<compile_context>
chip_gen: v5e
topology: v5e:2x2
jax: 0.10.0
libtpu: 0.0.40
codegen_flags: <defaults>
</compile_context>

<pallas_src>
import functools

import numpy as np
import jax
import jax.numpy as jnp
from jax.experimental import pallas as pl
from jax.experimental.pallas import tpu as pltpu

# ----------------------------- hyper-params ---------------------------------
HP = dict(
    vocab=64, max_seq=256,
    H=32, nh=2, dk=16, dv=16,
    enc_layers=2, dec_layers=2,
    fft_filter=32, fft_kernel=(9, 1),
    vp_filter=32, vp_kernel=3,
    n_bins=16,
    x_vec_size=16, n_mel=16,
    postnet_dim=32, postnet_kernel=5, postnet_layers=5,
)

LN_EPS = 1e-5


# ----------------------------- in-kernel helpers ------------------------------
def _layernorm(x, g, b, eps=LN_EPS):
    mu = jnp.mean(x, axis=-1, keepdims=True)
    var = jnp.mean(jnp.square(x - mu), axis=-1, keepdims=True)
    return (x - mu) * jax.lax.rsqrt(var + eps) * g + b


def _conv_shift(x2, s_list, w_list, bias):
    # 'same' 1-D conv over time on a flattened [B*T, Cin] slab, computed as a
    # sum of K shifted bf16 matmuls.  s_list[k] is a constant 0/1 [BT, BT]
    # shift matrix (zero rows emulate the zero padding and keep batches apart).
    # s_list=None means K == 1 (pointwise conv).
    xb = x2.astype(jnp.bfloat16)
    acc = None
    for k, w in enumerate(w_list):
        if s_list is None:
            shifted = xb
        else:
            shifted = jnp.dot(s_list[k], xb,
                              preferred_element_type=jnp.float32
                              ).astype(jnp.bfloat16)
        yk = jnp.dot(shifted, w, preferred_element_type=jnp.float32)
        acc = yk if acc is None else acc + yk
    return acc + bias


# ----------------------------- Pallas kernels --------------------------------
def _fft_stack_kernel(x_ref, keep_ref, bias_ref, s1_ref,
                      wqkv_ref, bqkv_ref, wfc_ref, bfc_ref, ln1g_ref, ln1b_ref,
                      wc1_ref, bc1_ref, wc2_ref, bc2_ref, ln2g_ref, ln2b_ref,
                      o_ref, carry_ref, qkv_scr, attn_scr,
                      *, B, T, nh, dk, dv, k1, k2, scale):
    """One FFT block per grid step; the activation stays resident in VMEM."""
    layer = pl.program_id(0)

    @pl.when(layer == 0)
    def _():
        carry_ref[...] = x_ref[...]

    x2 = carry_ref[...]                      # [B*T, H] f32
    keep = keep_ref[...]                     # [B*T, 1]  (0.0 on padding)

    # ---- fused Q|K|V projection: one MXU matmul, N = nh*(dk+dk+dv) ----
    qkv_scr[...] = jnp.dot(x2.astype(jnp.bfloat16), wqkv_ref[0],
                           preferred_element_type=jnp.float32) + bqkv_ref[0]

    # ---- multi-head self attention, unrolled over (batch, head) ----
    for b in range(B):
        o_b = None
        bias_b = bias_ref[b]                 # [1, T] additive key mask
        for h in range(nh):
            q = qkv_scr[b * T:(b + 1) * T, h * dk:(h + 1) * dk]
            k = qkv_scr[b * T:(b + 1) * T, nh * dk + h * dk: nh * dk + (h + 1) * dk]
            v = qkv_scr[b * T:(b + 1) * T, 2 * nh * dk + h * dv: 2 * nh * dk + (h + 1) * dv]
            s = jax.lax.dot_general(
                q.astype(jnp.bfloat16), k.astype(jnp.bfloat16),
                (((1,), (1,)), ((), ())),
                preferred_element_type=jnp.float32) * scale + bias_b
            m = jnp.max(s, axis=-1, keepdims=True)
            p = jnp.exp(s - m)
            p = p * pl.reciprocal(jnp.sum(p, axis=-1, keepdims=True), approx=True)
            ctx = jnp.dot(p.astype(jnp.bfloat16), v.astype(jnp.bfloat16),
                          preferred_element_type=jnp.float32)         # [T, dv]
            # fold the per-head slice of the output projection here instead of
            # concatenating heads: concat(heads) @ Wfc == sum_h head_h @ Wfc[h]
            contrib = jnp.dot(ctx.astype(jnp.bfloat16), wfc_ref[0, h],
                              preferred_element_type=jnp.float32)      # [T, H]
            o_b = contrib if o_b is None else o_b + contrib
        attn_scr[b * T:(b + 1) * T, :] = o_b

    o = attn_scr[...] + bfc_ref[0]
    y = _layernorm(o + x2, ln1g_ref[0], ln1b_ref[0]) * keep            # mask fill

    # ---- position-wise FFN: conv1d(k1)+ReLU -> conv1d(k2); residual + LN ----
    s1 = [s1_ref[k] for k in range(k1)]
    h1 = jnp.maximum(_conv_shift(y, s1, [wc1_ref[0, k] for k in range(k1)],
                                 bc1_ref[0]), 0.0)
    h2 = _conv_shift(h1, None, [wc2_ref[0, k] for k in range(k2)], bc2_ref[0])
    z = _layernorm(h2 + y, ln2g_ref[0], ln2b_ref[0]) * keep            # mask fill

    carry_ref[...] = z
    o_ref[...] = z


def _va_kernel(enc2_ref, keep_ref, s_ref, expand_ref, xvec_ref, pt_ref, et_ref,
               pbins_ref, ebins_ref, pemb_ref, eemb_ref,
               xvp_w1, xvp_b1, xvp_w2, xvp_b2,
               adv_w1, adv_b1, adv_w2, adv_b2,
               wc1_ref, bc1_ref, ln1g_ref, ln1b_ref, wc2_ref, bc2_ref,
               ln2g_ref, ln2b_ref, wout_ref, bout_ref,
               pxv_ref, logd_ref, ppred_ref, epred_ref, encout_ref, *, K):
    """Fused variance-adaptor branch:
       adversarial head + x_vec proj/broadcast + 3 variance predictors +
       pitch/energy bucketize + embedding add, all in one kernel."""
    enc2 = enc2_ref[...]                     # [B*T, H]
    keep = keep_ref[...]                     # [B*T, 1]
    s_list = [s_ref[k] for k in range(K)]

    # ---- adversarial predictor on raw encoder output (grad-reversal == id fwd)
    h = jnp.maximum(jnp.dot(enc2.astype(jnp.bfloat16), adv_w1[...],
                            preferred_element_type=jnp.float32) + adv_b1[...], 0.0)
    pxv_ref[...] = jnp.dot(h.astype(jnp.bfloat16), adv_w2[...],
                           preferred_element_type=jnp.float32) + adv_b2[...]

    # ---- x_vec projection, broadcast over time with a tiny 0/1 expand matmul
    xv = jnp.maximum(jnp.dot(xvec_ref[...].astype(jnp.bfloat16), xvp_w1[...],
                             preferred_element_type=jnp.float32) + xvp_b1[...], 0.0)
    xv = jnp.dot(xv.astype(jnp.bfloat16), xvp_w2[...],
                 preferred_element_type=jnp.float32) + xvp_b2[...]     # [B, H]
    enc = enc2 + jnp.dot(expand_ref[...], xv,
                         preferred_element_type=jnp.float32)           # [B*T, H]

    def vpred(x2, p):
        # conv+ReLU+LN -> conv+ReLU+LN -> linear -> mask (predictor index p)
        y = jnp.maximum(_conv_shift(x2, s_list, [wc1_ref[p, k] for k in range(K)],
                                    bc1_ref[p]), 0.0)
        y = _layernorm(y, ln1g_ref[p], ln1b_ref[p])
        y = jnp.maximum(_conv_shift(y, s_list, [wc2_ref[p, k] for k in range(K)],
                                    bc2_ref[p]), 0.0)
        y = _layernorm(y, ln2g_ref[p], ln2b_ref[p])
        val = jnp.dot(y.astype(jnp.bfloat16), wout_ref[p],
                      preferred_element_type=jnp.float32) + bout_ref[p]
        return val * keep

    def bucket_embed(tcol, bins_row, emb_ref):
        # jnp.digitize(x, bins) == count(bins <= x); then one-hot @ table.
        nb = emb_ref.shape[0]
        idx = jnp.sum((tcol >= bins_row).astype(jnp.int32), axis=-1, keepdims=True)
        iota = jax.lax.broadcasted_iota(jnp.int32, (1, nb), 1)
        onehot = (idx == iota).astype(jnp.float32)                     # [B*T, nb]
        return jnp.dot(onehot, emb_ref[...], preferred_element_type=jnp.float32)

    logd_ref[...] = vpred(enc, 0)                                      # duration
    ppred_ref[...] = vpred(enc, 1)                                     # pitch
    enc = enc + bucket_embed(pt_ref[...], pbins_ref[...], pemb_ref)
    epred_ref[...] = vpred(enc, 2)                                     # energy
    enc = enc + bucket_embed(et_ref[...], ebins_ref[...], eemb_ref)
    encout_ref[...] = enc


def _mel_postnet_kernel(*refs, K, n_layers):
    """mel_linear + full PostNet (tanh convs, BN folded) + residual, one kernel."""
    dec_ref, s_ref, wmel_ref, bmel_ref = refs[:4]
    conv_refs = refs[4:4 + 2 * n_layers]
    mel_ref, post_ref = refs[4 + 2 * n_layers:]
    s_list = [s_ref[k] for k in range(K)]

    mel = jnp.dot(dec_ref[...].astype(jnp.bfloat16), wmel_ref[...],
                  preferred_element_type=jnp.float32) + bmel_ref[...]
    mel_ref[...] = mel

    y = mel
    for i in range(n_layers):
        w_ref, b_ref = conv_refs[2 * i], conv_refs[2 * i + 1]
        y = _conv_shift(y, s_list, [w_ref[k] for k in range(K)], b_ref[...])
        if i < n_layers - 1:
            y = jnp.tanh(y)
    post_ref[...] = y + mel


# ----------------------------- pallas_call wrappers ---------------------------
def _whole_spec(a):
    nd = a.ndim
    return pl.BlockSpec(tuple(a.shape), lambda i, _n=nd: (0,) * _n)


def fft_stack_forward(sp, x2, keep_col, attn_bias, s1, T):
    """Run a stack of FFT blocks (encoder or decoder) as ONE pallas_call."""
    BT, H = x2.shape
    B = attn_bias.shape[0]
    L = sp["wqkv"].shape[0]
    nh, dk, dv = HP["nh"], HP["dk"], HP["dv"]
    k1 = sp["wc1"].shape[1]
    k2 = sp["wc2"].shape[1]
    scale = 1.0 / float(np.sqrt(dk))

    fixed = [x2, keep_col, attn_bias, s1]
    names = ["wqkv", "bqkv", "wfc", "bfc", "ln1g", "ln1b",
             "wc1", "bc1", "wc2", "bc2", "ln2g", "ln2b"]
    weights = [sp[n] for n in names]

    def per_layer(a):
        nd = a.ndim
        return pl.BlockSpec((1,) + tuple(a.shape[1:]),
                            lambda l, _n=nd: (l,) + (0,) * (_n - 1))

    kernel = functools.partial(_fft_stack_kernel, B=B, T=T, nh=nh, dk=dk, dv=dv,
                               k1=k1, k2=k2, scale=scale)
    return pl.pallas_call(
        kernel,
        out_shape=jax.ShapeDtypeStruct((BT, H), jnp.float32),
        grid=(L,),
        in_specs=[_whole_spec(a) for a in fixed] + [per_layer(w) for w in weights],
        out_specs=pl.BlockSpec((BT, H), lambda l: (0, 0)),
        scratch_shapes=[pltpu.VMEM((BT, H), jnp.float32),                 # carry
                        pltpu.VMEM((BT, nh * (2 * HP["dk"] + dv)), jnp.float32),
                        pltpu.VMEM((BT, H), jnp.float32)],                # attn out
        compiler_params=pltpu.CompilerParams(dimension_semantics=("arbitrary",)),
    )(*fixed, *weights)


def variance_adaptor_call(params, enc2, keep_col, s_vp, expand_mat, x_vec,
                          p_t_col, e_t_col):
    """Fused adversarial head + x_vec proj + 3 variance predictors + embeds."""
    va, xvp, adv = params["va"], params["x_vec_proj"], params["adv"]
    BT, H = enc2.shape
    xdim = adv["w2"].shape[1]
    K = va["wc1"].shape[1]

    args = [enc2, keep_col, s_vp, expand_mat, x_vec, p_t_col, e_t_col,
            va["pitch_bins"], va["energy_bins"], va["pitch_emb"], va["energy_emb"],
            xvp["w1"], xvp["b1"], xvp["w2"], xvp["b2"],
            adv["w1"], adv["b1"], adv["w2"], adv["b2"],
            va["wc1"], va["bc1"], va["ln1g"], va["ln1b"],
            va["wc2"], va["bc2"], va["ln2g"], va["ln2b"],
            va["wout"], va["bout"]]

    out_shape = (jax.ShapeDtypeStruct((BT, xdim), jnp.float32),   # p_x_vec
                 jax.ShapeDtypeStruct((BT, 1), jnp.float32),      # log duration
                 jax.ShapeDtypeStruct((BT, 1), jnp.float32),      # pitch pred
                 jax.ShapeDtypeStruct((BT, 1), jnp.float32),      # energy pred
                 jax.ShapeDtypeStruct((BT, H), jnp.float32))      # adapted enc
    out_specs = (pl.BlockSpec((BT, xdim), lambda i: (0, 0)),
                 pl.BlockSpec((BT, 1), lambda i: (0, 0)),
                 pl.BlockSpec((BT, 1), lambda i: (0, 0)),
                 pl.BlockSpec((BT, 1), lambda i: (0, 0)),
                 pl.BlockSpec((BT, H), lambda i: (0, 0)))

    return pl.pallas_call(
        functools.partial(_va_kernel, K=K),
        out_shape=out_shape,
        grid=(1,),
        in_specs=[_whole_spec(a) for a in args],
        out_specs=out_specs,
    )(*args)


def mel_postnet(dec2, s_shift, mel_p, post_p):
    BT = dec2.shape[0]
    n_mel = mel_p["w"].shape[1]
    K = post_p[0]["w"].shape[0]
    args = [dec2, s_shift, mel_p["w"], mel_p["b"]]
    for lp in post_p:
        args += [lp["w"], lp["b"]]
    kernel = functools.partial(_mel_postnet_kernel, K=K, n_layers=len(post_p))
    return pl.pallas_call(
        kernel,
        out_shape=(jax.ShapeDtypeStruct((BT, n_mel), jnp.float32),
                   jax.ShapeDtypeStruct((BT, n_mel), jnp.float32)),
        grid=(1,),
        in_specs=[_whole_spec(a) for a in args],
        out_specs=(pl.BlockSpec((BT, n_mel), lambda i: (0, 0)),
                   pl.BlockSpec((BT, n_mel), lambda i: (0, 0))),
    )(*args)


# ----------------------------- model glue -------------------------------------
def get_mask_from_lengths(lengths, max_len):
    ids = jnp.arange(max_len)
    return ids[None, :] >= lengths[:, None]          # True == padding


def sinusoid_table(n_pos, d):
    pos = np.arange(n_pos)[:, None].astype(np.float64)
    i = np.arange(d)[None, :]
    angle = pos / np.power(10000.0, 2.0 * (i // 2) / d)
    tab = np.zeros((n_pos, d), np.float64)
    tab[:, 0::2] = np.sin(angle[:, 0::2])
    tab[:, 1::2] = np.cos(angle[:, 1::2])
    return jnp.asarray(tab, jnp.float32)


def shift_matrices(K, B, T):
    """Constant 0/1 matrices S_k so that (S_k @ x)[b*T+t] == x[b*T+t+k-pad],
    zero-padded at sequence edges (emulates Conv1d 'same' zero padding and
    keeps batches independent in the flattened [B*T, C] layout)."""
    pad = (K - 1) // 2
    BT = B * T
    t = np.arange(T)
    m = np.zeros((K, BT, BT), np.float32)
    for k in range(K):
        s = k - pad
        src = t + s
        ok = (src >= 0) & (src < T)
        for b in range(B):
            m[k, b * T + t[ok], b * T + src[ok]] = 1.0
    return jnp.asarray(m, jnp.bfloat16)


def length_regulator(x, durations, max_mel_len):
    # x: [B, T, H]; durations: [B, T] int
    cum = jnp.cumsum(durations, axis=1)
    mel_pos = jnp.arange(max_mel_len)
    idx = jnp.sum(mel_pos[None, :, None] >= cum[:, None, :], axis=-1)
    idx = jnp.clip(idx, 0, x.shape[1] - 1)
    out = jnp.take_along_axis(x, idx[..., None], axis=1)
    mel_len = jnp.sum(durations, axis=1)
    return out, mel_len


def fastspeech2_forward(params, src_seq, src_len, mel_len, d_target, p_target,
                        e_target, max_src_len, max_mel_len, x_vec):
    B, T = src_seq.shape
    H = HP["H"]
    Tm = max_mel_len

    src_mask = get_mask_from_lengths(src_len, max_src_len)       # True == pad
    mel_mask = get_mask_from_lengths(mel_len, Tm)

    src_keep = (~src_mask).astype(jnp.float32).reshape(B * T, 1)
    mel_keep = (~mel_mask).astype(jnp.float32).reshape(B * Tm, 1)
    src_bias = (src_mask.astype(jnp.float32) * -1e9)[:, None, :]   # [B,1,T]
    mel_bias = (mel_mask.astype(jnp.float32) * -1e9)[:, None, :]

    k_fft = HP["fft_kernel"][0]
    s_fft_src = shift_matrices(k_fft, B, T)
    s_fft_mel = shift_matrices(k_fft, B, Tm)
    s_vp = shift_matrices(HP["vp_kernel"], B, T)
    s_post = shift_matrices(HP["postnet_kernel"], B, Tm)
    expand_src = jnp.asarray(np.repeat(np.eye(B, dtype=np.float32), T, axis=0))

    # ---------------- encoder (one fused pallas_call for all layers) ----------
    enc_in = params["encoder"]["emb"][src_seq] + params["encoder"]["pos"][:T][None]
    enc2 = fft_stack_forward(params["encoder"]["layers"], enc_in.reshape(B * T, H),
                             src_keep, src_bias, s_fft_src, T)

    p_bert = None          # use_gst=False, use_wst=False -> GST/WST branches skipped

    # ---------------- fused variance-adaptor branch (one pallas_call) ---------
    # TODO(synk): exact AdversarialPredictor head undefined in the reference;
    # gradient reversal is identity in forward, modeled as a per-token 2-layer MLP.
    (p_x_vec2, log_d2, p_pred2, e_pred2, enc_va2) = variance_adaptor_call(
        params, enc2, src_keep, s_vp, expand_src, x_vec,
        p_target.reshape(B * T, 1).astype(jnp.float32),
        e_target.reshape(B * T, 1).astype(jnp.float32))

    p_x_vec = p_x_vec2.reshape(B, T, -1)
    log_d = log_d2.reshape(B, T)
    d_rounded = jnp.maximum(jnp.round(jnp.exp(log_d) - 1.0), 0.0)
    p_pred = p_pred2.reshape(B, T)
    e_pred = e_pred2.reshape(B, T)

    va_out, _ = length_regulator(enc_va2.reshape(B, T, H), d_target, Tm)

    # ---------------- decoder (one fused pallas_call for all layers) ----------
    dec_in = va_out + params["decoder"]["pos"][:Tm][None]
    dec2 = fft_stack_forward(params["decoder"]["layers"], dec_in.reshape(B * Tm, H),
                             mel_keep, mel_bias, s_fft_mel, Tm)

    # ---------------- mel head + postnet (fused) ----------------
    mel2, post2 = mel_postnet(dec2, s_post, params["mel_linear"], params["postnet"])
    mel = mel2.reshape(B, Tm, -1)
    mel_post = post2.reshape(B, Tm, -1)

    return (mel, mel_post, log_d, d_rounded, p_pred, e_pred,
            src_mask, mel_mask, mel_len, p_x_vec, p_bert)


# ----------------------------- parameter init --------------------------------
def init_params(key):
    keys = iter(jax.random.split(key, 512))

    def nk():
        return next(keys)

    H, nh, dk, dv = HP["H"], HP["nh"], HP["dk"], HP["dv"]
    filt, (kc1, kc2) = HP["fft_filter"], HP["fft_kernel"]

    def dense_w(din, dout, scale=0.05):
        return (scale * jax.random.normal(nk(), (din, dout), jnp.float32)
                ).astype(jnp.bfloat16)

    def conv_w(cin, cout, k, scale=0.05):
        # torch Conv1d layout [Cout, Cin, K] -> [K, Cin, Cout] (bf16 for the MXU)
        w = scale * jax.random.normal(nk(), (cout, cin, k), jnp.float32)
        return jnp.transpose(w, (2, 1, 0)).astype(jnp.bfloat16)

    def bias(n):
        return jnp.zeros((1, n), jnp.float32)

    def gamma(n):
        return jnp.ones((1, n), jnp.float32)

    def emb_t(n, d, scale=0.1):
        return scale * jax.random.normal(nk(), (n, d), jnp.float32)

    def fft_layer():
        wq, wk, wv = dense_w(H, nh * dk), dense_w(H, nh * dk), dense_w(H, nh * dv)
        return dict(
            wqkv=jnp.concatenate([wq, wk, wv], axis=1),          # fused QKV weight
            bqkv=jnp.zeros((1, nh * (2 * dk + dv)), jnp.float32),
            wfc=dense_w(nh * dv, H).reshape(nh, dv, H),          # per-head slices
            bfc=bias(H), ln1g=gamma(H), ln1b=bias(H),
            wc1=conv_w(H, filt, kc1), bc1=bias(filt),
            wc2=conv_w(filt, H, kc2), bc2=bias(H),
            ln2g=gamma(H), ln2b=bias(H))

    def stack(layers):
        return jax.tree_util.tree_map(lambda *xs: jnp.stack(xs, 0), *layers)

    def vpred():
        f, kk = HP["vp_filter"], HP["vp_kernel"]
        return dict(wc1=conv_w(H, f, kk), bc1=bias(f), ln1g=gamma(f), ln1b=bias(f),
                    wc2=conv_w(f, f, kk), bc2=bias(f), ln2g=gamma(f), ln2b=bias(f),
                    wout=dense_w(f, 1), bout=jnp.zeros((1, 1), jnp.float32))

    def mlp(din, dh, dout):
        return dict(w1=dense_w(din, dh), b1=bias(dh),
                    w2=dense_w(dh, dout), b2=bias(dout))

    word_emb = emb_t(HP["vocab"], H).at[0].set(0.0)              # padding_idx=0
    pos = sinusoid_table(HP["max_seq"], H)

    # variance predictors stacked along a leading axis: 0=duration,1=pitch,2=energy
    vp_stacked = stack([vpred() for _ in range(3)])
    va = dict(vp_stacked,
              pitch_emb=emb_t(HP["n_bins"], H), energy_emb=emb_t(HP["n_bins"], H),
              pitch_bins=jnp.linspace(0.0, 1.0, HP["n_bins"] - 1).reshape(1, -1),
              energy_bins=jnp.linspace(0.0, 1.0, HP["n_bins"] - 1).reshape(1, -1))

    bn_scale = float(1.0 / np.sqrt(1.0 + 1e-5))                  # fold eval BatchNorm
    post_dims = ([(HP["n_mel"], HP["postnet_dim"])]
                 + [(HP["postnet_dim"], HP["postnet_dim"])] * (HP["postnet_layers"] - 2)
                 + [(HP["postnet_dim"], HP["n_mel"])])
    postnet = [dict(w=conv_w(ci, co, HP["postnet_kernel"]) * bn_scale, b=bias(co))
               for ci, co in post_dims]

    return dict(
        encoder=dict(emb=word_emb, pos=pos,
                     layers=stack([fft_layer() for _ in range(HP["enc_layers"])])),
        x_vec_proj=mlp(HP["x_vec_size"], H, H),
        adv=mlp(H, H, HP["x_vec_size"]),
        va=va,
        decoder=dict(pos=pos,
                     layers=stack([fft_layer() for _ in range(HP["dec_layers"])])),
        mel_linear=dict(w=dense_w(H, HP["n_mel"]), b=bias(HP["n_mel"])),
        postnet=postnet,
    )


# ----------------------------- main -------------------------------------------
if __name__ == "__main__":
    B, T = 2, 8
    key = jax.random.PRNGKey(0)
    k1, k2, k3, k4, k5 = jax.random.split(key, 5)

    src_len = jnp.array([8, 6], jnp.int32)
    src_seq = jax.random.randint(k1, (B, T), 1, HP["vocab"])
    src_seq = jnp.where(jnp.arange(T)[None, :] < src_len[:, None], src_seq, 0)

    d_np = np.array(jax.random.randint(k2, (B, T), 1, 4))
    d_np = d_np * (np.arange(T)[None, :] < np.array(src_len)[:, None])
    mel_len_np = d_np.sum(axis=1)
    # pad the mel frame axis to a sublane multiple (caller-side padding choice)
    max_mel_len = int(np.ceil(mel_len_np.max() / 8.0)) * 8
    d_target = jnp.asarray(d_np, jnp.int32)
    mel_len = jnp.asarray(mel_len_np, jnp.int32)

    p_target = jax.random.uniform(k3, (B, T), minval=0.0, maxval=1.0)
    e_target = jax.random.uniform(k4, (B, T), minval=0.0, maxval=1.0)
    x_vec = jax.random.normal(k5, (B, HP["x_vec_size"]), jnp.float32)

    params = init_params(jax.random.PRNGKey(42))

    fwd = jax.jit(fastspeech2_forward, static_argnums=(7, 8))
    outs = fwd(params, src_seq, src_len, mel_len, d_target, p_target,
               e_target, T, max_mel_len, x_vec)
    jax.block_until_ready(outs)
    print("KERNEL_OK")
</pallas_src>

<mosaic_0001>
module attributes {stable_mosaic.version = 11 : i64} {
  func.func @_fft_stack_kernel(%arg0: i32, %arg1: memref<16x32xf32, #tpu.memory_space<vmem>>, %arg2: memref<16x1xf32, #tpu.memory_space<vmem>>, %arg3: memref<2x1x8xf32, #tpu.memory_space<vmem>>, %arg4: memref<9x16x16xbf16, #tpu.memory_space<vmem>>, %arg5: memref<1x32x96xbf16, #tpu.memory_space<vmem>>, %arg6: memref<1x1x96xf32, #tpu.memory_space<vmem>>, %arg7: memref<1x2x16x32xbf16, #tpu.memory_space<vmem>>, %arg8: memref<1x1x32xf32, #tpu.memory_space<vmem>>, %arg9: memref<1x1x32xf32, #tpu.memory_space<vmem>>, %arg10: memref<1x1x32xf32, #tpu.memory_space<vmem>>, %arg11: memref<1x9x32x32xbf16, #tpu.memory_space<vmem>>, %arg12: memref<1x1x32xf32, #tpu.memory_space<vmem>>, %arg13: memref<1x1x32x32xbf16, #tpu.memory_space<vmem>>, %arg14: memref<1x1x32xf32, #tpu.memory_space<vmem>>, %arg15: memref<1x1x32xf32, #tpu.memory_space<vmem>>, %arg16: memref<1x1x32xf32, #tpu.memory_space<vmem>>, %arg17: memref<16x32xf32, #tpu.memory_space<vmem>>, %arg18: memref<16x32xf32, #tpu.memory_space<vmem>>, %arg19: memref<16x96xf32, #tpu.memory_space<vmem>>, %arg20: memref<16x32xf32, #tpu.memory_space<vmem>>) attributes {dimension_semantics = [#tpu.dimension_semantics<arbitrary>], iteration_bounds = array<i64: 2>, scalar_prefetch = 0 : i64, scratch_operands = 3 : i64, tpu.core_type = #tpu.core_type<tc>, window_params = [{pipeline_mode = #tpu.pipeline_mode<synchronous>, transform_indices = @transform_0, window_bounds = array<i64: 16, 32>}, {pipeline_mode = #tpu.pipeline_mode<synchronous>, transform_indices = @transform_1, window_bounds = array<i64: 16, 1>}, {pipeline_mode = #tpu.pipeline_mode<synchronous>, transform_indices = @transform_2, window_bounds = array<i64: 2, 1, 8>}, {pipeline_mode = #tpu.pipeline_mode<synchronous>, transform_indices = @transform_3, window_bounds = array<i64: 9, 16, 16>}, {transform_indices = @transform_4, window_bounds = array<i64: 1, 32, 96>}, {transform_indices = @transform_5, window_bounds = array<i64: 1, 1, 96>}, {transform_indices = @transform_6, window_bounds = array<i64: 1, 2, 16, 32>}, {transform_indices = @transform_7, window_bounds = array<i64: 1, 1, 32>}, {transform_indices = @transform_8, window_bounds = array<i64: 1, 1, 32>}, {transform_indices = @transform_9, window_bounds = array<i64: 1, 1, 32>}, {transform_indices = @transform_10, window_bounds = array<i64: 1, 9, 32, 32>}, {transform_indices = @transform_11, window_bounds = array<i64: 1, 1, 32>}, {transform_indices = @transform_12, window_bounds = array<i64: 1, 1, 32, 32>}, {transform_indices = @transform_13, window_bounds = array<i64: 1, 1, 32>}, {transform_indices = @transform_14, window_bounds = array<i64: 1, 1, 32>}, {transform_indices = @transform_15, window_bounds = array<i64: 1, 1, 32>}, {pipeline_mode = #tpu.pipeline_mode<synchronous>, transform_indices = @transform_16, window_bounds = array<i64: 16, 32>}]} {
    %c0_i32 = arith.constant 0 : i32
    %0 = arith.cmpi eq, %arg0, %c0_i32 : i32
    %1 = arith.extui %0 : i1 to i32
    %c0_i32_0 = arith.constant 0 : i32
    %2 = arith.cmpi ne, %1, %c0_i32_0 : i32
    scf.if %2 {
      %c0_197 = arith.constant 0 : index
      %c0_198 = arith.constant 0 : index
      %281 = vector.load %arg1[%c0_197, %c0_198] : memref<16x32xf32, #tpu.memory_space<vmem>>, vector<16x32xf32>
      %c0_199 = arith.constant 0 : index
      %c0_200 = arith.constant 0 : index
      %282 = vector.load %arg18[%c0_199, %c0_200] : memref<16x32xf32, #tpu.memory_space<vmem>>, vector<16x32xf32>
      tpu.vector_store %arg18[%c0_199, %c0_200], %281 {strides = array<i32>} : memref<16x32xf32, #tpu.memory_space<vmem>>, vector<16x32xf32>,
    } else {
    }
    %c0 = arith.constant 0 : index
    %c0_1 = arith.constant 0 : index
    %3 = vector.load %arg18[%c0, %c0_1] : memref<16x32xf32, #tpu.memory_space<vmem>>, vector<16x32xf32>
    %c0_2 = arith.constant 0 : index
    %c0_3 = arith.constant 0 : index
    %4 = vector.load %arg2[%c0_2, %c0_3] : memref<16x1xf32, #tpu.memory_space<vmem>>, vector<16x1xf32>
    %5 = arith.truncf %3 : vector<16x32xf32> to vector<16x32xbf16>
    %c0_4 = arith.constant 0 : index
    %c0_5 = arith.constant 0 : index
    %c0_6 = arith.constant 0 : index
    %6 = vector.load %arg5[%c0_4, %c0_5, %c0_6] : memref<1x32x96xbf16, #tpu.memory_space<vmem>>, vector<1x32x96xbf16>
    %7 = vector.shape_cast %6 : vector<1x32x96xbf16> to vector<32x96xbf16>
    %cst = arith.constant dense<0.000000e+00> : vector<16x96xf32>
    %8 = tpu.matmul %5, %7, %cst {dimension_numbers = #tpu.dot_dimension_numbers<[1], [0], [0], [1], [0, 0, 1, 1], [], []>} : vector<16x32xbf16>, vector<32x96xbf16>, vector<16x96xf32> -> vector<16x96xf32>
    %c0_7 = arith.constant 0 : index
    %c0_8 = arith.constant 0 : index
    %c0_9 = arith.constant 0 : index
    %9 = vector.load %arg6[%c0_7, %c0_8, %c0_9] : memref<1x1x96xf32, #tpu.memory_space<vmem>>, vector<1x1x96xf32>
    %10 = vector.shape_cast %9 : vector<1x1x96xf32> to vector<1x96xf32>
    %11 = vector.broadcast %10 : vector<1x96xf32> to vector<16x96xf32>
    %12 = arith.addf %8, %11 : vector<16x96xf32>
    %c0_10 = arith.constant 0 : index
    %c0_11 = arith.constant 0 : index
    %13 = vector.load %arg19[%c0_10, %c0_11] : memref<16x96xf32, #tpu.memory_space<vmem>>, vector<16x96xf32>
    tpu.vector_store %arg19[%c0_10, %c0_11], %12 {strides = array<i32>} : memref<16x96xf32, #tpu.memory_space<vmem>>, vector<16x96xf32>,
    %c0_12 = arith.constant 0 : index
    %c0_13 = arith.constant 0 : index
    %c0_14 = arith.constant 0 : index
    %14 = vector.load %arg3[%c0_12, %c0_13, %c0_14] : memref<2x1x8xf32, #tpu.memory_space<vmem>>, vector<1x1x8xf32>
    %15 = vector.shape_cast %14 : vector<1x1x8xf32> to vector<1x8xf32>
    %c0_15 = arith.constant 0 : index
    %c0_16 = arith.constant 0 : index
    %16 = vector.load %arg19[%c0_15, %c0_16] : memref<16x96xf32, #tpu.memory_space<vmem>>, vector<8x16xf32>
    %c0_17 = arith.constant 0 : index
    %c32 = arith.constant 32 : index
    %17 = vector.load %arg19[%c0_17, %c32] : memref<16x96xf32, #tpu.memory_space<vmem>>, vector<8x16xf32>
    %c0_18 = arith.constant 0 : index
    %c64 = arith.constant 64 : index
    %18 = vector.load %arg19[%c0_18, %c64] : memref<16x96xf32, #tpu.memory_space<vmem>>, vector<8x16xf32>
    %19 = arith.truncf %16 : vector<8x16xf32> to vector<8x16xbf16>
    %20 = arith.truncf %17 : vector<8x16xf32> to vector<8x16xbf16>
    %cst_19 = arith.constant dense<0.000000e+00> : vector<8x8xf32>
    %21 = tpu.matmul %19, %20, %cst_19 {dimension_numbers = #tpu.dot_dimension_numbers<[1], [1], [0], [0], [0, 0, 1, 0], [], []>} : vector<8x16xbf16>, vector<8x16xbf16>, vector<8x8xf32> -> vector<8x8xf32>
    %cst_20 = arith.constant 2.500000e-01 : f32
    %22 = vector.broadcast %cst_20 : f32 to vector<8x8xf32>
    %23 = arith.mulf %21, %22 : vector<8x8xf32>
    %24 = vector.broadcast %15 : vector<1x8xf32> to vector<8x8xf32>
    %25 = arith.addf %23, %24 : vector<8x8xf32>
    %cst_21 = arith.constant dense<0xFF800000> : vector<8xf32>
    %26 = vector.multi_reduction <maximumf>, %25, %cst_21 [1] : vector<8x8xf32> to vector<8xf32>
    %27 = vector.shape_cast %26 : vector<8xf32> to vector<8x1xf32>
    %28 = vector.broadcast %27 : vector<8x1xf32> to vector<8x8xf32>
    %29 = arith.subf %25, %28 : vector<8x8xf32>
    %30 = math.exp %29 : vector<8x8xf32>
    %cst_22 = arith.constant dense<0.000000e+00> : vector<8xf32>
    %31 = vector.multi_reduction <add>, %30, %cst_22 [1] : vector<8x8xf32> to vector<8xf32>
    %32 = vector.shape_cast %31 : vector<8xf32> to vector<8x1xf32>
    %33 = tpu.reciprocal %32 {approx = true} : vector<8x1xf32> -> vector<8x1xf32>
    %34 = vector.broadcast %33 : vector<8x1xf32> to vector<8x8xf32>
    %35 = arith.mulf %30, %34 : vector<8x8xf32>
    %36 = arith.truncf %35 : vector<8x8xf32> to vector<8x8xbf16>
    %37 = arith.truncf %18 : vector<8x16xf32> to vector<8x16xbf16>
    %cst_23 = arith.constant dense<0.000000e+00> : vector<8x16xf32>
    %38 = tpu.matmul %36, %37, %cst_23 {dimension_numbers = #tpu.dot_dimension_numbers<[1], [0], [0], [1], [0, 0, 1, 1], [], []>} : vector<8x8xbf16>, vector<8x16xbf16>, vector<8x16xf32> -> vector<8x16xf32>
    %39 = arith.truncf %38 : vector<8x16xf32> to vector<8x16xbf16>
    %c0_24 = arith.constant 0 : index
    %c0_25 = arith.constant 0 : index
    %c0_26 = arith.constant 0 : index
    %c0_27 = arith.constant 0 : index
    %40 = vector.load %arg7[%c0_24, %c0_25, %c0_26, %c0_27] : memref<1x2x16x32xbf16, #tpu.memory_space<vmem>>, vector<1x1x16x32xbf16>
    %41 = vector.shape_cast %40 : vector<1x1x16x32xbf16> to vector<16x32xbf16>
    %cst_28 = arith.constant dense<0.000000e+00> : vector<8x32xf32>
    %42 = tpu.matmul %39, %41, %cst_28 {dimension_numbers = #tpu.dot_dimension_numbers<[1], [0], [0], [1], [0, 0, 1, 1], [], []>} : vector<8x16xbf16>, vector<16x32xbf16>, vector<8x32xf32> -> vector<8x32xf32>
    %c0_29 = arith.constant 0 : index
    %c16 = arith.constant 16 : index
    %43 = vector.load %arg19[%c0_29, %c16] : memref<16x96xf32, #tpu.memory_space<vmem>>, vector<8x16xf32>
    %c0_30 = arith.constant 0 : index
    %c48 = arith.constant 48 : index
    %44 = vector.load %arg19[%c0_30, %c48] : memref<16x96xf32, #tpu.memory_space<vmem>>, vector<8x16xf32>
    %c0_31 = arith.constant 0 : index
    %c80 = arith.constant 80 : index
    %45 = vector.load %arg19[%c0_31, %c80] : memref<16x96xf32, #tpu.memory_space<vmem>>, vector<8x16xf32>
    %46 = arith.truncf %43 : vector<8x16xf32> to vector<8x16xbf16>
    %47 = arith.truncf %44 : vector<8x16xf32> to vector<8x16xbf16>
    %cst_32 = arith.constant dense<0.000000e+00> : vector<8x8xf32>
    %48 = tpu.matmul %46, %47, %cst_32 {dimension_numbers = #tpu.dot_dimension_numbers<[1], [1], [0], [0], [0, 0, 1, 0], [], []>} : vector<8x16xbf16>, vector<8x16xbf16>, vector<8x8xf32> -> vector<8x8xf32>
    %cst_33 = arith.constant 2.500000e-01 : f32
    %49 = vector.broadcast %cst_33 : f32 to vector<8x8xf32>
    %50 = arith.mulf %48, %49 : vector<8x8xf32>
    %51 = vector.broadcast %15 : vector<1x8xf32> to vector<8x8xf32>
    %52 = arith.addf %50, %51 : vector<8x8xf32>
    %cst_34 = arith.constant dense<0xFF800000> : vector<8xf32>
    %53 = vector.multi_reduction <maximumf>, %52, %cst_34 [1] : vector<8x8xf32> to vector<8xf32>
    %54 = vector.shape_cast %53 : vector<8xf32> to vector<8x1xf32>
    %55 = vector.broadcast %54 : vector<8x1xf32> to vector<8x8xf32>
    %56 = arith.subf %52, %55 : vector<8x8xf32>
    %57 = math.exp %56 : vector<8x8xf32>
    %cst_35 = arith.constant dense<0.000000e+00> : vector<8xf32>
    %58 = vector.multi_reduction <add>, %57, %cst_35 [1] : vector<8x8xf32> to vector<8xf32>
    %59 = vector.shape_cast %58 : vector<8xf32> to vector<8x1xf32>
    %60 = tpu.reciprocal %59 {approx = true} : vector<8x1xf32> -> vector<8x1xf32>
    %61 = vector.broadcast %60 : vector<8x1xf32> to vector<8x8xf32>
    %62 = arith.mulf %57, %61 : vector<8x8xf32>
    %63 = arith.truncf %62 : vector<8x8xf32> to vector<8x8xbf16>
    %64 = arith.truncf %45 : vector<8x16xf32> to vector<8x16xbf16>
    %cst_36 = arith.constant dense<0.000000e+00> : vector<8x16xf32>
    %65 = tpu.matmul %63, %64, %cst_36 {dimension_numbers = #tpu.dot_dimension_numbers<[1], [0], [0], [1], [0, 0, 1, 1], [], []>} : vector<8x8xbf16>, vector<8x16xbf16>, vector<8x16xf32> -> vector<8x16xf32>
    %66 = arith.truncf %65 : vector<8x16xf32> to vector<8x16xbf16>
    %c0_37 = arith.constant 0 : index
    %c1 = arith.constant 1 : index
    %c0_38 = arith.constant 0 : index
    %c0_39 = arith.constant 0 : index
    %67 = vector.load %arg7[%c0_37, %c1, %c0_38, %c0_39] : memref<1x2x16x32xbf16, #tpu.memory_space<vmem>>, vector<1x1x16x32xbf16>
    %68 = vector.shape_cast %67 : vector<1x1x16x32xbf16> to vector<16x32xbf16>
    %cst_40 = arith.constant dense<0.000000e+00> : vector<8x32xf32>
    %69 = tpu.matmul %66, %68, %cst_40 {dimension_numbers = #tpu.dot_dimension_numbers<[1], [0], [0], [1], [0, 0, 1, 1], [], []>} : vector<8x16xbf16>, vector<16x32xbf16>, vector<8x32xf32> -> vector<8x32xf32>
    %70 = arith.addf %42, %69 : vector<8x32xf32>
    %c0_41 = arith.constant 0 : index
    %c0_42 = arith.constant 0 : index
    %71 = vector.load %arg20[%c0_41, %c0_42] : memref<16x32xf32, #tpu.memory_space<vmem>>, vector<8x32xf32>
    tpu.vector_store %arg20[%c0_41, %c0_42], %70 {strides = array<i32>} : memref<16x32xf32, #tpu.memory_space<vmem>>, vector<8x32xf32>,
    %c1_43 = arith.constant 1 : index
    %c0_44 = arith.constant 0 : index
    %c0_45 = arith.constant 0 : index
    %72 = vector.load %arg3[%c1_43, %c0_44, %c0_45] : memref<2x1x8xf32, #tpu.memory_space<vmem>>, vector<1x1x8xf32>
    %73 = vector.shape_cast %72 : vector<1x1x8xf32> to vector<1x8xf32>
    %c8 = arith.constant 8 : index
    %c0_46 = arith.constant 0 : index
    %74 = vector.load %arg19[%c8, %c0_46] : memref<16x96xf32, #tpu.memory_space<vmem>>, vector<8x16xf32>
    %c8_47 = arith.constant 8 : index
    %c32_48 = arith.constant 32 : index
    %75 = vector.load %arg19[%c8_47, %c32_48] : memref<16x96xf32, #tpu.memory_space<vmem>>, vector<8x16xf32>
    %c8_49 = arith.constant 8 : index
    %c64_50 = arith.constant 64 : index
    %76 = vector.load %arg19[%c8_49, %c64_50] : memref<16x96xf32, #tpu.memory_space<vmem>>, vector<8x16xf32>
    %77 = arith.truncf %74 : vector<8x16xf32> to vector<8x16xbf16>
    %78 = arith.truncf %75 : vector<8x16xf32> to vector<8x16xbf16>
    %cst_51 = arith.constant dense<0.000000e+00> : vector<8x8xf32>
    %79 = tpu.matmul %77, %78, %cst_51 {dimension_numbers = #tpu.dot_dimension_numbers<[1], [1], [0], [0], [0, 0, 1, 0], [], []>} : vector<8x16xbf16>, vector<8x16xbf16>, vector<8x8xf32> -> vector<8x8xf32>
    %cst_52 = arith.constant 2.500000e-01 : f32
    %80 = vector.broadcast %cst_52 : f32 to vector<8x8xf32>
    %81 = arith.mulf %79, %80 : vector<8x8xf32>
    %82 = vector.broadcast %73 : vector<1x8xf32> to vector<8x8xf32>
    %83 = arith.addf %81, %82 : vector<8x8xf32>
    %cst_53 = arith.constant dense<0xFF800000> : vector<8xf32>
    %84 = vector.multi_reduction <maximumf>, %83, %cst_53 [1] : vector<8x8xf32> to vector<8xf32>
    %85 = vector.shape_cast %84 : vector<8xf32> to vector<8x1xf32>
    %86 = vector.broadcast %85 : vector<8x1xf32> to vector<8x8xf32>
    %87 = arith.subf %83, %86 : vector<8x8xf32>
    %88 = math.exp %87 : vector<8x8xf32>
    %cst_54 = arith.constant dense<0.000000e+00> : vector<8xf32>
    %89 = vector.multi_reduction <add>, %88, %cst_54 [1] : vector<8x8xf32> to vector<8xf32>
    %90 = vector.shape_cast %89 : vector<8xf32> to vector<8x1xf32>
    %91 = tpu.reciprocal %90 {approx = true} : vector<8x1xf32> -> vector<8x1xf32>
    %92 = vector.broadcast %91 : vector<8x1xf32> to vector<8x8xf32>
    %93 = arith.mulf %88, %92 : vector<8x8xf32>
    %94 = arith.truncf %93 : vector<8x8xf32> to vector<8x8xbf16>
    %95 = arith.truncf %76 : vector<8x16xf32> to vector<8x16xbf16>
    %cst_55 = arith.constant dense<0.000000e+00> : vector<8x16xf32>
    %96 = tpu.matmul %94, %95, %cst_55 {dimension_numbers = #tpu.dot_dimension_numbers<[1], [0], [0], [1], [0, 0, 1, 1], [], []>} : vector<8x8xbf16>, vector<8x16xbf16>, vector<8x16xf32> -> vector<8x16xf32>
    %97 = arith.truncf %96 : vector<8x16xf32> to vector<8x16xbf16>
    %c0_56 = arith.constant 0 : index
    %c0_57 = arith.constant 0 : index
    %c0_58 = arith.constant 0 : index
    %c0_59 = arith.constant 0 : index
    %98 = vector.load %arg7[%c0_56, %c0_57, %c0_58, %c0_59] : memref<1x2x16x32xbf16, #tpu.memory_space<vmem>>, vector<1x1x16x32xbf16>
    %99 = vector.shape_cast %98 : vector<1x1x16x32xbf16> to vector<16x32xbf16>
    %cst_60 = arith.constant dense<0.000000e+00> : vector<8x32xf32>
    %100 = tpu.matmul %97, %99, %cst_60 {dimension_numbers = #tpu.dot_dimension_numbers<[1], [0], [0], [1], [0, 0, 1, 1], [], []>} : vector<8x16xbf16>, vector<16x32xbf16>, vector<8x32xf32> -> vector<8x32xf32>
    %c8_61 = arith.constant 8 : index
    %c16_62 = arith.constant 16 : index
    %101 = vector.load %arg19[%c8_61, %c16_62] : memref<16x96xf32, #tpu.memory_space<vmem>>, vector<8x16xf32>
    %c8_63 = arith.constant 8 : index
    %c48_64 = arith.constant 48 : index
    %102 = vector.load %arg19[%c8_63, %c48_64] : memref<16x96xf32, #tpu.memory_space<vmem>>, vector<8x16xf32>
    %c8_65 = arith.constant 8 : index
    %c80_66 = arith.constant 80 : index
    %103 = vector.load %arg19[%c8_65, %c80_66] : memref<16x96xf32, #tpu.memory_space<vmem>>, vector<8x16xf32>
    %104 = arith.truncf %101 : vector<8x16xf32> to vector<8x16xbf16>
    %105 = arith.truncf %102 : vector<8x16xf32> to vector<8x16xbf16>
    %cst_67 = arith.constant dense<0.000000e+00> : vector<8x8xf32>
    %106 = tpu.matmul %104, %105, %cst_67 {dimension_numbers = #tpu.dot_dimension_numbers<[1], [1], [0], [0], [0, 0, 1, 0], [], []>} : vector<8x16xbf16>, vector<8x16xbf16>, vector<8x8xf32> -> vector<8x8xf32>
    %cst_68 = arith.constant 2.500000e-01 : f32
    %107 = vector.broadcast %cst_68 : f32 to vector<8x8xf32>
    %108 = arith.mulf %106, %107 : vector<8x8xf32>
    %109 = vector.broadcast %73 : vector<1x8xf32> to vector<8x8xf32>
    %110 = arith.addf %108, %109 : vector<8x8xf32>
    %cst_69 = arith.constant dense<0xFF800000> : vector<8xf32>
    %111 = vector.multi_reduction <maximumf>, %110, %cst_69 [1] : vector<8x8xf32> to vector<8xf32>
    %112 = vector.shape_cast %111 : vector<8xf32> to vector<8x1xf32>
    %113 = vector.broadcast %112 : vector<8x1xf32> to vector<8x8xf32>
    %114 = arith.subf %110, %113 : vector<8x8xf32>
    %115 = math.exp %114 : vector<8x8xf32>
    %cst_70 = arith.constant dense<0.000000e+00> : vector<8xf32>
    %116 = vector.multi_reduction <add>, %115, %cst_70 [1] : vector<8x8xf32> to vector<8xf32>
    %117 = vector.shape_cast %116 : vector<8xf32> to vector<8x1xf32>
    %118 = tpu.reciprocal %117 {approx = true} : vector<8x1xf32> -> vector<8x1xf32>
    %119 = vector.broadcast %118 : vector<8x1xf32> to vector<8x8xf32>
    %120 = arith.mulf %115, %119 : vector<8x8xf32>
    %121 = arith.truncf %120 : vector<8x8xf32> to vector<8x8xbf16>
    %122 = arith.truncf %103 : vector<8x16xf32> to vector<8x16xbf16>
    %cst_71 = arith.constant dense<0.000000e+00> : vector<8x16xf32>
    %123 = tpu.matmul %121, %122, %cst_71 {dimension_numbers = #tpu.dot_dimension_numbers<[1], [0], [0], [1], [0, 0, 1, 1], [], []>} : vector<8x8xbf16>, vector<8x16xbf16>, vector<8x16xf32> -> vector<8x16xf32>
    %124 = arith.truncf %123 : vector<8x16xf32> to vector<8x16xbf16>
    %c0_72 = arith.constant 0 : index
    %c1_73 = arith.constant 1 : index
    %c0_74 = arith.constant 0 : index
    %c0_75 = arith.constant 0 : index
    %125 = vector.load %arg7[%c0_72, %c1_73, %c0_74, %c0_75] : memref<1x2x16x32xbf16, #tpu.memory_space<vmem>>, vector<1x1x16x32xbf16>
    %126 = vector.shape_cast %125 : vector<1x1x16x32xbf16> to vector<16x32xbf16>
    %cst_76 = arith.constant dense<0.000000e+00> : vector<8x32xf32>
    %127 = tpu.matmul %124, %126, %cst_76 {dimension_numbers = #tpu.dot_dimension_numbers<[1], [0], [0], [1], [0, 0, 1, 1], [], []>} : vector<8x16xbf16>, vector<16x32xbf16>, vector<8x32xf32> -> vector<8x32xf32>
    %128 = arith.addf %100, %127 : vector<8x32xf32>
    %c8_77 = arith.constant 8 : index
    %c0_78 = arith.constant 0 : index
    %129 = vector.load %arg20[%c8_77, %c0_78] : memref<16x32xf32, #tpu.memory_space<vmem>>, vector<8x32xf32>
    tpu.vector_store %arg20[%c8_77, %c0_78], %128 {strides = array<i32>} : memref<16x32xf32, #tpu.memory_space<vmem>>, vector<8x32xf32>,
    %c0_79 = arith.constant 0 : index
    %c0_80 = arith.constant 0 : index
    %130 = vector.load %arg20[%c0_79, %c0_80] : memref<16x32xf32, #tpu.memory_space<vmem>>, vector<16x32xf32>
    %c0_81 = arith.constant 0 : index
    %c0_82 = arith.constant 0 : index
    %c0_83 = arith.constant 0 : index
    %131 = vector.load %arg8[%c0_81, %c0_82, %c0_83] : memref<1x1x32xf32, #tpu.memory_space<vmem>>, vector<1x1x32xf32>
    %132 = vector.shape_cast %131 : vector<1x1x32xf32> to vector<1x32xf32>
    %133 = vector.broadcast %132 : vector<1x32xf32> to vector<16x32xf32>
    %134 = arith.addf %130, %133 : vector<16x32xf32>
    %135 = arith.addf %134, %3 : vector<16x32xf32>
    %c0_84 = arith.constant 0 : index
    %c0_85 = arith.constant 0 : index
    %c0_86 = arith.constant 0 : index
    %136 = vector.load %arg9[%c0_84, %c0_85, %c0_86] : memref<1x1x32xf32, #tpu.memory_space<vmem>>, vector<1x1x32xf32>
    %137 = vector.shape_cast %136 : vector<1x1x32xf32> to vector<1x32xf32>
    %c0_87 = arith.constant 0 : index
    %c0_88 = arith.constant 0 : index
    %c0_89 = arith.constant 0 : index
    %138 = vector.load %arg10[%c0_87, %c0_88, %c0_89] : memref<1x1x32xf32, #tpu.memory_space<vmem>>, vector<1x1x32xf32>
    %139 = vector.shape_cast %138 : vector<1x1x32xf32> to vector<1x32xf32>
    %cst_90 = arith.constant dense<0.000000e+00> : vector<16xf32>
    %140 = vector.multi_reduction <add>, %135, %cst_90 [1] : vector<16x32xf32> to vector<16xf32>
    %141 = vector.shape_cast %140 : vector<16xf32> to vector<16x1xf32>
    %cst_91 = arith.constant 3.200000e+01 : f32
    %142 = vector.broadcast %cst_91 : f32 to vector<16x1xf32>
    %143 = arith.divf %141, %142 : vector<16x1xf32>
    %144 = vector.broadcast %143 : vector<16x1xf32> to vector<16x32xf32>
    %145 = arith.subf %135, %144 : vector<16x32xf32>
    %146 = arith.mulf %145, %145 : vector<16x32xf32>
    %cst_92 = arith.constant dense<0.000000e+00> : vector<16xf32>
    %147 = vector.multi_reduction <add>, %146, %cst_92 [1] : vector<16x32xf32> to vector<16xf32>
    %148 = vector.shape_cast %147 : vector<16xf32> to vector<16x1xf32>
    %cst_93 = arith.constant 3.200000e+01 : f32
    %149 = vector.broadcast %cst_93 : f32 to vector<16x1xf32>
    %150 = arith.divf %148, %149 : vector<16x1xf32>
    %151 = vector.broadcast %143 : vector<16x1xf32> to vector<16x32xf32>
    %152 = arith.subf %135, %151 : vector<16x32xf32>
    %cst_94 = arith.constant 9.99999974E-6 : f32
    %153 = vector.broadcast %cst_94 : f32 to vector<16x1xf32>
    %154 = arith.addf %150, %153 : vector<16x1xf32>
    %155 = math.rsqrt %154 : vector<16x1xf32>
    %156 = vector.broadcast %155 : vector<16x1xf32> to vector<16x32xf32>
    %157 = arith.mulf %152, %156 : vector<16x32xf32>
    %158 = vector.broadcast %137 : vector<1x32xf32> to vector<16x32xf32>
    %159 = arith.mulf %157, %158 : vector<16x32xf32>
    %160 = vector.broadcast %139 : vector<1x32xf32> to vector<16x32xf32>
    %161 = arith.addf %159, %160 : vector<16x32xf32>
    %162 = vector.broadcast %4 : vector<16x1xf32> to vector<16x32xf32>
    %163 = arith.mulf %161, %162 : vector<16x32xf32>
    %c0_95 = arith.constant 0 : index
    %c0_96 = arith.constant 0 : index
    %c0_97 = arith.constant 0 : index
    %164 = vector.load %arg4[%c0_95, %c0_96, %c0_97] : memref<9x16x16xbf16, #tpu.memory_space<vmem>>, vector<1x16x16xbf16>
    %165 = vector.shape_cast %164 : vector<1x16x16xbf16> to vector<16x16xbf16>
    %c1_98 = arith.constant 1 : index
    %c0_99 = arith.constant 0 : index
    %c0_100 = arith.constant 0 : index
    %166 = vector.load %arg4[%c1_98, %c0_99, %c0_100] : memref<9x16x16xbf16, #tpu.memory_space<vmem>>, vector<1x16x16xbf16>
    %167 = vector.shape_cast %166 : vector<1x16x16xbf16> to vector<16x16xbf16>
    %c2 = arith.constant 2 : index
    %c0_101 = arith.constant 0 : index
    %c0_102 = arith.constant 0 : index
    %168 = vector.load %arg4[%c2, %c0_101, %c0_102] : memref<9x16x16xbf16, #tpu.memory_space<vmem>>, vector<1x16x16xbf16>
    %169 = vector.shape_cast %168 : vector<1x16x16xbf16> to vector<16x16xbf16>
    %c3 = arith.constant 3 : index
    %c0_103 = arith.constant 0 : index
    %c0_104 = arith.constant 0 : index
    %170 = vector.load %arg4[%c3, %c0_103, %c0_104] : memref<9x16x16xbf16, #tpu.memory_space<vmem>>, vector<1x16x16xbf16>
    %171 = vector.shape_cast %170 : vector<1x16x16xbf16> to vector<16x16xbf16>
    %c4 = arith.constant 4 : index
    %c0_105 = arith.constant 0 : index
    %c0_106 = arith.constant 0 : index
    %172 = vector.load %arg4[%c4, %c0_105, %c0_106] : memref<9x16x16xbf16, #tpu.memory_space<vmem>>, vector<1x16x16xbf16>
    %173 = vector.shape_cast %172 : vector<1x16x16xbf16> to vector<16x16xbf16>
    %c5 = arith.constant 5 : index
    %c0_107 = arith.constant 0 : index
    %c0_108 = arith.constant 0 : index
    %174 = vector.load %arg4[%c5, %c0_107, %c0_108] : memref<9x16x16xbf16, #tpu.memory_space<vmem>>, vector<1x16x16xbf16>
    %175 = vector.shape_cast %174 : vector<1x16x16xbf16> to vector<16x16xbf16>
    %c6 = arith.constant 6 : index
    %c0_109 = arith.constant 0 : index
    %c0_110 = arith.constant 0 : index
    %176 = vector.load %arg4[%c6, %c0_109, %c0_110] : memref<9x16x16xbf16, #tpu.memory_space<vmem>>, vector<1x16x16xbf16>
    %177 = vector.shape_cast %176 : vector<1x16x16xbf16> to vector<16x16xbf16>
    %c7 = arith.constant 7 : index
    %c0_111 = arith.constant 0 : index
    %c0_112 = arith.constant 0 : index
    %178 = vector.load %arg4[%c7, %c0_111, %c0_112] : memref<9x16x16xbf16, #tpu.memory_space<vmem>>, vector<1x16x16xbf16>
    %179 = vector.shape_cast %178 : vector<1x16x16xbf16> to vector<16x16xbf16>
    %c8_113 = arith.constant 8 : index
    %c0_114 = arith.constant 0 : index
    %c0_115 = arith.constant 0 : index
    %180 = vector.load %arg4[%c8_113, %c0_114, %c0_115] : memref<9x16x16xbf16, #tpu.memory_space<vmem>>, vector<1x16x16xbf16>
    %181 = vector.shape_cast %180 : vector<1x16x16xbf16> to vector<16x16xbf16>
    %c0_116 = arith.constant 0 : index
    %c0_117 = arith.constant 0 : index
    %c0_118 = arith.constant 0 : index
    %c0_119 = arith.constant 0 : index
    %182 = vector.load %arg11[%c0_116, %c0_117, %c0_118, %c0_119] : memref<1x9x32x32xbf16, #tpu.memory_space<vmem>>, vector<1x1x32x32xbf16>
    %183 = vector.shape_cast %182 : vector<1x1x32x32xbf16> to vector<32x32xbf16>
    %c0_120 = arith.constant 0 : index
    %c1_121 = arith.constant 1 : index
    %c0_122 = arith.constant 0 : index
    %c0_123 = arith.constant 0 : index
    %184 = vector.load %arg11[%c0_120, %c1_121, %c0_122, %c0_123] : memref<1x9x32x32xbf16, #tpu.memory_space<vmem>>, vector<1x1x32x32xbf16>
    %185 = vector.shape_cast %184 : vector<1x1x32x32xbf16> to vector<32x32xbf16>
    %c0_124 = arith.constant 0 : index
    %c2_125 = arith.constant 2 : index
    %c0_126 = arith.constant 0 : index
    %c0_127 = arith.constant 0 : index
    %186 = vector.load %arg11[%c0_124, %c2_125, %c0_126, %c0_127] : memref<1x9x32x32xbf16, #tpu.memory_space<vmem>>, vector<1x1x32x32xbf16>
    %187 = vector.shape_cast %186 : vector<1x1x32x32xbf16> to vector<32x32xbf16>
    %c0_128 = arith.constant 0 : index
    %c3_129 = arith.constant 3 : index
    %c0_130 = arith.constant 0 : index
    %c0_131 = arith.constant 0 : index
    %188 = vector.load %arg11[%c0_128, %c3_129, %c0_130, %c0_131] : memref<1x9x32x32xbf16, #tpu.memory_space<vmem>>, vector<1x1x32x32xbf16>
    %189 = vector.shape_cast %188 : vector<1x1x32x32xbf16> to vector<32x32xbf16>
    %c0_132 = arith.constant 0 : index
    %c4_133 = arith.constant 4 : index
    %c0_134 = arith.constant 0 : index
    %c0_135 = arith.constant 0 : index
    %190 = vector.load %arg11[%c0_132, %c4_133, %c0_134, %c0_135] : memref<1x9x32x32xbf16, #tpu.memory_space<vmem>>, vector<1x1x32x32xbf16>
    %191 = vector.shape_cast %190 : vector<1x1x32x32xbf16> to vector<32x32xbf16>
    %c0_136 = arith.constant 0 : index
    %c5_137 = arith.constant 5 : index
    %c0_138 = arith.constant 0 : index
    %c0_139 = arith.constant 0 : index
    %192 = vector.load %arg11[%c0_136, %c5_137, %c0_138, %c0_139] : memref<1x9x32x32xbf16, #tpu.memory_space<vmem>>, vector<1x1x32x32xbf16>
    %193 = vector.shape_cast %192 : vector<1x1x32x32xbf16> to vector<32x32xbf16>
    %c0_140 = arith.constant 0 : index
    %c6_141 = arith.constant 6 : index
    %c0_142 = arith.constant 0 : index
    %c0_143 = arith.constant 0 : index
    %194 = vector.load %arg11[%c0_140, %c6_141, %c0_142, %c0_143] : memref<1x9x32x32xbf16, #tpu.memory_space<vmem>>, vector<1x1x32x32xbf16>
    %195 = vector.shape_cast %194 : vector<1x1x32x32xbf16> to vector<32x32xbf16>
    %c0_144 = arith.constant 0 : index
    %c7_145 = arith.constant 7 : index
    %c0_146 = arith.constant 0 : index
    %c0_147 = arith.constant 0 : index
    %196 = vector.load %arg11[%c0_144, %c7_145, %c0_146, %c0_147] : memref<1x9x32x32xbf16, #tpu.memory_space<vmem>>, vector<1x1x32x32xbf16>
    %197 = vector.shape_cast %196 : vector<1x1x32x32xbf16> to vector<32x32xbf16>
    %c0_148 = arith.constant 0 : index
    %c8_149 = arith.constant 8 : index
    %c0_150 = arith.constant 0 : index
    %c0_151 = arith.constant 0 : index
    %198 = vector.load %arg11[%c0_148, %c8_149, %c0_150, %c0_151] : memref<1x9x32x32xbf16, #tpu.memory_space<vmem>>, vector<1x1x32x32xbf16>
    %199 = vector.shape_cast %198 : vector<1x1x32x32xbf16> to vector<32x32xbf16>
    %c0_152 = arith.constant 0 : index
    %c0_153 = arith.constant 0 : index
    %c0_154 = arith.constant 0 : index
    %200 = vector.load %arg12[%c0_152, %c0_153, %c0_154] : memref<1x1x32xf32, #tpu.memory_space<vmem>>, vector<1x1x32xf32>
    %201 = vector.shape_cast %200 : vector<1x1x32xf32> to vector<1x32xf32>
    %202 = arith.truncf %163 : vector<16x32xf32> to vector<16x32xbf16>
    %cst_155 = arith.constant dense<0.000000e+00> : vector<16x32xf32>
    %203 = tpu.matmul %165, %202, %cst_155 {dimension_numbers = #tpu.dot_dimension_numbers<[1], [0], [0], [1], [0, 0, 1, 1], [], []>} : vector<16x16xbf16>, vector<16x32xbf16>, vector<16x32xf32> -> vector<16x32xf32>
    %204 = arith.truncf %203 : vector<16x32xf32> to vector<16x32xbf16>
    %cst_156 = arith.constant dense<0.000000e+00> : vector<16x32xf32>
    %205 = tpu.matmul %204, %183, %cst_156 {dimension_numbers = #tpu.dot_dimension_numbers<[1], [0], [0], [1], [0, 0, 1, 1], [], []>} : vector<16x32xbf16>, vector<32x32xbf16>, vector<16x32xf32> -> vector<16x32xf32>
    %cst_157 = arith.constant dense<0.000000e+00> : vector<16x32xf32>
    %206 = tpu.matmul %167, %202, %cst_157 {dimension_numbers = #tpu.dot_dimension_numbers<[1], [0], [0], [1], [0, 0, 1, 1], [], []>} : vector<16x16xbf16>, vector<16x32xbf16>, vector<16x32xf32> -> vector<16x32xf32>
    %207 = arith.truncf %206 : vector<16x32xf32> to vector<16x32xbf16>
    %cst_158 = arith.constant dense<0.000000e+00> : vector<16x32xf32>
    %208 = tpu.matmul %207, %185, %cst_158 {dimension_numbers = #tpu.dot_dimension_numbers<[1], [0], [0], [1], [0, 0, 1, 1], [], []>} : vector<16x32xbf16>, vector<32x32xbf16>, vector<16x32xf32> -> vector<16x32xf32>
    %209 = arith.addf %205, %208 : vector<16x32xf32>
    %cst_159 = arith.constant dense<0.000000e+00> : vector<16x32xf32>
    %210 = tpu.matmul %169, %202, %cst_159 {dimension_numbers = #tpu.dot_dimension_numbers<[1], [0], [0], [1], [0, 0, 1, 1], [], []>} : vector<16x16xbf16>, vector<16x32xbf16>, vector<16x32xf32> -> vector<16x32xf32>
    %211 = arith.truncf %210 : vector<16x32xf32> to vector<16x32xbf16>
    %cst_160 = arith.constant dense<0.000000e+00> : vector<16x32xf32>
    %212 = tpu.matmul %211, %187, %cst_160 {dimension_numbers = #tpu.dot_dimension_numbers<[1], [0], [0], [1], [0, 0, 1, 1], [], []>} : vector<16x32xbf16>, vector<32x32xbf16>, vector<16x32xf32> -> vector<16x32xf32>
    %213 = arith.addf %209, %212 : vector<16x32xf32>
    %cst_161 = arith.constant dense<0.000000e+00> : vector<16x32xf32>
    %214 = tpu.matmul %171, %202, %cst_161 {dimension_numbers = #tpu.dot_dimension_numbers<[1], [0], [0], [1], [0, 0, 1, 1], [], []>} : vector<16x16xbf16>, vector<16x32xbf16>, vector<16x32xf32> -> vector<16x32xf32>
    %215 = arith.truncf %214 : vector<16x32xf32> to vector<16x32xbf16>
    %cst_162 = arith.constant dense<0.000000e+00> : vector<16x32xf32>
    %216 = tpu.matmul %215, %189, %cst_162 {dimension_numbers = #tpu.dot_dimension_numbers<[1], [0], [0], [1], [0, 0, 1, 1], [], []>} : vector<16x32xbf16>, vector<32x32xbf16>, vector<16x32xf32> -> vector<16x32xf32>
    %217 = arith.addf %213, %216 : vector<16x32xf32>
    %cst_163 = arith.constant dense<0.000000e+00> : vector<16x32xf32>
    %218 = tpu.matmul %173, %202, %cst_163 {dimension_numbers = #tpu.dot_dimension_numbers<[1], [0], [0], [1], [0, 0, 1, 1], [], []>} : vector<16x16xbf16>, vector<16x32xbf16>, vector<16x32xf32> -> vector<16x32xf32>
    %219 = arith.truncf %218 : vector<16x32xf32> to vector<16x32xbf16>
    %cst_164 = arith.constant dense<0.000000e+00> : vector<16x32xf32>
    %220 = tpu.matmul %219, %191, %cst_164 {dimension_numbers = #tpu.dot_dimension_numbers<[1], [0], [0], [1], [0, 0, 1, 1], [], []>} : vector<16x32xbf16>, vector<32x32xbf16>, vector<16x32xf32> -> vector<16x32xf32>
    %221 = arith.addf %217, %220 : vector<16x32xf32>
    %cst_165 = arith.constant dense<0.000000e+00> : vector<16x32xf32>
    %222 = tpu.matmul %175, %202, %cst_165 {dimension_numbers = #tpu.dot_dimension_numbers<[1], [0], [0], [1], [0, 0, 1, 1], [], []>} : vector<16x16xbf16>, vector<16x32xbf16>, vector<16x32xf32> -> vector<16x32xf32>
    %223 = arith.truncf %222 : vector<16x32xf32> to vector<16x32xbf16>
    %cst_166 = arith.constant dense<0.000000e+00> : vector<16x32xf32>
    %224 = tpu.matmul %223, %193, %cst_166 {dimension_numbers = #tpu.dot_dimension_numbers<[1], [0], [0], [1], [0, 0, 1, 1], [], []>} : vector<16x32xbf16>, vector<32x32xbf16>, vector<16x32xf32> -> vector<16x32xf32>
    %225 = arith.addf %221, %224 : vector<16x32xf32>
    %cst_167 = arith.constant dense<0.000000e+00> : vector<16x32xf32>
    %226 = tpu.matmul %177, %202, %cst_167 {dimension_numbers = #tpu.dot_dimension_numbers<[1], [0], [0], [1], [0, 0, 1, 1], [], []>} : vector<16x16xbf16>, vector<16x32xbf16>, vector<16x32xf32> -> vector<16x32xf32>
    %227 = arith.truncf %226 : vector<16x32xf32> to vector<16x32xbf16>
    %cst_168 = arith.constant dense<0.000000e+00> : vector<16x32xf32>
    %228 = tpu.matmul %227, %195, %cst_168 {dimension_numbers = #tpu.dot_dimension_numbers<[1], [0], [0], [1], [0, 0, 1, 1], [], []>} : vector<16x32xbf16>, vector<32x32xbf16>, vector<16x32xf32> -> vector<16x32xf32>
    %229 = arith.addf %225, %228 : vector<16x32xf32>
    %cst_169 = arith.constant dense<0.000000e+00> : vector<16x32xf32>
    %230 = tpu.matmul %179, %202, %cst_169 {dimension_numbers = #tpu.dot_dimension_numbers<[1], [0], [0], [1], [0, 0, 1, 1], [], []>} : vector<16x16xbf16>, vector<16x32xbf16>, vector<16x32xf32> -> vector<16x32xf32>
    %231 = arith.truncf %230 : vector<16x32xf32> to vector<16x32xbf16>
    %cst_170 = arith.constant dense<0.000000e+00> : vector<16x32xf32>
    %232 = tpu.matmul %231, %197, %cst_170 {dimension_numbers = #tpu.dot_dimension_numbers<[1], [0], [0], [1], [0, 0, 1, 1], [], []>} : vector<16x32xbf16>, vector<32x32xbf16>, vector<16x32xf32> -> vector<16x32xf32>
    %233 = arith.addf %229, %232 : vector<16x32xf32>
    %cst_171 = arith.constant dense<0.000000e+00> : vector<16x32xf32>
    %234 = tpu.matmul %181, %202, %cst_171 {dimension_numbers = #tpu.dot_dimension_numbers<[1], [0], [0], [1], [0, 0, 1, 1], [], []>} : vector<16x16xbf16>, vector<16x32xbf16>, vector<16x32xf32> -> vector<16x32xf32>
    %235 = arith.truncf %234 : vector<16x32xf32> to vector<16x32xbf16>
    %cst_172 = arith.constant dense<0.000000e+00> : vector<16x32xf32>
    %236 = tpu.matmul %235, %199, %cst_172 {dimension_numbers = #tpu.dot_dimension_numbers<[1], [0], [0], [1], [0, 0, 1, 1], [], []>} : vector<16x32xbf16>, vector<32x32xbf16>, vector<16x32xf32> -> vector<16x32xf32>
    %237 = arith.addf %233, %236 : vector<16x32xf32>
    %238 = vector.broadcast %201 : vector<1x32xf32> to vector<16x32xf32>
    %239 = arith.addf %237, %238 : vector<16x32xf32>
    %cst_173 = arith.constant 0.000000e+00 : f32
    %240 = vector.broadcast %cst_173 : f32 to vector<16x32xf32>
    %241 = arith.maximumf %239, %240 : vector<16x32xf32>
    %c0_174 = arith.constant 0 : index
    %c0_175 = arith.constant 0 : index
    %c0_176 = arith.constant 0 : index
    %c0_177 = arith.constant 0 : index
    %242 = vector.load %arg13[%c0_174, %c0_175, %c0_176, %c0_177] : memref<1x1x32x32xbf16, #tpu.memory_space<vmem>>, vector<1x1x32x32xbf16>
    %243 = vector.shape_cast %242 : vector<1x1x32x32xbf16> to vector<32x32xbf16>
    %c0_178 = arith.constant 0 : index
    %c0_179 = arith.constant 0 : index
    %c0_180 = arith.constant 0 : index
    %244 = vector.load %arg14[%c0_178, %c0_179, %c0_180] : memref<1x1x32xf32, #tpu.memory_space<vmem>>, vector<1x1x32xf32>
    %245 = vector.shape_cast %244 : vector<1x1x32xf32> to vector<1x32xf32>
    %246 = arith.truncf %241 : vector<16x32xf32> to vector<16x32xbf16>
    %cst_181 = arith.constant dense<0.000000e+00> : vector<16x32xf32>
    %247 = tpu.matmul %246, %243, %cst_181 {dimension_numbers = #tpu.dot_dimension_numbers<[1], [0], [0], [1], [0, 0, 1, 1], [], []>} : vector<16x32xbf16>, vector<32x32xbf16>, vector<16x32xf32> -> vector<16x32xf32>
    %248 = vector.broadcast %245 : vector<1x32xf32> to vector<16x32xf32>
    %249 = arith.addf %247, %248 : vector<16x32xf32>
    %250 = arith.addf %249, %163 : vector<16x32xf32>
    %c0_182 = arith.constant 0 : index
    %c0_183 = arith.constant 0 : index
    %c0_184 = arith.constant 0 : index
    %251 = vector.load %arg15[%c0_182, %c0_183, %c0_184] : memref<1x1x32xf32, #tpu.memory_space<vmem>>, vector<1x1x32xf32>
    %252 = vector.shape_cast %251 : vector<1x1x32xf32> to vector<1x32xf32>
    %c0_185 = arith.constant 0 : index
    %c0_186 = arith.constant 0 : index
    %c0_187 = arith.constant 0 : index
    %253 = vector.load %arg16[%c0_185, %c0_186, %c0_187] : memref<1x1x32xf32, #tpu.memory_space<vmem>>, vector<1x1x32xf32>
    %254 = vector.shape_cast %253 : vector<1x1x32xf32> to vector<1x32xf32>
    %cst_188 = arith.constant dense<0.000000e+00> : vector<16xf32>
    %255 = vector.multi_reduction <add>, %250, %cst_188 [1] : vector<16x32xf32> to vector<16xf32>
    %256 = vector.shape_cast %255 : vector<16xf32> to vector<16x1xf32>
    %cst_189 = arith.constant 3.200000e+01 : f32
    %257 = vector.broadcast %cst_189 : f32 to vector<16x1xf32>
    %258 = arith.divf %256, %257 : vector<16x1xf32>
    %259 = vector.broadcast %258 : vector<16x1xf32> to vector<16x32xf32>
    %260 = arith.subf %250, %259 : vector<16x32xf32>
    %261 = arith.mulf %260, %260 : vector<16x32xf32>
    %cst_190 = arith.constant dense<0.000000e+00> : vector<16xf32>
    %262 = vector.multi_reduction <add>, %261, %cst_190 [1] : vector<16x32xf32> to vector<16xf32>
    %263 = vector.shape_cast %262 : vector<16xf32> to vector<16x1xf32>
    %cst_191 = arith.constant 3.200000e+01 : f32
    %264 = vector.broadcast %cst_191 : f32 to vector<16x1xf32>
    %265 = arith.divf %263, %264 : vector<16x1xf32>
    %266 = vector.broadcast %258 : vector<16x1xf32> to vector<16x32xf32>
    %267 = arith.subf %250, %266 : vector<16x32xf32>
    %cst_192 = arith.constant 9.99999974E-6 : f32
    %268 = vector.broadcast %cst_192 : f32 to vector<16x1xf32>
    %269 = arith.addf %265, %268 : vector<16x1xf32>
    %270 = math.rsqrt %269 : vector<16x1xf32>
    %271 = vector.broadcast %270 : vector<16x1xf32> to vector<16x32xf32>
    %272 = arith.mulf %267, %271 : vector<16x32xf32>
    %273 = vector.broadcast %252 : vector<1x32xf32> to vector<16x32xf32>
    %274 = arith.mulf %272, %273 : vector<16x32xf32>
    %275 = vector.broadcast %254 : vector<1x32xf32> to vector<16x32xf32>
    %276 = arith.addf %274, %275 : vector<16x32xf32>
    %277 = vector.broadcast %4 : vector<16x1xf32> to vector<16x32xf32>
    %278 = arith.mulf %276, %277 : vector<16x32xf32>
    %c0_193 = arith.constant 0 : index
    %c0_194 = arith.constant 0 : index
    %279 = vector.load %arg18[%c0_193, %c0_194] : memref<16x32xf32, #tpu.memory_space<vmem>>, vector<16x32xf32>
    tpu.vector_store %arg18[%c0_193, %c0_194], %278 {strides = array<i32>} : memref<16x32xf32, #tpu.memory_space<vmem>>, vector<16x32xf32>,
    %c0_195 = arith.constant 0 : index
    %c0_196 = arith.constant 0 : index
    %280 = vector.load %arg17[%c0_195, %c0_196] : memref<16x32xf32, #tpu.memory_space<vmem>>, vector<16x32xf32>
    tpu.vector_store %arg17[%c0_195, %c0_196], %278 {strides = array<i32>} : memref<16x32xf32, #tpu.memory_space<vmem>>, vector<16x32xf32>,
    return
  }
  func.func @transform_0(%arg0: i32) -> (i32, i32) {
    %c0_i32 = arith.constant 0 : i32
    %c0_i32_0 = arith.constant 0 : i32
    %c0_i32_1 = arith.constant 0 : i32
    return %c0_i32, %c0_i32_0 : i32, i32
  }
  func.func @transform_1(%arg0: i32) -> (i32, i32) {
    %c0_i32 = arith.constant 0 : i32
    %c0_i32_0 = arith.constant 0 : i32
    %c0_i32_1 = arith.constant 0 : i32
    return %c0_i32, %c0_i32_0 : i32, i32
  }
  func.func @transform_2(%arg0: i32) -> (i32, i32, i32) {
    %c0_i32 = arith.constant 0 : i32
    %c0_i32_0 = arith.constant 0 : i32
    %c0_i32_1 = arith.constant 0 : i32
    %c0_i32_2 = arith.constant 0 : i32
    return %c0_i32, %c0_i32_0, %c0_i32_1 : i32, i32, i32
  }
  func.func @transform_3(%arg0: i32) -> (i32, i32, i32) {
    %c0_i32 = arith.constant 0 : i32
    %c0_i32_0 = arith.constant 0 : i32
    %c0_i32_1 = arith.constant 0 : i32
    %c0_i32_2 = arith.constant 0 : i32
    return %c0_i32, %c0_i32_0, %c0_i32_1 : i32, i32, i32
  }
  func.func @transform_4(%arg0: i32) -> (i32, i32, i32) {
    %c0_i32 = arith.constant 0 : i32
    %c0_i32_0 = arith.constant 0 : i32
    %c0_i32_1 = arith.constant 0 : i32
    return %arg0, %c0_i32, %c0_i32_0 : i32, i32, i32
  }
  func.func @transform_5(%arg0: i32) -> (i32, i32, i32) {
    %c0_i32 = arith.constant 0 : i32
    %c0_i32_0 = arith.constant 0 : i32
    %c0_i32_1 = arith.constant 0 : i32
    return %arg0, %c0_i32, %c0_i32_0 : i32, i32, i32
  }
  func.func @transform_6(%arg0: i32) -> (i32, i32, i32, i32) {
    %c0_i32 = arith.constant 0 : i32
    %c0_i32_0 = arith.constant 0 : i32
    %c0_i32_1 = arith.constant 0 : i32
    %c0_i32_2 = arith.constant 0 : i32
    return %arg0, %c0_i32, %c0_i32_0, %c0_i32_1 : i32, i32, i32, i32
  }
  func.func @transform_7(%arg0: i32) -> (i32, i32, i32) {
    %c0_i32 = arith.constant 0 : i32
    %c0_i32_0 = arith.constant 0 : i32
    %c0_i32_1 = arith.constant 0 : i32
    return %arg0, %c0_i32, %c0_i32_0 : i32, i32, i32
  }
  func.func @transform_8(%arg0: i32) -> (i32, i32, i32) {
    %c0_i32 = arith.constant 0 : i32
    %c0_i32_0 = arith.constant 0 : i32
    %c0_i32_1 = arith.constant 0 : i32
    return %arg0, %c0_i32, %c0_i32_0 : i32, i32, i32
  }
  func.func @transform_9(%arg0: i32) -> (i32, i32, i32) {
    %c0_i32 = arith.constant 0 : i32
    %c0_i32_0 = arith.constant 0 : i32
    %c0_i32_1 = arith.constant 0 : i32
    return %arg0, %c0_i32, %c0_i32_0 : i32, i32, i32
  }
  func.func @transform_10(%arg0: i32) -> (i32, i32, i32, i32) {
    %c0_i32 = arith.constant 0 : i32
    %c0_i32_0 = arith.constant 0 : i32
    %c0_i32_1 = arith.constant 0 : i32
    %c0_i32_2 = arith.constant 0 : i32
    return %arg0, %c0_i32, %c0_i32_0, %c0_i32_1 : i32, i32, i32, i32
  }
  func.func @transform_11(%arg0: i32) -> (i32, i32, i32) {
    %c0_i32 = arith.constant 0 : i32
    %c0_i32_0 = arith.constant 0 : i32
    %c0_i32_1 = arith.constant 0 : i32
    return %arg0, %c0_i32, %c0_i32_0 : i32, i32, i32
  }
  func.func @transform_12(%arg0: i32) -> (i32, i32, i32, i32) {
    %c0_i32 = arith.constant 0 : i32
    %c0_i32_0 = arith.constant 0 : i32
    %c0_i32_1 = arith.constant 0 : i32
    %c0_i32_2 = arith.constant 0 : i32
    return %arg0, %c0_i32, %c0_i32_0, %c0_i32_1 : i32, i32, i32, i32
  }
  func.func @transform_13(%arg0: i32) -> (i32, i32, i32) {
    %c0_i32 = arith.constant 0 : i32
    %c0_i32_0 = arith.constant 0 : i32
    %c0_i32_1 = arith.constant 0 : i32
    return %arg0, %c0_i32, %c0_i32_0 : i32, i32, i32
  }
  func.func @transform_14(%arg0: i32) -> (i32, i32, i32) {
    %c0_i32 = arith.constant 0 : i32
    %c0_i32_0 = arith.constant 0 : i32
    %c0_i32_1 = arith.constant 0 : i32
    return %arg0, %c0_i32, %c0_i32_0 : i32, i32, i32
  }
  func.func @transform_15(%arg0: i32) -> (i32, i32, i32) {
    %c0_i32 = arith.constant 0 : i32
    %c0_i32_0 = arith.constant 0 : i32
    %c0_i32_1 = arith.constant 0 : i32
    return %arg0, %c0_i32, %c0_i32_0 : i32, i32, i32
  }
  func.func @transform_16(%arg0: i32) -> (i32, i32) {
    %c0_i32 = arith.constant 0 : i32
    %c0_i32_0 = arith.constant 0 : i32
    %c0_i32_1 = arith.constant 0 : i32
    return %c0_i32, %c0_i32_0 : i32, i32
  }
}

module attributes {stable_mosaic.version = 11 : i64} {
  func.func @_va_kernel(%arg0: i32, %arg1: memref<16x32xf32, #tpu.memory_space<vmem>>, %arg2: memref<16x1xf32, #tpu.memory_space<vmem>>, %arg3: memref<3x16x16xbf16, #tpu.memory_space<vmem>>, %arg4: memref<16x2xf32, #tpu.memory_space<vmem>>, %arg5: memref<2x16xf32, #tpu.memory_space<vmem>>, %arg6: memref<16x1xf32, #tpu.memory_space<vmem>>, %arg7: memref<16x1xf32, #tpu.memory_space<vmem>>, %arg8: memref<1x15xf32, #tpu.memory_space<vmem>>, %arg9: memref<1x15xf32, #tpu.memory_space<vmem>>, %arg10: memref<16x32xf32, #tpu.memory_space<vmem>>, %arg11: memref<16x32xf32, #tpu.memory_space<vmem>>, %arg12: memref<16x32xbf16, #tpu.memory_space<vmem>>, %arg13: memref<1x32xf32, #tpu.memory_space<vmem>>, %arg14: memref<32x32xbf16, #tpu.memory_space<vmem>>, %arg15: memref<1x32xf32, #tpu.memory_space<vmem>>, %arg16: memref<32x32xbf16, #tpu.memory_space<vmem>>, %arg17: memref<1x32xf32, #tpu.memory_space<vmem>>, %arg18: memref<32x16xbf16, #tpu.memory_space<vmem>>, %arg19: memref<1x16xf32, #tpu.memory_space<vmem>>, %arg20: memref<3x3x32x32xbf16, #tpu.memory_space<vmem>>, %arg21: memref<3x1x32xf32, #tpu.memory_space<vmem>>, %arg22: memref<3x1x32xf32, #tpu.memory_space<vmem>>, %arg23: memref<3x1x32xf32, #tpu.memory_space<vmem>>, %arg24: memref<3x3x32x32xbf16, #tpu.memory_space<vmem>>, %arg25: memref<3x1x32xf32, #tpu.memory_space<vmem>>, %arg26: memref<3x1x32xf32, #tpu.memory_space<vmem>>, %arg27: memref<3x1x32xf32, #tpu.memory_space<vmem>>, %arg28: memref<3x32x1xbf16, #tpu.memory_space<vmem>>, %arg29: memref<3x1x1xf32, #tpu.memory_space<vmem>>, %arg30: memref<16x16xf32, #tpu.memory_space<vmem>>, %arg31: memref<16x1xf32, #tpu.memory_space<vmem>>, %arg32: memref<16x1xf32, #tpu.memory_space<vmem>>, %arg33: memref<16x1xf32, #tpu.memory_space<vmem>>, %arg34: memref<16x32xf32, #tpu.memory_space<vmem>>) attributes {dimension_semantics = [#tpu.dimension_semantics<arbitrary>], iteration_bounds = array<i64: 1>, scalar_prefetch = 0 : i64, scratch_operands = 0 : i64, tpu.core_type = #tpu.core_type<tc>, window_params = [{pipeline_mode = #tpu.pipeline_mode<synchronous>, transform_indices = @transform_0, window_bounds = array<i64: 16, 32>}, {pipeline_mode = #tpu.pipeline_mode<synchronous>, transform_indices = @transform_1, window_bounds = array<i64: 16, 1>}, {pipeline_mode = #tpu.pipeline_mode<synchronous>, transform_indices = @transform_2, window_bounds = array<i64: 3, 16, 16>}, {pipeline_mode = #tpu.pipeline_mode<synchronous>, transform_indices = @transform_3, window_bounds = array<i64: 16, 2>}, {pipeline_mode = #tpu.pipeline_mode<synchronous>, transform_indices = @transform_4, window_bounds = array<i64: 2, 16>}, {pipeline_mode = #tpu.pipeline_mode<synchronous>, transform_indices = @transform_5, window_bounds = array<i64: 16, 1>}, {pipeline_mode = #tpu.pipeline_mode<synchronous>, transform_indices = @transform_6, window_bounds = array<i64: 16, 1>}, {pipeline_mode = #tpu.pipeline_mode<synchronous>, transform_indices = @transform_7, window_bounds = array<i64: 1, 15>}, {pipeline_mode = #tpu.pipeline_mode<synchronous>, transform_indices = @transform_8, window_bounds = array<i64: 1, 15>}, {pipeline_mode = #tpu.pipeline_mode<synchronous>, transform_indices = @transform_9, window_bounds = array<i64: 16, 32>}, {pipeline_mode = #tpu.pipeline_mode<synchronous>, transform_indices = @transform_10, window_bounds = array<i64: 16, 32>}, {pipeline_mode = #tpu.pipeline_mode<synchronous>, transform_indices = @transform_11, window_bounds = array<i64: 16, 32>}, {pipeline_mode = #tpu.pipeline_mode<synchronous>, transform_indices = @transform_12, window_bounds = array<i64: 1, 32>}, {pipeline_mode = #tpu.pipeline_mode<synchronous>, transform_indices = @transform_13, window_bounds = array<i64: 32, 32>}, {pipeline_mode = #tpu.pipeline_mode<synchronous>, transform_indices = @transform_14, window_bounds = array<i64: 1, 32>}, {pipeline_mode = #tpu.pipeline_mode<synchronous>, transform_indices = @transform_15, window_bounds = array<i64: 32, 32>}, {pipeline_mode = #tpu.pipeline_mode<synchronous>, transform_indices = @transform_16, window_bounds = array<i64: 1, 32>}, {pipeline_mode = #tpu.pipeline_mode<synchronous>, transform_indices = @transform_17, window_bounds = array<i64: 32, 16>}, {pipeline_mode = #tpu.pipeline_mode<synchronous>, transform_indices = @transform_18, window_bounds = array<i64: 1, 16>}, {pipeline_mode = #tpu.pipeline_mode<synchronous>, transform_indices = @transform_19, window_bounds = array<i64: 3, 3, 32, 32>}, {pipeline_mode = #tpu.pipeline_mode<synchronous>, transform_indices = @transform_20, window_bounds = array<i64: 3, 1, 32>}, {pipeline_mode = #tpu.pipeline_mode<synchronous>, transform_indices = @transform_21, window_bounds = array<i64: 3, 1, 32>}, {pipeline_mode = #tpu.pipeline_mode<synchronous>, transform_indices = @transform_22, window_bounds = array<i64: 3, 1, 32>}, {pipeline_mode = #tpu.pipeline_mode<synchronous>, transform_indices = @transform_23, window_bounds = array<i64: 3, 3, 32, 32>}, {pipeline_mode = #tpu.pipeline_mode<synchronous>, transform_indices = @transform_24, window_bounds = array<i64: 3, 1, 32>}, {pipeline_mode = #tpu.pipeline_mode<synchronous>, transform_indices = @transform_25, window_bounds = array<i64: 3, 1, 32>}, {pipeline_mode = #tpu.pipeline_mode<synchronous>, transform_indices = @transform_26, window_bounds = array<i64: 3, 1, 32>}, {pipeline_mode = #tpu.pipeline_mode<synchronous>, transform_indices = @transform_27, window_bounds = array<i64: 3, 32, 1>}, {pipeline_mode = #tpu.pipeline_mode<synchronous>, transform_indices = @transform_28, window_bounds = array<i64: 3, 1, 1>}, {pipeline_mode = #tpu.pipeline_mode<synchronous>, transform_indices = @transform_29, window_bounds = array<i64: 16, 16>}, {pipeline_mode = #tpu.pipeline_mode<synchronous>, transform_indices = @transform_30, window_bounds = array<i64: 16, 1>}, {pipeline_mode = #tpu.pipeline_mode<synchronous>, transform_indices = @transform_31, window_bounds = array<i64: 16, 1>}, {pipeline_mode = #tpu.pipeline_mode<synchronous>, transform_indices = @transform_32, window_bounds = array<i64: 16, 1>}, {pipeline_mode = #tpu.pipeline_mode<synchronous>, transform_indices = @transform_33, window_bounds = array<i64: 16, 32>}]} {
    %c0 = arith.constant 0 : index
    %c0_0 = arith.constant 0 : index
    %0 = vector.load %arg1[%c0, %c0_0] : memref<16x32xf32, #tpu.memory_space<vmem>>, vector<16x32xf32>
    %c0_1 = arith.constant 0 : index
    %c0_2 = arith.constant 0 : index
    %1 = vector.load %arg2[%c0_1, %c0_2] : memref<16x1xf32, #tpu.memory_space<vmem>>, vector<16x1xf32>
    %c0_3 = arith.constant 0 : index
    %c0_4 = arith.constant 0 : index
    %c0_5 = arith.constant 0 : index
    %2 = vector.load %arg3[%c0_3, %c0_4, %c0_5] : memref<3x16x16xbf16, #tpu.memory_space<vmem>>, vector<1x16x16xbf16>
    %3 = vector.shape_cast %2 : vector<1x16x16xbf16> to vector<16x16xbf16>
    %c1 = arith.constant 1 : index
    %c0_6 = arith.constant 0 : index
    %c0_7 = arith.constant 0 : index
    %4 = vector.load %arg3[%c1, %c0_6, %c0_7] : memref<3x16x16xbf16, #tpu.memory_space<vmem>>, vector<1x16x16xbf16>
    %5 = vector.shape_cast %4 : vector<1x16x16xbf16> to vector<16x16xbf16>
    %c2 = arith.constant 2 : index
    %c0_8 = arith.constant 0 : index
    %c0_9 = arith.constant 0 : index
    %6 = vector.load %arg3[%c2, %c0_8, %c0_9] : memref<3x16x16xbf16, #tpu.memory_space<vmem>>, vector<1x16x16xbf16>
    %7 = vector.shape_cast %6 : vector<1x16x16xbf16> to vector<16x16xbf16>
    %8 = arith.truncf %0 : vector<16x32xf32> to vector<16x32xbf16>
    %c0_10 = arith.constant 0 : index
    %c0_11 = arith.constant 0 : index
    %9 = vector.load %arg16[%c0_10, %c0_11] : memref<32x32xbf16, #tpu.memory_space<vmem>>, vector<32x32xbf16>
    %cst = arith.constant dense<0.000000e+00> : vector<16x32xf32>
    %10 = tpu.matmul %8, %9, %cst {dimension_numbers = #tpu.dot_dimension_numbers<[1], [0], [0], [1], [0, 0, 1, 1], [], []>} : vector<16x32xbf16>, vector<32x32xbf16>, vector<16x32xf32> -> vector<16x32xf32>
    %c0_12 = arith.constant 0 : index
    %c0_13 = arith.constant 0 : index
    %11 = vector.load %arg17[%c0_12, %c0_13] : memref<1x32xf32, #tpu.memory_space<vmem>>, vector<1x32xf32>
    %12 = vector.broadcast %11 : vector<1x32xf32> to vector<16x32xf32>
    %13 = arith.addf %10, %12 : vector<16x32xf32>
    %cst_14 = arith.constant 0.000000e+00 : f32
    %14 = vector.broadcast %cst_14 : f32 to vector<16x32xf32>
    %15 = arith.maximumf %13, %14 : vector<16x32xf32>
    %16 = arith.truncf %15 : vector<16x32xf32> to vector<16x32xbf16>
    %c0_15 = arith.constant 0 : index
    %c0_16 = arith.constant 0 : index
    %17 = vector.load %arg18[%c0_15, %c0_16] : memref<32x16xbf16, #tpu.memory_space<vmem>>, vector<32x16xbf16>
    %cst_17 = arith.constant dense<0.000000e+00> : vector<16x16xf32>
    %18 = tpu.matmul %16, %17, %cst_17 {dimension_numbers = #tpu.dot_dimension_numbers<[1], [0], [0], [1], [0, 0, 1, 1], [], []>} : vector<16x32xbf16>, vector<32x16xbf16>, vector<16x16xf32> -> vector<16x16xf32>
    %c0_18 = arith.constant 0 : index
    %c0_19 = arith.constant 0 : index
    %19 = vector.load %arg19[%c0_18, %c0_19] : memref<1x16xf32, #tpu.memory_space<vmem>>, vector<1x16xf32>
    %20 = vector.broadcast %19 : vector<1x16xf32> to vector<16x16xf32>
    %21 = arith.addf %18, %20 : vector<16x16xf32>
    %c0_20 = arith.constant 0 : index
    %c0_21 = arith.constant 0 : index
    %22 = vector.load %arg30[%c0_20, %c0_21] : memref<16x16xf32, #tpu.memory_space<vmem>>, vector<16x16xf32>
    tpu.vector_store %arg30[%c0_20, %c0_21], %21 {strides = array<i32>} : memref<16x16xf32, #tpu.memory_space<vmem>>, vector<16x16xf32>,
    %c0_22 = arith.constant 0 : index
    %c0_23 = arith.constant 0 : index
    %23 = vector.load %arg5[%c0_22, %c0_23] : memref<2x16xf32, #tpu.memory_space<vmem>>, vector<2x16xf32>
    %24 = arith.truncf %23 : vector<2x16xf32> to vector<2x16xbf16>
    %c0_24 = arith.constant 0 : index
    %c0_25 = arith.constant 0 : index
    %25 = vector.load %arg12[%c0_24, %c0_25] : memref<16x32xbf16, #tpu.memory_space<vmem>>, vector<16x32xbf16>
    %cst_26 = arith.constant dense<0.000000e+00> : vector<2x32xf32>
    %26 = tpu.matmul %24, %25, %cst_26 {dimension_numbers = #tpu.dot_dimension_numbers<[1], [0], [0], [1], [0, 0, 1, 1], [], []>} : vector<2x16xbf16>, vector<16x32xbf16>, vector<2x32xf32> -> vector<2x32xf32>
    %c0_27 = arith.constant 0 : index
    %c0_28 = arith.constant 0 : index
    %27 = vector.load %arg13[%c0_27, %c0_28] : memref<1x32xf32, #tpu.memory_space<vmem>>, vector<1x32xf32>
    %28 = vector.broadcast %27 : vector<1x32xf32> to vector<2x32xf32>
    %29 = arith.addf %26, %28 : vector<2x32xf32>
    %cst_29 = arith.constant 0.000000e+00 : f32
    %30 = vector.broadcast %cst_29 : f32 to vector<2x32xf32>
    %31 = arith.maximumf %29, %30 : vector<2x32xf32>
    %32 = arith.truncf %31 : vector<2x32xf32> to vector<2x32xbf16>
    %c0_30 = arith.constant 0 : index
    %c0_31 = arith.constant 0 : index
    %33 = vector.load %arg14[%c0_30, %c0_31] : memref<32x32xbf16, #tpu.memory_space<vmem>>, vector<32x32xbf16>
    %cst_32 = arith.constant dense<0.000000e+00> : vector<2x32xf32>
    %34 = tpu.matmul %32, %33, %cst_32 {dimension_numbers = #tpu.dot_dimension_numbers<[1], [0], [0], [1], [0, 0, 1, 1], [], []>} : vector<2x32xbf16>, vector<32x32xbf16>, vector<2x32xf32> -> vector<2x32xf32>
    %c0_33 = arith.constant 0 : index
    %c0_34 = arith.constant 0 : index
    %35 = vector.load %arg15[%c0_33, %c0_34] : memref<1x32xf32, #tpu.memory_space<vmem>>, vector<1x32xf32>
    %36 = vector.broadcast %35 : vector<1x32xf32> to vector<2x32xf32>
    %37 = arith.addf %34, %36 : vector<2x32xf32>
    %c0_35 = arith.constant 0 : index
    %c0_36 = arith.constant 0 : index
    %38 = vector.load %arg4[%c0_35, %c0_36] : memref<16x2xf32, #tpu.memory_space<vmem>>, vector<16x2xf32>
    %cst_37 = arith.constant dense<0.000000e+00> : vector<16x32xf32>
    %39 = tpu.matmul %38, %37, %cst_37 {dimension_numbers = #tpu.dot_dimension_numbers<[1], [0], [0], [1], [0, 0, 1, 1], [], []>} : vector<16x2xf32>, vector<2x32xf32>, vector<16x32xf32> -> vector<16x32xf32>
    %40 = arith.addf %0, %39 : vector<16x32xf32>
    %c0_38 = arith.constant 0 : index
    %c0_39 = arith.constant 0 : index
    %c0_40 = arith.constant 0 : index
    %c0_41 = arith.constant 0 : index
    %41 = vector.load %arg20[%c0_38, %c0_39, %c0_40, %c0_41] : memref<3x3x32x32xbf16, #tpu.memory_space<vmem>>, vector<1x1x32x32xbf16>
    %42 = vector.shape_cast %41 : vector<1x1x32x32xbf16> to vector<32x32xbf16>
    %c0_42 = arith.constant 0 : index
    %c1_43 = arith.constant 1 : index
    %c0_44 = arith.constant 0 : index
    %c0_45 = arith.constant 0 : index
    %43 = vector.load %arg20[%c0_42, %c1_43, %c0_44, %c0_45] : memref<3x3x32x32xbf16, #tpu.memory_space<vmem>>, vector<1x1x32x32xbf16>
    %44 = vector.shape_cast %43 : vector<1x1x32x32xbf16> to vector<32x32xbf16>
    %c0_46 = arith.constant 0 : index
    %c2_47 = arith.constant 2 : index
    %c0_48 = arith.constant 0 : index
    %c0_49 = arith.constant 0 : index
    %45 = vector.load %arg20[%c0_46, %c2_47, %c0_48, %c0_49] : memref<3x3x32x32xbf16, #tpu.memory_space<vmem>>, vector<1x1x32x32xbf16>
    %46 = vector.shape_cast %45 : vector<1x1x32x32xbf16> to vector<32x32xbf16>
    %c0_50 = arith.constant 0 : index
    %c0_51 = arith.constant 0 : index
    %c0_52 = arith.constant 0 : index
    %47 = vector.load %arg21[%c0_50, %c0_51, %c0_52] : memref<3x1x32xf32, #tpu.memory_space<vmem>>, vector<1x1x32xf32>
    %48 = vector.shape_cast %47 : vector<1x1x32xf32> to vector<1x32xf32>
    %49 = arith.truncf %40 : vector<16x32xf32> to vector<16x32xbf16>
    %cst_53 = arith.constant dense<0.000000e+00> : vector<16x32xf32>
    %50 = tpu.matmul %3, %49, %cst_53 {dimension_numbers = #tpu.dot_dimension_numbers<[1], [0], [0], [1], [0, 0, 1, 1], [], []>} : vector<16x16xbf16>, vector<16x32xbf16>, vector<16x32xf32> -> vector<16x32xf32>
    %51 = arith.truncf %50 : vector<16x32xf32> to vector<16x32xbf16>
    %cst_54 = arith.constant dense<0.000000e+00> : vector<16x32xf32>
    %52 = tpu.matmul %51, %42, %cst_54 {dimension_numbers = #tpu.dot_dimension_numbers<[1], [0], [0], [1], [0, 0, 1, 1], [], []>} : vector<16x32xbf16>, vector<32x32xbf16>, vector<16x32xf32> -> vector<16x32xf32>
    %cst_55 = arith.constant dense<0.000000e+00> : vector<16x32xf32>
    %53 = tpu.matmul %5, %49, %cst_55 {dimension_numbers = #tpu.dot_dimension_numbers<[1], [0], [0], [1], [0, 0, 1, 1], [], []>} : vector<16x16xbf16>, vector<16x32xbf16>, vector<16x32xf32> -> vector<16x32xf32>
    %54 = arith.truncf %53 : vector<16x32xf32> to vector<16x32xbf16>
    %cst_56 = arith.constant dense<0.000000e+00> : vector<16x32xf32>
    %55 = tpu.matmul %54, %44, %cst_56 {dimension_numbers = #tpu.dot_dimension_numbers<[1], [0], [0], [1], [0, 0, 1, 1], [], []>} : vector<16x32xbf16>, vector<32x32xbf16>, vector<16x32xf32> -> vector<16x32xf32>
    %56 = arith.addf %52, %55 : vector<16x32xf32>
    %cst_57 = arith.constant dense<0.000000e+00> : vector<16x32xf32>
    %57 = tpu.matmul %7, %49, %cst_57 {dimension_numbers = #tpu.dot_dimension_numbers<[1], [0], [0], [1], [0, 0, 1, 1], [], []>} : vector<16x16xbf16>, vector<16x32xbf16>, vector<16x32xf32> -> vector<16x32xf32>
    %58 = arith.truncf %57 : vector<16x32xf32> to vector<16x32xbf16>
    %cst_58 = arith.constant dense<0.000000e+00> : vector<16x32xf32>
    %59 = tpu.matmul %58, %46, %cst_58 {dimension_numbers = #tpu.dot_dimension_numbers<[1], [0], [0], [1], [0, 0, 1, 1], [], []>} : vector<16x32xbf16>, vector<32x32xbf16>, vector<16x32xf32> -> vector<16x32xf32>
    %60 = arith.addf %56, %59 : vector<16x32xf32>
    %61 = vector.broadcast %48 : vector<1x32xf32> to vector<16x32xf32>
    %62 = arith.addf %60, %61 : vector<16x32xf32>
    %cst_59 = arith.constant 0.000000e+00 : f32
    %63 = vector.broadcast %cst_59 : f32 to vector<16x32xf32>
    %64 = arith.maximumf %62, %63 : vector<16x32xf32>
    %c0_60 = arith.constant 0 : index
    %c0_61 = arith.constant 0 : index
    %c0_62 = arith.constant 0 : index
    %65 = vector.load %arg22[%c0_60, %c0_61, %c0_62] : memref<3x1x32xf32, #tpu.memory_space<vmem>>, vector<1x1x32xf32>
    %66 = vector.shape_cast %65 : vector<1x1x32xf32> to vector<1x32xf32>
    %c0_63 = arith.constant 0 : index
    %c0_64 = arith.constant 0 : index
    %c0_65 = arith.constant 0 : index
    %67 = vector.load %arg23[%c0_63, %c0_64, %c0_65] : memref<3x1x32xf32, #tpu.memory_space<vmem>>, vector<1x1x32xf32>
    %68 = vector.shape_cast %67 : vector<1x1x32xf32> to vector<1x32xf32>
    %cst_66 = arith.constant dense<0.000000e+00> : vector<16xf32>
    %69 = vector.multi_reduction <add>, %64, %cst_66 [1] : vector<16x32xf32> to vector<16xf32>
    %70 = vector.shape_cast %69 : vector<16xf32> to vector<16x1xf32>
    %cst_67 = arith.constant 3.200000e+01 : f32
    %71 = vector.broadcast %cst_67 : f32 to vector<16x1xf32>
    %72 = arith.divf %70, %71 : vector<16x1xf32>
    %73 = vector.broadcast %72 : vector<16x1xf32> to vector<16x32xf32>
    %74 = arith.subf %64, %73 : vector<16x32xf32>
    %75 = arith.mulf %74, %74 : vector<16x32xf32>
    %cst_68 = arith.constant dense<0.000000e+00> : vector<16xf32>
    %76 = vector.multi_reduction <add>, %75, %cst_68 [1] : vector<16x32xf32> to vector<16xf32>
    %77 = vector.shape_cast %76 : vector<16xf32> to vector<16x1xf32>
    %cst_69 = arith.constant 3.200000e+01 : f32
    %78 = vector.broadcast %cst_69 : f32 to vector<16x1xf32>
    %79 = arith.divf %77, %78 : vector<16x1xf32>
    %80 = vector.broadcast %72 : vector<16x1xf32> to vector<16x32xf32>
    %81 = arith.subf %64, %80 : vector<16x32xf32>
    %cst_70 = arith.constant 9.99999974E-6 : f32
    %82 = vector.broadcast %cst_70 : f32 to vector<16x1xf32>
    %83 = arith.addf %79, %82 : vector<16x1xf32>
    %84 = math.rsqrt %83 : vector<16x1xf32>
    %85 = vector.broadcast %84 : vector<16x1xf32> to vector<16x32xf32>
    %86 = arith.mulf %81, %85 : vector<16x32xf32>
    %87 = vector.broadcast %66 : vector<1x32xf32> to vector<16x32xf32>
    %88 = arith.mulf %86, %87 : vector<16x32xf32>
    %89 = vector.broadcast %68 : vector<1x32xf32> to vector<16x32xf32>
    %90 = arith.addf %88, %89 : vector<16x32xf32>
    %c0_71 = arith.constant 0 : index
    %c0_72 = arith.constant 0 : index
    %c0_73 = arith.constant 0 : index
    %c0_74 = arith.constant 0 : index
    %91 = vector.load %arg24[%c0_71, %c0_72, %c0_73, %c0_74] : memref<3x3x32x32xbf16, #tpu.memory_space<vmem>>, vector<1x1x32x32xbf16>
    %92 = vector.shape_cast %91 : vector<1x1x32x32xbf16> to vector<32x32xbf16>
    %c0_75 = arith.constant 0 : index
    %c1_76 = arith.constant 1 : index
    %c0_77 = arith.constant 0 : index
    %c0_78 = arith.constant 0 : index
    %93 = vector.load %arg24[%c0_75, %c1_76, %c0_77, %c0_78] : memref<3x3x32x32xbf16, #tpu.memory_space<vmem>>, vector<1x1x32x32xbf16>
    %94 = vector.shape_cast %93 : vector<1x1x32x32xbf16> to vector<32x32xbf16>
    %c0_79 = arith.constant 0 : index
    %c2_80 = arith.constant 2 : index
    %c0_81 = arith.constant 0 : index
    %c0_82 = arith.constant 0 : index
    %95 = vector.load %arg24[%c0_79, %c2_80, %c0_81, %c0_82] : memref<3x3x32x32xbf16, #tpu.memory_space<vmem>>, vector<1x1x32x32xbf16>
    %96 = vector.shape_cast %95 : vector<1x1x32x32xbf16> to vector<32x32xbf16>
    %c0_83 = arith.constant 0 : index
    %c0_84 = arith.constant 0 : index
    %c0_85 = arith.constant 0 : index
    %97 = vector.load %arg25[%c0_83, %c0_84, %c0_85] : memref<3x1x32xf32, #tpu.memory_space<vmem>>, vector<1x1x32xf32>
    %98 = vector.shape_cast %97 : vector<1x1x32xf32> to vector<1x32xf32>
    %99 = arith.truncf %90 : vector<16x32xf32> to vector<16x32xbf16>
    %cst_86 = arith.constant dense<0.000000e+00> : vector<16x32xf32>
    %100 = tpu.matmul %3, %99, %cst_86 {dimension_numbers = #tpu.dot_dimension_numbers<[1], [0], [0], [1], [0, 0, 1, 1], [], []>} : vector<16x16xbf16>, vector<16x32xbf16>, vector<16x32xf32> -> vector<16x32xf32>
    %101 = arith.truncf %100 : vector<16x32xf32> to vector<16x32xbf16>
    %cst_87 = arith.constant dense<0.000000e+00> : vector<16x32xf32>
    %102 = tpu.matmul %101, %92, %cst_87 {dimension_numbers = #tpu.dot_dimension_numbers<[1], [0], [0], [1], [0, 0, 1, 1], [], []>} : vector<16x32xbf16>, vector<32x32xbf16>, vector<16x32xf32> -> vector<16x32xf32>
    %cst_88 = arith.constant dense<0.000000e+00> : vector<16x32xf32>
    %103 = tpu.matmul %5, %99, %cst_88 {dimension_numbers = #tpu.dot_dimension_numbers<[1], [0], [0], [1], [0, 0, 1, 1], [], []>} : vector<16x16xbf16>, vector<16x32xbf16>, vector<16x32xf32> -> vector<16x32xf32>
    %104 = arith.truncf %103 : vector<16x32xf32> to vector<16x32xbf16>
    %cst_89 = arith.constant dense<0.000000e+00> : vector<16x32xf32>
    %105 = tpu.matmul %104, %94, %cst_89 {dimension_numbers = #tpu.dot_dimension_numbers<[1], [0], [0], [1], [0, 0, 1, 1], [], []>} : vector<16x32xbf16>, vector<32x32xbf16>, vector<16x32xf32> -> vector<16x32xf32>
    %106 = arith.addf %102, %105 : vector<16x32xf32>
    %cst_90 = arith.constant dense<0.000000e+00> : vector<16x32xf32>
    %107 = tpu.matmul %7, %99, %cst_90 {dimension_numbers = #tpu.dot_dimension_numbers<[1], [0], [0], [1], [0, 0, 1, 1], [], []>} : vector<16x16xbf16>, vector<16x32xbf16>, vector<16x32xf32> -> vector<16x32xf32>
    %108 = arith.truncf %107 : vector<16x32xf32> to vector<16x32xbf16>
    %cst_91 = arith.constant dense<0.000000e+00> : vector<16x32xf32>
    %109 = tpu.matmul %108, %96, %cst_91 {dimension_numbers = #tpu.dot_dimension_numbers<[1], [0], [0], [1], [0, 0, 1, 1], [], []>} : vector<16x32xbf16>, vector<32x32xbf16>, vector<16x32xf32> -> vector<16x32xf32>
    %110 = arith.addf %106, %109 : vector<16x32xf32>
    %111 = vector.broadcast %98 : vector<1x32xf32> to vector<16x32xf32>
    %112 = arith.addf %110, %111 : vector<16x32xf32>
    %cst_92 = arith.constant 0.000000e+00 : f32
    %113 = vector.broadcast %cst_92 : f32 to vector<16x32xf32>
    %114 = arith.maximumf %112, %113 : vector<16x32xf32>
    %c0_93 = arith.constant 0 : index
    %c0_94 = arith.constant 0 : index
    %c0_95 = arith.constant 0 : index
    %115 = vector.load %arg26[%c0_93, %c0_94, %c0_95] : memref<3x1x32xf32, #tpu.memory_space<vmem>>, vector<1x1x32xf32>
    %116 = vector.shape_cast %115 : vector<1x1x32xf32> to vector<1x32xf32>
    %c0_96 = arith.constant 0 : index
    %c0_97 = arith.constant 0 : index
    %c0_98 = arith.constant 0 : index
    %117 = vector.load %arg27[%c0_96, %c0_97, %c0_98] : memref<3x1x32xf32, #tpu.memory_space<vmem>>, vector<1x1x32xf32>
    %118 = vector.shape_cast %117 : vector<1x1x32xf32> to vector<1x32xf32>
    %cst_99 = arith.constant dense<0.000000e+00> : vector<16xf32>
    %119 = vector.multi_reduction <add>, %114, %cst_99 [1] : vector<16x32xf32> to vector<16xf32>
    %120 = vector.shape_cast %119 : vector<16xf32> to vector<16x1xf32>
    %cst_100 = arith.constant 3.200000e+01 : f32
    %121 = vector.broadcast %cst_100 : f32 to vector<16x1xf32>
    %122 = arith.divf %120, %121 : vector<16x1xf32>
    %123 = vector.broadcast %122 : vector<16x1xf32> to vector<16x32xf32>
    %124 = arith.subf %114, %123 : vector<16x32xf32>
    %125 = arith.mulf %124, %124 : vector<16x32xf32>
    %cst_101 = arith.constant dense<0.000000e+00> : vector<16xf32>
    %126 = vector.multi_reduction <add>, %125, %cst_101 [1] : vector<16x32xf32> to vector<16xf32>
    %127 = vector.shape_cast %126 : vector<16xf32> to vector<16x1xf32>
    %cst_102 = arith.constant 3.200000e+01 : f32
    %128 = vector.broadcast %cst_102 : f32 to vector<16x1xf32>
    %129 = arith.divf %127, %128 : vector<16x1xf32>
    %130 = vector.broadcast %122 : vector<16x1xf32> to vector<16x32xf32>
    %131 = arith.subf %114, %130 : vector<16x32xf32>
    %cst_103 = arith.constant 9.99999974E-6 : f32
    %132 = vector.broadcast %cst_103 : f32 to vector<16x1xf32>
    %133 = arith.addf %129, %132 : vector<16x1xf32>
    %134 = math.rsqrt %133 : vector<16x1xf32>
    %135 = vector.broadcast %134 : vector<16x1xf32> to vector<16x32xf32>
    %136 = arith.mulf %131, %135 : vector<16x32xf32>
    %137 = vector.broadcast %116 : vector<1x32xf32> to vector<16x32xf32>
    %138 = arith.mulf %136, %137 : vector<16x32xf32>
    %139 = vector.broadcast %118 : vector<1x32xf32> to vector<16x32xf32>
    %140 = arith.addf %138, %139 : vector<16x32xf32>
    %141 = arith.truncf %140 : vector<16x32xf32> to vector<16x32xbf16>
    %c0_104 = arith.constant 0 : index
    %c0_105 = arith.constant 0 : index
    %c0_106 = arith.constant 0 : index
    %142 = vector.load %arg28[%c0_104, %c0_105, %c0_106] : memref<3x32x1xbf16, #tpu.memory_space<vmem>>, vector<1x32x1xbf16>
    %143 = vector.shape_cast %142 : vector<1x32x1xbf16> to vector<32x1xbf16>
    %cst_107 = arith.constant dense<0.000000e+00> : vector<16x1xf32>
    %144 = tpu.matmul %141, %143, %cst_107 {dimension_numbers = #tpu.dot_dimension_numbers<[1], [0], [0], [1], [0, 0, 1, 1], [], []>} : vector<16x32xbf16>, vector<32x1xbf16>, vector<16x1xf32> -> vector<16x1xf32>
    %c0_108 = arith.constant 0 : index
    %c0_109 = arith.constant 0 : index
    %c0_110 = arith.constant 0 : index
    %145 = vector.load %arg29[%c0_108, %c0_109, %c0_110] : memref<3x1x1xf32, #tpu.memory_space<vmem>>, vector<1x1x1xf32>
    %146 = vector.shape_cast %145 : vector<1x1x1xf32> to vector<1x1xf32>
    %147 = vector.broadcast %146 : vector<1x1xf32> to vector<16x1xf32>
    %148 = arith.addf %144, %147 : vector<16x1xf32>
    %149 = arith.mulf %148, %1 : vector<16x1xf32>
    %c0_111 = arith.constant 0 : index
    %c0_112 = arith.constant 0 : index
    %150 = vector.load %arg31[%c0_111, %c0_112] : memref<16x1xf32, #tpu.memory_space<vmem>>, vector<16x1xf32>
    tpu.vector_store %arg31[%c0_111, %c0_112], %149 {strides = array<i32>} : memref<16x1xf32, #tpu.memory_space<vmem>>, vector<16x1xf32>,
    %c1_113 = arith.constant 1 : index
    %c0_114 = arith.constant 0 : index
    %c0_115 = arith.constant 0 : index
    %c0_116 = arith.constant 0 : index
    %151 = vector.load %arg20[%c1_113, %c0_114, %c0_115, %c0_116] : memref<3x3x32x32xbf16, #tpu.memory_space<vmem>>, vector<1x1x32x32xbf16>
    %152 = vector.shape_cast %151 : vector<1x1x32x32xbf16> to vector<32x32xbf16>
    %c1_117 = arith.constant 1 : index
    %c1_118 = arith.constant 1 : index
    %c0_119 = arith.constant 0 : index
    %c0_120 = arith.constant 0 : index
    %153 = vector.load %arg20[%c1_117, %c1_118, %c0_119, %c0_120] : memref<3x3x32x32xbf16, #tpu.memory_space<vmem>>, vector<1x1x32x32xbf16>
    %154 = vector.shape_cast %153 : vector<1x1x32x32xbf16> to vector<32x32xbf16>
    %c1_121 = arith.constant 1 : index
    %c2_122 = arith.constant 2 : index
    %c0_123 = arith.constant 0 : index
    %c0_124 = arith.constant 0 : index
    %155 = vector.load %arg20[%c1_121, %c2_122, %c0_123, %c0_124] : memref<3x3x32x32xbf16, #tpu.memory_space<vmem>>, vector<1x1x32x32xbf16>
    %156 = vector.shape_cast %155 : vector<1x1x32x32xbf16> to vector<32x32xbf16>
    %c1_125 = arith.constant 1 : index
    %c0_126 = arith.constant 0 : index
    %c0_127 = arith.constant 0 : index
    %157 = vector.load %arg21[%c1_125, %c0_126, %c0_127] : memref<3x1x32xf32, #tpu.memory_space<vmem>>, vector<1x1x32xf32>
    %158 = vector.shape_cast %157 : vector<1x1x32xf32> to vector<1x32xf32>
    %159 = arith.truncf %40 : vector<16x32xf32> to vector<16x32xbf16>
    %cst_128 = arith.constant dense<0.000000e+00> : vector<16x32xf32>
    %160 = tpu.matmul %3, %159, %cst_128 {dimension_numbers = #tpu.dot_dimension_numbers<[1], [0], [0], [1], [0, 0, 1, 1], [], []>} : vector<16x16xbf16>, vector<16x32xbf16>, vector<16x32xf32> -> vector<16x32xf32>
    %161 = arith.truncf %160 : vector<16x32xf32> to vector<16x32xbf16>
    %cst_129 = arith.constant dense<0.000000e+00> : vector<16x32xf32>
    %162 = tpu.matmul %161, %152, %cst_129 {dimension_numbers = #tpu.dot_dimension_numbers<[1], [0], [0], [1], [0, 0, 1, 1], [], []>} : vector<16x32xbf16>, vector<32x32xbf16>, vector<16x32xf32> -> vector<16x32xf32>
    %cst_130 = arith.constant dense<0.000000e+00> : vector<16x32xf32>
    %163 = tpu.matmul %5, %159, %cst_130 {dimension_numbers = #tpu.dot_dimension_numbers<[1], [0], [0], [1], [0, 0, 1, 1], [], []>} : vector<16x16xbf16>, vector<16x32xbf16>, vector<16x32xf32> -> vector<16x32xf32>
    %164 = arith.truncf %163 : vector<16x32xf32> to vector<16x32xbf16>
    %cst_131 = arith.constant dense<0.000000e+00> : vector<16x32xf32>
    %165 = tpu.matmul %164, %154, %cst_131 {dimension_numbers = #tpu.dot_dimension_numbers<[1], [0], [0], [1], [0, 0, 1, 1], [], []>} : vector<16x32xbf16>, vector<32x32xbf16>, vector<16x32xf32> -> vector<16x32xf32>
    %166 = arith.addf %162, %165 : vector<16x32xf32>
    %cst_132 = arith.constant dense<0.000000e+00> : vector<16x32xf32>
    %167 = tpu.matmul %7, %159, %cst_132 {dimension_numbers = #tpu.dot_dimension_numbers<[1], [0], [0], [1], [0, 0, 1, 1], [], []>} : vector<16x16xbf16>, vector<16x32xbf16>, vector<16x32xf32> -> vector<16x32xf32>
    %168 = arith.truncf %167 : vector<16x32xf32> to vector<16x32xbf16>
    %cst_133 = arith.constant dense<0.000000e+00> : vector<16x32xf32>
    %169 = tpu.matmul %168, %156, %cst_133 {dimension_numbers = #tpu.dot_dimension_numbers<[1], [0], [0], [1], [0, 0, 1, 1], [], []>} : vector<16x32xbf16>, vector<32x32xbf16>, vector<16x32xf32> -> vector<16x32xf32>
    %170 = arith.addf %166, %169 : vector<16x32xf32>
    %171 = vector.broadcast %158 : vector<1x32xf32> to vector<16x32xf32>
    %172 = arith.addf %170, %171 : vector<16x32xf32>
    %cst_134 = arith.constant 0.000000e+00 : f32
    %173 = vector.broadcast %cst_134 : f32 to vector<16x32xf32>
    %174 = arith.maximumf %172, %173 : vector<16x32xf32>
    %c1_135 = arith.constant 1 : index
    %c0_136 = arith.constant 0 : index
    %c0_137 = arith.constant 0 : index
    %175 = vector.load %arg22[%c1_135, %c0_136, %c0_137] : memref<3x1x32xf32, #tpu.memory_space<vmem>>, vector<1x1x32xf32>
    %176 = vector.shape_cast %175 : vector<1x1x32xf32> to vector<1x32xf32>
    %c1_138 = arith.constant 1 : index
    %c0_139 = arith.constant 0 : index
    %c0_140 = arith.constant 0 : index
    %177 = vector.load %arg23[%c1_138, %c0_139, %c0_140] : memref<3x1x32xf32, #tpu.memory_space<vmem>>, vector<1x1x32xf32>
    %178 = vector.shape_cast %177 : vector<1x1x32xf32> to vector<1x32xf32>
    %cst_141 = arith.constant dense<0.000000e+00> : vector<16xf32>
    %179 = vector.multi_reduction <add>, %174, %cst_141 [1] : vector<16x32xf32> to vector<16xf32>
    %180 = vector.shape_cast %179 : vector<16xf32> to vector<16x1xf32>
    %cst_142 = arith.constant 3.200000e+01 : f32
    %181 = vector.broadcast %cst_142 : f32 to vector<16x1xf32>
    %182 = arith.divf %180, %181 : vector<16x1xf32>
    %183 = vector.broadcast %182 : vector<16x1xf32> to vector<16x32xf32>
    %184 = arith.subf %174, %183 : vector<16x32xf32>
    %185 = arith.mulf %184, %184 : vector<16x32xf32>
    %cst_143 = arith.constant dense<0.000000e+00> : vector<16xf32>
    %186 = vector.multi_reduction <add>, %185, %cst_143 [1] : vector<16x32xf32> to vector<16xf32>
    %187 = vector.shape_cast %186 : vector<16xf32> to vector<16x1xf32>
    %cst_144 = arith.constant 3.200000e+01 : f32
    %188 = vector.broadcast %cst_144 : f32 to vector<16x1xf32>
    %189 = arith.divf %187, %188 : vector<16x1xf32>
    %190 = vector.broadcast %182 : vector<16x1xf32> to vector<16x32xf32>
    %191 = arith.subf %174, %190 : vector<16x32xf32>
    %cst_145 = arith.constant 9.99999974E-6 : f32
    %192 = vector.broadcast %cst_145 : f32 to vector<16x1xf32>
    %193 = arith.addf %189, %192 : vector<16x1xf32>
    %194 = math.rsqrt %193 : vector<16x1xf32>
    %195 = vector.broadcast %194 : vector<16x1xf32> to vector<16x32xf32>
    %196 = arith.mulf %191, %195 : vector<16x32xf32>
    %197 = vector.broadcast %176 : vector<1x32xf32> to vector<16x32xf32>
    %198 = arith.mulf %196, %197 : vector<16x32xf32>
    %199 = vector.broadcast %178 : vector<1x32xf32> to vector<16x32xf32>
    %200 = arith.addf %198, %199 : vector<16x32xf32>
    %c1_146 = arith.constant 1 : index
    %c0_147 = arith.constant 0 : index
    %c0_148 = arith.constant 0 : index
    %c0_149 = arith.constant 0 : index
    %201 = vector.load %arg24[%c1_146, %c0_147, %c0_148, %c0_149] : memref<3x3x32x32xbf16, #tpu.memory_space<vmem>>, vector<1x1x32x32xbf16>
    %202 = vector.shape_cast %201 : vector<1x1x32x32xbf16> to vector<32x32xbf16>
    %c1_150 = arith.constant 1 : index
    %c1_151 = arith.constant 1 : index
    %c0_152 = arith.constant 0 : index
    %c0_153 = arith.constant 0 : index
    %203 = vector.load %arg24[%c1_150, %c1_151, %c0_152, %c0_153] : memref<3x3x32x32xbf16, #tpu.memory_space<vmem>>, vector<1x1x32x32xbf16>
    %204 = vector.shape_cast %203 : vector<1x1x32x32xbf16> to vector<32x32xbf16>
    %c1_154 = arith.constant 1 : index
    %c2_155 = arith.constant 2 : index
    %c0_156 = arith.constant 0 : index
    %c0_157 = arith.constant 0 : index
    %205 = vector.load %arg24[%c1_154, %c2_155, %c0_156, %c0_157] : memref<3x3x32x32xbf16, #tpu.memory_space<vmem>>, vector<1x1x32x32xbf16>
    %206 = vector.shape_cast %205 : vector<1x1x32x32xbf16> to vector<32x32xbf16>
    %c1_158 = arith.constant 1 : index
    %c0_159 = arith.constant 0 : index
    %c0_160 = arith.constant 0 : index
    %207 = vector.load %arg25[%c1_158, %c0_159, %c0_160] : memref<3x1x32xf32, #tpu.memory_space<vmem>>, vector<1x1x32xf32>
    %208 = vector.shape_cast %207 : vector<1x1x32xf32> to vector<1x32xf32>
    %209 = arith.truncf %200 : vector<16x32xf32> to vector<16x32xbf16>
    %cst_161 = arith.constant dense<0.000000e+00> : vector<16x32xf32>
    %210 = tpu.matmul %3, %209, %cst_161 {dimension_numbers = #tpu.dot_dimension_numbers<[1], [0], [0], [1], [0, 0, 1, 1], [], []>} : vector<16x16xbf16>, vector<16x32xbf16>, vector<16x32xf32> -> vector<16x32xf32>
    %211 = arith.truncf %210 : vector<16x32xf32> to vector<16x32xbf16>
    %cst_162 = arith.constant dense<0.000000e+00> : vector<16x32xf32>
    %212 = tpu.matmul %211, %202, %cst_162 {dimension_numbers = #tpu.dot_dimension_numbers<[1], [0], [0], [1], [0, 0, 1, 1], [], []>} : vector<16x32xbf16>, vector<32x32xbf16>, vector<16x32xf32> -> vector<16x32xf32>
    %cst_163 = arith.constant dense<0.000000e+00> : vector<16x32xf32>
    %213 = tpu.matmul %5, %209, %cst_163 {dimension_numbers = #tpu.dot_dimension_numbers<[1], [0], [0], [1], [0, 0, 1, 1], [], []>} : vector<16x16xbf16>, vector<16x32xbf16>, vector<16x32xf32> -> vector<16x32xf32>
    %214 = arith.truncf %213 : vector<16x32xf32> to vector<16x32xbf16>
    %cst_164 = arith.constant dense<0.000000e+00> : vector<16x32xf32>
    %215 = tpu.matmul %214, %204, %cst_164 {dimension_numbers = #tpu.dot_dimension_numbers<[1], [0], [0], [1], [0, 0, 1, 1], [], []>} : vector<16x32xbf16>, vector<32x32xbf16>, vector<16x32xf32> -> vector<16x32xf32>
    %216 = arith.addf %212, %215 : vector<16x32xf32>
    %cst_165 = arith.constant dense<0.000000e+00> : vector<16x32xf32>
    %217 = tpu.matmul %7, %209, %cst_165 {dimension_numbers = #tpu.dot_dimension_numbers<[1], [0], [0], [1], [0, 0, 1, 1], [], []>} : vector<16x16xbf16>, vector<16x32xbf16>, vector<16x32xf32> -> vector<16x32xf32>
    %218 = arith.truncf %217 : vector<16x32xf32> to vector<16x32xbf16>
    %cst_166 = arith.constant dense<0.000000e+00> : vector<16x32xf32>
    %219 = tpu.matmul %218, %206, %cst_166 {dimension_numbers = #tpu.dot_dimension_numbers<[1], [0], [0], [1], [0, 0, 1, 1], [], []>} : vector<16x32xbf16>, vector<32x32xbf16>, vector<16x32xf32> -> vector<16x32xf32>
    %220 = arith.addf %216, %219 : vector<16x32xf32>
    %221 = vector.broadcast %208 : vector<1x32xf32> to vector<16x32xf32>
    %222 = arith.addf %220, %221 : vector<16x32xf32>
    %cst_167 = arith.constant 0.000000e+00 : f32
    %223 = vector.broadcast %cst_167 : f32 to vector<16x32xf32>
    %224 = arith.maximumf %222, %223 : vector<16x32xf32>
    %c1_168 = arith.constant 1 : index
    %c0_169 = arith.constant 0 : index
    %c0_170 = arith.constant 0 : index
    %225 = vector.load %arg26[%c1_168, %c0_169, %c0_170] : memref<3x1x32xf32, #tpu.memory_space<vmem>>, vector<1x1x32xf32>
    %226 = vector.shape_cast %225 : vector<1x1x32xf32> to vector<1x32xf32>
    %c1_171 = arith.constant 1 : index
    %c0_172 = arith.constant 0 : index
    %c0_173 = arith.constant 0 : index
    %227 = vector.load %arg27[%c1_171, %c0_172, %c0_173] : memref<3x1x32xf32, #tpu.memory_space<vmem>>, vector<1x1x32xf32>
    %228 = vector.shape_cast %227 : vector<1x1x32xf32> to vector<1x32xf32>
    %cst_174 = arith.constant dense<0.000000e+00> : vector<16xf32>
    %229 = vector.multi_reduction <add>, %224, %cst_174 [1] : vector<16x32xf32> to vector<16xf32>
    %230 = vector.shape_cast %229 : vector<16xf32> to vector<16x1xf32>
    %cst_175 = arith.constant 3.200000e+01 : f32
    %231 = vector.broadcast %cst_175 : f32 to vector<16x1xf32>
    %232 = arith.divf %230, %231 : vector<16x1xf32>
    %233 = vector.broadcast %232 : vector<16x1xf32> to vector<16x32xf32>
    %234 = arith.subf %224, %233 : vector<16x32xf32>
    %235 = arith.mulf %234, %234 : vector<16x32xf32>
    %cst_176 = arith.constant dense<0.000000e+00> : vector<16xf32>
    %236 = vector.multi_reduction <add>, %235, %cst_176 [1] : vector<16x32xf32> to vector<16xf32>
    %237 = vector.shape_cast %236 : vector<16xf32> to vector<16x1xf32>
    %cst_177 = arith.constant 3.200000e+01 : f32
    %238 = vector.broadcast %cst_177 : f32 to vector<16x1xf32>
    %239 = arith.divf %237, %238 : vector<16x1xf32>
    %240 = vector.broadcast %232 : vector<16x1xf32> to vector<16x32xf32>
    %241 = arith.subf %224, %240 : vector<16x32xf32>
    %cst_178 = arith.constant 9.99999974E-6 : f32
    %242 = vector.broadcast %cst_178 : f32 to vector<16x1xf32>
    %243 = arith.addf %239, %242 : vector<16x1xf32>
    %244 = math.rsqrt %243 : vector<16x1xf32>
    %245 = vector.broadcast %244 : vector<16x1xf32> to vector<16x32xf32>
    %246 = arith.mulf %241, %245 : vector<16x32xf32>
    %247 = vector.broadcast %226 : vector<1x32xf32> to vector<16x32xf32>
    %248 = arith.mulf %246, %247 : vector<16x32xf32>
    %249 = vector.broadcast %228 : vector<1x32xf32> to vector<16x32xf32>
    %250 = arith.addf %248, %249 : vector<16x32xf32>
    %251 = arith.truncf %250 : vector<16x32xf32> to vector<16x32xbf16>
    %c1_179 = arith.constant 1 : index
    %c0_180 = arith.constant 0 : index
    %c0_181 = arith.constant 0 : index
    %252 = vector.load %arg28[%c1_179, %c0_180, %c0_181] : memref<3x32x1xbf16, #tpu.memory_space<vmem>>, vector<1x32x1xbf16>
    %253 = vector.shape_cast %252 : vector<1x32x1xbf16> to vector<32x1xbf16>
    %cst_182 = arith.constant dense<0.000000e+00> : vector<16x1xf32>
    %254 = tpu.matmul %251, %253, %cst_182 {dimension_numbers = #tpu.dot_dimension_numbers<[1], [0], [0], [1], [0, 0, 1, 1], [], []>} : vector<16x32xbf16>, vector<32x1xbf16>, vector<16x1xf32> -> vector<16x1xf32>
    %c1_183 = arith.constant 1 : index
    %c0_184 = arith.constant 0 : index
    %c0_185 = arith.constant 0 : index
    %255 = vector.load %arg29[%c1_183, %c0_184, %c0_185] : memref<3x1x1xf32, #tpu.memory_space<vmem>>, vector<1x1x1xf32>
    %256 = vector.shape_cast %255 : vector<1x1x1xf32> to vector<1x1xf32>
    %257 = vector.broadcast %256 : vector<1x1xf32> to vector<16x1xf32>
    %258 = arith.addf %254, %257 : vector<16x1xf32>
    %259 = arith.mulf %258, %1 : vector<16x1xf32>
    %c0_186 = arith.constant 0 : index
    %c0_187 = arith.constant 0 : index
    %260 = vector.load %arg32[%c0_186, %c0_187] : memref<16x1xf32, #tpu.memory_space<vmem>>, vector<16x1xf32>
    tpu.vector_store %arg32[%c0_186, %c0_187], %259 {strides = array<i32>} : memref<16x1xf32, #tpu.memory_space<vmem>>, vector<16x1xf32>,
    %c0_188 = arith.constant 0 : index
    %c0_189 = arith.constant 0 : index
    %261 = vector.load %arg6[%c0_188, %c0_189] : memref<16x1xf32, #tpu.memory_space<vmem>>, vector<16x1xf32>
    %c0_190 = arith.constant 0 : index
    %c0_191 = arith.constant 0 : index
    %262 = vector.load %arg8[%c0_190, %c0_191] : memref<1x15xf32, #tpu.memory_space<vmem>>, vector<1x15xf32>
    %263 = vector.broadcast %261 : vector<16x1xf32> to vector<16x15xf32>
    %264 = vector.broadcast %262 : vector<1x15xf32> to vector<16x15xf32>
    %265 = arith.cmpf oge, %263, %264 : vector<16x15xf32>
    %266 = arith.extui %265 : vector<16x15xi1> to vector<16x15xi32>
    %cst_192 = arith.constant dense<0> : vector<16xi32>
    %267 = vector.multi_reduction <add>, %266, %cst_192 [1] : vector<16x15xi32> to vector<16xi32>
    %268 = vector.shape_cast %267 : vector<16xi32> to vector<16x1xi32>
    %269 = tpu.iota {dimensions = array<i32: 1>} : vector<1x16xi32>
    %270 = vector.broadcast %268 : vector<16x1xi32> to vector<16x16xi32>
    %271 = vector.broadcast %269 : vector<1x16xi32> to vector<16x16xi32>
    %272 = arith.cmpi eq, %270, %271 : vector<16x16xi32>
    %273 = arith.extui %272 : vector<16x16xi1> to vector<16x16xi32>
    %274 = arith.sitofp %273 : vector<16x16xi32> to vector<16x16xf32>
    %c0_193 = arith.constant 0 : index
    %c0_194 = arith.constant 0 : index
    %275 = vector.load %arg10[%c0_193, %c0_194] : memref<16x32xf32, #tpu.memory_space<vmem>>, vector<16x32xf32>
    %cst_195 = arith.constant dense<0.000000e+00> : vector<16x32xf32>
    %276 = tpu.matmul %274, %275, %cst_195 {dimension_numbers = #tpu.dot_dimension_numbers<[1], [0], [0], [1], [0, 0, 1, 1], [], []>} : vector<16x16xf32>, vector<16x32xf32>, vector<16x32xf32> -> vector<16x32xf32>
    %277 = arith.addf %40, %276 : vector<16x32xf32>
    %c2_196 = arith.constant 2 : index
    %c0_197 = arith.constant 0 : index
    %c0_198 = arith.constant 0 : index
    %c0_199 = arith.constant 0 : index
    %278 = vector.load %arg20[%c2_196, %c0_197, %c0_198, %c0_199] : memref<3x3x32x32xbf16, #tpu.memory_space<vmem>>, vector<1x1x32x32xbf16>
    %279 = vector.shape_cast %278 : vector<1x1x32x32xbf16> to vector<32x32xbf16>
    %c2_200 = arith.constant 2 : index
    %c1_201 = arith.constant 1 : index
    %c0_202 = arith.constant 0 : index
    %c0_203 = arith.constant 0 : index
    %280 = vector.load %arg20[%c2_200, %c1_201, %c0_202, %c0_203] : memref<3x3x32x32xbf16, #tpu.memory_space<vmem>>, vector<1x1x32x32xbf16>
    %281 = vector.shape_cast %280 : vector<1x1x32x32xbf16> to vector<32x32xbf16>
    %c2_204 = arith.constant 2 : index
    %c2_205 = arith.constant 2 : index
    %c0_206 = arith.constant 0 : index
    %c0_207 = arith.constant 0 : index
    %282 = vector.load %arg20[%c2_204, %c2_205, %c0_206, %c0_207] : memref<3x3x32x32xbf16, #tpu.memory_space<vmem>>, vector<1x1x32x32xbf16>
    %283 = vector.shape_cast %282 : vector<1x1x32x32xbf16> to vector<32x32xbf16>
    %c2_208 = arith.constant 2 : index
    %c0_209 = arith.constant 0 : index
    %c0_210 = arith.constant 0 : index
    %284 = vector.load %arg21[%c2_208, %c0_209, %c0_210] : memref<3x1x32xf32, #tpu.memory_space<vmem>>, vector<1x1x32xf32>
    %285 = vector.shape_cast %284 : vector<1x1x32xf32> to vector<1x32xf32>
    %286 = arith.truncf %277 : vector<16x32xf32> to vector<16x32xbf16>
    %cst_211 = arith.constant dense<0.000000e+00> : vector<16x32xf32>
    %287 = tpu.matmul %3, %286, %cst_211 {dimension_numbers = #tpu.dot_dimension_numbers<[1], [0], [0], [1], [0, 0, 1, 1], [], []>} : vector<16x16xbf16>, vector<16x32xbf16>, vector<16x32xf32> -> vector<16x32xf32>
    %288 = arith.truncf %287 : vector<16x32xf32> to vector<16x32xbf16>
    %cst_212 = arith.constant dense<0.000000e+00> : vector<16x32xf32>
    %289 = tpu.matmul %288, %279, %cst_212 {dimension_numbers = #tpu.dot_dimension_numbers<[1], [0], [0], [1], [0, 0, 1, 1], [], []>} : vector<16x32xbf16>, vector<32x32xbf16>, vector<16x32xf32> -> vector<16x32xf32>
    %cst_213 = arith.constant dense<0.000000e+00> : vector<16x32xf32>
    %290 = tpu.matmul %5, %286, %cst_213 {dimension_numbers = #tpu.dot_dimension_numbers<[1], [0], [0], [1], [0, 0, 1, 1], [], []>} : vector<16x16xbf16>, vector<16x32xbf16>, vector<16x32xf32> -> vector<16x32xf32>
    %291 = arith.truncf %290 : vector<16x32xf32> to vector<16x32xbf16>
    %cst_214 = arith.constant dense<0.000000e+00> : vector<16x32xf32>
    %292 = tpu.matmul %291, %281, %cst_214 {dimension_numbers = #tpu.dot_dimension_numbers<[1], [0], [0], [1], [0, 0, 1, 1], [], []>} : vector<16x32xbf16>, vector<32x32xbf16>, vector<16x32xf32> -> vector<16x32xf32>
    %293 = arith.addf %289, %292 : vector<16x32xf32>
    %cst_215 = arith.constant dense<0.000000e+00> : vector<16x32xf32>
    %294 = tpu.matmul %7, %286, %cst_215 {dimension_numbers = #tpu.dot_dimension_numbers<[1], [0], [0], [1], [0, 0, 1, 1], [], []>} : vector<16x16xbf16>, vector<16x32xbf16>, vector<16x32xf32> -> vector<16x32xf32>
    %295 = arith.truncf %294 : vector<16x32xf32> to vector<16x32xbf16>
    %cst_216 = arith.constant dense<0.000000e+00> : vector<16x32xf32>
    %296 = tpu.matmul %295, %283, %cst_216 {dimension_numbers = #tpu.dot_dimension_numbers<[1], [0], [0], [1], [0, 0, 1, 1], [], []>} : vector<16x32xbf16>, vector<32x32xbf16>, vector<16x32xf32> -> vector<16x32xf32>
    %297 = arith.addf %293, %296 : vector<16x32xf32>
    %298 = vector.broadcast %285 : vector<1x32xf32> to vector<16x32xf32>
    %299 = arith.addf %297, %298 : vector<16x32xf32>
    %cst_217 = arith.constant 0.000000e+00 : f32
    %300 = vector.broadcast %cst_217 : f32 to vector<16x32xf32>
    %301 = arith.maximumf %299, %300 : vector<16x32xf32>
    %c2_218 = arith.constant 2 : index
    %c0_219 = arith.constant 0 : index
    %c0_220 = arith.constant 0 : index
    %302 = vector.load %arg22[%c2_218, %c0_219, %c0_220] : memref<3x1x32xf32, #tpu.memory_space<vmem>>, vector<1x1x32xf32>
    %303 = vector.shape_cast %302 : vector<1x1x32xf32> to vector<1x32xf32>
    %c2_221 = arith.constant 2 : index
    %c0_222 = arith.constant 0 : index
    %c0_223 = arith.constant 0 : index
    %304 = vector.load %arg23[%c2_221, %c0_222, %c0_223] : memref<3x1x32xf32, #tpu.memory_space<vmem>>, vector<1x1x32xf32>
    %305 = vector.shape_cast %304 : vector<1x1x32xf32> to vector<1x32xf32>
    %cst_224 = arith.constant dense<0.000000e+00> : vector<16xf32>
    %306 = vector.multi_reduction <add>, %301, %cst_224 [1] : vector<16x32xf32> to vector<16xf32>
    %307 = vector.shape_cast %306 : vector<16xf32> to vector<16x1xf32>
    %cst_225 = arith.constant 3.200000e+01 : f32
    %308 = vector.broadcast %cst_225 : f32 to vector<16x1xf32>
    %309 = arith.divf %307, %308 : vector<16x1xf32>
    %310 = vector.broadcast %309 : vector<16x1xf32> to vector<16x32xf32>
    %311 = arith.subf %301, %310 : vector<16x32xf32>
    %312 = arith.mulf %311, %311 : vector<16x32xf32>
    %cst_226 = arith.constant dense<0.000000e+00> : vector<16xf32>
    %313 = vector.multi_reduction <add>, %312, %cst_226 [1] : vector<16x32xf32> to vector<16xf32>
    %314 = vector.shape_cast %313 : vector<16xf32> to vector<16x1xf32>
    %cst_227 = arith.constant 3.200000e+01 : f32
    %315 = vector.broadcast %cst_227 : f32 to vector<16x1xf32>
    %316 = arith.divf %314, %315 : vector<16x1xf32>
    %317 = vector.broadcast %309 : vector<16x1xf32> to vector<16x32xf32>
    %318 = arith.subf %301, %317 : vector<16x32xf32>
    %cst_228 = arith.constant 9.99999974E-6 : f32
    %319 = vector.broadcast %cst_228 : f32 to vector<16x1xf32>
    %320 = arith.addf %316, %319 : vector<16x1xf32>
    %321 = math.rsqrt %320 : vector<16x1xf32>
    %322 = vector.broadcast %321 : vector<16x1xf32> to vector<16x32xf32>
    %323 = arith.mulf %318, %322 : vector<16x32xf32>
    %324 = vector.broadcast %303 : vector<1x32xf32> to vector<16x32xf32>
    %325 = arith.mulf %323, %324 : vector<16x32xf32>
    %326 = vector.broadcast %305 : vector<1x32xf32> to vector<16x32xf32>
    %327 = arith.addf %325, %326 : vector<16x32xf32>
    %c2_229 = arith.constant 2 : index
    %c0_230 = arith.constant 0 : index
    %c0_231 = arith.constant 0 : index
    %c0_232 = arith.constant 0 : index
    %328 = vector.load %arg24[%c2_229, %c0_230, %c0_231, %c0_232] : memref<3x3x32x32xbf16, #tpu.memory_space<vmem>>, vector<1x1x32x32xbf16>
    %329 = vector.shape_cast %328 : vector<1x1x32x32xbf16> to vector<32x32xbf16>
    %c2_233 = arith.constant 2 : index
    %c1_234 = arith.constant 1 : index
    %c0_235 = arith.constant 0 : index
    %c0_236 = arith.constant 0 : index
    %330 = vector.load %arg24[%c2_233, %c1_234, %c0_235, %c0_236] : memref<3x3x32x32xbf16, #tpu.memory_space<vmem>>, vector<1x1x32x32xbf16>
    %331 = vector.shape_cast %330 : vector<1x1x32x32xbf16> to vector<32x32xbf16>
    %c2_237 = arith.constant 2 : index
    %c2_238 = arith.constant 2 : index
    %c0_239 = arith.constant 0 : index
    %c0_240 = arith.constant 0 : index
    %332 = vector.load %arg24[%c2_237, %c2_238, %c0_239, %c0_240] : memref<3x3x32x32xbf16, #tpu.memory_space<vmem>>, vector<1x1x32x32xbf16>
    %333 = vector.shape_cast %332 : vector<1x1x32x32xbf16> to vector<32x32xbf16>
    %c2_241 = arith.constant 2 : index
    %c0_242 = arith.constant 0 : index
    %c0_243 = arith.constant 0 : index
    %334 = vector.load %arg25[%c2_241, %c0_242, %c0_243] : memref<3x1x32xf32, #tpu.memory_space<vmem>>, vector<1x1x32xf32>
    %335 = vector.shape_cast %334 : vector<1x1x32xf32> to vector<1x32xf32>
    %336 = arith.truncf %327 : vector<16x32xf32> to vector<16x32xbf16>
    %cst_244 = arith.constant dense<0.000000e+00> : vector<16x32xf32>
    %337 = tpu.matmul %3, %336, %cst_244 {dimension_numbers = #tpu.dot_dimension_numbers<[1], [0], [0], [1], [0, 0, 1, 1], [], []>} : vector<16x16xbf16>, vector<16x32xbf16>, vector<16x32xf32> -> vector<16x32xf32>
    %338 = arith.truncf %337 : vector<16x32xf32> to vector<16x32xbf16>
    %cst_245 = arith.constant dense<0.000000e+00> : vector<16x32xf32>
    %339 = tpu.matmul %338, %329, %cst_245 {dimension_numbers = #tpu.dot_dimension_numbers<[1], [0], [0], [1], [0, 0, 1, 1], [], []>} : vector<16x32xbf16>, vector<32x32xbf16>, vector<16x32xf32> -> vector<16x32xf32>
    %cst_246 = arith.constant dense<0.000000e+00> : vector<16x32xf32>
    %340 = tpu.matmul %5, %336, %cst_246 {dimension_numbers = #tpu.dot_dimension_numbers<[1], [0], [0], [1], [0, 0, 1, 1], [], []>} : vector<16x16xbf16>, vector<16x32xbf16>, vector<16x32xf32> -> vector<16x32xf32>
    %341 = arith.truncf %340 : vector<16x32xf32> to vector<16x32xbf16>
    %cst_247 = arith.constant dense<0.000000e+00> : vector<16x32xf32>
    %342 = tpu.matmul %341, %331, %cst_247 {dimension_numbers = #tpu.dot_dimension_numbers<[1], [0], [0], [1], [0, 0, 1, 1], [], []>} : vector<16x32xbf16>, vector<32x32xbf16>, vector<16x32xf32> -> vector<16x32xf32>
    %343 = arith.addf %339, %342 : vector<16x32xf32>
    %cst_248 = arith.constant dense<0.000000e+00> : vector<16x32xf32>
    %344 = tpu.matmul %7, %336, %cst_248 {dimension_numbers = #tpu.dot_dimension_numbers<[1], [0], [0], [1], [0, 0, 1, 1], [], []>} : vector<16x16xbf16>, vector<16x32xbf16>, vector<16x32xf32> -> vector<16x32xf32>
    %345 = arith.truncf %344 : vector<16x32xf32> to vector<16x32xbf16>
    %cst_249 = arith.constant dense<0.000000e+00> : vector<16x32xf32>
    %346 = tpu.matmul %345, %333, %cst_249 {dimension_numbers = #tpu.dot_dimension_numbers<[1], [0], [0], [1], [0, 0, 1, 1], [], []>} : vector<16x32xbf16>, vector<32x32xbf16>, vector<16x32xf32> -> vector<16x32xf32>
    %347 = arith.addf %343, %346 : vector<16x32xf32>
    %348 = vector.broadcast %335 : vector<1x32xf32> to vector<16x32xf32>
    %349 = arith.addf %347, %348 : vector<16x32xf32>
    %cst_250 = arith.constant 0.000000e+00 : f32
    %350 = vector.broadcast %cst_250 : f32 to vector<16x32xf32>
    %351 = arith.maximumf %349, %350 : vector<16x32xf32>
    %c2_251 = arith.constant 2 : index
    %c0_252 = arith.constant 0 : index
    %c0_253 = arith.constant 0 : index
    %352 = vector.load %arg26[%c2_251, %c0_252, %c0_253] : memref<3x1x32xf32, #tpu.memory_space<vmem>>, vector<1x1x32xf32>
    %353 = vector.shape_cast %352 : vector<1x1x32xf32> to vector<1x32xf32>
    %c2_254 = arith.constant 2 : index
    %c0_255 = arith.constant 0 : index
    %c0_256 = arith.constant 0 : index
    %354 = vector.load %arg27[%c2_254, %c0_255, %c0_256] : memref<3x1x32xf32, #tpu.memory_space<vmem>>, vector<1x1x32xf32>
    %355 = vector.shape_cast %354 : vector<1x1x32xf32> to vector<1x32xf32>
    %cst_257 = arith.constant dense<0.000000e+00> : vector<16xf32>
    %356 = vector.multi_reduction <add>, %351, %cst_257 [1] : vector<16x32xf32> to vector<16xf32>
    %357 = vector.shape_cast %356 : vector<16xf32> to vector<16x1xf32>
    %cst_258 = arith.constant 3.200000e+01 : f32
    %358 = vector.broadcast %cst_258 : f32 to vector<16x1xf32>
    %359 = arith.divf %357, %358 : vector<16x1xf32>
    %360 = vector.broadcast %359 : vector<16x1xf32> to vector<16x32xf32>
    %361 = arith.subf %351, %360 : vector<16x32xf32>
    %362 = arith.mulf %361, %361 : vector<16x32xf32>
    %cst_259 = arith.constant dense<0.000000e+00> : vector<16xf32>
    %363 = vector.multi_reduction <add>, %362, %cst_259 [1] : vector<16x32xf32> to vector<16xf32>
    %364 = vector.shape_cast %363 : vector<16xf32> to vector<16x1xf32>
    %cst_260 = arith.constant 3.200000e+01 : f32
    %365 = vector.broadcast %cst_260 : f32 to vector<16x1xf32>
    %366 = arith.divf %364, %365 : vector<16x1xf32>
    %367 = vector.broadcast %359 : vector<16x1xf32> to vector<16x32xf32>
    %368 = arith.subf %351, %367 : vector<16x32xf32>
    %cst_261 = arith.constant 9.99999974E-6 : f32
    %369 = vector.broadcast %cst_261 : f32 to vector<16x1xf32>
    %370 = arith.addf %366, %369 : vector<16x1xf32>
    %371 = math.rsqrt %370 : vector<16x1xf32>
    %372 = vector.broadcast %371 : vector<16x1xf32> to vector<16x32xf32>
    %373 = arith.mulf %368, %372 : vector<16x32xf32>
    %374 = vector.broadcast %353 : vector<1x32xf32> to vector<16x32xf32>
    %375 = arith.mulf %373, %374 : vector<16x32xf32>
    %376 = vector.broadcast %355 : vector<1x32xf32> to vector<16x32xf32>
    %377 = arith.addf %375, %376 : vector<16x32xf32>
    %378 = arith.truncf %377 : vector<16x32xf32> to vector<16x32xbf16>
    %c2_262 = arith.constant 2 : index
    %c0_263 = arith.constant 0 : index
    %c0_264 = arith.constant 0 : index
    %379 = vector.load %arg28[%c2_262, %c0_263, %c0_264] : memref<3x32x1xbf16, #tpu.memory_space<vmem>>, vector<1x32x1xbf16>
    %380 = vector.shape_cast %379 : vector<1x32x1xbf16> to vector<32x1xbf16>
    %cst_265 = arith.constant dense<0.000000e+00> : vector<16x1xf32>
    %381 = tpu.matmul %378, %380, %cst_265 {dimension_numbers = #tpu.dot_dimension_numbers<[1], [0], [0], [1], [0, 0, 1, 1], [], []>} : vector<16x32xbf16>, vector<32x1xbf16>, vector<16x1xf32> -> vector<16x1xf32>
    %c2_266 = arith.constant 2 : index
    %c0_267 = arith.constant 0 : index
    %c0_268 = arith.constant 0 : index
    %382 = vector.load %arg29[%c2_266, %c0_267, %c0_268] : memref<3x1x1xf32, #tpu.memory_space<vmem>>, vector<1x1x1xf32>
    %383 = vector.shape_cast %382 : vector<1x1x1xf32> to vector<1x1xf32>
    %384 = vector.broadcast %383 : vector<1x1xf32> to vector<16x1xf32>
    %385 = arith.addf %381, %384 : vector<16x1xf32>
    %386 = arith.mulf %385, %1 : vector<16x1xf32>
    %c0_269 = arith.constant 0 : index
    %c0_270 = arith.constant 0 : index
    %387 = vector.load %arg33[%c0_269, %c0_270] : memref<16x1xf32, #tpu.memory_space<vmem>>, vector<16x1xf32>
    tpu.vector_store %arg33[%c0_269, %c0_270], %386 {strides = array<i32>} : memref<16x1xf32, #tpu.memory_space<vmem>>, vector<16x1xf32>,
    %c0_271 = arith.constant 0 : index
    %c0_272 = arith.constant 0 : index
    %388 = vector.load %arg7[%c0_271, %c0_272] : memref<16x1xf32, #tpu.memory_space<vmem>>, vector<16x1xf32>
    %c0_273 = arith.constant 0 : index
    %c0_274 = arith.constant 0 : index
    %389 = vector.load %arg9[%c0_273, %c0_274] : memref<1x15xf32, #tpu.memory_space<vmem>>, vector<1x15xf32>
    %390 = vector.broadcast %388 : vector<16x1xf32> to vector<16x15xf32>
    %391 = vector.broadcast %389 : vector<1x15xf32> to vector<16x15xf32>
    %392 = arith.cmpf oge, %390, %391 : vector<16x15xf32>
    %393 = arith.extui %392 : vector<16x15xi1> to vector<16x15xi32>
    %cst_275 = arith.constant dense<0> : vector<16xi32>
    %394 = vector.multi_reduction <add>, %393, %cst_275 [1] : vector<16x15xi32> to vector<16xi32>
    %395 = vector.shape_cast %394 : vector<16xi32> to vector<16x1xi32>
    %396 = tpu.iota {dimensions = array<i32: 1>} : vector<1x16xi32>
    %397 = vector.broadcast %395 : vector<16x1xi32> to vector<16x16xi32>
    %398 = vector.broadcast %396 : vector<1x16xi32> to vector<16x16xi32>
    %399 = arith.cmpi eq, %397, %398 : vector<16x16xi32>
    %400 = arith.extui %399 : vector<16x16xi1> to vector<16x16xi32>
    %401 = arith.sitofp %400 : vector<16x16xi32> to vector<16x16xf32>
    %c0_276 = arith.constant 0 : index
    %c0_277 = arith.constant 0 : index
    %402 = vector.load %arg11[%c0_276, %c0_277] : memref<16x32xf32, #tpu.memory_space<vmem>>, vector<16x32xf32>
    %cst_278 = arith.constant dense<0.000000e+00> : vector<16x32xf32>
    %403 = tpu.matmul %401, %402, %cst_278 {dimension_numbers = #tpu.dot_dimension_numbers<[1], [0], [0], [1], [0, 0, 1, 1], [], []>} : vector<16x16xf32>, vector<16x32xf32>, vector<16x32xf32> -> vector<16x32xf32>
    %404 = arith.addf %277, %403 : vector<16x32xf32>
    %c0_279 = arith.constant 0 : index
    %c0_280 = arith.constant 0 : index
    %405 = vector.load %arg34[%c0_279, %c0_280] : memref<16x32xf32, #tpu.memory_space<vmem>>, vector<16x32xf32>
    tpu.vector_store %arg34[%c0_279, %c0_280], %404 {strides = array<i32>} : memref<16x32xf32, #tpu.memory_space<vmem>>, vector<16x32xf32>,
    return
  }
  func.func @transform_0(%arg0: i32) -> (i32, i32) {
    %c0_i32 = arith.constant 0 : i32
    %c0_i32_0 = arith.constant 0 : i32
    %c0_i32_1 = arith.constant 0 : i32
    return %c0_i32, %c0_i32_0 : i32, i32
  }
  func.func @transform_1(%arg0: i32) -> (i32, i32) {
    %c0_i32 = arith.constant 0 : i32
    %c0_i32_0 = arith.constant 0 : i32
    %c0_i32_1 = arith.constant 0 : i32
    return %c0_i32, %c0_i32_0 : i32, i32
  }
  func.func @transform_2(%arg0: i32) -> (i32, i32, i32) {
    %c0_i32 = arith.constant 0 : i32
    %c0_i32_0 = arith.constant 0 : i32
    %c0_i32_1 = arith.constant 0 : i32
    %c0_i32_2 = arith.constant 0 : i32
    return %c0_i32, %c0_i32_0, %c0_i32_1 : i32, i32, i32
  }
  func.func @transform_3(%arg0: i32) -> (i32, i32) {
    %c0_i32 = arith.constant 0 : i32
    %c0_i32_0 = arith.constant 0 : i32
    %c0_i32_1 = arith.constant 0 : i32
    return %c0_i32, %c0_i32_0 : i32, i32
  }
  func.func @transform_4(%arg0: i32) -> (i32, i32) {
    %c0_i32 = arith.constant 0 : i32
    %c0_i32_0 = arith.constant 0 : i32
    %c0_i32_1 = arith.constant 0 : i32
    return %c0_i32, %c0_i32_0 : i32, i32
  }
  func.func @transform_5(%arg0: i32) -> (i32, i32) {
    %c0_i32 = arith.constant 0 : i32
    %c0_i32_0 = arith.constant 0 : i32
    %c0_i32_1 = arith.constant 0 : i32
    return %c0_i32, %c0_i32_0 : i32, i32
  }
  func.func @transform_6(%arg0: i32) -> (i32, i32) {
    %c0_i32 = arith.constant 0 : i32
    %c0_i32_0 = arith.constant 0 : i32
    %c0_i32_1 = arith.constant 0 : i32
    return %c0_i32, %c0_i32_0 : i32, i32
  }
  func.func @transform_7(%arg0: i32) -> (i32, i32) {
    %c0_i32 = arith.constant 0 : i32
    %c0_i32_0 = arith.constant 0 : i32
    %c0_i32_1 = arith.constant 0 : i32
    return %c0_i32, %c0_i32_0 : i32, i32
  }
  func.func @transform_8(%arg0: i32) -> (i32, i32) {
    %c0_i32 = arith.constant 0 : i32
    %c0_i32_0 = arith.constant 0 : i32
    %c0_i32_1 = arith.constant 0 : i32
    return %c0_i32, %c0_i32_0 : i32, i32
  }
  func.func @transform_9(%arg0: i32) -> (i32, i32) {
    %c0_i32 = arith.constant 0 : i32
    %c0_i32_0 = arith.constant 0 : i32
    %c0_i32_1 = arith.constant 0 : i32
    return %c0_i32, %c0_i32_0 : i32, i32
  }
  func.func @transform_10(%arg0: i32) -> (i32, i32) {
    %c0_i32 = arith.constant 0 : i32
    %c0_i32_0 = arith.constant 0 : i32
    %c0_i32_1 = arith.constant 0 : i32
    return %c0_i32, %c0_i32_0 : i32, i32
  }
  func.func @transform_11(%arg0: i32) -> (i32, i32) {
    %c0_i32 = arith.constant 0 : i32
    %c0_i32_0 = arith.constant 0 : i32
    %c0_i32_1 = arith.constant 0 : i32
    return %c0_i32, %c0_i32_0 : i32, i32
  }
  func.func @transform_12(%arg0: i32) -> (i32, i32) {
    %c0_i32 = arith.constant 0 : i32
    %c0_i32_0 = arith.constant 0 : i32
    %c0_i32_1 = arith.constant 0 : i32
    return %c0_i32, %c0_i32_0 : i32, i32
  }
  func.func @transform_13(%arg0: i32) -> (i32, i32) {
    %c0_i32 = arith.constant 0 : i32
    %c0_i32_0 = arith.constant 0 : i32
    %c0_i32_1 = arith.constant 0 : i32
    return %c0_i32, %c0_i32_0 : i32, i32
  }
  func.func @transform_14(%arg0: i32) -> (i32, i32) {
    %c0_i32 = arith.constant 0 : i32
    %c0_i32_0 = arith.constant 0 : i32
    %c0_i32_1 = arith.constant 0 : i32
    return %c0_i32, %c0_i32_0 : i32, i32
  }
  func.func @transform_15(%arg0: i32) -> (i32, i32) {
    %c0_i32 = arith.constant 0 : i32
    %c0_i32_0 = arith.constant 0 : i32
    %c0_i32_1 = arith.constant 0 : i32
    return %c0_i32, %c0_i32_0 : i32, i32
  }
  func.func @transform_16(%arg0: i32) -> (i32, i32) {
    %c0_i32 = arith.constant 0 : i32
    %c0_i32_0 = arith.constant 0 : i32
    %c0_i32_1 = arith.constant 0 : i32
    return %c0_i32, %c0_i32_0 : i32, i32
  }
  func.func @transform_17(%arg0: i32) -> (i32, i32) {
    %c0_i32 = arith.constant 0 : i32
    %c0_i32_0 = arith.constant 0 : i32
    %c0_i32_1 = arith.constant 0 : i32
    return %c0_i32, %c0_i32_0 : i32, i32
  }
  func.func @transform_18(%arg0: i32) -> (i32, i32) {
    %c0_i32 = arith.constant 0 : i32
    %c0_i32_0 = arith.constant 0 : i32
    %c0_i32_1 = arith.constant 0 : i32
    return %c0_i32, %c0_i32_0 : i32, i32
  }
  func.func @transform_19(%arg0: i32) -> (i32, i32, i32, i32) {
    %c0_i32 = arith.constant 0 : i32
    %c0_i32_0 = arith.constant 0 : i32
    %c0_i32_1 = arith.constant 0 : i32
    %c0_i32_2 = arith.constant 0 : i32
    %c0_i32_3 = arith.constant 0 : i32
    return %c0_i32, %c0_i32_0, %c0_i32_1, %c0_i32_2 : i32, i32, i32, i32
  }
  func.func @transform_20(%arg0: i32) -> (i32, i32, i32) {
    %c0_i32 = arith.constant 0 : i32
    %c0_i32_0 = arith.constant 0 : i32
    %c0_i32_1 = arith.constant 0 : i32
    %c0_i32_2 = arith.constant 0 : i32
    return %c0_i32, %c0_i32_0, %c0_i32_1 : i32, i32, i32
  }
  func.func @transform_21(%arg0: i32) -> (i32, i32, i32) {
    %c0_i32 = arith.constant 0 : i32
    %c0_i32_0 = arith.constant 0 : i32
    %c0_i32_1 = arith.constant 0 : i32
    %c0_i32_2 = arith.constant 0 : i32
    return %c0_i32, %c0_i32_0, %c0_i32_1 : i32, i32, i32
  }
  func.func @transform_22(%arg0: i32) -> (i32, i32, i32) {
    %c0_i32 = arith.constant 0 : i32
    %c0_i32_0 = arith.constant 0 : i32
    %c0_i32_1 = arith.constant 0 : i32
    %c0_i32_2 = arith.constant 0 : i32
    return %c0_i32, %c0_i32_0, %c0_i32_1 : i32, i32, i32
  }
  func.func @transform_23(%arg0: i32) -> (i32, i32, i32, i32) {
    %c0_i32 = arith.constant 0 : i32
    %c0_i32_0 = arith.constant 0 : i32
    %c0_i32_1 = arith.constant 0 : i32
    %c0_i32_2 = arith.constant 0 : i32
    %c0_i32_3 = arith.constant 0 : i32
    return %c0_i32, %c0_i32_0, %c0_i32_1, %c0_i32_2 : i32, i32, i32, i32
  }
  func.func @transform_24(%arg0: i32) -> (i32, i32, i32) {
    %c0_i32 = arith.constant 0 : i32
    %c0_i32_0 = arith.constant 0 : i32
    %c0_i32_1 = arith.constant 0 : i32
    %c0_i32_2 = arith.constant 0 : i32
    return %c0_i32, %c0_i32_0, %c0_i32_1 : i32, i32, i32
  }
  func.func @transform_25(%arg0: i32) -> (i32, i32, i32) {
    %c0_i32 = arith.constant 0 : i32
    %c0_i32_0 = arith.constant 0 : i32
    %c0_i32_1 = arith.constant 0 : i32
    %c0_i32_2 = arith.constant 0 : i32
    return %c0_i32, %c0_i32_0, %c0_i32_1 : i32, i32, i32
  }
  func.func @transform_26(%arg0: i32) -> (i32, i32, i32) {
    %c0_i32 = arith.constant 0 : i32
    %c0_i32_0 = arith.constant 0 : i32
    %c0_i32_1 = arith.constant 0 : i32
    %c0_i32_2 = arith.constant 0 : i32
    return %c0_i32, %c0_i32_0, %c0_i32_1 : i32, i32, i32
  }
  func.func @transform_27(%arg0: i32) -> (i32, i32, i32) {
    %c0_i32 = arith.constant 0 : i32
    %c0_i32_0 = arith.constant 0 : i32
    %c0_i32_1 = arith.constant 0 : i32
    %c0_i32_2 = arith.constant 0 : i32
    return %c0_i32, %c0_i32_0, %c0_i32_1 : i32, i32, i32
  }
  func.func @transform_28(%arg0: i32) -> (i32, i32, i32) {
    %c0_i32 = arith.constant 0 : i32
    %c0_i32_0 = arith.constant 0 : i32
    %c0_i32_1 = arith.constant 0 : i32
    %c0_i32_2 = arith.constant 0 : i32
    return %c0_i32, %c0_i32_0, %c0_i32_1 : i32, i32, i32
  }
  func.func @transform_29(%arg0: i32) -> (i32, i32) {
    %c0_i32 = arith.constant 0 : i32
    %c0_i32_0 = arith.constant 0 : i32
    %c0_i32_1 = arith.constant 0 : i32
    return %c0_i32, %c0_i32_0 : i32, i32
  }
  func.func @transform_30(%arg0: i32) -> (i32, i32) {
    %c0_i32 = arith.constant 0 : i32
    %c0_i32_0 = arith.constant 0 : i32
    %c0_i32_1 = arith.constant 0 : i32
    return %c0_i32, %c0_i32_0 : i32, i32
  }
  func.func @transform_31(%arg0: i32) -> (i32, i32) {
    %c0_i32 = arith.constant 0 : i32
    %c0_i32_0 = arith.constant 0 : i32
    %c0_i32_1 = arith.constant 0 : i32
    return %c0_i32, %c0_i32_0 : i32, i32
  }
  func.func @transform_32(%arg0: i32) -> (i32, i32) {
    %c0_i32 = arith.constant 0 : i32
    %c0_i32_0 = arith.constant 0 : i32
    %c0_i32_1 = arith.constant 0 : i32
    return %c0_i32, %c0_i32_0 : i32, i32
  }
  func.func @transform_33(%arg0: i32) -> (i32, i32) {
    %c0_i32 = arith.constant 0 : i32
    %c0_i32_0 = arith.constant 0 : i32
    %c0_i32_1 = arith.constant 0 : i32
    return %c0_i32, %c0_i32_0 : i32, i32
  }
}

module attributes {stable_mosaic.version = 11 : i64} {
  func.func @_fft_stack_kernel(%arg0: i32, %arg1: memref<32x32xf32, #tpu.memory_space<vmem>>, %arg2: memref<32x1xf32, #tpu.memory_space<vmem>>, %arg3: memref<2x1x16xf32, #tpu.memory_space<vmem>>, %arg4: memref<9x32x32xbf16, #tpu.memory_space<vmem>>, %arg5: memref<1x32x96xbf16, #tpu.memory_space<vmem>>, %arg6: memref<1x1x96xf32, #tpu.memory_space<vmem>>, %arg7: memref<1x2x16x32xbf16, #tpu.memory_space<vmem>>, %arg8: memref<1x1x32xf32, #tpu.memory_space<vmem>>, %arg9: memref<1x1x32xf32, #tpu.memory_space<vmem>>, %arg10: memref<1x1x32xf32, #tpu.memory_space<vmem>>, %arg11: memref<1x9x32x32xbf16, #tpu.memory_space<vmem>>, %arg12: memref<1x1x32xf32, #tpu.memory_space<vmem>>, %arg13: memref<1x1x32x32xbf16, #tpu.memory_space<vmem>>, %arg14: memref<1x1x32xf32, #tpu.memory_space<vmem>>, %arg15: memref<1x1x32xf32, #tpu.memory_space<vmem>>, %arg16: memref<1x1x32xf32, #tpu.memory_space<vmem>>, %arg17: memref<32x32xf32, #tpu.memory_space<vmem>>, %arg18: memref<32x32xf32, #tpu.memory_space<vmem>>, %arg19: memref<32x96xf32, #tpu.memory_space<vmem>>, %arg20: memref<32x32xf32, #tpu.memory_space<vmem>>) attributes {dimension_semantics = [#tpu.dimension_semantics<arbitrary>], iteration_bounds = array<i64: 2>, scalar_prefetch = 0 : i64, scratch_operands = 3 : i64, tpu.core_type = #tpu.core_type<tc>, window_params = [{pipeline_mode = #tpu.pipeline_mode<synchronous>, transform_indices = @transform_0, window_bounds = array<i64: 32, 32>}, {pipeline_mode = #tpu.pipeline_mode<synchronous>, transform_indices = @transform_1, window_bounds = array<i64: 32, 1>}, {pipeline_mode = #tpu.pipeline_mode<synchronous>, transform_indices = @transform_2, window_bounds = array<i64: 2, 1, 16>}, {pipeline_mode = #tpu.pipeline_mode<synchronous>, transform_indices = @transform_3, window_bounds = array<i64: 9, 32, 32>}, {transform_indices = @transform_4, window_bounds = array<i64: 1, 32, 96>}, {transform_indices = @transform_5, window_bounds = array<i64: 1, 1, 96>}, {transform_indices = @transform_6, window_bounds = array<i64: 1, 2, 16, 32>}, {transform_indices = @transform_7, window_bounds = array<i64: 1, 1, 32>}, {transform_indices = @transform_8, window_bounds = array<i64: 1, 1, 32>}, {transform_indices = @transform_9, window_bounds = array<i64: 1, 1, 32>}, {transform_indices = @transform_10, window_bounds = array<i64: 1, 9, 32, 32>}, {transform_indices = @transform_11, window_bounds = array<i64: 1, 1, 32>}, {transform_indices = @transform_12, window_bounds = array<i64: 1, 1, 32, 32>}, {transform_indices = @transform_13, window_bounds = array<i64: 1, 1, 32>}, {transform_indices = @transform_14, window_bounds = array<i64: 1, 1, 32>}, {transform_indices = @transform_15, window_bounds = array<i64: 1, 1, 32>}, {pipeline_mode = #tpu.pipeline_mode<synchronous>, transform_indices = @transform_16, window_bounds = array<i64: 32, 32>}]} {
    %c0_i32 = arith.constant 0 : i32
    %0 = arith.cmpi eq, %arg0, %c0_i32 : i32
    %1 = arith.extui %0 : i1 to i32
    %c0_i32_0 = arith.constant 0 : i32
    %2 = arith.cmpi ne, %1, %c0_i32_0 : i32
    scf.if %2 {
      %c0_197 = arith.constant 0 : index
      %c0_198 = arith.constant 0 : index
      %281 = vector.load %arg1[%c0_197, %c0_198] : memref<32x32xf32, #tpu.memory_space<vmem>>, vector<32x32xf32>
      %c0_199 = arith.constant 0 : index
      %c0_200 = arith.constant 0 : index
      %282 = vector.load %arg18[%c0_199, %c0_200] : memref<32x32xf32, #tpu.memory_space<vmem>>, vector<32x32xf32>
      tpu.vector_store %arg18[%c0_199, %c0_200], %281 {strides = array<i32>} : memref<32x32xf32, #tpu.memory_space<vmem>>, vector<32x32xf32>,
    } else {
    }
    %c0 = arith.constant 0 : index
    %c0_1 = arith.constant 0 : index
    %3 = vector.load %arg18[%c0, %c0_1] : memref<32x32xf32, #tpu.memory_space<vmem>>, vector<32x32xf32>
    %c0_2 = arith.constant 0 : index
    %c0_3 = arith.constant 0 : index
    %4 = vector.load %arg2[%c0_2, %c0_3] : memref<32x1xf32, #tpu.memory_space<vmem>>, vector<32x1xf32>
    %5 = arith.truncf %3 : vector<32x32xf32> to vector<32x32xbf16>
    %c0_4 = arith.constant 0 : index
    %c0_5 = arith.constant 0 : index
    %c0_6 = arith.constant 0 : index
    %6 = vector.load %arg5[%c0_4, %c0_5, %c0_6] : memref<1x32x96xbf16, #tpu.memory_space<vmem>>, vector<1x32x96xbf16>
    %7 = vector.shape_cast %6 : vector<1x32x96xbf16> to vector<32x96xbf16>
    %cst = arith.constant dense<0.000000e+00> : vector<32x96xf32>
    %8 = tpu.matmul %5, %7, %cst {dimension_numbers = #tpu.dot_dimension_numbers<[1], [0], [0], [1], [0, 0, 1, 1], [], []>} : vector<32x32xbf16>, vector<32x96xbf16>, vector<32x96xf32> -> vector<32x96xf32>
    %c0_7 = arith.constant 0 : index
    %c0_8 = arith.constant 0 : index
    %c0_9 = arith.constant 0 : index
    %9 = vector.load %arg6[%c0_7, %c0_8, %c0_9] : memref<1x1x96xf32, #tpu.memory_space<vmem>>, vector<1x1x96xf32>
    %10 = vector.shape_cast %9 : vector<1x1x96xf32> to vector<1x96xf32>
    %11 = vector.broadcast %10 : vector<1x96xf32> to vector<32x96xf32>
    %12 = arith.addf %8, %11 : vector<32x96xf32>
    %c0_10 = arith.constant 0 : index
    %c0_11 = arith.constant 0 : index
    %13 = vector.load %arg19[%c0_10, %c0_11] : memref<32x96xf32, #tpu.memory_space<vmem>>, vector<32x96xf32>
    tpu.vector_store %arg19[%c0_10, %c0_11], %12 {strides = array<i32>} : memref<32x96xf32, #tpu.memory_space<vmem>>, vector<32x96xf32>,
    %c0_12 = arith.constant 0 : index
    %c0_13 = arith.constant 0 : index
    %c0_14 = arith.constant 0 : index
    %14 = vector.load %arg3[%c0_12, %c0_13, %c0_14] : memref<2x1x16xf32, #tpu.memory_space<vmem>>, vector<1x1x16xf32>
    %15 = vector.shape_cast %14 : vector<1x1x16xf32> to vector<1x16xf32>
    %c0_15 = arith.constant 0 : index
    %c0_16 = arith.constant 0 : index
    %16 = vector.load %arg19[%c0_15, %c0_16] : memref<32x96xf32, #tpu.memory_space<vmem>>, vector<16x16xf32>
    %c0_17 = arith.constant 0 : index
    %c32 = arith.constant 32 : index
    %17 = vector.load %arg19[%c0_17, %c32] : memref<32x96xf32, #tpu.memory_space<vmem>>, vector<16x16xf32>
    %c0_18 = arith.constant 0 : index
    %c64 = arith.constant 64 : index
    %18 = vector.load %arg19[%c0_18, %c64] : memref<32x96xf32, #tpu.memory_space<vmem>>, vector<16x16xf32>
    %19 = arith.truncf %16 : vector<16x16xf32> to vector<16x16xbf16>
    %20 = arith.truncf %17 : vector<16x16xf32> to vector<16x16xbf16>
    %cst_19 = arith.constant dense<0.000000e+00> : vector<16x16xf32>
    %21 = tpu.matmul %19, %20, %cst_19 {dimension_numbers = #tpu.dot_dimension_numbers<[1], [1], [0], [0], [0, 0, 1, 0], [], []>} : vector<16x16xbf16>, vector<16x16xbf16>, vector<16x16xf32> -> vector<16x16xf32>
    %cst_20 = arith.constant 2.500000e-01 : f32
    %22 = vector.broadcast %cst_20 : f32 to vector<16x16xf32>
    %23 = arith.mulf %21, %22 : vector<16x16xf32>
    %24 = vector.broadcast %15 : vector<1x16xf32> to vector<16x16xf32>
    %25 = arith.addf %23, %24 : vector<16x16xf32>
    %cst_21 = arith.constant dense<0xFF800000> : vector<16xf32>
    %26 = vector.multi_reduction <maximumf>, %25, %cst_21 [1] : vector<16x16xf32> to vector<16xf32>
    %27 = vector.shape_cast %26 : vector<16xf32> to vector<16x1xf32>
    %28 = vector.broadcast %27 : vector<16x1xf32> to vector<16x16xf32>
    %29 = arith.subf %25, %28 : vector<16x16xf32>
    %30 = math.exp %29 : vector<16x16xf32>
    %cst_22 = arith.constant dense<0.000000e+00> : vector<16xf32>
    %31 = vector.multi_reduction <add>, %30, %cst_22 [1] : vector<16x16xf32> to vector<16xf32>
    %32 = vector.shape_cast %31 : vector<16xf32> to vector<16x1xf32>
    %33 = tpu.reciprocal %32 {approx = true} : vector<16x1xf32> -> vector<16x1xf32>
    %34 = vector.broadcast %33 : vector<16x1xf32> to vector<16x16xf32>
    %35 = arith.mulf %30, %34 : vector<16x16xf32>
    %36 = arith.truncf %35 : vector<16x16xf32> to vector<16x16xbf16>
    %37 = arith.truncf %18 : vector<16x16xf32> to vector<16x16xbf16>
    %cst_23 = arith.constant dense<0.000000e+00> : vector<16x16xf32>
    %38 = tpu.matmul %36, %37, %cst_23 {dimension_numbers = #tpu.dot_dimension_numbers<[1], [0], [0], [1], [0, 0, 1, 1], [], []>} : vector<16x16xbf16>, vector<16x16xbf16>, vector<16x16xf32> -> vector<16x16xf32>
    %39 = arith.truncf %38 : vector<16x16xf32> to vector<16x16xbf16>
    %c0_24 = arith.constant 0 : index
    %c0_25 = arith.constant 0 : index
    %c0_26 = arith.constant 0 : index
    %c0_27 = arith.constant 0 : index
    %40 = vector.load %arg7[%c0_24, %c0_25, %c0_26, %c0_27] : memref<1x2x16x32xbf16, #tpu.memory_space<vmem>>, vector<1x1x16x32xbf16>
    %41 = vector.shape_cast %40 : vector<1x1x16x32xbf16> to vector<16x32xbf16>
    %cst_28 = arith.constant dense<0.000000e+00> : vector<16x32xf32>
    %42 = tpu.matmul %39, %41, %cst_28 {dimension_numbers = #tpu.dot_dimension_numbers<[1], [0], [0], [1], [0, 0, 1, 1], [], []>} : vector<16x16xbf16>, vector<16x32xbf16>, vector<16x32xf32> -> vector<16x32xf32>
    %c0_29 = arith.constant 0 : index
    %c16 = arith.constant 16 : index
    %43 = vector.load %arg19[%c0_29, %c16] : memref<32x96xf32, #tpu.memory_space<vmem>>, vector<16x16xf32>
    %c0_30 = arith.constant 0 : index
    %c48 = arith.constant 48 : index
    %44 = vector.load %arg19[%c0_30, %c48] : memref<32x96xf32, #tpu.memory_space<vmem>>, vector<16x16xf32>
    %c0_31 = arith.constant 0 : index
    %c80 = arith.constant 80 : index
    %45 = vector.load %arg19[%c0_31, %c80] : memref<32x96xf32, #tpu.memory_space<vmem>>, vector<16x16xf32>
    %46 = arith.truncf %43 : vector<16x16xf32> to vector<16x16xbf16>
    %47 = arith.truncf %44 : vector<16x16xf32> to vector<16x16xbf16>
    %cst_32 = arith.constant dense<0.000000e+00> : vector<16x16xf32>
    %48 = tpu.matmul %46, %47, %cst_32 {dimension_numbers = #tpu.dot_dimension_numbers<[1], [1], [0], [0], [0, 0, 1, 0], [], []>} : vector<16x16xbf16>, vector<16x16xbf16>, vector<16x16xf32> -> vector<16x16xf32>
    %cst_33 = arith.constant 2.500000e-01 : f32
    %49 = vector.broadcast %cst_33 : f32 to vector<16x16xf32>
    %50 = arith.mulf %48, %49 : vector<16x16xf32>
    %51 = vector.broadcast %15 : vector<1x16xf32> to vector<16x16xf32>
    %52 = arith.addf %50, %51 : vector<16x16xf32>
    %cst_34 = arith.constant dense<0xFF800000> : vector<16xf32>
    %53 = vector.multi_reduction <maximumf>, %52, %cst_34 [1] : vector<16x16xf32> to vector<16xf32>
    %54 = vector.shape_cast %53 : vector<16xf32> to vector<16x1xf32>
    %55 = vector.broadcast %54 : vector<16x1xf32> to vector<16x16xf32>
    %56 = arith.subf %52, %55 : vector<16x16xf32>
    %57 = math.exp %56 : vector<16x16xf32>
    %cst_35 = arith.constant dense<0.000000e+00> : vector<16xf32>
    %58 = vector.multi_reduction <add>, %57, %cst_35 [1] : vector<16x16xf32> to vector<16xf32>
    %59 = vector.shape_cast %58 : vector<16xf32> to vector<16x1xf32>
    %60 = tpu.reciprocal %59 {approx = true} : vector<16x1xf32> -> vector<16x1xf32>
    %61 = vector.broadcast %60 : vector<16x1xf32> to vector<16x16xf32>
    %62 = arith.mulf %57, %61 : vector<16x16xf32>
    %63 = arith.truncf %62 : vector<16x16xf32> to vector<16x16xbf16>
    %64 = arith.truncf %45 : vector<16x16xf32> to vector<16x16xbf16>
    %cst_36 = arith.constant dense<0.000000e+00> : vector<16x16xf32>
    %65 = tpu.matmul %63, %64, %cst_36 {dimension_numbers = #tpu.dot_dimension_numbers<[1], [0], [0], [1], [0, 0, 1, 1], [], []>} : vector<16x16xbf16>, vector<16x16xbf16>, vector<16x16xf32> -> vector<16x16xf32>
    %66 = arith.truncf %65 : vector<16x16xf32> to vector<16x16xbf16>
    %c0_37 = arith.constant 0 : index
    %c1 = arith.constant 1 : index
    %c0_38 = arith.constant 0 : index
    %c0_39 = arith.constant 0 : index
    %67 = vector.load %arg7[%c0_37, %c1, %c0_38, %c0_39] : memref<1x2x16x32xbf16, #tpu.memory_space<vmem>>, vector<1x1x16x32xbf16>
    %68 = vector.shape_cast %67 : vector<1x1x16x32xbf16> to vector<16x32xbf16>
    %cst_40 = arith.constant dense<0.000000e+00> : vector<16x32xf32>
    %69 = tpu.matmul %66, %68, %cst_40 {dimension_numbers = #tpu.dot_dimension_numbers<[1], [0], [0], [1], [0, 0, 1, 1], [], []>} : vector<16x16xbf16>, vector<16x32xbf16>, vector<16x32xf32> -> vector<16x32xf32>
    %70 = arith.addf %42, %69 : vector<16x32xf32>
    %c0_41 = arith.constant 0 : index
    %c0_42 = arith.constant 0 : index
    %71 = vector.load %arg20[%c0_41, %c0_42] : memref<32x32xf32, #tpu.memory_space<vmem>>, vector<16x32xf32>
    tpu.vector_store %arg20[%c0_41, %c0_42], %70 {strides = array<i32>} : memref<32x32xf32, #tpu.memory_space<vmem>>, vector<16x32xf32>,
    %c1_43 = arith.constant 1 : index
    %c0_44 = arith.constant 0 : index
    %c0_45 = arith.constant 0 : index
    %72 = vector.load %arg3[%c1_43, %c0_44, %c0_45] : memref<2x1x16xf32, #tpu.memory_space<vmem>>, vector<1x1x16xf32>
    %73 = vector.shape_cast %72 : vector<1x1x16xf32> to vector<1x16xf32>
    %c16_46 = arith.constant 16 : index
    %c0_47 = arith.constant 0 : index
    %74 = vector.load %arg19[%c16_46, %c0_47] : memref<32x96xf32, #tpu.memory_space<vmem>>, vector<16x16xf32>
    %c16_48 = arith.constant 16 : index
    %c32_49 = arith.constant 32 : index
    %75 = vector.load %arg19[%c16_48, %c32_49] : memref<32x96xf32, #tpu.memory_space<vmem>>, vector<16x16xf32>
    %c16_50 = arith.constant 16 : index
    %c64_51 = arith.constant 64 : index
    %76 = vector.load %arg19[%c16_50, %c64_51] : memref<32x96xf32, #tpu.memory_space<vmem>>, vector<16x16xf32>
    %77 = arith.truncf %74 : vector<16x16xf32> to vector<16x16xbf16>
    %78 = arith.truncf %75 : vector<16x16xf32> to vector<16x16xbf16>
    %cst_52 = arith.constant dense<0.000000e+00> : vector<16x16xf32>
    %79 = tpu.matmul %77, %78, %cst_52 {dimension_numbers = #tpu.dot_dimension_numbers<[1], [1], [0], [0], [0, 0, 1, 0], [], []>} : vector<16x16xbf16>, vector<16x16xbf16>, vector<16x16xf32> -> vector<16x16xf32>
    %cst_53 = arith.constant 2.500000e-01 : f32
    %80 = vector.broadcast %cst_53 : f32 to vector<16x16xf32>
    %81 = arith.mulf %79, %80 : vector<16x16xf32>
    %82 = vector.broadcast %73 : vector<1x16xf32> to vector<16x16xf32>
    %83 = arith.addf %81, %82 : vector<16x16xf32>
    %cst_54 = arith.constant dense<0xFF800000> : vector<16xf32>
    %84 = vector.multi_reduction <maximumf>, %83, %cst_54 [1] : vector<16x16xf32> to vector<16xf32>
    %85 = vector.shape_cast %84 : vector<16xf32> to vector<16x1xf32>
    %86 = vector.broadcast %85 : vector<16x1xf32> to vector<16x16xf32>
    %87 = arith.subf %83, %86 : vector<16x16xf32>
    %88 = math.exp %87 : vector<16x16xf32>
    %cst_55 = arith.constant dense<0.000000e+00> : vector<16xf32>
    %89 = vector.multi_reduction <add>, %88, %cst_55 [1] : vector<16x16xf32> to vector<16xf32>
    %90 = vector.shape_cast %89 : vector<16xf32> to vector<16x1xf32>
    %91 = tpu.reciprocal %90 {approx = true} : vector<16x1xf32> -> vector<16x1xf32>
    %92 = vector.broadcast %91 : vector<16x1xf32> to vector<16x16xf32>
    %93 = arith.mulf %88, %92 : vector<16x16xf32>
    %94 = arith.truncf %93 : vector<16x16xf32> to vector<16x16xbf16>
    %95 = arith.truncf %76 : vector<16x16xf32> to vector<16x16xbf16>
    %cst_56 = arith.constant dense<0.000000e+00> : vector<16x16xf32>
    %96 = tpu.matmul %94, %95, %cst_56 {dimension_numbers = #tpu.dot_dimension_numbers<[1], [0], [0], [1], [0, 0, 1, 1], [], []>} : vector<16x16xbf16>, vector<16x16xbf16>, vector<16x16xf32> -> vector<16x16xf32>
    %97 = arith.truncf %96 : vector<16x16xf32> to vector<16x16xbf16>
    %c0_57 = arith.constant 0 : index
    %c0_58 = arith.constant 0 : index
    %c0_59 = arith.constant 0 : index
    %c0_60 = arith.constant 0 : index
    %98 = vector.load %arg7[%c0_57, %c0_58, %c0_59, %c0_60] : memref<1x2x16x32xbf16, #tpu.memory_space<vmem>>, vector<1x1x16x32xbf16>
    %99 = vector.shape_cast %98 : vector<1x1x16x32xbf16> to vector<16x32xbf16>
    %cst_61 = arith.constant dense<0.000000e+00> : vector<16x32xf32>
    %100 = tpu.matmul %97, %99, %cst_61 {dimension_numbers = #tpu.dot_dimension_numbers<[1], [0], [0], [1], [0, 0, 1, 1], [], []>} : vector<16x16xbf16>, vector<16x32xbf16>, vector<16x32xf32> -> vector<16x32xf32>
    %c16_62 = arith.constant 16 : index
    %c16_63 = arith.constant 16 : index
    %101 = vector.load %arg19[%c16_62, %c16_63] : memref<32x96xf32, #tpu.memory_space<vmem>>, vector<16x16xf32>
    %c16_64 = arith.constant 16 : index
    %c48_65 = arith.constant 48 : index
    %102 = vector.load %arg19[%c16_64, %c48_65] : memref<32x96xf32, #tpu.memory_space<vmem>>, vector<16x16xf32>
    %c16_66 = arith.constant 16 : index
    %c80_67 = arith.constant 80 : index
    %103 = vector.load %arg19[%c16_66, %c80_67] : memref<32x96xf32, #tpu.memory_space<vmem>>, vector<16x16xf32>
    %104 = arith.truncf %101 : vector<16x16xf32> to vector<16x16xbf16>
    %105 = arith.truncf %102 : vector<16x16xf32> to vector<16x16xbf16>
    %cst_68 = arith.constant dense<0.000000e+00> : vector<16x16xf32>
    %106 = tpu.matmul %104, %105, %cst_68 {dimension_numbers = #tpu.dot_dimension_numbers<[1], [1], [0], [0], [0, 0, 1, 0], [], []>} : vector<16x16xbf16>, vector<16x16xbf16>, vector<16x16xf32> -> vector<16x16xf32>
    %cst_69 = arith.constant 2.500000e-01 : f32
    %107 = vector.broadcast %cst_69 : f32 to vector<16x16xf32>
    %108 = arith.mulf %106, %107 : vector<16x16xf32>
    %109 = vector.broadcast %73 : vector<1x16xf32> to vector<16x16xf32>
    %110 = arith.addf %108, %109 : vector<16x16xf32>
    %cst_70 = arith.constant dense<0xFF800000> : vector<16xf32>
    %111 = vector.multi_reduction <maximumf>, %110, %cst_70 [1] : vector<16x16xf32> to vector<16xf32>
    %112 = vector.shape_cast %111 : vector<16xf32> to vector<16x1xf32>
    %113 = vector.broadcast %112 : vector<16x1xf32> to vector<16x16xf32>
    %114 = arith.subf %110, %113 : vector<16x16xf32>
    %115 = math.exp %114 : vector<16x16xf32>
    %cst_71 = arith.constant dense<0.000000e+00> : vector<16xf32>
    %116 = vector.multi_reduction <add>, %115, %cst_71 [1] : vector<16x16xf32> to vector<16xf32>
    %117 = vector.shape_cast %116 : vector<16xf32> to vector<16x1xf32>
    %118 = tpu.reciprocal %117 {approx = true} : vector<16x1xf32> -> vector<16x1xf32>
    %119 = vector.broadcast %118 : vector<16x1xf32> to vector<16x16xf32>
    %120 = arith.mulf %115, %119 : vector<16x16xf32>
    %121 = arith.truncf %120 : vector<16x16xf32> to vector<16x16xbf16>
    %122 = arith.truncf %103 : vector<16x16xf32> to vector<16x16xbf16>
    %cst_72 = arith.constant dense<0.000000e+00> : vector<16x16xf32>
    %123 = tpu.matmul %121, %122, %cst_72 {dimension_numbers = #tpu.dot_dimension_numbers<[1], [0], [0], [1], [0, 0, 1, 1], [], []>} : vector<16x16xbf16>, vector<16x16xbf16>, vector<16x16xf32> -> vector<16x16xf32>
    %124 = arith.truncf %123 : vector<16x16xf32> to vector<16x16xbf16>
    %c0_73 = arith.constant 0 : index
    %c1_74 = arith.constant 1 : index
    %c0_75 = arith.constant 0 : index
    %c0_76 = arith.constant 0 : index
    %125 = vector.load %arg7[%c0_73, %c1_74, %c0_75, %c0_76] : memref<1x2x16x32xbf16, #tpu.memory_space<vmem>>, vector<1x1x16x32xbf16>
    %126 = vector.shape_cast %125 : vector<1x1x16x32xbf16> to vector<16x32xbf16>
    %cst_77 = arith.constant dense<0.000000e+00> : vector<16x32xf32>
    %127 = tpu.matmul %124, %126, %cst_77 {dimension_numbers = #tpu.dot_dimension_numbers<[1], [0], [0], [1], [0, 0, 1, 1], [], []>} : vector<16x16xbf16>, vector<16x32xbf16>, vector<16x32xf32> -> vector<16x32xf32>
    %128 = arith.addf %100, %127 : vector<16x32xf32>
    %c16_78 = arith.constant 16 : index
    %c0_79 = arith.constant 0 : index
    %129 = vector.load %arg20[%c16_78, %c0_79] : memref<32x32xf32, #tpu.memory_space<vmem>>, vector<16x32xf32>
    tpu.vector_store %arg20[%c16_78, %c0_79], %128 {strides = array<i32>} : memref<32x32xf32, #tpu.memory_space<vmem>>, vector<16x32xf32>,
    %c0_80 = arith.constant 0 : index
    %c0_81 = arith.constant 0 : index
    %130 = vector.load %arg20[%c0_80, %c0_81] : memref<32x32xf32, #tpu.memory_space<vmem>>, vector<32x32xf32>
    %c0_82 = arith.constant 0 : index
    %c0_83 = arith.constant 0 : index
    %c0_84 = arith.constant 0 : index
    %131 = vector.load %arg8[%c0_82, %c0_83, %c0_84] : memref<1x1x32xf32, #tpu.memory_space<vmem>>, vector<1x1x32xf32>
    %132 = vector.shape_cast %131 : vector<1x1x32xf32> to vector<1x32xf32>
    %133 = vector.broadcast %132 : vector<1x32xf32> to vector<32x32xf32>
    %134 = arith.addf %130, %133 : vector<32x32xf32>
    %135 = arith.addf %134, %3 : vector<32x32xf32>
    %c0_85 = arith.constant 0 : index
    %c0_86 = arith.constant 0 : index
    %c0_87 = arith.constant 0 : index
    %136 = vector.load %arg9[%c0_85, %c0_86, %c0_87] : memref<1x1x32xf32, #tpu.memory_space<vmem>>, vector<1x1x32xf32>
    %137 = vector.shape_cast %136 : vector<1x1x32xf32> to vector<1x32xf32>
    %c0_88 = arith.constant 0 : index
    %c0_89 = arith.constant 0 : index
    %c0_90 = arith.constant 0 : index
    %138 = vector.load %arg10[%c0_88, %c0_89, %c0_90] : memref<1x1x32xf32, #tpu.memory_space<vmem>>, vector<1x1x32xf32>
    %139 = vector.shape_cast %138 : vector<1x1x32xf32> to vector<1x32xf32>
    %cst_91 = arith.constant dense<0.000000e+00> : vector<32xf32>
    %140 = vector.multi_reduction <add>, %135, %cst_91 [1] : vector<32x32xf32> to vector<32xf32>
    %141 = vector.shape_cast %140 : vector<32xf32> to vector<32x1xf32>
    %cst_92 = arith.constant 3.200000e+01 : f32
    %142 = vector.broadcast %cst_92 : f32 to vector<32x1xf32>
    %143 = arith.divf %141, %142 : vector<32x1xf32>
    %144 = vector.broadcast %143 : vector<32x1xf32> to vector<32x32xf32>
    %145 = arith.subf %135, %144 : vector<32x32xf32>
    %146 = arith.mulf %145, %145 : vector<32x32xf32>
    %cst_93 = arith.constant dense<0.000000e+00> : vector<32xf32>
    %147 = vector.multi_reduction <add>, %146, %cst_93 [1] : vector<32x32xf32> to vector<32xf32>
    %148 = vector.shape_cast %147 : vector<32xf32> to vector<32x1xf32>
    %cst_94 = arith.constant 3.200000e+01 : f32
    %149 = vector.broadcast %cst_94 : f32 to vector<32x1xf32>
    %150 = arith.divf %148, %149 : vector<32x1xf32>
    %151 = vector.broadcast %143 : vector<32x1xf32> to vector<32x32xf32>
    %152 = arith.subf %135, %151 : vector<32x32xf32>
    %cst_95 = arith.constant 9.99999974E-6 : f32
    %153 = vector.broadcast %cst_95 : f32 to vector<32x1xf32>
    %154 = arith.addf %150, %153 : vector<32x1xf32>
    %155 = math.rsqrt %154 : vector<32x1xf32>
    %156 = vector.broadcast %155 : vector<32x1xf32> to vector<32x32xf32>
    %157 = arith.mulf %152, %156 : vector<32x32xf32>
    %158 = vector.broadcast %137 : vector<1x32xf32> to vector<32x32xf32>
    %159 = arith.mulf %157, %158 : vector<32x32xf32>
    %160 = vector.broadcast %139 : vector<1x32xf32> to vector<32x32xf32>
    %161 = arith.addf %159, %160 : vector<32x32xf32>
    %162 = vector.broadcast %4 : vector<32x1xf32> to vector<32x32xf32>
    %163 = arith.mulf %161, %162 : vector<32x32xf32>
    %c0_96 = arith.constant 0 : index
    %c0_97 = arith.constant 0 : index
    %c0_98 = arith.constant 0 : index
    %164 = vector.load %arg4[%c0_96, %c0_97, %c0_98] : memref<9x32x32xbf16, #tpu.memory_space<vmem>>, vector<1x32x32xbf16>
    %165 = vector.shape_cast %164 : vector<1x32x32xbf16> to vector<32x32xbf16>
    %c1_99 = arith.constant 1 : index
    %c0_100 = arith.constant 0 : index
    %c0_101 = arith.constant 0 : index
    %166 = vector.load %arg4[%c1_99, %c0_100, %c0_101] : memref<9x32x32xbf16, #tpu.memory_space<vmem>>, vector<1x32x32xbf16>
    %167 = vector.shape_cast %166 : vector<1x32x32xbf16> to vector<32x32xbf16>
    %c2 = arith.constant 2 : index
    %c0_102 = arith.constant 0 : index
    %c0_103 = arith.constant 0 : index
    %168 = vector.load %arg4[%c2, %c0_102, %c0_103] : memref<9x32x32xbf16, #tpu.memory_space<vmem>>, vector<1x32x32xbf16>
    %169 = vector.shape_cast %168 : vector<1x32x32xbf16> to vector<32x32xbf16>
    %c3 = arith.constant 3 : index
    %c0_104 = arith.constant 0 : index
    %c0_105 = arith.constant 0 : index
    %170 = vector.load %arg4[%c3, %c0_104, %c0_105] : memref<9x32x32xbf16, #tpu.memory_space<vmem>>, vector<1x32x32xbf16>
    %171 = vector.shape_cast %170 : vector<1x32x32xbf16> to vector<32x32xbf16>
    %c4 = arith.constant 4 : index
    %c0_106 = arith.constant 0 : index
    %c0_107 = arith.constant 0 : index
    %172 = vector.load %arg4[%c4, %c0_106, %c0_107] : memref<9x32x32xbf16, #tpu.memory_space<vmem>>, vector<1x32x32xbf16>
    %173 = vector.shape_cast %172 : vector<1x32x32xbf16> to vector<32x32xbf16>
    %c5 = arith.constant 5 : index
    %c0_108 = arith.constant 0 : index
    %c0_109 = arith.constant 0 : index
    %174 = vector.load %arg4[%c5, %c0_108, %c0_109] : memref<9x32x32xbf16, #tpu.memory_space<vmem>>, vector<1x32x32xbf16>
    %175 = vector.shape_cast %174 : vector<1x32x32xbf16> to vector<32x32xbf16>
    %c6 = arith.constant 6 : index
    %c0_110 = arith.constant 0 : index
    %c0_111 = arith.constant 0 : index
    %176 = vector.load %arg4[%c6, %c0_110, %c0_111] : memref<9x32x32xbf16, #tpu.memory_space<vmem>>, vector<1x32x32xbf16>
    %177 = vector.shape_cast %176 : vector<1x32x32xbf16> to vector<32x32xbf16>
    %c7 = arith.constant 7 : index
    %c0_112 = arith.constant 0 : index
    %c0_113 = arith.constant 0 : index
    %178 = vector.load %arg4[%c7, %c0_112, %c0_113] : memref<9x32x32xbf16, #tpu.memory_space<vmem>>, vector<1x32x32xbf16>
    %179 = vector.shape_cast %178 : vector<1x32x32xbf16> to vector<32x32xbf16>
    %c8 = arith.constant 8 : index
    %c0_114 = arith.constant 0 : index
    %c0_115 = arith.constant 0 : index
    %180 = vector.load %arg4[%c8, %c0_114, %c0_115] : memref<9x32x32xbf16, #tpu.memory_space<vmem>>, vector<1x32x32xbf16>
    %181 = vector.shape_cast %180 : vector<1x32x32xbf16> to vector<32x32xbf16>
    %c0_116 = arith.constant 0 : index
    %c0_117 = arith.constant 0 : index
    %c0_118 = arith.constant 0 : index
    %c0_119 = arith.constant 0 : index
    %182 = vector.load %arg11[%c0_116, %c0_117, %c0_118, %c0_119] : memref<1x9x32x32xbf16, #tpu.memory_space<vmem>>, vector<1x1x32x32xbf16>
    %183 = vector.shape_cast %182 : vector<1x1x32x32xbf16> to vector<32x32xbf16>
    %c0_120 = arith.constant 0 : index
    %c1_121 = arith.constant 1 : index
    %c0_122 = arith.constant 0 : index
    %c0_123 = arith.constant 0 : index
    %184 = vector.load %arg11[%c0_120, %c1_121, %c0_122, %c0_123] : memref<1x9x32x32xbf16, #tpu.memory_space<vmem>>, vector<1x1x32x32xbf16>
    %185 = vector.shape_cast %184 : vector<1x1x32x32xbf16> to vector<32x32xbf16>
    %c0_124 = arith.constant 0 : index
    %c2_125 = arith.constant 2 : index
    %c0_126 = arith.constant 0 : index
    %c0_127 = arith.constant 0 : index
    %186 = vector.load %arg11[%c0_124, %c2_125, %c0_126, %c0_127] : memref<1x9x32x32xbf16, #tpu.memory_space<vmem>>, vector<1x1x32x32xbf16>
    %187 = vector.shape_cast %186 : vector<1x1x32x32xbf16> to vector<32x32xbf16>
    %c0_128 = arith.constant 0 : index
    %c3_129 = arith.constant 3 : index
    %c0_130 = arith.constant 0 : index
    %c0_131 = arith.constant 0 : index
    %188 = vector.load %arg11[%c0_128, %c3_129, %c0_130, %c0_131] : memref<1x9x32x32xbf16, #tpu.memory_space<vmem>>, vector<1x1x32x32xbf16>
    %189 = vector.shape_cast %188 : vector<1x1x32x32xbf16> to vector<32x32xbf16>
    %c0_132 = arith.constant 0 : index
    %c4_133 = arith.constant 4 : index
    %c0_134 = arith.constant 0 : index
    %c0_135 = arith.constant 0 : index
    %190 = vector.load %arg11[%c0_132, %c4_133, %c0_134, %c0_135] : memref<1x9x32x32xbf16, #tpu.memory_space<vmem>>, vector<1x1x32x32xbf16>
    %191 = vector.shape_cast %190 : vector<1x1x32x32xbf16> to vector<32x32xbf16>
    %c0_136 = arith.constant 0 : index
    %c5_137 = arith.constant 5 : index
    %c0_138 = arith.constant 0 : index
    %c0_139 = arith.constant 0 : index
    %192 = vector.load %arg11[%c0_136, %c5_137, %c0_138, %c0_139] : memref<1x9x32x32xbf16, #tpu.memory_space<vmem>>, vector<1x1x32x32xbf16>
    %193 = vector.shape_cast %192 : vector<1x1x32x32xbf16> to vector<32x32xbf16>
    %c0_140 = arith.constant 0 : index
    %c6_141 = arith.constant 6 : index
    %c0_142 = arith.constant 0 : index
    %c0_143 = arith.constant 0 : index
    %194 = vector.load %arg11[%c0_140, %c6_141, %c0_142, %c0_143] : memref<1x9x32x32xbf16, #tpu.memory_space<vmem>>, vector<1x1x32x32xbf16>
    %195 = vector.shape_cast %194 : vector<1x1x32x32xbf16> to vector<32x32xbf16>
    %c0_144 = arith.constant 0 : index
    %c7_145 = arith.constant 7 : index
    %c0_146 = arith.constant 0 : index
    %c0_147 = arith.constant 0 : index
    %196 = vector.load %arg11[%c0_144, %c7_145, %c0_146, %c0_147] : memref<1x9x32x32xbf16, #tpu.memory_space<vmem>>, vector<1x1x32x32xbf16>
    %197 = vector.shape_cast %196 : vector<1x1x32x32xbf16> to vector<32x32xbf16>
    %c0_148 = arith.constant 0 : index
    %c8_149 = arith.constant 8 : index
    %c0_150 = arith.constant 0 : index
    %c0_151 = arith.constant 0 : index
    %198 = vector.load %arg11[%c0_148, %c8_149, %c0_150, %c0_151] : memref<1x9x32x32xbf16, #tpu.memory_space<vmem>>, vector<1x1x32x32xbf16>
    %199 = vector.shape_cast %198 : vector<1x1x32x32xbf16> to vector<32x32xbf16>
    %c0_152 = arith.constant 0 : index
    %c0_153 = arith.constant 0 : index
    %c0_154 = arith.constant 0 : index
    %200 = vector.load %arg12[%c0_152, %c0_153, %c0_154] : memref<1x1x32xf32, #tpu.memory_space<vmem>>, vector<1x1x32xf32>
    %201 = vector.shape_cast %200 : vector<1x1x32xf32> to vector<1x32xf32>
    %202 = arith.truncf %163 : vector<32x32xf32> to vector<32x32xbf16>
    %cst_155 = arith.constant dense<0.000000e+00> : vector<32x32xf32>
    %203 = tpu.matmul %165, %202, %cst_155 {dimension_numbers = #tpu.dot_dimension_numbers<[1], [0], [0], [1], [0, 0, 1, 1], [], []>} : vector<32x32xbf16>, vector<32x32xbf16>, vector<32x32xf32> -> vector<32x32xf32>
    %204 = arith.truncf %203 : vector<32x32xf32> to vector<32x32xbf16>
    %cst_156 = arith.constant dense<0.000000e+00> : vector<32x32xf32>
    %205 = tpu.matmul %204, %183, %cst_156 {dimension_numbers = #tpu.dot_dimension_numbers<[1], [0], [0], [1], [0, 0, 1, 1], [], []>} : vector<32x32xbf16>, vector<32x32xbf16>, vector<32x32xf32> -> vector<32x32xf32>
    %cst_157 = arith.constant dense<0.000000e+00> : vector<32x32xf32>
    %206 = tpu.matmul %167, %202, %cst_157 {dimension_numbers = #tpu.dot_dimension_numbers<[1], [0], [0], [1], [0, 0, 1, 1], [], []>} : vector<32x32xbf16>, vector<32x32xbf16>, vector<32x32xf32> -> vector<32x32xf32>
    %207 = arith.truncf %206 : vector<32x32xf32> to vector<32x32xbf16>
    %cst_158 = arith.constant dense<0.000000e+00> : vector<32x32xf32>
    %208 = tpu.matmul %207, %185, %cst_158 {dimension_numbers = #tpu.dot_dimension_numbers<[1], [0], [0], [1], [0, 0, 1, 1], [], []>} : vector<32x32xbf16>, vector<32x32xbf16>, vector<32x32xf32> -> vector<32x32xf32>
    %209 = arith.addf %205, %208 : vector<32x32xf32>
    %cst_159 = arith.constant dense<0.000000e+00> : vector<32x32xf32>
    %210 = tpu.matmul %169, %202, %cst_159 {dimension_numbers = #tpu.dot_dimension_numbers<[1], [0], [0], [1], [0, 0, 1, 1], [], []>} : vector<32x32xbf16>, vector<32x32xbf16>, vector<32x32xf32> -> vector<32x32xf32>
    %211 = arith.truncf %210 : vector<32x32xf32> to vector<32x32xbf16>
    %cst_160 = arith.constant dense<0.000000e+00> : vector<32x32xf32>
    %212 = tpu.matmul %211, %187, %cst_160 {dimension_numbers = #tpu.dot_dimension_numbers<[1], [0], [0], [1], [0, 0, 1, 1], [], []>} : vector<32x32xbf16>, vector<32x32xbf16>, vector<32x32xf32> -> vector<32x32xf32>
    %213 = arith.addf %209, %212 : vector<32x32xf32>
    %cst_161 = arith.constant dense<0.000000e+00> : vector<32x32xf32>
    %214 = tpu.matmul %171, %202, %cst_161 {dimension_numbers = #tpu.dot_dimension_numbers<[1], [0], [0], [1], [0, 0, 1, 1], [], []>} : vector<32x32xbf16>, vector<32x32xbf16>, vector<32x32xf32> -> vector<32x32xf32>
    %215 = arith.truncf %214 : vector<32x32xf32> to vector<32x32xbf16>
    %cst_162 = arith.constant dense<0.000000e+00> : vector<32x32xf32>
    %216 = tpu.matmul %215, %189, %cst_162 {dimension_numbers = #tpu.dot_dimension_numbers<[1], [0], [0], [1], [0, 0, 1, 1], [], []>} : vector<32x32xbf16>, vector<32x32xbf16>, vector<32x32xf32> -> vector<32x32xf32>
    %217 = arith.addf %213, %216 : vector<32x32xf32>
    %cst_163 = arith.constant dense<0.000000e+00> : vector<32x32xf32>
    %218 = tpu.matmul %173, %202, %cst_163 {dimension_numbers = #tpu.dot_dimension_numbers<[1], [0], [0], [1], [0, 0, 1, 1], [], []>} : vector<32x32xbf16>, vector<32x32xbf16>, vector<32x32xf32> -> vector<32x32xf32>
    %219 = arith.truncf %218 : vector<32x32xf32> to vector<32x32xbf16>
    %cst_164 = arith.constant dense<0.000000e+00> : vector<32x32xf32>
    %220 = tpu.matmul %219, %191, %cst_164 {dimension_numbers = #tpu.dot_dimension_numbers<[1], [0], [0], [1], [0, 0, 1, 1], [], []>} : vector<32x32xbf16>, vector<32x32xbf16>, vector<32x32xf32> -> vector<32x32xf32>
    %221 = arith.addf %217, %220 : vector<32x32xf32>
    %cst_165 = arith.constant dense<0.000000e+00> : vector<32x32xf32>
    %222 = tpu.matmul %175, %202, %cst_165 {dimension_numbers = #tpu.dot_dimension_numbers<[1], [0], [0], [1], [0, 0, 1, 1], [], []>} : vector<32x32xbf16>, vector<32x32xbf16>, vector<32x32xf32> -> vector<32x32xf32>
    %223 = arith.truncf %222 : vector<32x32xf32> to vector<32x32xbf16>
    %cst_166 = arith.constant dense<0.000000e+00> : vector<32x32xf32>
    %224 = tpu.matmul %223, %193, %cst_166 {dimension_numbers = #tpu.dot_dimension_numbers<[1], [0], [0], [1], [0, 0, 1, 1], [], []>} : vector<32x32xbf16>, vector<32x32xbf16>, vector<32x32xf32> -> vector<32x32xf32>
    %225 = arith.addf %221, %224 : vector<32x32xf32>
    %cst_167 = arith.constant dense<0.000000e+00> : vector<32x32xf32>
    %226 = tpu.matmul %177, %202, %cst_167 {dimension_numbers = #tpu.dot_dimension_numbers<[1], [0], [0], [1], [0, 0, 1, 1], [], []>} : vector<32x32xbf16>, vector<32x32xbf16>, vector<32x32xf32> -> vector<32x32xf32>
    %227 = arith.truncf %226 : vector<32x32xf32> to vector<32x32xbf16>
    %cst_168 = arith.constant dense<0.000000e+00> : vector<32x32xf32>
    %228 = tpu.matmul %227, %195, %cst_168 {dimension_numbers = #tpu.dot_dimension_numbers<[1], [0], [0], [1], [0, 0, 1, 1], [], []>} : vector<32x32xbf16>, vector<32x32xbf16>, vector<32x32xf32> -> vector<32x32xf32>
    %229 = arith.addf %225, %228 : vector<32x32xf32>
    %cst_169 = arith.constant dense<0.000000e+00> : vector<32x32xf32>
    %230 = tpu.matmul %179, %202, %cst_169 {dimension_numbers = #tpu.dot_dimension_numbers<[1], [0], [0], [1], [0, 0, 1, 1], [], []>} : vector<32x32xbf16>, vector<32x32xbf16>, vector<32x32xf32> -> vector<32x32xf32>
    %231 = arith.truncf %230 : vector<32x32xf32> to vector<32x32xbf16>
    %cst_170 = arith.constant dense<0.000000e+00> : vector<32x32xf32>
    %232 = tpu.matmul %231, %197, %cst_170 {dimension_numbers = #tpu.dot_dimension_numbers<[1], [0], [0], [1], [0, 0, 1, 1], [], []>} : vector<32x32xbf16>, vector<32x32xbf16>, vector<32x32xf32> -> vector<32x32xf32>
    %233 = arith.addf %229, %232 : vector<32x32xf32>
    %cst_171 = arith.constant dense<0.000000e+00> : vector<32x32xf32>
    %234 = tpu.matmul %181, %202, %cst_171 {dimension_numbers = #tpu.dot_dimension_numbers<[1], [0], [0], [1], [0, 0, 1, 1], [], []>} : vector<32x32xbf16>, vector<32x32xbf16>, vector<32x32xf32> -> vector<32x32xf32>
    %235 = arith.truncf %234 : vector<32x32xf32> to vector<32x32xbf16>
    %cst_172 = arith.constant dense<0.000000e+00> : vector<32x32xf32>
    %236 = tpu.matmul %235, %199, %cst_172 {dimension_numbers = #tpu.dot_dimension_numbers<[1], [0], [0], [1], [0, 0, 1, 1], [], []>} : vector<32x32xbf16>, vector<32x32xbf16>, vector<32x32xf32> -> vector<32x32xf32>
    %237 = arith.addf %233, %236 : vector<32x32xf32>
    %238 = vector.broadcast %201 : vector<1x32xf32> to vector<32x32xf32>
    %239 = arith.addf %237, %238 : vector<32x32xf32>
    %cst_173 = arith.constant 0.000000e+00 : f32
    %240 = vector.broadcast %cst_173 : f32 to vector<32x32xf32>
    %241 = arith.maximumf %239, %240 : vector<32x32xf32>
    %c0_174 = arith.constant 0 : index
    %c0_175 = arith.constant 0 : index
    %c0_176 = arith.constant 0 : index
    %c0_177 = arith.constant 0 : index
    %242 = vector.load %arg13[%c0_174, %c0_175, %c0_176, %c0_177] : memref<1x1x32x32xbf16, #tpu.memory_space<vmem>>, vector<1x1x32x32xbf16>
    %243 = vector.shape_cast %242 : vector<1x1x32x32xbf16> to vector<32x32xbf16>
    %c0_178 = arith.constant 0 : index
    %c0_179 = arith.constant 0 : index
    %c0_180 = arith.constant 0 : index
    %244 = vector.load %arg14[%c0_178, %c0_179, %c0_180] : memref<1x1x32xf32, #tpu.memory_space<vmem>>, vector<1x1x32xf32>
    %245 = vector.shape_cast %244 : vector<1x1x32xf32> to vector<1x32xf32>
    %246 = arith.truncf %241 : vector<32x32xf32> to vector<32x32xbf16>
    %cst_181 = arith.constant dense<0.000000e+00> : vector<32x32xf32>
    %247 = tpu.matmul %246, %243, %cst_181 {dimension_numbers = #tpu.dot_dimension_numbers<[1], [0], [0], [1], [0, 0, 1, 1], [], []>} : vector<32x32xbf16>, vector<32x32xbf16>, vector<32x32xf32> -> vector<32x32xf32>
    %248 = vector.broadcast %245 : vector<1x32xf32> to vector<32x32xf32>
    %249 = arith.addf %247, %248 : vector<32x32xf32>
    %250 = arith.addf %249, %163 : vector<32x32xf32>
    %c0_182 = arith.constant 0 : index
    %c0_183 = arith.constant 0 : index
    %c0_184 = arith.constant 0 : index
    %251 = vector.load %arg15[%c0_182, %c0_183, %c0_184] : memref<1x1x32xf32, #tpu.memory_space<vmem>>, vector<1x1x32xf32>
    %252 = vector.shape_cast %251 : vector<1x1x32xf32> to vector<1x32xf32>
    %c0_185 = arith.constant 0 : index
    %c0_186 = arith.constant 0 : index
    %c0_187 = arith.constant 0 : index
    %253 = vector.load %arg16[%c0_185, %c0_186, %c0_187] : memref<1x1x32xf32, #tpu.memory_space<vmem>>, vector<1x1x32xf32>
    %254 = vector.shape_cast %253 : vector<1x1x32xf32> to vector<1x32xf32>
    %cst_188 = arith.constant dense<0.000000e+00> : vector<32xf32>
    %255 = vector.multi_reduction <add>, %250, %cst_188 [1] : vector<32x32xf32> to vector<32xf32>
    %256 = vector.shape_cast %255 : vector<32xf32> to vector<32x1xf32>
    %cst_189 = arith.constant 3.200000e+01 : f32
    %257 = vector.broadcast %cst_189 : f32 to vector<32x1xf32>
    %258 = arith.divf %256, %257 : vector<32x1xf32>
    %259 = vector.broadcast %258 : vector<32x1xf32> to vector<32x32xf32>
    %260 = arith.subf %250, %259 : vector<32x32xf32>
    %261 = arith.mulf %260, %260 : vector<32x32xf32>
    %cst_190 = arith.constant dense<0.000000e+00> : vector<32xf32>
    %262 = vector.multi_reduction <add>, %261, %cst_190 [1] : vector<32x32xf32> to vector<32xf32>
    %263 = vector.shape_cast %262 : vector<32xf32> to vector<32x1xf32>
    %cst_191 = arith.constant 3.200000e+01 : f32
    %264 = vector.broadcast %cst_191 : f32 to vector<32x1xf32>
    %265 = arith.divf %263, %264 : vector<32x1xf32>
    %266 = vector.broadcast %258 : vector<32x1xf32> to vector<32x32xf32>
    %267 = arith.subf %250, %266 : vector<32x32xf32>
    %cst_192 = arith.constant 9.99999974E-6 : f32
    %268 = vector.broadcast %cst_192 : f32 to vector<32x1xf32>
    %269 = arith.addf %265, %268 : vector<32x1xf32>
    %270 = math.rsqrt %269 : vector<32x1xf32>
    %271 = vector.broadcast %270 : vector<32x1xf32> to vector<32x32xf32>
    %272 = arith.mulf %267, %271 : vector<32x32xf32>
    %273 = vector.broadcast %252 : vector<1x32xf32> to vector<32x32xf32>
    %274 = arith.mulf %272, %273 : vector<32x32xf32>
    %275 = vector.broadcast %254 : vector<1x32xf32> to vector<32x32xf32>
    %276 = arith.addf %274, %275 : vector<32x32xf32>
    %277 = vector.broadcast %4 : vector<32x1xf32> to vector<32x32xf32>
    %278 = arith.mulf %276, %277 : vector<32x32xf32>
    %c0_193 = arith.constant 0 : index
    %c0_194 = arith.constant 0 : index
    %279 = vector.load %arg18[%c0_193, %c0_194] : memref<32x32xf32, #tpu.memory_space<vmem>>, vector<32x32xf32>
    tpu.vector_store %arg18[%c0_193, %c0_194], %278 {strides = array<i32>} : memref<32x32xf32, #tpu.memory_space<vmem>>, vector<32x32xf32>,
    %c0_195 = arith.constant 0 : index
    %c0_196 = arith.constant 0 : index
    %280 = vector.load %arg17[%c0_195, %c0_196] : memref<32x32xf32, #tpu.memory_space<vmem>>, vector<32x32xf32>
    tpu.vector_store %arg17[%c0_195, %c0_196], %278 {strides = array<i32>} : memref<32x32xf32, #tpu.memory_space<vmem>>, vector<32x32xf32>,
    return
  }
  func.func @transform_0(%arg0: i32) -> (i32, i32) {
    %c0_i32 = arith.constant 0 : i32
    %c0_i32_0 = arith.constant 0 : i32
    %c0_i32_1 = arith.constant 0 : i32
    return %c0_i32, %c0_i32_0 : i32, i32
  }
  func.func @transform_1(%arg0: i32) -> (i32, i32) {
    %c0_i32 = arith.constant 0 : i32
    %c0_i32_0 = arith.constant 0 : i32
    %c0_i32_1 = arith.constant 0 : i32
    return %c0_i32, %c0_i32_0 : i32, i32
  }
  func.func @transform_2(%arg0: i32) -> (i32, i32, i32) {
    %c0_i32 = arith.constant 0 : i32
    %c0_i32_0 = arith.constant 0 : i32
    %c0_i32_1 = arith.constant 0 : i32
    %c0_i32_2 = arith.constant 0 : i32
    return %c0_i32, %c0_i32_0, %c0_i32_1 : i32, i32, i32
  }
  func.func @transform_3(%arg0: i32) -> (i32, i32, i32) {
    %c0_i32 = arith.constant 0 : i32
    %c0_i32_0 = arith.constant 0 : i32
    %c0_i32_1 = arith.constant 0 : i32
    %c0_i32_2 = arith.constant 0 : i32
    return %c0_i32, %c0_i32_0, %c0_i32_1 : i32, i32, i32
  }
  func.func @transform_4(%arg0: i32) -> (i32, i32, i32) {
    %c0_i32 = arith.constant 0 : i32
    %c0_i32_0 = arith.constant 0 : i32
    %c0_i32_1 = arith.constant 0 : i32
    return %arg0, %c0_i32, %c0_i32_0 : i32, i32, i32
  }
  func.func @transform_5(%arg0: i32) -> (i32, i32, i32) {
    %c0_i32 = arith.constant 0 : i32
    %c0_i32_0 = arith.constant 0 : i32
    %c0_i32_1 = arith.constant 0 : i32
    return %arg0, %c0_i32, %c0_i32_0 : i32, i32, i32
  }
  func.func @transform_6(%arg0: i32) -> (i32, i32, i32, i32) {
    %c0_i32 = arith.constant 0 : i32
    %c0_i32_0 = arith.constant 0 : i32
    %c0_i32_1 = arith.constant 0 : i32
    %c0_i32_2 = arith.constant 0 : i32
    return %arg0, %c0_i32, %c0_i32_0, %c0_i32_1 : i32, i32, i32, i32
  }
  func.func @transform_7(%arg0: i32) -> (i32, i32, i32) {
    %c0_i32 = arith.constant 0 : i32
    %c0_i32_0 = arith.constant 0 : i32
    %c0_i32_1 = arith.constant 0 : i32
    return %arg0, %c0_i32, %c0_i32_0 : i32, i32, i32
  }
  func.func @transform_8(%arg0: i32) -> (i32, i32, i32) {
    %c0_i32 = arith.constant 0 : i32
    %c0_i32_0 = arith.constant 0 : i32
    %c0_i32_1 = arith.constant 0 : i32
    return %arg0, %c0_i32, %c0_i32_0 : i32, i32, i32
  }
  func.func @transform_9(%arg0: i32) -> (i32, i32, i32) {
    %c0_i32 = arith.constant 0 : i32
    %c0_i32_0 = arith.constant 0 : i32
    %c0_i32_1 = arith.constant 0 : i32
    return %arg0, %c0_i32, %c0_i32_0 : i32, i32, i32
  }
  func.func @transform_10(%arg0: i32) -> (i32, i32, i32, i32) {
    %c0_i32 = arith.constant 0 : i32
    %c0_i32_0 = arith.constant 0 : i32
    %c0_i32_1 = arith.constant 0 : i32
    %c0_i32_2 = arith.constant 0 : i32
    return %arg0, %c0_i32, %c0_i32_0, %c0_i32_1 : i32, i32, i32, i32
  }
  func.func @transform_11(%arg0: i32) -> (i32, i32, i32) {
    %c0_i32 = arith.constant 0 : i32
    %c0_i32_0 = arith.constant 0 : i32
    %c0_i32_1 = arith.constant 0 : i32
    return %arg0, %c0_i32, %c0_i32_0 : i32, i32, i32
  }
  func.func @transform_12(%arg0: i32) -> (i32, i32, i32, i32) {
    %c0_i32 = arith.constant 0 : i32
    %c0_i32_0 = arith.constant 0 : i32
    %c0_i32_1 = arith.constant 0 : i32
    %c0_i32_2 = arith.constant 0 : i32
    return %arg0, %c0_i32, %c0_i32_0, %c0_i32_1 : i32, i32, i32, i32
  }
  func.func @transform_13(%arg0: i32) -> (i32, i32, i32) {
    %c0_i32 = arith.constant 0 : i32
    %c0_i32_0 = arith.constant 0 : i32
    %c0_i32_1 = arith.constant 0 : i32
    return %arg0, %c0_i32, %c0_i32_0 : i32, i32, i32
  }
  func.func @transform_14(%arg0: i32) -> (i32, i32, i32) {
    %c0_i32 = arith.constant 0 : i32
    %c0_i32_0 = arith.constant 0 : i32
    %c0_i32_1 = arith.constant 0 : i32
    return %arg0, %c0_i32, %c0_i32_0 : i32, i32, i32
  }
  func.func @transform_15(%arg0: i32) -> (i32, i32, i32) {
    %c0_i32 = arith.constant 0 : i32
    %c0_i32_0 = arith.constant 0 : i32
    %c0_i32_1 = arith.constant 0 : i32
    return %arg0, %c0_i32, %c0_i32_0 : i32, i32, i32
  }
  func.func @transform_16(%arg0: i32) -> (i32, i32) {
    %c0_i32 = arith.constant 0 : i32
    %c0_i32_0 = arith.constant 0 : i32
    %c0_i32_1 = arith.constant 0 : i32
    return %c0_i32, %c0_i32_0 : i32, i32
  }
}

module attributes {stable_mosaic.version = 11 : i64} {
  func.func @_mel_postnet_kernel(%arg0: i32, %arg1: memref<32x32xf32, #tpu.memory_space<vmem>>, %arg2: memref<5x32x32xbf16, #tpu.memory_space<vmem>>, %arg3: memref<32x16xbf16, #tpu.memory_space<vmem>>, %arg4: memref<1x16xf32, #tpu.memory_space<vmem>>, %arg5: memref<5x16x32xbf16, #tpu.memory_space<vmem>>, %arg6: memref<1x32xf32, #tpu.memory_space<vmem>>, %arg7: memref<5x32x32xbf16, #tpu.memory_space<vmem>>, %arg8: memref<1x32xf32, #tpu.memory_space<vmem>>, %arg9: memref<5x32x32xbf16, #tpu.memory_space<vmem>>, %arg10: memref<1x32xf32, #tpu.memory_space<vmem>>, %arg11: memref<5x32x32xbf16, #tpu.memory_space<vmem>>, %arg12: memref<1x32xf32, #tpu.memory_space<vmem>>, %arg13: memref<5x32x16xbf16, #tpu.memory_space<vmem>>, %arg14: memref<1x16xf32, #tpu.memory_space<vmem>>, %arg15: memref<32x16xf32, #tpu.memory_space<vmem>>, %arg16: memref<32x16xf32, #tpu.memory_space<vmem>>) attributes {dimension_semantics = [#tpu.dimension_semantics<arbitrary>], iteration_bounds = array<i64: 1>, scalar_prefetch = 0 : i64, scratch_operands = 0 : i64, tpu.core_type = #tpu.core_type<tc>, window_params = [{pipeline_mode = #tpu.pipeline_mode<synchronous>, transform_indices = @transform_0, window_bounds = array<i64: 32, 32>}, {pipeline_mode = #tpu.pipeline_mode<synchronous>, transform_indices = @transform_1, window_bounds = array<i64: 5, 32, 32>}, {pipeline_mode = #tpu.pipeline_mode<synchronous>, transform_indices = @transform_2, window_bounds = array<i64: 32, 16>}, {pipeline_mode = #tpu.pipeline_mode<synchronous>, transform_indices = @transform_3, window_bounds = array<i64: 1, 16>}, {pipeline_mode = #tpu.pipeline_mode<synchronous>, transform_indices = @transform_4, window_bounds = array<i64: 5, 16, 32>}, {pipeline_mode = #tpu.pipeline_mode<synchronous>, transform_indices = @transform_5, window_bounds = array<i64: 1, 32>}, {pipeline_mode = #tpu.pipeline_mode<synchronous>, transform_indices = @transform_6, window_bounds = array<i64: 5, 32, 32>}, {pipeline_mode = #tpu.pipeline_mode<synchronous>, transform_indices = @transform_7, window_bounds = array<i64: 1, 32>}, {pipeline_mode = #tpu.pipeline_mode<synchronous>, transform_indices = @transform_8, window_bounds = array<i64: 5, 32, 32>}, {pipeline_mode = #tpu.pipeline_mode<synchronous>, transform_indices = @transform_9, window_bounds = array<i64: 1, 32>}, {pipeline_mode = #tpu.pipeline_mode<synchronous>, transform_indices = @transform_10, window_bounds = array<i64: 5, 32, 32>}, {pipeline_mode = #tpu.pipeline_mode<synchronous>, transform_indices = @transform_11, window_bounds = array<i64: 1, 32>}, {pipeline_mode = #tpu.pipeline_mode<synchronous>, transform_indices = @transform_12, window_bounds = array<i64: 5, 32, 16>}, {pipeline_mode = #tpu.pipeline_mode<synchronous>, transform_indices = @transform_13, window_bounds = array<i64: 1, 16>}, {pipeline_mode = #tpu.pipeline_mode<synchronous>, transform_indices = @transform_14, window_bounds = array<i64: 32, 16>}, {pipeline_mode = #tpu.pipeline_mode<synchronous>, transform_indices = @transform_15, window_bounds = array<i64: 32, 16>}]} {
    %c0 = arith.constant 0 : index
    %c0_0 = arith.constant 0 : index
    %c0_1 = arith.constant 0 : index
    %0 = vector.load %arg2[%c0, %c0_0, %c0_1] : memref<5x32x32xbf16, #tpu.memory_space<vmem>>, vector<1x32x32xbf16>
    %1 = vector.shape_cast %0 : vector<1x32x32xbf16> to vector<32x32xbf16>
    %c1 = arith.constant 1 : index
    %c0_2 = arith.constant 0 : index
    %c0_3 = arith.constant 0 : index
    %2 = vector.load %arg2[%c1, %c0_2, %c0_3] : memref<5x32x32xbf16, #tpu.memory_space<vmem>>, vector<1x32x32xbf16>
    %3 = vector.shape_cast %2 : vector<1x32x32xbf16> to vector<32x32xbf16>
    %c2 = arith.constant 2 : index
    %c0_4 = arith.constant 0 : index
    %c0_5 = arith.constant 0 : index
    %4 = vector.load %arg2[%c2, %c0_4, %c0_5] : memref<5x32x32xbf16, #tpu.memory_space<vmem>>, vector<1x32x32xbf16>
    %5 = vector.shape_cast %4 : vector<1x32x32xbf16> to vector<32x32xbf16>
    %c3 = arith.constant 3 : index
    %c0_6 = arith.constant 0 : index
    %c0_7 = arith.constant 0 : index
    %6 = vector.load %arg2[%c3, %c0_6, %c0_7] : memref<5x32x32xbf16, #tpu.memory_space<vmem>>, vector<1x32x32xbf16>
    %7 = vector.shape_cast %6 : vector<1x32x32xbf16> to vector<32x32xbf16>
    %c4 = arith.constant 4 : index
    %c0_8 = arith.constant 0 : index
    %c0_9 = arith.constant 0 : index
    %8 = vector.load %arg2[%c4, %c0_8, %c0_9] : memref<5x32x32xbf16, #tpu.memory_space<vmem>>, vector<1x32x32xbf16>
    %9 = vector.shape_cast %8 : vector<1x32x32xbf16> to vector<32x32xbf16>
    %c0_10 = arith.constant 0 : index
    %c0_11 = arith.constant 0 : index
    %10 = vector.load %arg1[%c0_10, %c0_11] : memref<32x32xf32, #tpu.memory_space<vmem>>, vector<32x32xf32>
    %11 = arith.truncf %10 : vector<32x32xf32> to vector<32x32xbf16>
    %c0_12 = arith.constant 0 : index
    %c0_13 = arith.constant 0 : index
    %12 = vector.load %arg3[%c0_12, %c0_13] : memref<32x16xbf16, #tpu.memory_space<vmem>>, vector<32x16xbf16>
    %cst = arith.constant dense<0.000000e+00> : vector<32x16xf32>
    %13 = tpu.matmul %11, %12, %cst {dimension_numbers = #tpu.dot_dimension_numbers<[1], [0], [0], [1], [0, 0, 1, 1], [], []>} : vector<32x32xbf16>, vector<32x16xbf16>, vector<32x16xf32> -> vector<32x16xf32>
    %c0_14 = arith.constant 0 : index
    %c0_15 = arith.constant 0 : index
    %14 = vector.load %arg4[%c0_14, %c0_15] : memref<1x16xf32, #tpu.memory_space<vmem>>, vector<1x16xf32>
    %15 = vector.broadcast %14 : vector<1x16xf32> to vector<32x16xf32>
    %16 = arith.addf %13, %15 : vector<32x16xf32>
    %c0_16 = arith.constant 0 : index
    %c0_17 = arith.constant 0 : index
    %17 = vector.load %arg15[%c0_16, %c0_17] : memref<32x16xf32, #tpu.memory_space<vmem>>, vector<32x16xf32>
    tpu.vector_store %arg15[%c0_16, %c0_17], %16 {strides = array<i32>} : memref<32x16xf32, #tpu.memory_space<vmem>>, vector<32x16xf32>,
    %c0_18 = arith.constant 0 : index
    %c0_19 = arith.constant 0 : index
    %c0_20 = arith.constant 0 : index
    %18 = vector.load %arg5[%c0_18, %c0_19, %c0_20] : memref<5x16x32xbf16, #tpu.memory_space<vmem>>, vector<1x16x32xbf16>
    %19 = vector.shape_cast %18 : vector<1x16x32xbf16> to vector<16x32xbf16>
    %c1_21 = arith.constant 1 : index
    %c0_22 = arith.constant 0 : index
    %c0_23 = arith.constant 0 : index
    %20 = vector.load %arg5[%c1_21, %c0_22, %c0_23] : memref<5x16x32xbf16, #tpu.memory_space<vmem>>, vector<1x16x32xbf16>
    %21 = vector.shape_cast %20 : vector<1x16x32xbf16> to vector<16x32xbf16>
    %c2_24 = arith.constant 2 : index
    %c0_25 = arith.constant 0 : index
    %c0_26 = arith.constant 0 : index
    %22 = vector.load %arg5[%c2_24, %c0_25, %c0_26] : memref<5x16x32xbf16, #tpu.memory_space<vmem>>, vector<1x16x32xbf16>
    %23 = vector.shape_cast %22 : vector<1x16x32xbf16> to vector<16x32xbf16>
    %c3_27 = arith.constant 3 : index
    %c0_28 = arith.constant 0 : index
    %c0_29 = arith.constant 0 : index
    %24 = vector.load %arg5[%c3_27, %c0_28, %c0_29] : memref<5x16x32xbf16, #tpu.memory_space<vmem>>, vector<1x16x32xbf16>
    %25 = vector.shape_cast %24 : vector<1x16x32xbf16> to vector<16x32xbf16>
    %c4_30 = arith.constant 4 : index
    %c0_31 = arith.constant 0 : index
    %c0_32 = arith.constant 0 : index
    %26 = vector.load %arg5[%c4_30, %c0_31, %c0_32] : memref<5x16x32xbf16, #tpu.memory_space<vmem>>, vector<1x16x32xbf16>
    %27 = vector.shape_cast %26 : vector<1x16x32xbf16> to vector<16x32xbf16>
    %c0_33 = arith.constant 0 : index
    %c0_34 = arith.constant 0 : index
    %28 = vector.load %arg6[%c0_33, %c0_34] : memref<1x32xf32, #tpu.memory_space<vmem>>, vector<1x32xf32>
    %29 = arith.truncf %16 : vector<32x16xf32> to vector<32x16xbf16>
    %cst_35 = arith.constant dense<0.000000e+00> : vector<32x16xf32>
    %30 = tpu.matmul %1, %29, %cst_35 {dimension_numbers = #tpu.dot_dimension_numbers<[1], [0], [0], [1], [0, 0, 1, 1], [], []>} : vector<32x32xbf16>, vector<32x16xbf16>, vector<32x16xf32> -> vector<32x16xf32>
    %31 = arith.truncf %30 : vector<32x16xf32> to vector<32x16xbf16>
    %cst_36 = arith.constant dense<0.000000e+00> : vector<32x32xf32>
    %32 = tpu.matmul %31, %19, %cst_36 {dimension_numbers = #tpu.dot_dimension_numbers<[1], [0], [0], [1], [0, 0, 1, 1], [], []>} : vector<32x16xbf16>, vector<16x32xbf16>, vector<32x32xf32> -> vector<32x32xf32>
    %cst_37 = arith.constant dense<0.000000e+00> : vector<32x16xf32>
    %33 = tpu.matmul %3, %29, %cst_37 {dimension_numbers = #tpu.dot_dimension_numbers<[1], [0], [0], [1], [0, 0, 1, 1], [], []>} : vector<32x32xbf16>, vector<32x16xbf16>, vector<32x16xf32> -> vector<32x16xf32>
    %34 = arith.truncf %33 : vector<32x16xf32> to vector<32x16xbf16>
    %cst_38 = arith.constant dense<0.000000e+00> : vector<32x32xf32>
    %35 = tpu.matmul %34, %21, %cst_38 {dimension_numbers = #tpu.dot_dimension_numbers<[1], [0], [0], [1], [0, 0, 1, 1], [], []>} : vector<32x16xbf16>, vector<16x32xbf16>, vector<32x32xf32> -> vector<32x32xf32>
    %36 = arith.addf %32, %35 : vector<32x32xf32>
    %cst_39 = arith.constant dense<0.000000e+00> : vector<32x16xf32>
    %37 = tpu.matmul %5, %29, %cst_39 {dimension_numbers = #tpu.dot_dimension_numbers<[1], [0], [0], [1], [0, 0, 1, 1], [], []>} : vector<32x32xbf16>, vector<32x16xbf16>, vector<32x16xf32> -> vector<32x16xf32>
    %38 = arith.truncf %37 : vector<32x16xf32> to vector<32x16xbf16>
    %cst_40 = arith.constant dense<0.000000e+00> : vector<32x32xf32>
    %39 = tpu.matmul %38, %23, %cst_40 {dimension_numbers = #tpu.dot_dimension_numbers<[1], [0], [0], [1], [0, 0, 1, 1], [], []>} : vector<32x16xbf16>, vector<16x32xbf16>, vector<32x32xf32> -> vector<32x32xf32>
    %40 = arith.addf %36, %39 : vector<32x32xf32>
    %cst_41 = arith.constant dense<0.000000e+00> : vector<32x16xf32>
    %41 = tpu.matmul %7, %29, %cst_41 {dimension_numbers = #tpu.dot_dimension_numbers<[1], [0], [0], [1], [0, 0, 1, 1], [], []>} : vector<32x32xbf16>, vector<32x16xbf16>, vector<32x16xf32> -> vector<32x16xf32>
    %42 = arith.truncf %41 : vector<32x16xf32> to vector<32x16xbf16>
    %cst_42 = arith.constant dense<0.000000e+00> : vector<32x32xf32>
    %43 = tpu.matmul %42, %25, %cst_42 {dimension_numbers = #tpu.dot_dimension_numbers<[1], [0], [0], [1], [0, 0, 1, 1], [], []>} : vector<32x16xbf16>, vector<16x32xbf16>, vector<32x32xf32> -> vector<32x32xf32>
    %44 = arith.addf %40, %43 : vector<32x32xf32>
    %cst_43 = arith.constant dense<0.000000e+00> : vector<32x16xf32>
    %45 = tpu.matmul %9, %29, %cst_43 {dimension_numbers = #tpu.dot_dimension_numbers<[1], [0], [0], [1], [0, 0, 1, 1], [], []>} : vector<32x32xbf16>, vector<32x16xbf16>, vector<32x16xf32> -> vector<32x16xf32>
    %46 = arith.truncf %45 : vector<32x16xf32> to vector<32x16xbf16>
    %cst_44 = arith.constant dense<0.000000e+00> : vector<32x32xf32>
    %47 = tpu.matmul %46, %27, %cst_44 {dimension_numbers = #tpu.dot_dimension_numbers<[1], [0], [0], [1], [0, 0, 1, 1], [], []>} : vector<32x16xbf16>, vector<16x32xbf16>, vector<32x32xf32> -> vector<32x32xf32>
    %48 = arith.addf %44, %47 : vector<32x32xf32>
    %49 = vector.broadcast %28 : vector<1x32xf32> to vector<32x32xf32>
    %50 = arith.addf %48, %49 : vector<32x32xf32>
    %51 = math.tanh %50 : vector<32x32xf32>
    %c0_45 = arith.constant 0 : index
    %c0_46 = arith.constant 0 : index
    %c0_47 = arith.constant 0 : index
    %52 = vector.load %arg7[%c0_45, %c0_46, %c0_47] : memref<5x32x32xbf16, #tpu.memory_space<vmem>>, vector<1x32x32xbf16>
    %53 = vector.shape_cast %52 : vector<1x32x32xbf16> to vector<32x32xbf16>
    %c1_48 = arith.constant 1 : index
    %c0_49 = arith.constant 0 : index
    %c0_50 = arith.constant 0 : index
    %54 = vector.load %arg7[%c1_48, %c0_49, %c0_50] : memref<5x32x32xbf16, #tpu.memory_space<vmem>>, vector<1x32x32xbf16>
    %55 = vector.shape_cast %54 : vector<1x32x32xbf16> to vector<32x32xbf16>
    %c2_51 = arith.constant 2 : index
    %c0_52 = arith.constant 0 : index
    %c0_53 = arith.constant 0 : index
    %56 = vector.load %arg7[%c2_51, %c0_52, %c0_53] : memref<5x32x32xbf16, #tpu.memory_space<vmem>>, vector<1x32x32xbf16>
    %57 = vector.shape_cast %56 : vector<1x32x32xbf16> to vector<32x32xbf16>
    %c3_54 = arith.constant 3 : index
    %c0_55 = arith.constant 0 : index
    %c0_56 = arith.constant 0 : index
    %58 = vector.load %arg7[%c3_54, %c0_55, %c0_56] : memref<5x32x32xbf16, #tpu.memory_space<vmem>>, vector<1x32x32xbf16>
    %59 = vector.shape_cast %58 : vector<1x32x32xbf16> to vector<32x32xbf16>
    %c4_57 = arith.constant 4 : index
    %c0_58 = arith.constant 0 : index
    %c0_59 = arith.constant 0 : index
    %60 = vector.load %arg7[%c4_57, %c0_58, %c0_59] : memref<5x32x32xbf16, #tpu.memory_space<vmem>>, vector<1x32x32xbf16>
    %61 = vector.shape_cast %60 : vector<1x32x32xbf16> to vector<32x32xbf16>
    %c0_60 = arith.constant 0 : index
    %c0_61 = arith.constant 0 : index
    %62 = vector.load %arg8[%c0_60, %c0_61] : memref<1x32xf32, #tpu.memory_space<vmem>>, vector<1x32xf32>
    %63 = arith.truncf %51 : vector<32x32xf32> to vector<32x32xbf16>
    %cst_62 = arith.constant dense<0.000000e+00> : vector<32x32xf32>
    %64 = tpu.matmul %1, %63, %cst_62 {dimension_numbers = #tpu.dot_dimension_numbers<[1], [0], [0], [1], [0, 0, 1, 1], [], []>} : vector<32x32xbf16>, vector<32x32xbf16>, vector<32x32xf32> -> vector<32x32xf32>
    %65 = arith.truncf %64 : vector<32x32xf32> to vector<32x32xbf16>
    %cst_63 = arith.constant dense<0.000000e+00> : vector<32x32xf32>
    %66 = tpu.matmul %65, %53, %cst_63 {dimension_numbers = #tpu.dot_dimension_numbers<[1], [0], [0], [1], [0, 0, 1, 1], [], []>} : vector<32x32xbf16>, vector<32x32xbf16>, vector<32x32xf32> -> vector<32x32xf32>
    %cst_64 = arith.constant dense<0.000000e+00> : vector<32x32xf32>
    %67 = tpu.matmul %3, %63, %cst_64 {dimension_numbers = #tpu.dot_dimension_numbers<[1], [0], [0], [1], [0, 0, 1, 1], [], []>} : vector<32x32xbf16>, vector<32x32xbf16>, vector<32x32xf32> -> vector<32x32xf32>
    %68 = arith.truncf %67 : vector<32x32xf32> to vector<32x32xbf16>
    %cst_65 = arith.constant dense<0.000000e+00> : vector<32x32xf32>
    %69 = tpu.matmul %68, %55, %cst_65 {dimension_numbers = #tpu.dot_dimension_numbers<[1], [0], [0], [1], [0, 0, 1, 1], [], []>} : vector<32x32xbf16>, vector<32x32xbf16>, vector<32x32xf32> -> vector<32x32xf32>
    %70 = arith.addf %66, %69 : vector<32x32xf32>
    %cst_66 = arith.constant dense<0.000000e+00> : vector<32x32xf32>
    %71 = tpu.matmul %5, %63, %cst_66 {dimension_numbers = #tpu.dot_dimension_numbers<[1], [0], [0], [1], [0, 0, 1, 1], [], []>} : vector<32x32xbf16>, vector<32x32xbf16>, vector<32x32xf32> -> vector<32x32xf32>
    %72 = arith.truncf %71 : vector<32x32xf32> to vector<32x32xbf16>
    %cst_67 = arith.constant dense<0.000000e+00> : vector<32x32xf32>
    %73 = tpu.matmul %72, %57, %cst_67 {dimension_numbers = #tpu.dot_dimension_numbers<[1], [0], [0], [1], [0, 0, 1, 1], [], []>} : vector<32x32xbf16>, vector<32x32xbf16>, vector<32x32xf32> -> vector<32x32xf32>
    %74 = arith.addf %70, %73 : vector<32x32xf32>
    %cst_68 = arith.constant dense<0.000000e+00> : vector<32x32xf32>
    %75 = tpu.matmul %7, %63, %cst_68 {dimension_numbers = #tpu.dot_dimension_numbers<[1], [0], [0], [1], [0, 0, 1, 1], [], []>} : vector<32x32xbf16>, vector<32x32xbf16>, vector<32x32xf32> -> vector<32x32xf32>
    %76 = arith.truncf %75 : vector<32x32xf32> to vector<32x32xbf16>
    %cst_69 = arith.constant dense<0.000000e+00> : vector<32x32xf32>
    %77 = tpu.matmul %76, %59, %cst_69 {dimension_numbers = #tpu.dot_dimension_numbers<[1], [0], [0], [1], [0, 0, 1, 1], [], []>} : vector<32x32xbf16>, vector<32x32xbf16>, vector<32x32xf32> -> vector<32x32xf32>
    %78 = arith.addf %74, %77 : vector<32x32xf32>
    %cst_70 = arith.constant dense<0.000000e+00> : vector<32x32xf32>
    %79 = tpu.matmul %9, %63, %cst_70 {dimension_numbers = #tpu.dot_dimension_numbers<[1], [0], [0], [1], [0, 0, 1, 1], [], []>} : vector<32x32xbf16>, vector<32x32xbf16>, vector<32x32xf32> -> vector<32x32xf32>
    %80 = arith.truncf %79 : vector<32x32xf32> to vector<32x32xbf16>
    %cst_71 = arith.constant dense<0.000000e+00> : vector<32x32xf32>
    %81 = tpu.matmul %80, %61, %cst_71 {dimension_numbers = #tpu.dot_dimension_numbers<[1], [0], [0], [1], [0, 0, 1, 1], [], []>} : vector<32x32xbf16>, vector<32x32xbf16>, vector<32x32xf32> -> vector<32x32xf32>
    %82 = arith.addf %78, %81 : vector<32x32xf32>
    %83 = vector.broadcast %62 : vector<1x32xf32> to vector<32x32xf32>
    %84 = arith.addf %82, %83 : vector<32x32xf32>
    %85 = math.tanh %84 : vector<32x32xf32>
    %c0_72 = arith.constant 0 : index
    %c0_73 = arith.constant 0 : index
    %c0_74 = arith.constant 0 : index
    %86 = vector.load %arg9[%c0_72, %c0_73, %c0_74] : memref<5x32x32xbf16, #tpu.memory_space<vmem>>, vector<1x32x32xbf16>
    %87 = vector.shape_cast %86 : vector<1x32x32xbf16> to vector<32x32xbf16>
    %c1_75 = arith.constant 1 : index
    %c0_76 = arith.constant 0 : index
    %c0_77 = arith.constant 0 : index
    %88 = vector.load %arg9[%c1_75, %c0_76, %c0_77] : memref<5x32x32xbf16, #tpu.memory_space<vmem>>, vector<1x32x32xbf16>
    %89 = vector.shape_cast %88 : vector<1x32x32xbf16> to vector<32x32xbf16>
    %c2_78 = arith.constant 2 : index
    %c0_79 = arith.constant 0 : index
    %c0_80 = arith.constant 0 : index
    %90 = vector.load %arg9[%c2_78, %c0_79, %c0_80] : memref<5x32x32xbf16, #tpu.memory_space<vmem>>, vector<1x32x32xbf16>
    %91 = vector.shape_cast %90 : vector<1x32x32xbf16> to vector<32x32xbf16>
    %c3_81 = arith.constant 3 : index
    %c0_82 = arith.constant 0 : index
    %c0_83 = arith.constant 0 : index
    %92 = vector.load %arg9[%c3_81, %c0_82, %c0_83] : memref<5x32x32xbf16, #tpu.memory_space<vmem>>, vector<1x32x32xbf16>
    %93 = vector.shape_cast %92 : vector<1x32x32xbf16> to vector<32x32xbf16>
    %c4_84 = arith.constant 4 : index
    %c0_85 = arith.constant 0 : index
    %c0_86 = arith.constant 0 : index
    %94 = vector.load %arg9[%c4_84, %c0_85, %c0_86] : memref<5x32x32xbf16, #tpu.memory_space<vmem>>, vector<1x32x32xbf16>
    %95 = vector.shape_cast %94 : vector<1x32x32xbf16> to vector<32x32xbf16>
    %c0_87 = arith.constant 0 : index
    %c0_88 = arith.constant 0 : index
    %96 = vector.load %arg10[%c0_87, %c0_88] : memref<1x32xf32, #tpu.memory_space<vmem>>, vector<1x32xf32>
    %97 = arith.truncf %85 : vector<32x32xf32> to vector<32x32xbf16>
    %cst_89 = arith.constant dense<0.000000e+00> : vector<32x32xf32>
    %98 = tpu.matmul %1, %97, %cst_89 {dimension_numbers = #tpu.dot_dimension_numbers<[1], [0], [0], [1], [0, 0, 1, 1], [], []>} : vector<32x32xbf16>, vector<32x32xbf16>, vector<32x32xf32> -> vector<32x32xf32>
    %99 = arith.truncf %98 : vector<32x32xf32> to vector<32x32xbf16>
    %cst_90 = arith.constant dense<0.000000e+00> : vector<32x32xf32>
    %100 = tpu.matmul %99, %87, %cst_90 {dimension_numbers = #tpu.dot_dimension_numbers<[1], [0], [0], [1], [0, 0, 1, 1], [], []>} : vector<32x32xbf16>, vector<32x32xbf16>, vector<32x32xf32> -> vector<32x32xf32>
    %cst_91 = arith.constant dense<0.000000e+00> : vector<32x32xf32>
    %101 = tpu.matmul %3, %97, %cst_91 {dimension_numbers = #tpu.dot_dimension_numbers<[1], [0], [0], [1], [0, 0, 1, 1], [], []>} : vector<32x32xbf16>, vector<32x32xbf16>, vector<32x32xf32> -> vector<32x32xf32>
    %102 = arith.truncf %101 : vector<32x32xf32> to vector<32x32xbf16>
    %cst_92 = arith.constant dense<0.000000e+00> : vector<32x32xf32>
    %103 = tpu.matmul %102, %89, %cst_92 {dimension_numbers = #tpu.dot_dimension_numbers<[1], [0], [0], [1], [0, 0, 1, 1], [], []>} : vector<32x32xbf16>, vector<32x32xbf16>, vector<32x32xf32> -> vector<32x32xf32>
    %104 = arith.addf %100, %103 : vector<32x32xf32>
    %cst_93 = arith.constant dense<0.000000e+00> : vector<32x32xf32>
    %105 = tpu.matmul %5, %97, %cst_93 {dimension_numbers = #tpu.dot_dimension_numbers<[1], [0], [0], [1], [0, 0, 1, 1], [], []>} : vector<32x32xbf16>, vector<32x32xbf16>, vector<32x32xf32> -> vector<32x32xf32>
    %106 = arith.truncf %105 : vector<32x32xf32> to vector<32x32xbf16>
    %cst_94 = arith.constant dense<0.000000e+00> : vector<32x32xf32>
    %107 = tpu.matmul %106, %91, %cst_94 {dimension_numbers = #tpu.dot_dimension_numbers<[1], [0], [0], [1], [0, 0, 1, 1], [], []>} : vector<32x32xbf16>, vector<32x32xbf16>, vector<32x32xf32> -> vector<32x32xf32>
    %108 = arith.addf %104, %107 : vector<32x32xf32>
    %cst_95 = arith.constant dense<0.000000e+00> : vector<32x32xf32>
    %109 = tpu.matmul %7, %97, %cst_95 {dimension_numbers = #tpu.dot_dimension_numbers<[1], [0], [0], [1], [0, 0, 1, 1], [], []>} : vector<32x32xbf16>, vector<32x32xbf16>, vector<32x32xf32> -> vector<32x32xf32>
    %110 = arith.truncf %109 : vector<32x32xf32> to vector<32x32xbf16>
    %cst_96 = arith.constant dense<0.000000e+00> : vector<32x32xf32>
    %111 = tpu.matmul %110, %93, %cst_96 {dimension_numbers = #tpu.dot_dimension_numbers<[1], [0], [0], [1], [0, 0, 1, 1], [], []>} : vector<32x32xbf16>, vector<32x32xbf16>, vector<32x32xf32> -> vector<32x32xf32>
    %112 = arith.addf %108, %111 : vector<32x32xf32>
    %cst_97 = arith.constant dense<0.000000e+00> : vector<32x32xf32>
    %113 = tpu.matmul %9, %97, %cst_97 {dimension_numbers = #tpu.dot_dimension_numbers<[1], [0], [0], [1], [0, 0, 1, 1], [], []>} : vector<32x32xbf16>, vector<32x32xbf16>, vector<32x32xf32> -> vector<32x32xf32>
    %114 = arith.truncf %113 : vector<32x32xf32> to vector<32x32xbf16>
    %cst_98 = arith.constant dense<0.000000e+00> : vector<32x32xf32>
    %115 = tpu.matmul %114, %95, %cst_98 {dimension_numbers = #tpu.dot_dimension_numbers<[1], [0], [0], [1], [0, 0, 1, 1], [], []>} : vector<32x32xbf16>, vector<32x32xbf16>, vector<32x32xf32> -> vector<32x32xf32>
    %116 = arith.addf %112, %115 : vector<32x32xf32>
    %117 = vector.broadcast %96 : vector<1x32xf32> to vector<32x32xf32>
    %118 = arith.addf %116, %117 : vector<32x32xf32>
    %119 = math.tanh %118 : vector<32x32xf32>
    %c0_99 = arith.constant 0 : index
    %c0_100 = arith.constant 0 : index
    %c0_101 = arith.constant 0 : index
    %120 = vector.load %arg11[%c0_99, %c0_100, %c0_101] : memref<5x32x32xbf16, #tpu.memory_space<vmem>>, vector<1x32x32xbf16>
    %121 = vector.shape_cast %120 : vector<1x32x32xbf16> to vector<32x32xbf16>
    %c1_102 = arith.constant 1 : index
    %c0_103 = arith.constant 0 : index
    %c0_104 = arith.constant 0 : index
    %122 = vector.load %arg11[%c1_102, %c0_103, %c0_104] : memref<5x32x32xbf16, #tpu.memory_space<vmem>>, vector<1x32x32xbf16>
    %123 = vector.shape_cast %122 : vector<1x32x32xbf16> to vector<32x32xbf16>
    %c2_105 = arith.constant 2 : index
    %c0_106 = arith.constant 0 : index
    %c0_107 = arith.constant 0 : index
    %124 = vector.load %arg11[%c2_105, %c0_106, %c0_107] : memref<5x32x32xbf16, #tpu.memory_space<vmem>>, vector<1x32x32xbf16>
    %125 = vector.shape_cast %124 : vector<1x32x32xbf16> to vector<32x32xbf16>
    %c3_108 = arith.constant 3 : index
    %c0_109 = arith.constant 0 : index
    %c0_110 = arith.constant 0 : index
    %126 = vector.load %arg11[%c3_108, %c0_109, %c0_110] : memref<5x32x32xbf16, #tpu.memory_space<vmem>>, vector<1x32x32xbf16>
    %127 = vector.shape_cast %126 : vector<1x32x32xbf16> to vector<32x32xbf16>
    %c4_111 = arith.constant 4 : index
    %c0_112 = arith.constant 0 : index
    %c0_113 = arith.constant 0 : index
    %128 = vector.load %arg11[%c4_111, %c0_112, %c0_113] : memref<5x32x32xbf16, #tpu.memory_space<vmem>>, vector<1x32x32xbf16>
    %129 = vector.shape_cast %128 : vector<1x32x32xbf16> to vector<32x32xbf16>
    %c0_114 = arith.constant 0 : index
    %c0_115 = arith.constant 0 : index
    %130 = vector.load %arg12[%c0_114, %c0_115] : memref<1x32xf32, #tpu.memory_space<vmem>>, vector<1x32xf32>
    %131 = arith.truncf %119 : vector<32x32xf32> to vector<32x32xbf16>
    %cst_116 = arith.constant dense<0.000000e+00> : vector<32x32xf32>
    %132 = tpu.matmul %1, %131, %cst_116 {dimension_numbers = #tpu.dot_dimension_numbers<[1], [0], [0], [1], [0, 0, 1, 1], [], []>} : vector<32x32xbf16>, vector<32x32xbf16>, vector<32x32xf32> -> vector<32x32xf32>
    %133 = arith.truncf %132 : vector<32x32xf32> to vector<32x32xbf16>
    %cst_117 = arith.constant dense<0.000000e+00> : vector<32x32xf32>
    %134 = tpu.matmul %133, %121, %cst_117 {dimension_numbers = #tpu.dot_dimension_numbers<[1], [0], [0], [1], [0, 0, 1, 1], [], []>} : vector<32x32xbf16>, vector<32x32xbf16>, vector<32x32xf32> -> vector<32x32xf32>
    %cst_118 = arith.constant dense<0.000000e+00> : vector<32x32xf32>
    %135 = tpu.matmul %3, %131, %cst_118 {dimension_numbers = #tpu.dot_dimension_numbers<[1], [0], [0], [1], [0, 0, 1, 1], [], []>} : vector<32x32xbf16>, vector<32x32xbf16>, vector<32x32xf32> -> vector<32x32xf32>
    %136 = arith.truncf %135 : vector<32x32xf32> to vector<32x32xbf16>
    %cst_119 = arith.constant dense<0.000000e+00> : vector<32x32xf32>
    %137 = tpu.matmul %136, %123, %cst_119 {dimension_numbers = #tpu.dot_dimension_numbers<[1], [0], [0], [1], [0, 0, 1, 1], [], []>} : vector<32x32xbf16>, vector<32x32xbf16>, vector<32x32xf32> -> vector<32x32xf32>
    %138 = arith.addf %134, %137 : vector<32x32xf32>
    %cst_120 = arith.constant dense<0.000000e+00> : vector<32x32xf32>
    %139 = tpu.matmul %5, %131, %cst_120 {dimension_numbers = #tpu.dot_dimension_numbers<[1], [0], [0], [1], [0, 0, 1, 1], [], []>} : vector<32x32xbf16>, vector<32x32xbf16>, vector<32x32xf32> -> vector<32x32xf32>
    %140 = arith.truncf %139 : vector<32x32xf32> to vector<32x32xbf16>
    %cst_121 = arith.constant dense<0.000000e+00> : vector<32x32xf32>
    %141 = tpu.matmul %140, %125, %cst_121 {dimension_numbers = #tpu.dot_dimension_numbers<[1], [0], [0], [1], [0, 0, 1, 1], [], []>} : vector<32x32xbf16>, vector<32x32xbf16>, vector<32x32xf32> -> vector<32x32xf32>
    %142 = arith.addf %138, %141 : vector<32x32xf32>
    %cst_122 = arith.constant dense<0.000000e+00> : vector<32x32xf32>
    %143 = tpu.matmul %7, %131, %cst_122 {dimension_numbers = #tpu.dot_dimension_numbers<[1], [0], [0], [1], [0, 0, 1, 1], [], []>} : vector<32x32xbf16>, vector<32x32xbf16>, vector<32x32xf32> -> vector<32x32xf32>
    %144 = arith.truncf %143 : vector<32x32xf32> to vector<32x32xbf16>
    %cst_123 = arith.constant dense<0.000000e+00> : vector<32x32xf32>
    %145 = tpu.matmul %144, %127, %cst_123 {dimension_numbers = #tpu.dot_dimension_numbers<[1], [0], [0], [1], [0, 0, 1, 1], [], []>} : vector<32x32xbf16>, vector<32x32xbf16>, vector<32x32xf32> -> vector<32x32xf32>
    %146 = arith.addf %142, %145 : vector<32x32xf32>
    %cst_124 = arith.constant dense<0.000000e+00> : vector<32x32xf32>
    %147 = tpu.matmul %9, %131, %cst_124 {dimension_numbers = #tpu.dot_dimension_numbers<[1], [0], [0], [1], [0, 0, 1, 1], [], []>} : vector<32x32xbf16>, vector<32x32xbf16>, vector<32x32xf32> -> vector<32x32xf32>
    %148 = arith.truncf %147 : vector<32x32xf32> to vector<32x32xbf16>
    %cst_125 = arith.constant dense<0.000000e+00> : vector<32x32xf32>
    %149 = tpu.matmul %148, %129, %cst_125 {dimension_numbers = #tpu.dot_dimension_numbers<[1], [0], [0], [1], [0, 0, 1, 1], [], []>} : vector<32x32xbf16>, vector<32x32xbf16>, vector<32x32xf32> -> vector<32x32xf32>
    %150 = arith.addf %146, %149 : vector<32x32xf32>
    %151 = vector.broadcast %130 : vector<1x32xf32> to vector<32x32xf32>
    %152 = arith.addf %150, %151 : vector<32x32xf32>
    %153 = math.tanh %152 : vector<32x32xf32>
    %c0_126 = arith.constant 0 : index
    %c0_127 = arith.constant 0 : index
    %c0_128 = arith.constant 0 : index
    %154 = vector.load %arg13[%c0_126, %c0_127, %c0_128] : memref<5x32x16xbf16, #tpu.memory_space<vmem>>, vector<1x32x16xbf16>
    %155 = vector.shape_cast %154 : vector<1x32x16xbf16> to vector<32x16xbf16>
    %c1_129 = arith.constant 1 : index
    %c0_130 = arith.constant 0 : index
    %c0_131 = arith.constant 0 : index
    %156 = vector.load %arg13[%c1_129, %c0_130, %c0_131] : memref<5x32x16xbf16, #tpu.memory_space<vmem>>, vector<1x32x16xbf16>
    %157 = vector.shape_cast %156 : vector<1x32x16xbf16> to vector<32x16xbf16>
    %c2_132 = arith.constant 2 : index
    %c0_133 = arith.constant 0 : index
    %c0_134 = arith.constant 0 : index
    %158 = vector.load %arg13[%c2_132, %c0_133, %c0_134] : memref<5x32x16xbf16, #tpu.memory_space<vmem>>, vector<1x32x16xbf16>
    %159 = vector.shape_cast %158 : vector<1x32x16xbf16> to vector<32x16xbf16>
    %c3_135 = arith.constant 3 : index
    %c0_136 = arith.constant 0 : index
    %c0_137 = arith.constant 0 : index
    %160 = vector.load %arg13[%c3_135, %c0_136, %c0_137] : memref<5x32x16xbf16, #tpu.memory_space<vmem>>, vector<1x32x16xbf16>
    %161 = vector.shape_cast %160 : vector<1x32x16xbf16> to vector<32x16xbf16>
    %c4_138 = arith.constant 4 : index
    %c0_139 = arith.constant 0 : index
    %c0_140 = arith.constant 0 : index
    %162 = vector.load %arg13[%c4_138, %c0_139, %c0_140] : memref<5x32x16xbf16, #tpu.memory_space<vmem>>, vector<1x32x16xbf16>
    %163 = vector.shape_cast %162 : vector<1x32x16xbf16> to vector<32x16xbf16>
    %c0_141 = arith.constant 0 : index
    %c0_142 = arith.constant 0 : index
    %164 = vector.load %arg14[%c0_141, %c0_142] : memref<1x16xf32, #tpu.memory_space<vmem>>, vector<1x16xf32>
    %165 = arith.truncf %153 : vector<32x32xf32> to vector<32x32xbf16>
    %cst_143 = arith.constant dense<0.000000e+00> : vector<32x32xf32>
    %166 = tpu.matmul %1, %165, %cst_143 {dimension_numbers = #tpu.dot_dimension_numbers<[1], [0], [0], [1], [0, 0, 1, 1], [], []>} : vector<32x32xbf16>, vector<32x32xbf16>, vector<32x32xf32> -> vector<32x32xf32>
    %167 = arith.truncf %166 : vector<32x32xf32> to vector<32x32xbf16>
    %cst_144 = arith.constant dense<0.000000e+00> : vector<32x16xf32>
    %168 = tpu.matmul %167, %155, %cst_144 {dimension_numbers = #tpu.dot_dimension_numbers<[1], [0], [0], [1], [0, 0, 1, 1], [], []>} : vector<32x32xbf16>, vector<32x16xbf16>, vector<32x16xf32> -> vector<32x16xf32>
    %cst_145 = arith.constant dense<0.000000e+00> : vector<32x32xf32>
    %169 = tpu.matmul %3, %165, %cst_145 {dimension_numbers = #tpu.dot_dimension_numbers<[1], [0], [0], [1], [0, 0, 1, 1], [], []>} : vector<32x32xbf16>, vector<32x32xbf16>, vector<32x32xf32> -> vector<32x32xf32>
    %170 = arith.truncf %169 : vector<32x32xf32> to vector<32x32xbf16>
    %cst_146 = arith.constant dense<0.000000e+00> : vector<32x16xf32>
    %171 = tpu.matmul %170, %157, %cst_146 {dimension_numbers = #tpu.dot_dimension_numbers<[1], [0], [0], [1], [0, 0, 1, 1], [], []>} : vector<32x32xbf16>, vector<32x16xbf16>, vector<32x16xf32> -> vector<32x16xf32>
    %172 = arith.addf %168, %171 : vector<32x16xf32>
    %cst_147 = arith.constant dense<0.000000e+00> : vector<32x32xf32>
    %173 = tpu.matmul %5, %165, %cst_147 {dimension_numbers = #tpu.dot_dimension_numbers<[1], [0], [0], [1], [0, 0, 1, 1], [], []>} : vector<32x32xbf16>, vector<32x32xbf16>, vector<32x32xf32> -> vector<32x32xf32>
    %174 = arith.truncf %173 : vector<32x32xf32> to vector<32x32xbf16>
    %cst_148 = arith.constant dense<0.000000e+00> : vector<32x16xf32>
    %175 = tpu.matmul %174, %159, %cst_148 {dimension_numbers = #tpu.dot_dimension_numbers<[1], [0], [0], [1], [0, 0, 1, 1], [], []>} : vector<32x32xbf16>, vector<32x16xbf16>, vector<32x16xf32> -> vector<32x16xf32>
    %176 = arith.addf %172, %175 : vector<32x16xf32>
    %cst_149 = arith.constant dense<0.000000e+00> : vector<32x32xf32>
    %177 = tpu.matmul %7, %165, %cst_149 {dimension_numbers = #tpu.dot_dimension_numbers<[1], [0], [0], [1], [0, 0, 1, 1], [], []>} : vector<32x32xbf16>, vector<32x32xbf16>, vector<32x32xf32> -> vector<32x32xf32>
    %178 = arith.truncf %177 : vector<32x32xf32> to vector<32x32xbf16>
    %cst_150 = arith.constant dense<0.000000e+00> : vector<32x16xf32>
    %179 = tpu.matmul %178, %161, %cst_150 {dimension_numbers = #tpu.dot_dimension_numbers<[1], [0], [0], [1], [0, 0, 1, 1], [], []>} : vector<32x32xbf16>, vector<32x16xbf16>, vector<32x16xf32> -> vector<32x16xf32>
    %180 = arith.addf %176, %179 : vector<32x16xf32>
    %cst_151 = arith.constant dense<0.000000e+00> : vector<32x32xf32>
    %181 = tpu.matmul %9, %165, %cst_151 {dimension_numbers = #tpu.dot_dimension_numbers<[1], [0], [0], [1], [0, 0, 1, 1], [], []>} : vector<32x32xbf16>, vector<32x32xbf16>, vector<32x32xf32> -> vector<32x32xf32>
    %182 = arith.truncf %181 : vector<32x32xf32> to vector<32x32xbf16>
    %cst_152 = arith.constant dense<0.000000e+00> : vector<32x16xf32>
    %183 = tpu.matmul %182, %163, %cst_152 {dimension_numbers = #tpu.dot_dimension_numbers<[1], [0], [0], [1], [0, 0, 1, 1], [], []>} : vector<32x32xbf16>, vector<32x16xbf16>, vector<32x16xf32> -> vector<32x16xf32>
    %184 = arith.addf %180, %183 : vector<32x16xf32>
    %185 = vector.broadcast %164 : vector<1x16xf32> to vector<32x16xf32>
    %186 = arith.addf %184, %185 : vector<32x16xf32>
    %187 = arith.addf %186, %16 : vector<32x16xf32>
    %c0_153 = arith.constant 0 : index
    %c0_154 = arith.constant 0 : index
    %188 = vector.load %arg16[%c0_153, %c0_154] : memref<32x16xf32, #tpu.memory_space<vmem>>, vector<32x16xf32>
    tpu.vector_store %arg16[%c0_153, %c0_154], %187 {strides = array<i32>} : memref<32x16xf32, #tpu.memory_space<vmem>>, vector<32x16xf32>,
    return
  }
  func.func @transform_0(%arg0: i32) -> (i32, i32) {
    %c0_i32 = arith.constant 0 : i32
    %c0_i32_0 = arith.constant 0 : i32
    %c0_i32_1 = arith.constant 0 : i32
    return %c0_i32, %c0_i32_0 : i32, i32
  }
  func.func @transform_1(%arg0: i32) -> (i32, i32, i32) {
    %c0_i32 = arith.constant 0 : i32
    %c0_i32_0 = arith.constant 0 : i32
    %c0_i32_1 = arith.constant 0 : i32
    %c0_i32_2 = arith.constant 0 : i32
    return %c0_i32, %c0_i32_0, %c0_i32_1 : i32, i32, i32
  }
  func.func @transform_2(%arg0: i32) -> (i32, i32) {
    %c0_i32 = arith.constant 0 : i32
    %c0_i32_0 = arith.constant 0 : i32
    %c0_i32_1 = arith.constant 0 : i32
    return %c0_i32, %c0_i32_0 : i32, i32
  }
  func.func @transform_3(%arg0: i32) -> (i32, i32) {
    %c0_i32 = arith.constant 0 : i32
    %c0_i32_0 = arith.constant 0 : i32
    %c0_i32_1 = arith.constant 0 : i32
    return %c0_i32, %c0_i32_0 : i32, i32
  }
  func.func @transform_4(%arg0: i32) -> (i32, i32, i32) {
    %c0_i32 = arith.constant 0 : i32
    %c0_i32_0 = arith.constant 0 : i32
    %c0_i32_1 = arith.constant 0 : i32
    %c0_i32_2 = arith.constant 0 : i32
    return %c0_i32, %c0_i32_0, %c0_i32_1 : i32, i32, i32
  }
  func.func @transform_5(%arg0: i32) -> (i32, i32) {
    %c0_i32 = arith.constant 0 : i32
    %c0_i32_0 = arith.constant 0 : i32
    %c0_i32_1 = arith.constant 0 : i32
    return %c0_i32, %c0_i32_0 : i32, i32
  }
  func.func @transform_6(%arg0: i32) -> (i32, i32, i32) {
    %c0_i32 = arith.constant 0 : i32
    %c0_i32_0 = arith.constant 0 : i32
    %c0_i32_1 = arith.constant 0 : i32
    %c0_i32_2 = arith.constant 0 : i32
    return %c0_i32, %c0_i32_0, %c0_i32_1 : i32, i32, i32
  }
  func.func @transform_7(%arg0: i32) -> (i32, i32) {
    %c0_i32 = arith.constant 0 : i32
    %c0_i32_0 = arith.constant 0 : i32
    %c0_i32_1 = arith.constant 0 : i32
    return %c0_i32, %c0_i32_0 : i32, i32
  }
  func.func @transform_8(%arg0: i32) -> (i32, i32, i32) {
    %c0_i32 = arith.constant 0 : i32
    %c0_i32_0 = arith.constant 0 : i32
    %c0_i32_1 = arith.constant 0 : i32
    %c0_i32_2 = arith.constant 0 : i32
    return %c0_i32, %c0_i32_0, %c0_i32_1 : i32, i32, i32
  }
  func.func @transform_9(%arg0: i32) -> (i32, i32) {
    %c0_i32 = arith.constant 0 : i32
    %c0_i32_0 = arith.constant 0 : i32
    %c0_i32_1 = arith.constant 0 : i32
    return %c0_i32, %c0_i32_0 : i32, i32
  }
  func.func @transform_10(%arg0: i32) -> (i32, i32, i32) {
    %c0_i32 = arith.constant 0 : i32
    %c0_i32_0 = arith.constant 0 : i32
    %c0_i32_1 = arith.constant 0 : i32
    %c0_i32_2 = arith.constant 0 : i32
    return %c0_i32, %c0_i32_0, %c0_i32_1 : i32, i32, i32
  }
  func.func @transform_11(%arg0: i32) -> (i32, i32) {
    %c0_i32 = arith.constant 0 : i32
    %c0_i32_0 = arith.constant 0 : i32
    %c0_i32_1 = arith.constant 0 : i32
    return %c0_i32, %c0_i32_0 : i32, i32
  }
  func.func @transform_12(%arg0: i32) -> (i32, i32, i32) {
    %c0_i32 = arith.constant 0 : i32
    %c0_i32_0 = arith.constant 0 : i32
    %c0_i32_1 = arith.constant 0 : i32
    %c0_i32_2 = arith.constant 0 : i32
    return %c0_i32, %c0_i32_0, %c0_i32_1 : i32, i32, i32
  }
  func.func @transform_13(%arg0: i32) -> (i32, i32) {
    %c0_i32 = arith.constant 0 : i32
    %c0_i32_0 = arith.constant 0 : i32
    %c0_i32_1 = arith.constant 0 : i32
    return %c0_i32, %c0_i32_0 : i32, i32
  }
  func.func @transform_14(%arg0: i32) -> (i32, i32) {
    %c0_i32 = arith.constant 0 : i32
    %c0_i32_0 = arith.constant 0 : i32
    %c0_i32_1 = arith.constant 0 : i32
    return %c0_i32, %c0_i32_0 : i32, i32
  }
  func.func @transform_15(%arg0: i32) -> (i32, i32) {
    %c0_i32 = arith.constant 0 : i32
    %c0_i32_0 = arith.constant 0 : i32
    %c0_i32_1 = arith.constant 0 : i32
    return %c0_i32, %c0_i32_0 : i32, i32
  }
}

</mosaic_0001>

<bundles_post_ra>
// kernel: fastspeech2_forward.4
= control target key start
LH: loop header
LB: loop body
LE: loop exit
PB: predicated region body
PF: predicated region fallthrough
CT: control target
= control target key end

     0   :  { %s3438_s0 = inlined_call_operand.vmem [shape: f32[16,32], index: 0, kind: input, shape index: {}]   ;;  %s3439_s1 = inlined_call_operand.vmem [shape: f32[16,1], index: 1, kind: input, shape index: {}]   ;;  %s3440_s2 = inlined_call_operand.vmem [shape: f32[2,1,8], index: 2, kind: input, shape index: {}]   ;;  %s3441_s3 = inlined_call_operand.vmem [shape: bf16[9,16,16], index: 3, kind: input, shape index: {}]   ;;  %s3442_s4 = inlined_call_operand.hbm [shape: bf16[2,32,96], index: 4, kind: input, shape index: {}]   ;;  %s3443_s5 = inlined_call_operand.vmem [shape: f32[2,1,96], index: 5, kind: input, shape index: {}]   ;;  %s3444_s6 = inlined_call_operand.hbm [shape: bf16[2,2,16,32], index: 6, kind: input, shape index: {}]   ;;  %s3445_s7 = inlined_call_operand.vmem [shape: f32[2,1,32], index: 7, kind: input, shape index: {}]   ;;  %s3446_s8 = inlined_call_operand.vmem [shape: f32[2,1,32], index: 8, kind: input, shape index: {}]   ;;  %s3447_s9 = inlined_call_operand.vmem [shape: f32[2,1,32], index: 9, kind: input, shape index: {}]   ;;  %s3448_s10 = inlined_call_operand.hbm [shape: bf16[2,9,32,32], index: 10, kind: input, shape index: {}]   ;;  %s3449_s11 = inlined_call_operand.vmem [shape: f32[2,1,32], index: 11, kind: input, shape index: {}]   ;;  %s3450_s12 = inlined_call_operand.hbm [shape: bf16[2,1,32,32], index: 12, kind: input, shape index: {}]   ;;  %s3451_s13 = inlined_call_operand.hbm [shape: f32[2,1,32], index: 13, kind: input, shape index: {}]   ;;  %s3452_s14 = inlined_call_operand.hbm [shape: f32[2,1,32], index: 14, kind: input, shape index: {}]   ;;  %s3453_s15 = inlined_call_operand.hbm [shape: f32[2,1,32], index: 15, kind: input, shape index: {}]   ;;  %s3454_s16 = inlined_call_operand.vmem [shape: f32[16,32], index: 16, kind: output, shape index: {}]  }
   0x1   :  { %3468 = sst [smem:[#allocation24_spill]] %s3438_s0 }
   0x2   :  { %3469 = sst [smem:[#allocation25_spill]] %s3439_s1 }
   0x3   :  { %3470 = sst [smem:[#allocation26_spill]] %s3440_s2 }
   0x4   :  { %3471 = sst [smem:[#allocation27_spill]] %s3441_s3 }
   0x5   :  { %3472 = sst [smem:[#allocation28_spill]] %s3442_s4 }
   0x6   :  { %3473 = sst [smem:[#allocation29_spill]] %s3443_s5 }
   0x7   :  { %3474 = sst [smem:[#allocation30_spill]] %s3444_s6 }
   0x8   :  { %3475 = sst [smem:[#allocation31_spill]] %s3445_s7 }
   0x9   :  { %3476 = sst [smem:[#allocation32_spill]] %s3446_s8 }
   0xa   :  { %3477 = sst [smem:[#allocation33_spill]] %s3447_s9 }
   0xb   :  { %3478 = sst [smem:[#allocation34_spill]] %s3449_s11 }
   0xc   :  { %3479 = sst [smem:[#allocation35_spill]] %s3450_s12 }
   0xd   :  { %3480 = sst [smem:[#allocation36_spill]] %s3454_s16 }
   0xe   :  { %21 = vsyncpa [#allocation6], 0 }
   0xf   :  { %23 = vsyncpa [#allocation6 + $0x1], 0 }
  0x10   :  { %24 = vsyncpa [#allocation8], 0 }
  0x11   :  { %26 = vsyncpa [#allocation8 + $0x1], 0 }
  0x12   :  { %27 = vsyncpa [#allocation11], 0 }
  0x13   :  { %29 = vsyncpa [#allocation11 + $0x1], 0 }
  0x14   :  { %30 = vsyncpa [#allocation14], 0 }
  0x15   :  { %32 = vsyncpa [#allocation14 + $0x1], 0  ;;  %s2929_s21 = smov 0   ;;  %s2931_s22 = smov 0  }
  0x16   :  { %s2933_s23 = smov 0   ;;  %s2935_s24 = smov 0  }
  0x17 LB: > { %3481 = sst [smem:[#allocation20_spill]] %s2829_s23  ;;  %s2948_s25 = sadd.s32 4294967295, %s2833_s24   ;;  %s2833_s24 = sphi %s2935_s24, %s3518_s24   ;;  %s2829_s23 = sphi %s2933_s23, %s3520_s23   ;;  %s2825_s22 = sphi %s2931_s22, %s3522_s22   ;;  %s2821_s21 = sphi %s2929_s21, %s3521_s21  }
  0x18   : > { %3482 = sst [smem:[#allocation21_spill]] %s2948_s25  ;;  %s2951_s26 = sadd.s32 1, %s2833_s24  }
  0x19   : > { %3483 = sst [smem:[#allocation22_spill]] %s2951_s26  ;;  %s126_s27 = ssub.s32 %s2833_s24, %s2951_s26 }
  0x1a   : > { %s129_s28 = sadd.s32 1, %s2829_s23  ;;  %p127_p0 = scmp.eq.s32.totalorder %s126_s27, 0 }
  0x1b   : > { %p136_p1 = scmp.ne.s32.totalorder %s2829_s23, %s2825_s22  ;;  %p137_p2 = scmp.eq.s32.totalorder %s2833_s24, 0 }
  0x1c   : > { %p142_p3 = scmp.ne.s32.totalorder %s2825_s22, %s2821_s21  ;;  %p143_p5 = scmp.eq.s32.totalorder %s2948_s25, 0 }
  0x1d   : > { %s2961_s29 = scalar_select %p127_p0, %s2829_s23, %s129_s28  }
  0x1e   : > { %p138_p4 = por %p137_p2, %p136_p1  ;;  %p2497_p6 = scmp.lt.s32.totalorder %s2833_s24, 2 }
  0x1f   : > { %3484 = sst [smem:[#allocation23_spill]] %s2961_s29  ;;  %p2965_p7 = por %p143_p5, %p142_p3 }
  0x20   : > { %s2970_s0 = sand.u32 1, %s2829_s23   ;;  %s2976_s18 = sshll.u32 %s2833_s24, 4 }
  0x21   : > { %s2973_s17 = sshll.u32 %s2970_s0, 4  ;;  %p2978_p8 = pnand %p2497_p6, %p138_p4 }
  0x22   : > { %s2983_s20 = sand.u32 1, %s2833_s24   ;;  %s3487_s6 = sld [smem:[#allocation30_spill]] }
  0x23   : > { %s517_s23 = scalar_lea.vmem [#allocation7], %s2973_s17  ;;  %p2993_p10 = pneg %p2978_p8 }
  0x24   : > { %s525_s26 = sshll.u32 %s517_s23, 4  ;;  %s526_s26 = int_to_ptr.vmem [resolvable:$true] %s525_s26 }
  0x28   : > { %s522_s28 = scalar_lea.hbm %s3487_s6, %s2976_s18  ;;  %s2584_s23 = scalar_lea.hbm %s3487_s6, 32 }
  0x29   : > { %s523_s29 = sshll.u32 %s522_s28, 4  ;;  %s524_s29 = int_to_ptr.hbm [resolvable:$true] %s523_s29 }
  0x2a   : > { %s2577_s3 = sshra.s32 %s524_s29, 4  ;;  %s2578_s3 = int_to_ptr.hbm [resolvable:$true] %s2577_s3 }
  0x2b   : > { %s2579_s1 = scalar_lea.hbm %s2578_s3, 16  ;;  %p2585_p13 = scmp.lt.s32.totalorder %s2578_s3, %s3487_s6 }
  0x2c   : > { %p2580_p9 = scmp.ne.s32.totalorder %s2578_s3, %s2579_s1  ;;  %p2586_p0 = scmp.lt.s32.totalorder %s2584_s23, %s2579_s1 }
  0x2e   : > { %p2582_p11 = pnand %p2993_p10, %p2580_p9  ;;  %p2587_p1 = por %p2586_p0, %p2585_p13 }
  0x30   : > { %p2583_p12 = pneg %p2582_p11 }
  0x32   : > { %p2588_p2 = pnand %p2587_p1, %p2583_p12 }
  0x34   : > { %2591 = shalt.err (!%p2588_p2)
}
  0x35   : > { %s3463_s16 = smov 64   ;;  %s2836_s9 = smov 4  }
  0x36   : > { %s3489_s21 = scalar_lea.sflag [#allocation8], %s2983_s20  ;;  %p2188_p3 = scmp.ge.s32.totalorder %s2833_s24, 1 }
  0x37   : > { %2481 = dma.hbm_to_vmem [thread:$0]  (!%p2978_p8), %s524_s29, 256, %s526_s26, %s3489_s21, %s3463_s16, %s3463_s16, %s2836_s9  }
  0x38   : > { %p652_p4 = scmp.lt.s32.totalorder %s2833_s24, 3  ;;  %s3491_s12 = sld [smem:[#allocation35_spill]] }
  0x39   : > { %s585_s28 = scalar_lea.vmem [#allocation10], %s2973_s17  ;;  %s3467_s8 = scalar_lea.sflag [#allocation11], %s2983_s20 }
  0x3a   : > { %p3014_p5 = pnand %p2188_p3, %p652_p4  ;;  %s593_s6 = sshll.u32 %s585_s28, 4  ;;  %s594_s6 = int_to_ptr.vmem [resolvable:$true] %s593_s6 }
  0x3e   : > { %s590_s27 = scalar_lea.hbm %s3491_s12, %s2976_s18  ;;  %s2614_s21 = scalar_lea.hbm %s3491_s12, 32 }
  0x3f   : > { %s591_s23 = sshll.u32 %s590_s27, 4  ;;  %s592_s23 = int_to_ptr.hbm [resolvable:$true] %s591_s23 }
  0x40   : > { %s2607_s7 = sshra.s32 %s592_s23, 4  ;;  %s2608_s7 = int_to_ptr.hbm [resolvable:$true] %s2607_s7 }
  0x41   : > { %s2609_s5 = scalar_lea.hbm %s2608_s7, 16  ;;  %p2615_p12 = scmp.lt.s32.totalorder %s2608_s7, %s3491_s12 }
  0x42   : > { %p2610_p6 = scmp.ne.s32.totalorder %s2608_s7, %s2609_s5  ;;  %p2616_p13 = scmp.lt.s32.totalorder %s2614_s21, %s2609_s5 }
  0x44   : > { %p2612_p9 = pnand %p2610_p6, %p2993_p10  ;;  %p2617_p0 = por %p2616_p13, %p2615_p12 }
  0x46   : > { %p2613_p11 = pneg %p2612_p9 }
  0x48   : > { %p2618_p1 = pnand %p2617_p0, %p2613_p11 }
  0x4a   : > { %2621 = shalt.err (!%p2618_p1)
}
  0x4b   : > { %s3492_s11 = smov 64   ;;  %s626_s7 = scalar_lea.hbm %s3452_s14, %s2833_s24 }
  0x4c   : > { %2487 = dma.hbm_to_vmem [thread:$0]  (!%p2978_p8), %s592_s23, 256, %s594_s6, %s3467_s8, %s3492_s11, %s3492_s11, %s2836_s9  }
  0x4d   : > { %s623_s5 = scalar_lea.vmem [#allocation13], %s2970_s0  ;;  %s628_s26 = sshll.u32 %s626_s7, 4  ;;  %s629_s26 = int_to_ptr.hbm [resolvable:$true] %s628_s26 }
  0x4e   : > { %s630_s16 = sshll.u32 %s623_s5, 4  ;;  %s621_s29 = scalar_lea.sflag [#allocation14], %s2983_s20  ;;  %s631_s16 = int_to_ptr.vmem [resolvable:$true] %s630_s16 }
  0x4f   : > { %s2637_s21 = sshra.s32 %s629_s26, 4  ;;  %s2644_s6 = scalar_lea.hbm %s3452_s14, 2  ;;  %s2638_s21 = int_to_ptr.hbm [resolvable:$true] %s2637_s21 }
  0x50   : > { %s2639_s3 = scalar_lea.hbm %s2638_s21, 1  ;;  %p2645_p6 = scmp.lt.s32.totalorder %s2638_s21, %s3452_s14 }
  0x51   : > { %p2640_p2 = scmp.ne.s32.totalorder %s2638_s21, %s2639_s3  ;;  %p2646_p9 = scmp.lt.s32.totalorder %s2644_s6, %s2639_s3 }
  0x53   : > { %p2642_p3 = pnand %p2640_p2, %p2993_p10  ;;  %p2647_p11 = por %p2646_p9, %p2645_p6 }
  0x55   : > { %p2643_p4 = pneg %p2642_p3 }
  0x57   : > { %p2648_p12 = pnand %p2647_p11, %p2643_p4 }
  0x59   : > { %2651 = shalt.err (!%p2648_p12)
}
  0x5a   : > { %2493 = dma.hbm_to_vmem [thread:$0]  (!%p2978_p8), %s629_s26, 16, %s631_s16, %s621_s29  }
  0x5b   : > { %s3493_s4 = sld [smem:[#allocation28_spill]]  ;;  %s489_s5 = scalar_lea.vmem [#allocation5], %s2973_s17 }
  0x5c   : > { %s497_s21 = sshll.u32 %s489_s5, 4  ;;  %s486_s3 = scalar_lea.sflag [#allocation6], %s2970_s0  ;;  %s498_s21 = int_to_ptr.vmem [resolvable:$true] %s497_s21 }
  0x61   : > { %s494_s25 = scalar_lea.hbm %s3493_s4, %s2976_s18  ;;  %s2674_s16 = scalar_lea.hbm %s3493_s4, 32 }
  0x62   : > { %s495_s7 = sshll.u32 %s494_s25, 4  ;;  %s496_s7 = int_to_ptr.hbm [resolvable:$true] %s495_s7 }
  0x63   : > { %s2667_s6 = sshra.s32 %s496_s7, 4  ;;  %s2668_s6 = int_to_ptr.hbm [resolvable:$true] %s2667_s6 }
  0x64   : > { %s2669_s23 = scalar_lea.hbm %s2668_s6, 16  ;;  %p2675_p2 = scmp.lt.s32.totalorder %s2668_s6, %s3493_s4 }
  0x65   : > { %p2670_p13 = scmp.ne.s32.totalorder %s2668_s6, %s2669_s23  ;;  %p2676_p3 = scmp.lt.s32.totalorder %s2674_s16, %s2669_s23 }
  0x67   : > { %p2672_p0 = pnand %p2670_p13, %p2993_p10  ;;  %p2677_p4 = por %p2676_p3, %p2675_p2 }
  0x69   : > { %p2673_p1 = pneg %p2672_p0 }
  0x6b   : > { %p2678_p6 = pnand %p2677_p4, %p2673_p1 }
  0x6d   : > { %2681 = shalt.err (!%p2678_p6)
}
  0x6e   : > { %2478 = dma.hbm_to_vmem [thread:$0]  (!%p2978_p8), %s496_s7, 256, %s498_s21, %s486_s3, %s3492_s11, %s3492_s11, %s2836_s9  }
  0x6f   : > { %s2458_s8 = smul.u32 144, %s2970_s0  ;;  %s609_s25 = scalar_lea.hbm %s3451_s13, %s2833_s24 }
  0x70   : > { %s2459_s17 = smul.u32 144, %s2833_s24  ;;  %s3082_s5 = sshll.u32 %s609_s25, 4  ;;  %s612_s5 = int_to_ptr.hbm [resolvable:$true] %s3082_s5 }
  0x71   : > { %s557_s16 = scalar_lea.vmem [#allocation9], %s2458_s8  ;;  %s2704_s12 = scalar_lea.hbm %s3448_s10, 288 }
  0x72   : > { %s562_s27 = scalar_lea.hbm %s3448_s10, %s2459_s17  ;;  %s565_s26 = sshll.u32 %s557_s16, 4  ;;  %s566_s26 = int_to_ptr.vmem [resolvable:$true] %s565_s26 }
  0x73   : > { %s563_s28 = sshll.u32 %s562_s27, 4  ;;  %s564_s28 = int_to_ptr.hbm [resolvable:$true] %s563_s28 }
  0x74   : > { %s2697_s7 = sshra.s32 %s564_s28, 4  ;;  %s2698_s7 = int_to_ptr.hbm [resolvable:$true] %s2697_s7 }
  0x75   : > { %s2699_s21 = scalar_lea.hbm %s2698_s7, 144  ;;  %p2705_p13 = scmp.lt.s32.totalorder %s2698_s7, %s3448_s10 }
  0x76   : > { %p2700_p9 = scmp.ne.s32.totalorder %s2698_s7, %s2699_s21  ;;  %p2706_p0 = scmp.lt.s32.totalorder %s2704_s12, %s2699_s21 }
  0x78   : > { %p2702_p11 = pnand %p2700_p9, %p2993_p10  ;;  %p2707_p1 = por %p2706_p0, %p2705_p13 }
  0x7a   : > { %p2703_p12 = pneg %p2702_p11 }
  0x7c   : > { %p2708_p2 = pnand %p2707_p1, %p2703_p12 }
  0x7e   : > { %2711 = shalt.err (!%p2708_p2)
}
  0x7f   : > { %s3494_s8 = scalar_lea.sflag [#allocation8], %s2983_s20  ;;  %s606_s17 = scalar_lea.vmem [#allocation12], %s2970_s0 }
  0x80   : > { %2484 = dma.hbm_to_vmem [thread:$0]  (!%p2978_p8), %s564_s28, 2304, %s566_s26, %s3494_s8, %s3492_s11, %s3492_s11, %s2836_s9  }
  0x81   : > { %s613_s23 = sshll.u32 %s606_s17, 4  ;;  %s643_s7 = scalar_lea.hbm %s3453_s15, %s2833_s24  ;;  %s614_s23 = int_to_ptr.vmem [resolvable:$true] %s613_s23 }
  0x82   : > { %s2727_s21 = sshra.s32 %s612_s5, 4  ;;  %s2734_s25 = scalar_lea.hbm %s3451_s13, 2  ;;  %s2728_s21 = int_to_ptr.hbm [resolvable:$true] %s2727_s21 }
  0x83   : > { %s2729_s3 = scalar_lea.hbm %s2728_s21, 1  ;;  %p2735_p9 = scmp.lt.s32.totalorder %s2728_s21, %s3451_s13 }
  0x84   : > { %p2730_p3 = scmp.ne.s32.totalorder %s2728_s21, %s2729_s3  ;;  %p2736_p11 = scmp.lt.s32.totalorder %s2734_s25, %s2729_s3 }
  0x86   : > { %p2732_p4 = pnand %p2730_p3, %p2993_p10  ;;  %p2737_p12 = por %p2736_p11, %p2735_p9 }
  0x88   : > { %p2733_p6 = pneg %p2732_p4 }
  0x8a   : > { %p2738_p13 = pnand %p2737_p12, %p2733_p6 }
  0x8c   : > { %2741 = shalt.err (!%p2738_p13)
}
  0x8d   : > { %s3495_s24 = scalar_lea.sflag [#allocation11], %s2983_s20  ;;  %s645_s26 = sshll.u32 %s643_s7, 4  ;;  %s646_s26 = int_to_ptr.hbm [resolvable:$true] %s645_s26 }
  0x8e   : > { %2490 = dma.hbm_to_vmem [thread:$0]  (!%p2978_p8), %s612_s5, 16, %s614_s23, %s3495_s24  }
  0x8f   : > { %s640_s28 = scalar_lea.vmem [#allocation15], %s2970_s0  ;;  %s2757_s8 = sshra.s32 %s646_s26, 4  ;;  %s2758_s8 = int_to_ptr.hbm [resolvable:$true] %s2757_s8 }
  0x90   : > { %s647_s6 = sshll.u32 %s640_s28, 4  ;;  %s2759_s17 = scalar_lea.hbm %s2758_s8, 1  ;;  %s648_s6 = int_to_ptr.vmem [resolvable:$true] %s647_s6 }
  0x91   : > { %p2760_p0 = scmp.ne.s32.totalorder %s2758_s8, %s2759_s17  ;;  %s2764_s21 = scalar_lea.hbm %s3453_s15, 2 }
  0x92   : > { %p2765_p3 = scmp.lt.s32.totalorder %s2758_s8, %s3453_s15  ;;  %p2766_p4 = scmp.lt.s32.totalorder %s2764_s21, %s2759_s17 }
  0x93   : > { %p2762_p1 = pnand %p2760_p0, %p2993_p10 }
  0x94   : > { %p2767_p6 = por %p2766_p4, %p2765_p3 }
  0x95   : > { %p2763_p2 = pneg %p2762_p1 }
  0x97   : > { %p2768_p9 = pnand %p2767_p6, %p2763_p2 }
  0x99   : > { %2771 = shalt.err (!%p2768_p9)
}
  0x9a   : > { %2496 = dma.hbm_to_vmem [thread:$0]  (!%p2978_p8), %s646_s26, 16, %s648_s6, %s621_s29  }
  0x9b   : > { %656 = sbr.rel (%p3014_p5) target bundleno = 2863 (0xb2f), region = 84  ;;  %s3140_s2 = sand.u32 (!%p3014_p5), 1, %s2825_s22  }
  0x9c   : > { %s3143_s0 = sshll.u32 (!%p3014_p5), %s3140_s2, 4  ;;  %s659_s5 = scalar_lea.sflag (!%p3014_p5), [#allocation6], %s3140_s2 }
  0xa0   : > { %2804 = dma.done.wait (%p2965_p7), %s659_s5, 256  }
  0xa1   : > { %2806 = vsyncadd (%p2965_p7), %s659_s5, 4294967040  ;;  %s3496_s19 = sld [smem:[#allocation21_spill]]  ;;  %s3153_s29 = scalar_lea.vmem [#allocation7], %s3143_s0 }
  0xa7   : > { %s668_s20 = sand.u32 1, %s3496_s19  }
  0xa8   : > { %s669_s1 = scalar_lea.sflag [#allocation8], %s668_s20 }
  0xa9   : > { %2808 = dma.done.wait (%p2965_p7), %s669_s1, 2560  }
  0xaa   : > { %2810 = vsyncadd (%p2965_p7), %s669_s1, 4294964736  ;;  %s2460_s7 = smul.u32 144, %s3140_s2  ;;  %s689_s25 = scalar_lea.sflag [#allocation11], %s668_s20 }
  0xac   : > { %s3160_s12 = scalar_lea.vmem [#allocation9], %s2460_s7 }
  0xad   : > { %2812 = dma.done.wait (%p2965_p7), %s689_s25, 272  }
  0xae   : > { %2814 = vsyncadd (%p2965_p7), %s689_s25, 4294967024  ;;  %s708_s24 = scalar_lea.sflag [#allocation14], %s668_s20 }
  0xaf   : > { %2816 = dma.done.wait (%p2965_p7), %s708_s24, 32  }
  0xb0   : > { %2818 = vsyncadd (%p2965_p7), %s708_s24, 4294967264  ;;  %p806_p8 = scmp.lt.s32.totalorder %s3496_s19, 1  ;;  %s3497_s17 = sld [smem:[#allocation29_spill]] }
  0xb1   : > { %s3498_s3 = sld [smem:[#allocation31_spill]]  ;;  %s719_s23 = scalar_lea.vmem [#allocation15], %s3140_s2 }
  0xb2   : > { %s3175_s28 = scalar_select %p806_p8, %s3496_s19, 1 }
  0xb3   : > { %s3499_s20 = sld [smem:[#allocation32_spill]]  ;;  %p2192_p7 = scmp.ne.s32.totalorder %s3496_s19, 0 }
  0xb4   : > { %s3500_s24 = sld [smem:[#allocation33_spill]] }
  0xb5   : > { %s3501_s6 = sld [smem:[#allocation34_spill]] }
  0xb6   : > { %s808_s27 = scalar_lea.vmem %s3497_s17, %s3175_s28  ;;  %s3502_s16 = sld [smem:[#allocation24_spill]] (!%p2192_p7) }
  0xb7   : > { %s811_s30 = scalar_lea.vmem %s3498_s3, %s3175_s28  ;;  %825 = sbr.rel (%p2192_p7) target bundleno = 191 (0xbf), region = 116 }
  0xb9   : > { %s814_s1 = scalar_lea.vmem %s3499_s20, %s3175_s28 }
  0xba   : > { %s817_s26 = scalar_lea.vmem %s3500_s24, %s3175_s28 }
  0xbb   : > { %s820_s8 = scalar_lea.vmem %s3501_s6, %s3175_s28 }
  0xbc   : > { %v826_v0 = vld [vmem:[%s3502_s16] sm:$0xff]  ;;  %vm828_vm0 = vcmask 261120   ;;  %v827_v1 = vld [vmem:[%s3502_s16 + $0x8] sm:$0xff] }
  0xbd   : > { %829 = vst.msk [vmem:[#allocation2] sm:$0xff] %vm828_vm0, %v826_v0 }
  0xbe   : > { %830 = vst.msk [vmem:[#allocation2 + $0x8] sm:$0xff] %vm828_vm0, %v827_v1 }
  0xbf PF: > { %s3503_s18 = scalar_lea.vmem [#allocation5], %s3143_s0  ;;  %vm856_vm1 = vcmask 261120   ;;  %v2541_v7 = vld [vmem:[%s808_s27] ss:$0 sm:$0xff]  ;;  %vm874_vm2 = vcmask 785408   ;;  %s2837_s4 = smov 112  }
  0xc0   : > { %v2424_v2 = vld [vmem:[%s3503_s18 + $0x8] sm:$0xff]  ;;  %s3504_s9 = smov %s3503_s18  ;;  %s2838_s19 = smov 96   ;;  %vm883_vm3 = vcmask 130048   ;;  %vm926_vm4 = vcmask 1043456   ;;  %vm908_vm5 = vcmask 64512   ;;  %v2425_v59 = vld [vmem:[%s3153_s29] sm:$0xff] }
  0xc1   : > { %v2423_v3 = vld [vmem:[%s3504_s9] sm:$0xff]  ;;  %866 = vmatpush.bf16.msra.mxu0 %v2424_v2  ;;  %s2839_s11 = smov 80   ;;  %s2840_s5 = smov 64   ;;  %v2426_v16 = vld [vmem:[%s3153_s29 + $0x8] sm:$0xff] }
  0xc2   : > { %s2841_s27 = smov 48   ;;  %s3505_s25 = sld [smem:[#allocation26_spill]] }
  0xc3   : > { %s3507_s9 = sld [smem:[#allocation25_spill]]  ;;  %s3516_s28 = scalar_lea.vmem [#allocation13], %s3140_s2 }
  0xc4   : > { %v3209_v4 = vld [vmem:[#allocation2] sm:$0xff]  ;;  %s3510_s24 = sld [smem:[#allocation27_spill]] }
  0xc5   : > { %v3211_v5 = vld [vmem:[#allocation2 + $0x8] sm:$0xff]  ;;  %867 = vmatpush.bf16.msra.mxu0 %v2423_v3 }
  0xc6   : > { %v835_v6 = vpack.c.bf16 %v3211_v5, %v3209_v4 }
  0xc8   : > { %2201 = vmatmul.msk.bf16.vlgmr.msra.gmra.mxu0 %vm856_vm1, %v835_v6  ;;  %v2542_v28 = vld [vmem:[%s3505_s25] ss:$0 sm:$0xff]  ;;  %v2543_v1 = vld [vmem:[%s3505_s25 + $0x1] ss:$0 sm:$0xff] }
  0xc9   : > { %1024 = vmatpush.bf16.msrb.mxu0 %v2426_v16 }
  0xca   : > { %s3511_s6 = smov %s3510_s24 }
 0x145   : > { %v869_v8 = vpop.f32.mrf.mxu0 }
 0x146   : > { %v870_v9 = vadd.f32 %v2541_v7, %v869_v8 }
 0x148   : > { %875 = vst.msk [vmem:[#allocation3] sm:$0xff] %vm874_vm2, %v870_v9 }
 0x14d   : > { %v871_v10 = vpop.f32.mrf.mxu0 }
 0x14e   : > { %v872_v11 = vadd.f32 %v2541_v7, %v871_v10 }
 0x14f   : > { %v878_v12 = vld [vmem:[#allocation3] sm:$0xff] }
 0x150   : > { %876 = vst.msk [vmem:[#allocation3 + $0x8] sm:$0xff] %vm874_vm2, %v872_v11  ;;  %v879_v13 = vpack.c.bf16 %v878_v12, %v878_v12 }
 0x152   : > { %946 = vrot.lane.b32.xlu1 %v879_v13, %s2837_s4  ;;  %881 = vrot.lane.b32.xlu0 %v879_v13, %s2838_s19 }
 0x157   : > { %v1055_v14 = vld [vmem:[#allocation3 + $0x8] sm:$0xff] }
 0x158   : > { %v3219_v15 = vpack.c.bf16 %v1055_v14, %v1055_v14 }
 0x15a   : > { %948 = vrot.lane.b32.xlu0 %v879_v13, %s2839_s11 }
 0x162   : > { %921 = vrot.lane.b32.xlu0 %v879_v13, %s2840_s5 }
 0x16a   : > { %983 = vrot.lane.b32.xlu0 %v879_v13, %s2841_s27 }
 0x172   : > { %1122 = vrot.lane.b32.xlu0 %v3219_v15, %s2839_s11 }
 0x17a   : > { %1120 = vrot.lane.b32.xlu0 %v3219_v15, %s2837_s4 }
 0x1c4   : > { %v882_v17 = vpop.permute.xlu0 %881  ;;  %v947_v21 = vpop.permute.xlu1 %946 }
 0x1c5   : > { %v888_v18 = vsel %vm883_vm3, %v882_v17, 0 }
 0x1c6   : > { %897 = vmatpush.bf16.xpose.msra.mxu1 %v888_v18 }
 0x1cc   : > { %v949_v19 = vpop.permute.xlu0 %948 }
 0x1cd   : > { %2202 = vmatmul.msk.bf16.vlgmr.msra.gmra.mxu1 %vm883_vm3, %v879_v13  ;;  %v954_v20 = vsel %vm883_vm3, %v949_v19, 0 }
 0x1ce   : > { %963 = vmatpush.bf16.xpose.msra.mxu3 %v954_v20  ;;  %1046 = vmatpush.bf16.msrb.mxu1 %v2425_v59  ;;  %v3259_v20 = vld [vmem:[%s811_s30] ss:$0 sm:$0xff]  ;;  %s3515_s30 = scalar_lea.vmem [#allocation12], %s3140_s2  ;;  %s3517_s2 = sld [smem:[#allocation36_spill]] }
 0x1d4   : > { %v922_v22 = vpop.permute.xlu0 %921 }
 0x1d5   : > { %2204 = vmatmul.msk.bf16.vlgmr.msra.gmra.mxu3 %vm883_vm3, %v947_v21  ;;  %v928_v23 = vsel %vm926_vm4, %v922_v22, 0 }
 0x1d6   : > { %937 = vmatpush.bf16.msra.mxu2 %v928_v23 }
 0x1dc   : > { %v984_v24 = vpop.permute.xlu0 %983 }
 0x1dd   : > { %v989_v25 = vsel %vm926_vm4, %v984_v24, 0 }
 0x1de   : > { %998 = vmatpush.bf16.msrb.mxu2 %v989_v25 }
 0x1e4   : > { %v1123_v26 = vpop.permute.xlu0 %1122 }
 0x1e5   : > { %v1128_v27 = vsel %vm883_vm3, %v1123_v26, 0 }
 0x1e6   : > { %1137 = vmatpush.bf16.xpose.msra.mxu0 %v1128_v27 }
 0x1ec   : > { %v1121_v10 = vpop.permute.xlu0 %1120 }
 0x24a   : > { %v899_v29 = vpop.f32.mrf.mxu1 }
 0x24b   : > { %v903_v30 = vmul.f32 0.25, %v899_v29 }
 0x24d   : > { %v907_v31 = vadd.f32 %v2542_v28, %v903_v30 }
 0x24f   : > { %v909_v32 = vsel %vm908_vm5, %v907_v31, -inf }
 0x250   : > { %910 = vmax.xlane.f32.xlu1 %v909_v32  ;;  %v2842_v32 = vmov 32.0  }
 0x252   : > { %v901_v33 = vpop.f32.mrf.mxu1 }
 0x258   : > { %v965_v34 = vpop.f32.mrf.mxu3 }
 0x259   : > { %v969_v35 = vmul.f32 0.25, %v965_v34 }
 0x25b   : > { %v970_v36 = vadd.f32 %v2542_v28, %v969_v35 }
 0x25d   : > { %v971_v37 = vsel %vm908_vm5, %v970_v36, -inf }
 0x25e   : > { %972 = vmax.xlane.f32.xlu2 %v971_v37 }
 0x260   : > { %v967_v38 = vpop.f32.mrf.mxu3 }
 0x2c3   : > { %v911_v39 = vpop.xlane.xlu1 %910 }
 0x2c4   : > { %v912_v40 = vsub.f32 %v907_v31, %v911_v39 }
 0x2c6   : > { %v913_v41 = vmul.f32 1.442695, %v912_v40 }
 0x2c8   : > { %2551 = vpow2.f32 %v913_v41 }
 0x2ce   : > { %v2552_v42 = vpop.eup %2551 }
 0x2cf   : > { %v915_v43 = vsel %vm908_vm5, %v2552_v42, 0.0 }
 0x2d0   : > { %916 = vadd.xlane.f32.xlu2 %v915_v43 }
 0x2d1   : > { %v973_v44 = vpop.xlane.xlu2 %972 }
 0x2d2   : > { %v974_v45 = vsub.f32 %v970_v36, %v973_v44 }
 0x2d4   : > { %v975_v46 = vmul.f32 1.442695, %v974_v45 }
 0x2d6   : > { %2553 = vpow2.f32 %v975_v46  ;;  %v833_v46 = vld [vmem:[%s3507_s9] sm:$0xff] }
 0x2dc   : > { %v2554_v47 = vpop.eup %2553 }
 0x2dd   : > { %v977_v48 = vsel %vm908_vm5, %v2554_v47, 0.0 }
 0x2de   : > { %978 = vadd.xlane.f32.xlu2 %v977_v48 }
 0x2f6   : > { %1058 = vrot.lane.b32.xlu2 %v3219_v15, %s2838_s19 }
 0x343   : > { %v917_v49 = vpop.xlane.xlu2 %916 }
 0x344   : > { %2555 = vrcp.f32 %v917_v49 }
 0x34a   : > { %v2556_v50 = vpop.eup %2555 }
 0x34b   : > { %v919_v51 = vmul.f32 %v2556_v50, %v2552_v42 }
 0x34d   : > { %v920_v52 = vpack.c.bf16 %v919_v51, %v919_v51 }
 0x34f   : > { %2203 = vmatmul.msk.bf16.vlgmr.msra.gmra.mxu2 %vm908_vm5, %v920_v52 }
 0x351   : > { %v979_v53 = vpop.xlane.xlu2 %978 }
 0x352   : > { %2557 = vrcp.f32 %v979_v53 }
 0x358   : > { %v2558_v54 = vpop.eup %2557 }
 0x359   : > { %v981_v55 = vmul.f32 %v2558_v54, %v2554_v47  ;;  %v1059_v56 = vpop.permute.xlu2 %1058  ;;  %v2843_v47 = vmov 0  }
 0x35a   : > { %v1064_v57 = vsel %vm883_vm3, %v1059_v56, 0  ;;  %2539 = vset.pattern.permute.xlu2 %v2843_v47  ;;  %2540 = vset.pattern.permute.xlu0 %v2843_v47 }
 0x35b   : > { %1073 = vmatpush.bf16.xpose.msrb.mxu3 %v1064_v57  ;;  %v982_v58 = vpack.c.bf16 %v981_v55, %v981_v55 }
 0x35f   : > { %2205 = vmatmul.msk.bf16.vlgmr.msrb.gmra.mxu2 %vm908_vm5, %v982_v58 }
 0x362   : > { %2219 = vmatmul.msk.bf16.vlgmr.msrb.gmra.mxu3 %vm883_vm3, %v3219_v15 }
 0x3d2   : > { %v939_v60 = vpop.f32.mrf.mxu2 }
 0x3d3   : > { %v943_v61 = vpack.c.bf16 %v939_v60, %v939_v60 }
 0x3d5   : > { %2217 = vmatmul.msk.bf16.vlgmr.msrb.gmra.mxu1 %vm883_vm3, %v943_v61 }
 0x3da   : > { %v941_v62 = vpop.f32.mrf.mxu2 }
 0x3db   : > { %v2427_v62 = vld [vmem:[%s3153_s29] sm:$0xff] }
 0x3e2   : > { %v1000_v63 = vpop.f32.mrf.mxu2 }
 0x3e3   : > { %v1004_v0 = vpack.c.bf16 %v1000_v63, %v1000_v63 }
 0x3e5   : > { %2212 = vmatmul.msk.bf16.vlgmr.msrb.gmra.mxu0 %vm883_vm3, %v1004_v0  ;;  %v1075_v2 = vpop.f32.mrf.mxu3 }
 0x3e6   : > { %v1079_v3 = vmul.f32 0.25, %v1075_v2 }
 0x3e8   : > { %v1083_v6 = vadd.f32 %v2543_v1, %v1079_v3 }
 0x3ea   : > { %v1002_v7 = vpop.f32.mrf.mxu2  ;;  %v1084_v8 = vsel %vm908_vm5, %v1083_v6, -inf }
 0x3eb   : > { %1085 = vmax.xlane.f32.xlu0 %v1084_v8 }
 0x3ed   : > { %v1077_v9 = vpop.f32.mrf.mxu3 }
 0x3f5   : > { %2221 = vmatmul.msk.bf16.vlgmr.msra.gmra.mxu0 %vm883_vm3, %v1121_v10 }
 0x452   : > { %v1048_v11 = vpop.f32.mrf.mxu1 }
 0x45a   : > { %v1050_v12 = vpop.f32.mrf.mxu1 }
 0x45e   : > { %v1086_v13 = vpop.xlane.xlu0 %1085 }
 0x45f   : > { %v1087_v14 = vsub.f32 %v1083_v6, %v1086_v13 }
 0x461   : > { %v1088_v16 = vmul.f32 1.442695, %v1087_v14 }
 0x462   : > { %v1026_v17 = vpop.f32.mrf.mxu0 }
 0x463   : > { %2559 = vpow2.f32 %v1088_v16  ;;  %v1049_v18 = vadd.f32 %v1048_v11, %v1026_v17 }
 0x464   : > { %2561 = vrcp.f32 %v2842_v32 }
 0x465   : > { %1052 = vst.msk [vmem:[#allocation4] sm:$0xff] %vm856_vm1, %v1049_v18 }
 0x469   : > { %v2560_v19 = vpop.eup %2559 }
 0x46a   : > { %v1028_v21 = vpop.f32.mrf.mxu0  ;;  %v1090_v22 = vsel %vm908_vm5, %v2560_v19, 0.0  ;;  %v2562_v33 = vpop.eup %2561 }
 0x46b   : > { %1091 = vadd.xlane.f32.xlu1 %v1090_v22  ;;  %v1245_v34 = vmul.f32 32.0, %v2562_v33  ;;  %vm1249_vm6 = vweird.f32 %v2562_v33 }
 0x46c   : > { %v1226_v23 = vld [vmem:[#allocation4] sm:$0xff] }
 0x46d   : > { %v1232_v24 = vadd.f32 %v3259_v20, %v1226_v23  ;;  %v1246_v35 = vsub.f32 1.0, %v1245_v34  ;;  %v834_v23 = vld [vmem:[%s3507_s9 + $0x8] sm:$0xff] }
 0x46f   : > { %v1234_v25 = vadd.f32 %v1232_v24, %v3209_v4  ;;  %v1247_v36 = vmul.f32 %v2562_v33, %v1246_v35 }
 0x471   : > { %v1238_v26 = vsel %vm856_vm1, %v1234_v25, 0.0  ;;  %v1248_v4 = vadd.f32 %v2562_v33, %v1247_v36 }
 0x472   : > { %1239 = vadd.xlane.f32.xlu0 %v1238_v26  ;;  %v1139_v27 = vpop.f32.mrf.mxu0 }
 0x473   : > { %v1143_v28 = vmul.f32 0.25, %v1139_v27  ;;  %v3268_v37 = vsel %vm1249_vm6, %v2562_v33, %v1248_v4 }
 0x475   : > { %v1144_v29 = vadd.f32 %v2543_v1, %v1143_v28 }
 0x477   : > { %v1145_v30 = vsel %vm908_vm5, %v1144_v29, -inf }
 0x478   : > { %1146 = vmax.xlane.f32.xlu2 %v1145_v30 }
 0x47a   : > { %v1141_v31 = vpop.f32.mrf.mxu0 }
 0x490   : > { %1157 = vrot.lane.b32.xlu2 %v3219_v15, %s2841_s27 }
 0x498   : > { %1301 = vperm.xlu2 %2539, %v833_v46   ;;  %v2546_v46 = vld [vmem:[%s817_s26] ss:$0 sm:$0xff] }
 0x4de   : > { %v1092_v52 = vpop.xlane.xlu1 %1091 }
 0x4e5   : > { %v1240_v38 = vpop.xlane.xlu0 %1239 }
 0x4e6   : > { %v1251_v39 = vmul.f32 %v3268_v37, %v1240_v38 }
 0x4e8   : > { %v3271_v40 = vsub.f32 %v1234_v25, %v1251_v39  ;;  %v2441_v25 = vld [vmem:[%s3160_s12 + $0x18] sm:$0xff] }
 0x4ea   : > { %v1255_v41 = vmul.f32 %v3271_v40, %v3271_v40 }
 0x4eb   : > { %v1147_v42 = vpop.xlane.xlu2 %1146 }
 0x4ec   : > { %v1148_v43 = vsub.f32 %v1144_v29, %v1147_v42  ;;  %v1257_v44 = vsel %vm856_vm1, %v1255_v41, 0.0  ;;  %v2440_v29 = vld [vmem:[%s3160_s12 + $0x10] sm:$0xff] }
 0x4ed   : > { %1258 = vadd.xlane.f32.xlu0 %v1257_v44  ;;  %v2545_v42 = vld [vmem:[%s814_s1] ss:$0 sm:$0xff] }
 0x4ee   : > { %v1149_v45 = vmul.f32 1.442695, %v1148_v43 }
 0x4f0   : > { %2563 = vpow2.f32 %v1149_v45 }
 0x4f3   : > { %v1158_v48 = vpop.permute.xlu2 %1157 }
 0x4f4   : > { %v1163_v49 = vsel %vm926_vm4, %v1158_v48, 0 }
 0x4f5   : > { %1172 = vmatpush.bf16.msra.mxu1 %v1163_v49 }
 0x4f6   : > { %v2564_v50 = vpop.eup %2563 }
 0x4f7   : > { %v1151_v51 = vsel %vm908_vm5, %v2564_v50, 0.0 }
 0x4f8   : > { %1152 = vadd.xlane.f32.xlu1 %v1151_v51 }
 0x511   : > { %1096 = vrot.lane.b32.xlu1 %v3219_v15, %s2840_s5  ;;  %v2428_v15 = vld [vmem:[%s3153_s29 + $0x8] sm:$0xff] }
 0x512   : > { %1197 = vmatpush.bf16.msra.mxu3 %v2428_v15  ;;  %v2438_v15 = vld [vmem:[%s3160_s12] sm:$0xff] }
 0x516   : > { %1450 = vmatpush.bf16.msrb.mxu3 %v2441_v25  ;;  %v2450_v25 = vld [vmem:[%s3160_s12 + $0x60] sm:$0xff] }
 0x51a   : > { %1451 = vmatpush.bf16.msrb.mxu3 %v2440_v29 }
 0x56b   : > { %v1153_v53 = vpop.xlane.xlu1 %1152 }
 0x56c   : > { %2565 = vrcp.f32 %v1153_v53 }
 0x56d   : > { %2567 = vrcp.f32 %v1092_v52  ;;  %v3314_v52 = vpop.permute.xlu2 %1301 }
 0x572   : > { %v2566_v54 = vpop.eup %2565 }
 0x573   : > { %v1155_v55 = vmul.f32 %v2566_v54, %v2564_v50  ;;  %v2568_v57 = vpop.eup %2567 }
 0x574   : > { %v1094_v58 = vmul.f32 %v2568_v57, %v2560_v19  ;;  %v2429_v57 = vld [vmem:[%s3510_s24] sm:$0xff] }
 0x575   : > { %v1156_v56 = vpack.c.bf16 %v1155_v55, %v1155_v55 }
 0x576   : > { %v1095_v61 = vpack.c.bf16 %v1094_v58, %v1094_v58  ;;  %v2430_v58 = vld [vmem:[%s3511_s6 + $0x8] sm:$0xff] }
 0x577   : > { %2222 = vmatmul.msk.bf16.vlgmr.msra.gmra.mxu1 %vm908_vm5, %v1156_v56 }
 0x583   : > { %v1097_v59 = vpop.permute.xlu1 %1096 }
 0x584   : > { %v1102_v60 = vsel %vm926_vm4, %v1097_v59, 0  ;;  %v2431_v59 = vld [vmem:[%s3511_s6 + $0x10] sm:$0xff] }
 0x585   : > { %1111 = vmatpush.bf16.msra.mxu2 %v1102_v60  ;;  %v2433_v60 = vld [vmem:[%s3511_s6 + $0x20] sm:$0xff] }
 0x588   : > { %2220 = vmatmul.msk.bf16.vlgmr.msra.gmra.mxu2 %vm908_vm5, %v1095_v61  ;;  %v2439_v61 = vld [vmem:[%s3160_s12 + $0x8] sm:$0xff] }
 0x589   : > { %1219 = vmatpush.bf16.msrb.mxu2 %v2427_v62  ;;  %v2443_v62 = vld [vmem:[%s3160_s12 + $0x28] sm:$0xff] }
 0x58d   : > { %1479 = vmatpush.bf16.msra.mxu2 %v2439_v61 }
 0x591   : > { %1480 = vmatpush.bf16.msra.mxu2 %v2438_v15 }
 0x5f4   : > { %v1174_v63 = vpop.f32.mrf.mxu1 }
 0x5f5   : > { %v1178_v0 = vpack.c.bf16 %v1174_v63, %v1174_v63  ;;  %v2442_v63 = vld [vmem:[%s3160_s12 + $0x20] sm:$0xff] }
 0x5f7   : > { %2229 = vmatmul.msk.bf16.vlgmr.msra.gmra.mxu3 %vm883_vm3, %v1178_v0 }
 0x5fc   : > { %v1176_v1 = vpop.f32.mrf.mxu1 }
 0x60b   : > { %v1113_v2 = vpop.f32.mrf.mxu2 }
 0x60c   : > { %v1117_v3 = vpack.c.bf16 %v1113_v2, %v1113_v2 }
 0x60e   : > { %2234 = vmatmul.msk.bf16.vlgmr.msrb.gmra.mxu2 %vm883_vm3, %v1117_v3 }
 0x613   : > { %v1115_v6 = vpop.f32.mrf.mxu2 }
 0x614   : > { %v2435_v6 = vld [vmem:[%s3511_s6 + $0x30] sm:$0xff] }
 0x67a   : > { %v1199_v7 = vpop.f32.mrf.mxu3 }
 0x682   : > { %v1201_v8 = vpop.f32.mrf.mxu3 }
 0x691   : > { %v1221_v9 = vpop.f32.mrf.mxu2 }
 0x692   : > { %v1222_v10 = vadd.f32 %v1221_v9, %v1199_v7 }
 0x694   : > { %1225 = vst.msk [vmem:[#allocation4 + $0x8] sm:$0xff] %vm856_vm1, %v1222_v10  ;;  %v2432_v10 = vld [vmem:[%s3511_s6 + $0x18] sm:$0xff] }
 0x699   : > { %v1223_v11 = vpop.f32.mrf.mxu2 }
 0x69b   : > { %v1227_v12 = vld [vmem:[#allocation4 + $0x8] sm:$0xff] }
 0x69c   : > { %v1233_v13 = vadd.f32 %v3259_v20, %v1227_v12  ;;  %v1259_v20 = vpop.xlane.xlu0 %1258  ;;  %v2437_v12 = vld [vmem:[%s3511_s6 + $0x40] sm:$0xff] }
 0x69e   : > { %v1235_v14 = vadd.f32 %v1233_v13, %v3211_v5  ;;  %v1263_v5 = vmul.f32 %v1259_v20, %v3268_v37  ;;  %v2444_v20 = vld [vmem:[%s3160_s12 + $0x30] sm:$0xff] }
 0x6a0   : > { %v1241_v16 = vsel %vm856_vm1, %v1235_v14, 0.0  ;;  %v1265_v24 = vadd.f32 1e-05, %v1263_v5 }
 0x6a1   : > { %1242 = vadd.xlane.f32.xlu1 %v1241_v16  ;;  %v2436_v16 = vld [vmem:[%s3511_s6 + $0x38] sm:$0xff] }
 0x6a2   : > { %2569 = vrsqrt.f32 %v1265_v24  ;;  %vm1273_vm8 = vweird.f32 %v1265_v24 }
 0x6a8   : > { %v2570_v26 = vpop.eup %2569 }
 0x6a9   : > { %v1268_v27 = vmul.f32 %v2570_v26, %v1265_v24  ;;  %vm1274_vm7 = vweird.f32 %v2570_v26  ;;  %v2451_v24 = vld [vmem:[%s3160_s12 + $0x68] sm:$0xff] }
 0x6aa   : > { %vm1275_vm9 = vmor %vm1273_vm8, %vm1274_vm7 }
 0x6ab   : > { %v1269_v28 = vmul.f32 %v2570_v26, %v1268_v27  ;;  %v2449_v27 = vld [vmem:[%s3160_s12 + $0x58] sm:$0xff] }
 0x6ad   : > { %v1270_v32 = vmul.f32 0.5, %v1269_v28 }
 0x6af   : > { %v1271_v34 = vsub.f32 1.5, %v1270_v32 }
 0x6b1   : > { %v1272_v35 = vmul.f32 %v2570_v26, %v1271_v34  ;;  %v2454_v34 = vld [vmem:[%s3160_s12 + $0x80] sm:$0xff] }
 0x6b3   : > { %v1276_v38 = vsel %vm1275_vm9, %v2570_v26, %v1272_v35 }
 0x6b4   : > { %v1287_v43 = vmul.f32 %v1276_v38, %v3271_v40 }
 0x6b6   : > { %v1292_v47 = vmul.f32 %v2545_v42, %v1287_v43 }
 0x6b8   : > { %v1297_v50 = vadd.f32 %v2546_v46, %v1292_v47 }
 0x6ba   : > { %v3319_v54 = vmul.f32 %v3314_v52, %v1297_v50 }
 0x714   : > { %v1243_v17 = vpop.xlane.xlu1 %1242 }
 0x715   : > { %v1252_v18 = vmul.f32 %v3268_v37, %v1243_v17 }
 0x717   : > { %v1254_v19 = vsub.f32 %v1235_v14, %v1252_v18  ;;  %v2434_v14 = vld [vmem:[%s3511_s6 + $0x28] sm:$0xff] }
 0x718   : > { %v2447_v18 = vld [vmem:[%s3160_s12 + $0x48] sm:$0xff] }
 0x719   : > { %v1256_v21 = vmul.f32 %v1254_v19, %v1254_v19 }
 0x71b   : > { %v1260_v22 = vsel %vm856_vm1, %v1256_v21, 0.0 }
 0x71c   : > { %1261 = vadd.xlane.f32.xlu0 %v1260_v22 }
 0x730   : > { %1306 = vperm.xlu0 %2540, %v834_v23   ;;  %v2445_v23 = vld [vmem:[%s3160_s12 + $0x38] sm:$0xff] }
 0x731   : > { %1585 = vmatpush.bf16.msrb.mxu2 %v2445_v23 }
 0x735   : > { %1586 = vmatpush.bf16.msrb.mxu2 %v2444_v20 }
 0x78f   : > { %v1262_v30 = vpop.xlane.xlu0 %1261 }
 0x790   : > { %v1264_v31 = vmul.f32 %v1262_v30, %v3268_v37  ;;  %v2448_v30 = vld [vmem:[%s3160_s12 + $0x50] sm:$0xff] }
 0x792   : > { %v1266_v33 = vadd.f32 1e-05, %v1264_v31 }
 0x794   : > { %2571 = vrsqrt.f32 %v1266_v33  ;;  %vm1283_vm11 = vweird.f32 %v1266_v33 }
 0x79a   : > { %v2572_v36 = vpop.eup %2571 }
 0x79b   : > { %v1278_v4 = vmul.f32 %v2572_v36, %v1266_v33  ;;  %vm1284_vm10 = vweird.f32 %v2572_v36  ;;  %v2455_v33 = vld [vmem:[%s3160_s12 + $0x88] sm:$0xff] }
 0x79c   : > { %vm1285_vm12 = vmor %vm1283_vm11, %vm1284_vm10 }
 0x79d   : > { %v1279_v39 = vmul.f32 %v2572_v36, %v1278_v4 }
 0x79f   : > { %v1280_v41 = vmul.f32 0.5, %v1279_v39  ;;  %v2453_v39 = vld [vmem:[%s3160_s12 + $0x78] sm:$0xff] }
 0x7a1   : > { %v1281_v44 = vsub.f32 1.5, %v1280_v41 }
 0x7a2   : > { %v3316_v53 = vpop.permute.xlu0 %1306 }
 0x7a3   : > { %v1282_v45 = vmul.f32 %v2572_v36, %v1281_v44 }
 0x7a5   : > { %v1286_v48 = vsel %vm1285_vm12, %v2572_v36, %v1282_v45 }
 0x7a6   : > { %v1288_v49 = vmul.f32 %v1286_v48, %v1254_v19  ;;  %v2446_v19 = vld [vmem:[%s3160_s12 + $0x40] sm:$0xff] }
 0x7a8   : > { %v1293_v51 = vmul.f32 %v2545_v42, %v1288_v49  ;;  %v2452_v42 = vld [vmem:[%s3160_s12 + $0x70] sm:$0xff]  ;;  %s3512_s12 = scalar_lea.vmem [#allocation10], %s3143_s0 }
 0x7a9   : > { %s3513_s17 = smov %s3512_s12 }
 0x7aa   : > { %v1298_v40 = vadd.f32 %v2546_v46, %v1293_v51  ;;  %v2456_v15 = vld [vmem:[%s3513_s17] sm:$0xff] }
 0x7ac   : > { %v3322_v55 = vmul.f32 %v3316_v53, %v1298_v40 }
 0x7ae   : > { %v1382_v56 = vpack.c.bf16 %v3322_v55, %v3319_v54 }
 0x7b0   : > { %1398 = vmatpush.bf16.msrb.mxu0 %v1382_v56  ;;  %1421 = vmatpush.bf16.msrb.mxu1 %v1382_v56 }
 0x7b1   : > { %1556 = vmatpush.bf16.msra.mxu3 %v1382_v56 }
 0x7b3   : > { %2287 = vmatmul.msk.bf16.vlgmr.msrb.gmra.mxu0 %vm883_vm3, %v2429_v57  ;;  %2292 = vmatmul.msk.bf16.vlgmr.msrb.gmra.mxu1 %vm883_vm3, %v2430_v58 }
 0x7b4   : > { %1502 = vmatpush.bf16.msra.mxu0 %v1382_v56  ;;  %1531 = vmatpush.bf16.msra.mxu1 %v2443_v62 }
 0x7b8   : > { %1610 = vmatpush.bf16.msrb.mxu0 %v1382_v56  ;;  %1532 = vmatpush.bf16.msra.mxu1 %v2442_v63 }
 0x7bc   : > { %1639 = vmatpush.bf16.msrb.mxu1 %v2447_v18 }
 0x7c0   : > { %1640 = vmatpush.bf16.msrb.mxu1 %v2446_v19  ;;  %v2547_v19 = vld [vmem:[%s820_s8] ss:$0 sm:$0xff] }
 0x7c3   : > { %2315 = vmatmul.msk.bf16.vlgmr.msra.gmra.mxu0 %vm883_vm3, %v2431_v59 }
 0x7c4   : > { %1718 = vmatpush.bf16.msra.mxu0 %v1382_v56 }
 0x7d3   : > { %2343 = vmatmul.msk.bf16.vlgmr.msrb.gmra.mxu0 %vm883_vm3, %v2433_v60  ;;  %v2457_v60 = vld [vmem:[%s3512_s12 + $0x8] sm:$0xff] }
 0x7d4   : > { %1826 = vmatpush.bf16.msrb.mxu0 %v1382_v56 }
 0x7e3   : > { %2371 = vmatmul.msk.bf16.vlgmr.msra.gmra.mxu0 %vm883_vm3, %v2435_v6 }
 0x7f3   : > { %2399 = vmatmul.msk.bf16.vlgmr.msrb.gmra.mxu0 %vm883_vm3, %v2437_v12 }
 0x830   : > { %v1400_v0 = vpop.f32.mrf.mxu0  ;;  %v1423_v1 = vpop.f32.mrf.mxu1 }
 0x838   : > { %v1402_v2 = vpop.f32.mrf.mxu0  ;;  %v1425_v3 = vpop.f32.mrf.mxu1 }
 0x839   : > { %v1405_v7 = vpack.c.bf16 %v1402_v2, %v1400_v0  ;;  %v1428_v8 = vpack.c.bf16 %v1425_v3, %v1423_v1 }
 0x83b   : > { %2301 = vmatmul.msk.bf16.vlgmr.msrb.gmra.mxu3 %vm856_vm1, %v1428_v8  ;;  %2310 = vmatmul.msk.bf16.vlgmr.msra.gmra.mxu2 %vm856_vm1, %v1405_v7 }
 0x83c   : > { %1664 = vmatpush.bf16.msrb.mxu3 %v1382_v56  ;;  %1693 = vmatpush.bf16.msra.mxu2 %v2449_v27 }
 0x840   : > { %v1504_v9 = vpop.f32.mrf.mxu0  ;;  %1694 = vmatpush.bf16.msra.mxu2 %v2448_v30 }
 0x848   : > { %v1506_v11 = vpop.f32.mrf.mxu0 }
 0x849   : > { %v1509_v13 = vpack.c.bf16 %v1506_v11, %v1504_v9 }
 0x84b   : > { %2324 = vmatmul.msk.bf16.vlgmr.msra.gmra.mxu1 %vm856_vm1, %v1509_v13  ;;  %2329 = vmatmul.msk.bf16.vlgmr.msra.gmra.mxu3 %vm883_vm3, %v2432_v10 }
 0x84c   : > { %1772 = vmatpush.bf16.msra.mxu3 %v1382_v56  ;;  %1747 = vmatpush.bf16.msra.mxu1 %v2451_v24 }
 0x850   : > { %v1612_v17 = vpop.f32.mrf.mxu0  ;;  %1748 = vmatpush.bf16.msra.mxu1 %v2450_v25 }
 0x858   : > { %v1614_v21 = vpop.f32.mrf.mxu0 }
 0x859   : > { %v1617_v22 = vpack.c.bf16 %v1614_v21, %v1612_v17 }
 0x85b   : > { %2357 = vmatmul.msk.bf16.vlgmr.msrb.gmra.mxu3 %vm883_vm3, %v2434_v14  ;;  %2352 = vmatmul.msk.bf16.vlgmr.msrb.gmra.mxu1 %vm856_vm1, %v1617_v22 }
 0x85c   : > { %1855 = vmatpush.bf16.msrb.mxu1 %v2455_v33  ;;  %1902 = vmatpush.bf16.msrb.mxu3 %v2457_v60 }
 0x860   : > { %v1720_v5 = vpop.f32.mrf.mxu0  ;;  %1856 = vmatpush.bf16.msrb.mxu1 %v2454_v34  ;;  %1903 = vmatpush.bf16.msrb.mxu3 %v2456_v15 }
 0x868   : > { %v1722_v28 = vpop.f32.mrf.mxu0 }
 0x869   : > { %v1725_v29 = vpack.c.bf16 %v1722_v28, %v1720_v5 }
 0x86b   : > { %2385 = vmatmul.msk.bf16.vlgmr.msra.gmra.mxu3 %vm883_vm3, %v2436_v16  ;;  %2380 = vmatmul.msk.bf16.vlgmr.msra.gmra.mxu1 %vm856_vm1, %v1725_v29  ;;  %v2548_v29 = vld [vmem:[%s3515_s30] ss:$0 sm:$0xff] }
 0x870   : > { %v1828_v32 = vpop.f32.mrf.mxu0 }
 0x878   : > { %v1830_v36 = vpop.f32.mrf.mxu0 }
 0x879   : > { %v1833_v4 = vpack.c.bf16 %v1830_v36, %v1828_v32 }
 0x87b   : > { %2408 = vmatmul.msk.bf16.vlgmr.msrb.gmra.mxu1 %vm856_vm1, %v1833_v4 }
 0x8be   : > { %v1453_v26 = vpop.f32.mrf.mxu3  ;;  %v1482_v50 = vpop.f32.mrf.mxu2 }
 0x8bf   : > { %v1483_v63 = vadd.f32 %v1482_v50, %v1453_v26 }
 0x8c6   : > { %v1455_v31 = vpop.f32.mrf.mxu3  ;;  %v1484_v40 = vpop.f32.mrf.mxu2 }
 0x8c7   : > { %v1485_v6 = vadd.f32 %v1484_v40, %v1455_v31 }
 0x8c8   : > { %v1534_v49 = vpop.f32.mrf.mxu1 }
 0x8c9   : > { %v1539_v0 = vadd.f32 %v1534_v49, %v1483_v63  ;;  %v2549_v63 = vld [vmem:[%s3516_s28] ss:$0 sm:$0xff] }
 0x8ce   : > { %v1558_v35 = vpop.f32.mrf.mxu3 }
 0x8d0   : > { %v1536_v51 = vpop.f32.mrf.mxu1 }
 0x8d1   : > { %v1540_v7 = vadd.f32 %v1536_v51, %v1485_v6 }
 0x8d6   : > { %v1560_v38 = vpop.f32.mrf.mxu3 }
 0x8d7   : > { %v1563_v41 = vpack.c.bf16 %v1560_v38, %v1558_v35 }
 0x8d8   : > { %v1642_v56 = vpop.f32.mrf.mxu1 }
 0x8d9   : > { %2338 = vmatmul.msk.bf16.vlgmr.msrb.gmra.mxu2 %vm856_vm1, %v1563_v41 }
 0x8da   : > { %1801 = vmatpush.bf16.msrb.mxu2 %v2453_v39 }
 0x8de   : > { %v1666_v43 = vpop.f32.mrf.mxu3  ;;  %1802 = vmatpush.bf16.msrb.mxu2 %v2452_v42 }
 0x8e0   : > { %v1644_v58 = vpop.f32.mrf.mxu1 }
 0x8e6   : > { %v1668_v44 = vpop.f32.mrf.mxu3 }
 0x8e7   : > { %v1671_v45 = vpack.c.bf16 %v1668_v44, %v1666_v43 }
 0x8e8   : > { %v1750_v61 = vpop.f32.mrf.mxu1 }
 0x8e9   : > { %2366 = vmatmul.msk.bf16.vlgmr.msra.gmra.mxu2 %vm856_vm1, %v1671_v45 }
 0x8ee   : > { %v1774_v46 = vpop.f32.mrf.mxu3 }
 0x8f0   : > { %v1752_v1 = vpop.f32.mrf.mxu1 }
 0x8f6   : > { %v1776_v47 = vpop.f32.mrf.mxu3 }
 0x8f7   : > { %v1779_v48 = vpack.c.bf16 %v1776_v47, %v1774_v46 }
 0x8f8   : > { %v1858_v11 = vpop.f32.mrf.mxu1 }
 0x8f9   : > { %2394 = vmatmul.msk.bf16.vlgmr.msrb.gmra.mxu2 %vm856_vm1, %v1779_v48 }
 0x900   : > { %v1860_v20 = vpop.f32.mrf.mxu1 }
 0x95c   : > { %v1588_v57 = vpop.f32.mrf.mxu2 }
 0x95d   : > { %v1593_v2 = vadd.f32 %v1588_v57, %v1539_v0 }
 0x95f   : > { %v1647_v8 = vadd.f32 %v1642_v56, %v1593_v2 }
 0x964   : > { %v1590_v59 = vpop.f32.mrf.mxu2 }
 0x965   : > { %v1594_v9 = vadd.f32 %v1590_v59, %v1540_v7 }
 0x967   : > { %v1648_v13 = vadd.f32 %v1644_v58, %v1594_v9 }
 0x96c   : > { %v1696_v62 = vpop.f32.mrf.mxu2 }
 0x96d   : > { %v1701_v10 = vadd.f32 %v1696_v62, %v1647_v8 }
 0x96f   : > { %v1755_v14 = vadd.f32 %v1750_v61, %v1701_v10 }
 0x974   : > { %v1698_v3 = vpop.f32.mrf.mxu2 }
 0x975   : > { %v1702_v16 = vadd.f32 %v1698_v3, %v1648_v13 }
 0x977   : > { %v1756_v21 = vadd.f32 %v1752_v1, %v1702_v16 }
 0x97c   : > { %v1804_v12 = vpop.f32.mrf.mxu2 }
 0x97d   : > { %v1809_v17 = vadd.f32 %v1804_v12, %v1755_v14 }
 0x97f   : > { %v1863_v18 = vadd.f32 %v1858_v11, %v1809_v17 }
 0x981   : > { %v1868_v5 = vadd.f32 %v2547_v19, %v1863_v18 }
 0x983   : > { %v1870_v26 = vmax.f32 %v1868_v5, 0.0 }
 0x984   : > { %v1806_v22 = vpop.f32.mrf.mxu2 }
 0x985   : > { %v1810_v23 = vadd.f32 %v1806_v22, %v1756_v21 }
 0x987   : > { %v1864_v24 = vadd.f32 %v1860_v20, %v1810_v23 }
 0x989   : > { %v1869_v25 = vadd.f32 %v2547_v19, %v1864_v24 }
 0x98b   : > { %v1871_v27 = vmax.f32 %v1869_v25, 0.0 }
 0x98d   : > { %v1877_v28 = vpack.c.bf16 %v1871_v27, %v1870_v26 }
 0x98f   : > { %2417 = vmatmul.msk.bf16.vlgmr.msrb.gmra.mxu3 %vm856_vm1, %v1877_v28 }
 0xa12   : > { %v1905_v30 = vpop.f32.mrf.mxu3 }
 0xa13   : > { %v1906_v31 = vadd.f32 %v2548_v29, %v1905_v30 }
 0xa15   : > { %v1910_v32 = vadd.f32 %v1906_v31, %v3319_v54 }
 0xa17   : > { %v1914_v33 = vsel %vm856_vm1, %v1910_v32, 0.0 }
 0xa18   : > { %1915 = vadd.xlane.f32.xlu2 %v1914_v33 }
 0xa1a   : > { %v1907_v34 = vpop.f32.mrf.mxu3 }
 0xa1b   : > { %v1908_v35 = vadd.f32 %v2548_v29, %v1907_v34 }
 0xa1d   : > { %v1911_v36 = vadd.f32 %v1908_v35, %v3322_v55 }
 0xa1f   : > { %v1917_v4 = vsel %vm856_vm1, %v1911_v36, 0.0 }
 0xa20   : > { %1918 = vadd.xlane.f32.xlu1 %v1917_v4 }
 0xa8b   : > { %v1916_v38 = vpop.xlane.xlu2 %1915 }
 0xa8c   : > { %v1920_v39 = vmul.f32 %v1916_v38, %v3268_v37 }
 0xa8e   : > { %v1922_v41 = vsub.f32 %v1910_v32, %v1920_v39 }
 0xa90   : > { %v1924_v42 = vmul.f32 %v1922_v41, %v1922_v41 }
 0xa92   : > { %v1926_v43 = vsel %vm856_vm1, %v1924_v42, 0.0 }
 0xa93   : > { %v1919_v44 = vpop.xlane.xlu1 %1918  ;;  %1927 = vadd.xlane.f32.xlu1 %v1926_v43 }
 0xa94   : > { %v1921_v54 = vmul.f32 %v1919_v44, %v3268_v37 }
 0xa96   : > { %v1923_v45 = vsub.f32 %v1911_v36, %v1921_v54 }
 0xa98   : > { %v1925_v46 = vmul.f32 %v1923_v45, %v1923_v45 }
 0xa9a   : > { %v1929_v47 = vsel %vm856_vm1, %v1925_v46, 0.0 }
 0xa9b   : > { %1930 = vadd.xlane.f32.xlu1 %v1929_v47 }
 0xb06   : > { %v1928_v55 = vpop.xlane.xlu1 %1927 }
 0xb07   : > { %v1932_v48 = vmul.f32 %v1928_v55, %v3268_v37 }
 0xb09   : > { %v1934_v49 = vadd.f32 1e-05, %v1932_v48 }
 0xb0b   : > { %2573 = vrsqrt.f32 %v1934_v49  ;;  %vm1942_vm14 = vweird.f32 %v1934_v49 }
 0xb0e   : > { %v1931_v50 = vpop.xlane.xlu1 %1930 }
 0xb0f   : > { %v1933_v51 = vmul.f32 %v1931_v50, %v3268_v37  ;;  %v2550_v37 = vld [vmem:[%s719_s23] ss:$0 sm:$0xff] }
 0xb11   : > { %v2574_v40 = vpop.eup %2573  ;;  %v1935_v56 = vadd.f32 1e-05, %v1933_v51 }
 0xb12   : > { %v1937_v57 = vmul.f32 %v2574_v40, %v1934_v49  ;;  %vm1943_vm13 = vweird.f32 %v2574_v40 }
 0xb13   : > { %2575 = vrsqrt.f32 %v1935_v56  ;;  %vm1944_vm15 = vmor %vm1942_vm14, %vm1943_vm13  ;;  %vm1952_vm2 = vweird.f32 %v1935_v56 }
 0xb14   : > { %v1938_v58 = vmul.f32 %v2574_v40, %v1937_v57 }
 0xb16   : > { %v1939_v59 = vmul.f32 0.5, %v1938_v58 }
 0xb18   : > { %v1940_v60 = vsub.f32 1.5, %v1939_v59 }
 0xb19   : > { %v2576_v61 = vpop.eup %2575 }
 0xb1a   : > { %v1941_v15 = vmul.f32 %v2574_v40, %v1940_v60  ;;  %v1947_v62 = vmul.f32 %v2576_v61, %v1935_v56  ;;  %vm1953_vm0 = vweird.f32 %v2576_v61 }
 0xb1b   : > { %vm1954_vm3 = vmor %vm1952_vm2, %vm1953_vm0 }
 0xb1c   : > { %v1945_v0 = vsel %vm1944_vm15, %v2574_v40, %v1941_v15  ;;  %v1948_v1 = vmul.f32 %v2576_v61, %v1947_v62 }
 0xb1d   : > { %v1956_v2 = vmul.f32 %v1945_v0, %v1922_v41 }
 0xb1e   : > { %v1949_v3 = vmul.f32 0.5, %v1948_v1 }
 0xb1f   : > { %v1961_v6 = vmul.f32 %v2549_v63, %v1956_v2 }
 0xb20   : > { %v1950_v7 = vsub.f32 1.5, %v1949_v3 }
 0xb21   : > { %v1966_v8 = vadd.f32 %v2550_v37, %v1961_v6 }
 0xb22   : > { %v1951_v9 = vmul.f32 %v2576_v61, %v1950_v7 }
 0xb23   : > { %v1968_v10 = vmul.f32 %v1966_v8, %v3314_v52 }
 0xb24   : > { %v1955_v11 = vsel %vm1954_vm3, %v2576_v61, %v1951_v9 }
 0xb25   : > { %1970 = vst.msk [vmem:[#allocation2] sm:$0xff] %vm856_vm1, %v1968_v10  ;;  %v1957_v12 = vmul.f32 %v1955_v11, %v1923_v45 }
 0xb26   : > { %1972 = vst.msk [vmem:[%s3517_s2] sm:$0xff] %vm856_vm1, %v1968_v10 }
 0xb27   : > { %v1962_v13 = vmul.f32 %v2549_v63, %v1957_v12 }
 0xb29   : > { %v1967_v14 = vadd.f32 %v2550_v37, %v1962_v13 }
 0xb2b   : > { %v1969_v16 = vmul.f32 %v1967_v14, %v3316_v53 }
 0xb2d   : > { %1971 = vst.msk [vmem:[#allocation2 + $0x8] sm:$0xff] %vm856_vm1, %v1969_v16 }
 0xb2e   : > { %1973 = vst.msk [vmem:[%s3517_s2 + $0x8] sm:$0xff] %vm856_vm1, %v1969_v16 }
 0xb2f PF: > { %s3518_s24 = sld [smem:[#allocation22_spill]]  ;;  %s3521_s21 = smov %s2825_s22 }
 0xb30   : > { %s3519_s4 = sld [smem:[#allocation20_spill]] }
 0xb31   : > { %s3520_s23 = sld [smem:[#allocation23_spill]] }
 0xb35   : > { %p35_p10 = scmp.ge.s32.totalorder %s3518_s24, 4  }
 0xb36   : > { %s3522_s22 = smov %s3519_s4 }
 0xb37   :  { %37 = sbr.rel (!%p35_p10) target bundleno = 23 (0x17), region = 229 }
 0xb3c   :  { %1985 = vsyncpa [#allocation6], 1 }
 0xb3d   :  { %1987 = vsyncpa [#allocation6 + $0x1], 1 }
 0xb3e   :  { %1988 = vsyncpa [#allocation8], 1 }
 0xb3f   :  { %1990 = vsyncpa [#allocation8 + $0x1], 1 }
 0xb40   :  { %1991 = vsyncpa [#allocation11], 1 }
 0xb41   :  { %1993 = vsyncpa [#allocation11 + $0x1], 1 }
 0xb42   :  { %1994 = vsyncpa [#allocation14], 1 }
 0xb43   :  { %1996 = vsyncpa [#allocation14 + $0x1], 1 }

// kernel: fastspeech2_forward.6
= control target key start
LH: loop header
LB: loop body
LE: loop exit
PB: predicated region body
PF: predicated region fallthrough
CT: control target
= control target key end

     0   :  { %s2948_s21 = smov 0   ;;  %s3443_s0 = inlined_call_operand.vmem [shape: f32[32,32], index: 0, kind: input, shape index: {}]   ;;  %s3444_s1 = inlined_call_operand.vmem [shape: f32[32,1], index: 1, kind: input, shape index: {}]   ;;  %s3445_s2 = inlined_call_operand.vmem [shape: f32[2,1,16], index: 2, kind: input, shape index: {}]   ;;  %s3446_s3 = inlined_call_operand.vmem [shape: bf16[9,32,32], index: 3, kind: input, shape index: {}]   ;;  %s3447_s4 = inlined_call_operand.vmem [shape: bf16[2,32,96], index: 4, kind: input, shape index: {}]   ;;  %s3448_s5 = inlined_call_operand.vmem [shape: f32[2,1,96], index: 5, kind: input, shape index: {}]   ;;  %s3449_s6 = inlined_call_operand.vmem [shape: bf16[2,2,16,32], index: 6, kind: input, shape index: {}]   ;;  %s3450_s7 = inlined_call_operand.vmem [shape: f32[2,1,32], index: 7, kind: input, shape index: {}]   ;;  %s3451_s8 = inlined_call_operand.vmem [shape: f32[2,1,32], index: 8, kind: input, shape index: {}]   ;;  %s3452_s9 = inlined_call_operand.vmem [shape: f32[2,1,32], index: 9, kind: input, shape index: {}]   ;;  %s3453_s10 = inlined_call_operand.vmem [shape: bf16[2,9,32,32], index: 10, kind: input, shape index: {}]   ;;  %s3454_s11 = inlined_call_operand.vmem [shape: f32[2,1,32], index: 11, kind: input, shape index: {}]   ;;  %s3455_s12 = inlined_call_operand.vmem [shape: bf16[2,1,32,32], index: 12, kind: input, shape index: {}]   ;;  %s3456_s13 = inlined_call_operand.vmem [shape: f32[2,1,32], index: 13, kind: input, shape index: {}]   ;;  %s3457_s14 = inlined_call_operand.vmem [shape: f32[2,1,32], index: 14, kind: input, shape index: {}]   ;;  %s3458_s15 = inlined_call_operand.vmem [shape: f32[2,1,32], index: 15, kind: input, shape index: {}]   ;;  %s3459_s16 = inlined_call_operand.vmem [shape: f32[32,32], index: 16, kind: output, shape index: {}]  }
   0x1   :  { %3466 = sst [smem:[#allocation6_spill]] %s3443_s0 }
   0x2   :  { %3467 = sst [smem:[#allocation7_spill]] %s3444_s1 }
   0x3   :  { %3468 = sst [smem:[#allocation8_spill]] %s3445_s2 }
   0x4   :  { %3469 = sst [smem:[#allocation9_spill]] %s3446_s3 }
   0x5   :  { %3470 = sst [smem:[#allocation10_spill]] %s3447_s4 }
   0x6   :  { %3471 = sst [smem:[#allocation11_spill]] %s3449_s6 }
   0x7   :  { %3472 = sst [smem:[#allocation12_spill]] %s3459_s16 }
   0x8 LB: > { %3473 = sst [smem:[#allocation5_spill]] %s2854_s21  ;;  %s2411_s22 = sadd.s32 4294967295, %s2854_s21   ;;  %s2854_s21 = sphi %s2948_s21, %s26_s21  }
   0x9   : > { %p2414_p0 = scmp.ge.s32.totalorder %s2854_s21, 1  ;;  %p551_p1 = scmp.lt.s32.totalorder %s2854_s21, 3 }
   0xb   : > { %p552_p2 = pnand %p2414_p0, %p551_p1 }
   0xc   : > { %p635_p3 = scmp.lt.s32.totalorder (!%p552_p2), %s2411_s22, 1  ;;  %s3474_s4 = sld [smem:[#allocation10_spill]] (!%p552_p2) }
   0xd   : > { %555 = sbr.rel (%p552_p2) target bundleno = 2831 (0xb0f), region = 84  ;;  %s3475_s6 = sld [smem:[#allocation11_spill]] (!%p552_p2) }
   0xe   : > { %p2422_p4 = scmp.ne.s32.totalorder (!%p552_p2), %s2411_s22, 0 }
  0x12   : > { %s2956_s23 = scalar_select %p635_p3, %s2411_s22, 1 }
  0x13   : > { %s3476_s17 = sld [smem:[#allocation6_spill]] (!%p2422_p4) }
  0x14   : > { %s2722_s24 = sshll.u32 %s2956_s23, 4  ;;  %s2769_s27 = smul.u32 144, %s2956_s23 }
  0x15   : > { %s639_s30 = scalar_lea.vmem %s3474_s4, %s2722_s24  ;;  %s2969_s18 = scalar_lea.vmem %s3475_s6, %s2722_s24 }
  0x16   : > { %s2991_s6 = scalar_lea.vmem %s3455_s12, %s2722_s24  ;;  %s2996_s21 = scalar_lea.vmem %s3453_s10, %s2769_s27 }
  0x17   : > { %s672_s2 = scalar_lea.vmem %s3456_s13, %s2956_s23  ;;  %s675_s1 = scalar_lea.vmem %s3457_s14, %s2956_s23 }
  0x18   : > { %s678_s4 = scalar_lea.vmem %s3458_s15, %s2956_s23  ;;  %683 = sbr.rel (%p2422_p4) target bundleno = 34 (0x22), region = 88 }
  0x1d   : > { %v684_v0 = vld [vmem:[%s3476_s17] sm:$0xff]  ;;  %vm688_vm0 = vcmask 261120   ;;  %v685_v1 = vld [vmem:[%s3476_s17 + $0x8] sm:$0xff]  ;;  %v686_v2 = vld [vmem:[%s3476_s17 + $0x10] sm:$0xff] }
  0x1e   : > { %689 = vst.msk [vmem:[#allocation2] sm:$0xff] %vm688_vm0, %v684_v0  ;;  %v687_v3 = vld [vmem:[%s3476_s17 + $0x18] sm:$0xff] }
  0x1f   : > { %690 = vst.msk [vmem:[#allocation2 + $0x8] sm:$0xff] %vm688_vm0, %v685_v1 }
  0x20   : > { %691 = vst.msk [vmem:[#allocation2 + $0x10] sm:$0xff] %vm688_vm0, %v686_v2 }
  0x21   : > { %692 = vst.msk [vmem:[#allocation2 + $0x18] sm:$0xff] %vm688_vm0, %v687_v3 }
  0x22 PF: > { %v2726_v4 = vld [vmem:[%s639_s30 + $0x8] sm:$0xff]  ;;  %v2725_v5 = vld [vmem:[%s639_s30] sm:$0xff]  ;;  %vm723_vm1 = vcmask 261120   ;;  %s3477_s28 = scalar_lea.vmem %s3448_s5, %s2956_s23  ;;  %vm749_vm2 = vcmask 785408   ;;  %s2856_s30 = smov 80   ;;  %vm761_vm3 = vcmask 130048  }
  0x23   : > { %736 = vmatpush.bf16.msra.mxu0 %v2726_v4  ;;  %v2788_v9 = vld [vmem:[%s3477_s28] ss:$0 sm:$0xff]  ;;  %s2857_s29 = smov 112   ;;  %s2858_s24 = smov 48   ;;  %v2728_v62 = vld [vmem:[%s2969_s18 + $0x8] sm:$0xff] }
  0x24   : > { %s3478_s19 = sld [smem:[#allocation8_spill]]  ;;  %s2859_s20 = smov 96  }
  0x25   : > { %v3022_v6 = vld [vmem:[#allocation2] sm:$0xff]  ;;  %s2860_s3 = smov 64   ;;  %s3479_s28 = scalar_lea.vmem %s3450_s7, %s2956_s23 }
  0x26   : > { %v3024_v7 = vld [vmem:[#allocation2 + $0x8] sm:$0xff]  ;;  %s3481_s25 = scalar_lea.vmem %s3451_s8, %s2956_s23  ;;  %s3483_s27 = sld [smem:[#allocation9_spill]] }
  0x27   : > { %v701_v8 = vpack.c.bf16 %v3024_v7, %v3022_v6  ;;  %737 = vmatpush.bf16.msra.mxu0 %v2725_v5  ;;  %v3046_v21 = vld [vmem:[#allocation2 + $0x10] sm:$0xff]  ;;  %s3484_s26 = scalar_lea.vmem %s3454_s11, %s2956_s23 }
  0x28   : > { %v3048_v22 = vld [vmem:[#allocation2 + $0x18] sm:$0xff] }
  0x29   : > { %v702_v23 = vpack.c.bf16 %v3048_v22, %v3046_v21 }
  0x2a   : > { %2431 = vmatmul.msk.bf16.vlgmr.msra.gmra.mxu0 %vm723_vm1, %v701_v8  ;;  %v3056_v24 = vld [vmem:[%s3478_s19] ss:$0 sm:$0xff] }
  0x3a   : > { %2432 = vmatmul.msk.bf16.gmra.mxu0 %vm723_vm1, %v702_v23 }
  0xa7   : > { %v739_v10 = vpop.f32.mrf.mxu0 }
  0xa8   : > { %v740_v11 = vadd.f32 %v2788_v9, %v739_v10 }
  0xaa   : > { %750 = vst.msk [vmem:[#allocation3] sm:$0xff] %vm749_vm2, %v740_v11 }
  0xaf   : > { %v741_v12 = vpop.f32.mrf.mxu0 }
  0xb0   : > { %v742_v13 = vadd.f32 %v2788_v9, %v741_v12 }
  0xb1   : > { %v755_v14 = vld [vmem:[#allocation3] sm:$0xff] }
  0xb2   : > { %751 = vst.msk [vmem:[#allocation3 + $0x8] sm:$0xff] %vm749_vm2, %v742_v13 }
  0xb7   : > { %v744_v33 = vpop.f32.mrf.mxu0 }
  0xb8   : > { %v745_v34 = vadd.f32 %v2788_v9, %v744_v33 }
  0xb9   : > { %v756_v15 = vld [vmem:[#allocation3 + $0x8] sm:$0xff] }
  0xba   : > { %v3036_v16 = vpack.c.bf16 %v756_v15, %v755_v14  ;;  %752 = vst.msk [vmem:[#allocation3 + $0x10] sm:$0xff] %vm749_vm2, %v745_v34 }
  0xbc   : > { %837 = vrot.lane.b32.xlu0 %v3036_v16, %s2856_s30 }
  0xbf   : > { %v746_v35 = vpop.f32.mrf.mxu0 }
  0xc0   : > { %v747_v36 = vadd.f32 %v2788_v9, %v746_v35 }
  0xc1   : > { %v960_v42 = vld [vmem:[#allocation3 + $0x10] sm:$0xff] }
  0xc2   : > { %753 = vst.msk [vmem:[#allocation3 + $0x18] sm:$0xff] %vm749_vm2, %v747_v36 }
  0xc4   : > { %835 = vrot.lane.b32.xlu0 %v3036_v16, %s2857_s29 }
  0xc9   : > { %v961_v43 = vld [vmem:[#allocation3 + $0x18] sm:$0xff] }
  0xca   : > { %v3065_v44 = vpack.c.bf16 %v961_v43, %v960_v42 }
  0xcc   : > { %886 = vrot.lane.b32.xlu0 %v3036_v16, %s2858_s24 }
  0xd4   : > { %964 = vrot.lane.b32.xlu0 %v3065_v44, %s2859_s20 }
  0xdc   : > { %1039 = vrot.lane.b32.xlu0 %v3065_v44, %s2857_s29  ;;  %s3480_s29 = sld [smem:[#allocation7_spill]] }
 0x12e   : > { %v838_v17 = vpop.permute.xlu0 %837 }
 0x12f   : > { %v843_v18 = vsel %vm761_vm3, %v838_v17, 0 }
 0x130   : > { %852 = vmatpush.bf16.xpose.msra.mxu3 %v843_v18 }
 0x136   : > { %v836_v19 = vpop.permute.xlu0 %835 }
 0x137   : > { %2435 = vmatmul.msk.bf16.vlgmr.msra.gmra.mxu3 %vm761_vm3, %v836_v19 }
 0x13e   : > { %v887_v20 = vpop.permute.xlu0 %886 }
 0x13f   : > { %899 = vmatpush.bf16.msra.mxu2 %v887_v20 }
 0x146   : > { %v965_v52 = vpop.permute.xlu0 %964 }
 0x147   : > { %v970_v53 = vsel %vm761_vm3, %v965_v52, 0 }
 0x148   : > { %979 = vmatpush.bf16.xpose.msrb.mxu2 %v970_v53 }
 0x14e   : > { %v1040_v10 = vpop.permute.xlu0 %1039 }
 0x1ba   : > { %v854_v25 = vpop.f32.mrf.mxu3 }
 0x1bb   : > { %v859_v26 = vmul.f32 0.25, %v854_v25 }
 0x1bd   : > { %v861_v27 = vadd.f32 %v3056_v24, %v859_v26 }
 0x1bf   : > { %v863_v28 = vsel %vm761_vm3, %v861_v27, -inf }
 0x1c0   : > { %864 = vmax.xlane.f32.xlu1 %v863_v28 }
 0x1c2   : > { %v856_v29 = vpop.f32.mrf.mxu3 }
 0x1c3   : > { %v860_v30 = vmul.f32 0.25, %v856_v29 }
 0x1c5   : > { %v862_v31 = vadd.f32 %v3056_v24, %v860_v30 }
 0x1c7   : > { %v866_v32 = vsel %vm761_vm3, %v862_v31, -inf }
 0x1c8   : > { %867 = vmax.xlane.f32.xlu1 %v866_v32 }
 0x1e1   : > { %759 = vrot.lane.b32.xlu1 %v3036_v16, %s2859_s20 }
 0x233   : > { %v865_v37 = vpop.xlane.xlu1 %864 }
 0x234   : > { %v869_v38 = vsub.f32 %v861_v27, %v865_v37 }
 0x236   : > { %v871_v39 = vmul.f32 1.442695, %v869_v38  ;;  %v2790_v38 = vld [vmem:[%s3478_s19 + $0x1] ss:$0 sm:$0xff] }
 0x238   : > { %2798 = vpow2.f32 %v871_v39 }
 0x23b   : > { %v868_v40 = vpop.xlane.xlu1 %867 }
 0x23c   : > { %v870_v41 = vsub.f32 %v862_v31, %v868_v40 }
 0x23e   : > { %v2799_v45 = vpop.eup %2798  ;;  %v873_v46 = vmul.f32 1.442695, %v870_v41 }
 0x23f   : > { %v875_v47 = vsel %vm761_vm3, %v2799_v45, 0.0 }
 0x240   : > { %2800 = vpow2.f32 %v873_v46  ;;  %876 = vadd.xlane.f32.xlu2 %v875_v47 }
 0x246   : > { %v2801_v48 = vpop.eup %2800 }
 0x247   : > { %v878_v49 = vsel %vm761_vm3, %v2801_v48, 0.0 }
 0x248   : > { %879 = vadd.xlane.f32.xlu2 %v878_v49 }
 0x253   : > { %v760_v50 = vpop.permute.xlu1 %759 }
 0x254   : > { %v766_v51 = vsel %vm761_vm3, %v760_v50, 0 }
 0x255   : > { %775 = vmatpush.bf16.xpose.msra.mxu1 %v766_v51 }
 0x25c   : > { %2433 = vmatmul.msk.bf16.vlgmr.msra.gmra.mxu1 %vm761_vm3, %v3036_v16 }
 0x25d   : > { %926 = vmatpush.bf16.msrb.mxu1 %v2728_v62 }
 0x260   : > { %1041 = vrot.lane.b32.xlu2 %v3065_v44, %s2856_s30  ;;  %s3482_s30 = scalar_lea.vmem %s3452_s9, %s2956_s23  ;;  %s3485_s23 = sld [smem:[#allocation12_spill]] }
 0x2b3   : > { %v877_v54 = vpop.xlane.xlu2 %876 }
 0x2b4   : > { %2802 = vrcp.f32 %v877_v54  ;;  %v2727_v54 = vld [vmem:[%s2969_s18] sm:$0xff] }
 0x2b5   : > { %949 = vmatpush.bf16.msrb.mxu3 %v2727_v54 }
 0x2ba   : > { %v2803_v56 = vpop.eup %2802 }
 0x2bb   : > { %v880_v55 = vpop.xlane.xlu2 %879  ;;  %v883_v58 = vmul.f32 %v2803_v56, %v2799_v45 }
 0x2bc   : > { %2804 = vrcp.f32 %v880_v55 }
 0x2c2   : > { %v2805_v57 = vpop.eup %2804 }
 0x2c3   : > { %v884_v59 = vmul.f32 %v2805_v57, %v2801_v48  ;;  %v1042_v61 = vpop.permute.xlu2 %1041 }
 0x2c4   : > { %v1047_v63 = vsel %vm761_vm3, %v1042_v61, 0 }
 0x2c5   : > { %v885_v60 = vpack.c.bf16 %v884_v59, %v883_v58  ;;  %1056 = vmatpush.bf16.xpose.msra.mxu1 %v1047_v63 }
 0x2c7   : > { %2436 = vmatmul.msk.bf16.vlgmr.msra.gmra.mxu2 %vm761_vm3, %v885_v60 }
 0x2d7   : > { %2450 = vmatmul.msk.bf16.vlgmr.msrb.gmra.mxu2 %vm761_vm3, %v3065_v44 }
 0x2d9   : > { %v777_v0 = vpop.f32.mrf.mxu1 }
 0x2da   : > { %v782_v1 = vmul.f32 0.25, %v777_v0 }
 0x2dc   : > { %v787_v2 = vadd.f32 %v3056_v24, %v782_v1 }
 0x2de   : > { %v789_v3 = vsel %vm761_vm3, %v787_v2, -inf }
 0x2df   : > { %790 = vmax.xlane.f32.xlu0 %v789_v3 }
 0x2e1   : > { %v779_v4 = vpop.f32.mrf.mxu1 }
 0x2e2   : > { %v783_v5 = vmul.f32 0.25, %v779_v4 }
 0x2e4   : > { %v788_v8 = vadd.f32 %v3056_v24, %v783_v5 }
 0x2e6   : > { %v792_v9 = vsel %vm761_vm3, %v788_v8, -inf }
 0x2e7   : > { %793 = vmax.xlane.f32.xlu2 %v792_v9 }
 0x2f3   : > { %812 = vrot.lane.b32.xlu0 %v3036_v16, %s2860_s3 }
 0x34a   : > { %v901_v11 = vpop.f32.mrf.mxu2 }
 0x352   : > { %v903_v12 = vpop.f32.mrf.mxu2  ;;  %v791_v13 = vpop.xlane.xlu0 %790 }
 0x353   : > { %v906_v14 = vpack.c.bf16 %v903_v12, %v901_v11  ;;  %v795_v15 = vsub.f32 %v787_v2, %v791_v13 }
 0x355   : > { %v797_v17 = vmul.f32 1.442695, %v795_v15  ;;  %2443 = vmatmul.msk.bf16.vlgmr.msrb.gmra.mxu1 %vm761_vm3, %v906_v14 }
 0x357   : > { %2806 = vpow2.f32 %v797_v17 }
 0x35a   : > { %v794_v18 = vpop.xlane.xlu2 %793  ;;  %v981_v33 = vpop.f32.mrf.mxu2 }
 0x35b   : > { %v796_v19 = vsub.f32 %v788_v8, %v794_v18  ;;  %v986_v41 = vmul.f32 0.25, %v981_v33 }
 0x35d   : > { %v2807_v20 = vpop.eup %2806  ;;  %v799_v23 = vmul.f32 1.442695, %v796_v19  ;;  %v991_v46 = vadd.f32 %v2790_v38, %v986_v41 }
 0x35e   : > { %v801_v24 = vsel %vm761_vm3, %v2807_v20, 0.0 }
 0x35f   : > { %2808 = vpow2.f32 %v799_v23  ;;  %802 = vadd.xlane.f32.xlu1 %v801_v24  ;;  %v993_v51 = vsel %vm761_vm3, %v991_v46, -inf }
 0x362   : > { %v983_v47 = vpop.f32.mrf.mxu2 }
 0x363   : > { %v987_v49 = vmul.f32 0.25, %v983_v47 }
 0x365   : > { %v2809_v25 = vpop.eup %2808  ;;  %2452 = vmatmul.msk.bf16.vlgmr.msra.gmra.mxu1 %vm761_vm3, %v1040_v10  ;;  %v813_v16 = vpop.permute.xlu0 %812  ;;  %v992_v52 = vadd.f32 %v2790_v38, %v987_v49 }
 0x366   : > { %825 = vmatpush.bf16.msrb.mxu0 %v813_v16  ;;  %v804_v26 = vsel %vm761_vm3, %v2809_v25, 0.0 }
 0x367   : > { %805 = vadd.xlane.f32.xlu2 %v804_v26  ;;  %v996_v53 = vsel %vm761_vm3, %v992_v52, -inf }
 0x3d2   : > { %v3093_v27 = vpop.f32.mrf.mxu1  ;;  %v803_v28 = vpop.xlane.xlu1 %802 }
 0x3d3   : > { %2810 = vrcp.f32 %v803_v28 }
 0x3d9   : > { %v2811_v31 = vpop.eup %2810 }
 0x3da   : > { %v806_v29 = vpop.xlane.xlu2 %805  ;;  %v3095_v30 = vpop.f32.mrf.mxu1  ;;  %v809_v34 = vmul.f32 %v2811_v31, %v2807_v20 }
 0x3db   : > { %2812 = vrcp.f32 %v806_v29 }
 0x3e1   : > { %v2813_v32 = vpop.eup %2812 }
 0x3e2   : > { %v810_v35 = vmul.f32 %v2813_v32, %v2809_v25  ;;  %v1058_v36 = vpop.f32.mrf.mxu1 }
 0x3e3   : > { %v1063_v37 = vmul.f32 0.25, %v1058_v36 }
 0x3e4   : > { %v811_v39 = vpack.c.bf16 %v810_v35, %v809_v34 }
 0x3e5   : > { %v1065_v40 = vadd.f32 %v2790_v38, %v1063_v37 }
 0x3e6   : > { %2434 = vmatmul.msk.bf16.vlgmr.msrb.gmra.mxu0 %vm761_vm3, %v811_v39 }
 0x3e7   : > { %v1067_v42 = vsel %vm761_vm3, %v1065_v40, -inf }
 0x3e8   : > { %1068 = vmax.xlane.f32.xlu1 %v1067_v42 }
 0x3ea   : > { %v1060_v43 = vpop.f32.mrf.mxu1 }
 0x3eb   : > { %v1064_v45 = vmul.f32 0.25, %v1060_v43  ;;  %v2729_v43 = vld [vmem:[%s2969_s18] sm:$0xff] }
 0x3ed   : > { %v1066_v48 = vadd.f32 %v2790_v38, %v1064_v45 }
 0x3ef   : > { %v1070_v50 = vsel %vm761_vm3, %v1066_v48, -inf }
 0x3f0   : > { %1071 = vmax.xlane.f32.xlu2 %v1070_v50  ;;  %994 = vmax.xlane.f32.xlu1 %v993_v51  ;;  %v2861_v50 = vmov 32.0  }
 0x3f8   : > { %997 = vmax.xlane.f32.xlu2 %v996_v53 }
 0x410   : > { %1090 = vrot.lane.b32.xlu2 %v3065_v44, %s2858_s24 }
 0x45b   : > { %v1069_v55 = vpop.xlane.xlu1 %1068 }
 0x45c   : > { %v1073_v56 = vsub.f32 %v1065_v40, %v1069_v55 }
 0x45e   : > { %v1075_v57 = vmul.f32 1.442695, %v1073_v56 }
 0x460   : > { %2814 = vpow2.f32 %v1075_v57  ;;  %v697_v57 = vld [vmem:[%s3480_s29] sm:$0xff] }
 0x463   : > { %v1072_v58 = vpop.xlane.xlu2 %1071  ;;  %v995_v59 = vpop.xlane.xlu1 %994 }
 0x464   : > { %v1074_v60 = vsub.f32 %v1066_v48, %v1072_v58  ;;  %v999_v61 = vsub.f32 %v991_v46, %v995_v59  ;;  %v827_v62 = vpop.f32.mrf.mxu0  ;;  %v2862_v59 = vmov 0  }
 0x465   : > { %2787 = vset.pattern.permute.xlu1 %v2862_v59  ;;  %2786 = vset.pattern.permute.xlu0 %v2862_v59 }
 0x466   : > { %v2815_v63 = vpop.eup %2814  ;;  %v1077_v0 = vmul.f32 1.442695, %v1074_v60  ;;  %v1001_v1 = vmul.f32 1.442695, %v999_v61  ;;  %2785 = vset.pattern.permute.xlu2 %v2862_v59 }
 0x467   : > { %v1079_v2 = vsel %vm761_vm3, %v2815_v63, 0.0 }
 0x468   : > { %2816 = vpow2.f32 %v1077_v0  ;;  %1080 = vadd.xlane.f32.xlu1 %v1079_v2 }
 0x469   : > { %2818 = vpow2.f32 %v1001_v1 }
 0x46b   : > { %v998_v3 = vpop.xlane.xlu2 %997 }
 0x46c   : > { %v1000_v4 = vsub.f32 %v992_v52, %v998_v3  ;;  %v829_v5 = vpop.f32.mrf.mxu0 }
 0x46d   : > { %v832_v8 = vpack.c.bf16 %v829_v5, %v827_v62 }
 0x46e   : > { %v2817_v9 = vpop.eup %2816  ;;  %v1003_v10 = vmul.f32 1.442695, %v1000_v4 }
 0x46f   : > { %v2819_v11 = vpop.eup %2818  ;;  %2448 = vmatmul.msk.bf16.vlgmr.msrb.gmra.mxu3 %vm761_vm3, %v832_v8  ;;  %v1082_v12 = vsel %vm761_vm3, %v2817_v9, 0.0 }
 0x470   : > { %2820 = vpow2.f32 %v1003_v10  ;;  %1083 = vadd.xlane.f32.xlu0 %v1082_v12  ;;  %v1005_v13 = vsel %vm761_vm3, %v2819_v11, 0.0 }
 0x471   : > { %1006 = vadd.xlane.f32.xlu1 %v1005_v13 }
 0x473   : > { %v1091_v14 = vpop.permute.xlu2 %1090 }
 0x474   : > { %1103 = vmatpush.bf16.msra.mxu3 %v1091_v14 }
 0x476   : > { %v2821_v15 = vpop.eup %2820 }
 0x477   : > { %v1008_v17 = vsel %vm761_vm3, %v2821_v15, 0.0 }
 0x479   : > { %1009 = vadd.xlane.f32.xlu1 %v1008_v17 }
 0x492   : > { %1016 = vrot.lane.b32.xlu1 %v3065_v44, %s2860_s3  ;;  %v3123_v44 = vld [vmem:[%s3479_s28] ss:$0 sm:$0xff] }
 0x4db   : > { %v1081_v18 = vpop.xlane.xlu1 %1080 }
 0x4dc   : > { %2822 = vrcp.f32 %v1081_v18 }
 0x4e2   : > { %v2823_v20 = vpop.eup %2822 }
 0x4e3   : > { %v1084_v19 = vpop.xlane.xlu0 %1083  ;;  %v1087_v24 = vmul.f32 %v2823_v20, %v2815_v63 }
 0x4e4   : > { %2824 = vrcp.f32 %v1084_v19  ;;  %v1007_v16 = vpop.xlane.xlu1 %1006 }
 0x4ea   : > { %v2825_v23 = vpop.eup %2824 }
 0x4eb   : > { %v1088_v25 = vmul.f32 %v2825_v23, %v2817_v9  ;;  %v699_v23 = vld [vmem:[%s3480_s29 + $0x10] sm:$0xff] }
 0x4ec   : > { %v1010_v31 = vpop.xlane.xlu1 %1009 }
 0x4ed   : > { %v1089_v26 = vpack.c.bf16 %v1088_v25, %v1087_v24  ;;  %2826 = vrcp.f32 %v1010_v31 }
 0x4ee   : > { %2828 = vrcp.f32 %v1007_v16 }
 0x4ef   : > { %2453 = vmatmul.msk.bf16.vlgmr.msra.gmra.mxu3 %vm761_vm3, %v1089_v26  ;;  %2830 = vrcp.f32 %v2861_v50  ;;  %v2751_v50 = vld [vmem:[%s2996_s21 + $0x10] sm:$0xff] }
 0x4f2   : > { %v951_v28 = vpop.f32.mrf.mxu3 }
 0x4f3   : > { %v952_v29 = vadd.f32 %v951_v28, %v3093_v27  ;;  %v2827_v35 = vpop.eup %2826 }
 0x4f4   : > { %v2829_v37 = vpop.eup %2828  ;;  %v1014_v39 = vmul.f32 %v2827_v35, %v2821_v15 }
 0x4f5   : > { %956 = vst.msk [vmem:[#allocation4] sm:$0xff] %vm723_vm1, %v952_v29  ;;  %v1013_v40 = vmul.f32 %v2829_v37, %v2819_v11  ;;  %v2831_v51 = vpop.eup %2830 }
 0x4f6   : > { %v1192_v52 = vmul.f32 32.0, %v2831_v51  ;;  %vm1196_vm4 = vweird.f32 %v2831_v51 }
 0x4f7   : > { %v1015_v42 = vpack.c.bf16 %v1014_v39, %v1013_v40 }
 0x4f8   : > { %v1193_v53 = vsub.f32 1.0, %v1192_v52 }
 0x4fa   : > { %v953_v32 = vpop.f32.mrf.mxu3  ;;  %v1194_v55 = vmul.f32 %v2831_v51, %v1193_v53 }
 0x4fb   : > { %v954_v33 = vadd.f32 %v953_v32, %v3095_v30  ;;  %v2730_v30 = vld [vmem:[%s2969_s18 + $0x8] sm:$0xff] }
 0x4fc   : > { %v1161_v34 = vld [vmem:[#allocation4] sm:$0xff]  ;;  %1129 = vmatpush.bf16.msra.mxu2 %v2730_v30  ;;  %v1195_v60 = vadd.f32 %v2831_v51, %v1194_v55  ;;  %v698_v32 = vld [vmem:[%s3480_s29 + $0x8] sm:$0xff]  ;;  %v2752_v30 = vld [vmem:[%s2996_s21 + $0x18] sm:$0xff] }
 0x4fd   : > { %957 = vst.msk [vmem:[#allocation4 + $0x8] sm:$0xff] %vm723_vm1, %v954_v33  ;;  %v1169_v27 = vadd.f32 %v3123_v44, %v1161_v34 }
 0x4fe   : > { %v3139_v62 = vsel %vm1196_vm4, %v2831_v51, %v1195_v60 }
 0x4ff   : > { %v1173_v36 = vadd.f32 %v1169_v27, %v3022_v6 }
 0x500   : > { %1501 = vmatpush.bf16.msrb.mxu2 %v2752_v30  ;;  %v2734_v30 = vld [vmem:[%s3483_s27 + $0x18] sm:$0xff] }
 0x501   : > { %v1179_v38 = vsel %vm723_vm1, %v1173_v36, 0.0 }
 0x502   : > { %1180 = vadd.xlane.f32.xlu1 %v1179_v38 }
 0x504   : > { %v1017_v41 = vpop.permute.xlu1 %1016  ;;  %v1162_v13 = vld [vmem:[#allocation4 + $0x8] sm:$0xff]  ;;  %1502 = vmatpush.bf16.msrb.mxu2 %v2751_v50 }
 0x505   : > { %1029 = vmatpush.bf16.msra.mxu0 %v1017_v41 }
 0x508   : > { %2451 = vmatmul.msk.bf16.vlgmr.msra.gmra.mxu0 %vm761_vm3, %v1015_v42 }
 0x509   : > { %1152 = vmatpush.bf16.msrb.mxu0 %v2729_v43 }
 0x51b   : > { %1290 = vperm.xlu1 %2787, %v697_v57  }
 0x572   : > { %v1105_v45 = vpop.f32.mrf.mxu3 }
 0x575   : > { %v1181_v61 = vpop.xlane.xlu1 %1180 }
 0x576   : > { %v1198_v3 = vmul.f32 %v3139_v62, %v1181_v61 }
 0x578   : > { %v3145_v8 = vsub.f32 %v1173_v36, %v1198_v3  ;;  %v700_v36 = vld [vmem:[%s3480_s29 + $0x18] sm:$0xff] }
 0x57a   : > { %v1107_v46 = vpop.f32.mrf.mxu3  ;;  %v1206_v11 = vmul.f32 %v3145_v8, %v3145_v8 }
 0x57b   : > { %v1110_v47 = vpack.c.bf16 %v1107_v46, %v1105_v45 }
 0x57c   : > { %v1210_v15 = vsel %vm723_vm1, %v1206_v11, 0.0 }
 0x57d   : > { %2460 = vmatmul.msk.bf16.vlgmr.msra.gmra.mxu2 %vm761_vm3, %v1110_v47 }
 0x585   : > { %v1031_v6 = vpop.f32.mrf.mxu0 }
 0x58d   : > { %v1033_v48 = vpop.f32.mrf.mxu0 }
 0x58e   : > { %v1036_v49 = vpack.c.bf16 %v1033_v48, %v1031_v6 }
 0x590   : > { %2465 = vmatmul.msk.bf16.vlgmr.msrb.gmra.mxu0 %vm761_vm3, %v1036_v49 }
 0x600   : > { %v1131_v54 = vpop.f32.mrf.mxu2 }
 0x608   : > { %v1133_v63 = vpop.f32.mrf.mxu2 }
 0x60d   : > { %v1154_v56 = vpop.f32.mrf.mxu0 }
 0x60e   : > { %v1155_v58 = vadd.f32 %v1154_v56, %v1131_v54 }
 0x610   : > { %1159 = vst.msk [vmem:[#allocation4 + $0x10] sm:$0xff] %vm723_vm1, %v1155_v58 }
 0x615   : > { %v1156_v0 = vpop.f32.mrf.mxu0 }
 0x616   : > { %v1157_v1 = vadd.f32 %v1156_v0, %v1133_v63 }
 0x617   : > { %v1163_v2 = vld [vmem:[#allocation4 + $0x10] sm:$0xff] }
 0x618   : > { %1160 = vst.msk [vmem:[#allocation4 + $0x18] sm:$0xff] %vm723_vm1, %v1157_v1  ;;  %v1171_v4 = vadd.f32 %v3123_v44, %v1163_v2 }
 0x61a   : > { %v1175_v5 = vadd.f32 %v1171_v4, %v3046_v21  ;;  %v1170_v21 = vadd.f32 %v3123_v44, %v1162_v13 }
 0x61c   : > { %v1185_v9 = vsel %vm723_vm1, %v1175_v5, 0.0  ;;  %v1174_v18 = vadd.f32 %v1170_v21, %v3024_v7 }
 0x61d   : > { %1186 = vadd.xlane.f32.xlu2 %v1185_v9 }
 0x61e   : > { %v1182_v19 = vsel %vm723_vm1, %v1174_v18, 0.0 }
 0x61f   : > { %v1164_v10 = vld [vmem:[#allocation4 + $0x18] sm:$0xff] }
 0x620   : > { %v1172_v12 = vadd.f32 %v3123_v44, %v1164_v10 }
 0x622   : > { %v1176_v14 = vadd.f32 %v1172_v12, %v3048_v22 }
 0x624   : > { %v1188_v17 = vsel %vm723_vm1, %v1176_v14, 0.0 }
 0x625   : > { %1211 = vadd.xlane.f32.xlu2 %v1210_v15  ;;  %1189 = vadd.xlane.f32.xlu0 %v1188_v17 }
 0x62d   : > { %1183 = vadd.xlane.f32.xlu0 %v1182_v19 }
 0x63d   : > { %1300 = vperm.xlu2 %2785, %v699_v23  }
 0x645   : > { %1295 = vperm.xlu2 %2785, %v698_v32  }
 0x690   : > { %v1187_v22 = vpop.xlane.xlu2 %1186 }
 0x691   : > { %v1200_v16 = vmul.f32 %v3139_v62, %v1187_v22 }
 0x693   : > { %v3166_v28 = vsub.f32 %v1175_v5, %v1200_v16 }
 0x695   : > { %v1208_v44 = vmul.f32 %v3166_v28, %v3166_v28 }
 0x697   : > { %v1216_v34 = vsel %vm723_vm1, %v1208_v44, 0.0 }
 0x698   : > { %v1190_v20 = vpop.xlane.xlu0 %1189  ;;  %v1212_v37 = vpop.xlane.xlu2 %1211 }
 0x699   : > { %v1201_v31 = vmul.f32 %v3139_v62, %v1190_v20  ;;  %v1222_v38 = vmul.f32 %v1212_v37, %v3139_v62 }
 0x69b   : > { %v3175_v33 = vsub.f32 %v1176_v14, %v1201_v31  ;;  %v1226_v39 = vadd.f32 1e-05, %v1222_v38 }
 0x69d   : > { %v1209_v27 = vmul.f32 %v3175_v33, %v3175_v33  ;;  %2832 = vrsqrt.f32 %v1226_v39  ;;  %vm1236_vm12 = vweird.f32 %v1226_v39 }
 0x69f   : > { %v1219_v35 = vsel %vm723_vm1, %v1209_v27, 0.0 }
 0x6a0   : > { %v1184_v24 = vpop.xlane.xlu0 %1183  ;;  %v3191_v21 = vpop.permute.xlu2 %1300 }
 0x6a1   : > { %v1199_v25 = vmul.f32 %v3139_v62, %v1184_v24 }
 0x6a3   : > { %v3162_v26 = vsub.f32 %v1174_v18, %v1199_v25  ;;  %v2833_v46 = vpop.eup %2832  ;;  %v2792_v18 = vld [vmem:[%s3481_s25] ss:$0 sm:$0xff] }
 0x6a4   : > { %v1231_v49 = vmul.f32 %v2833_v46, %v1226_v39  ;;  %vm1237_vm8 = vweird.f32 %v2833_v46  ;;  %v2793_v25 = vld [vmem:[%s3482_s30] ss:$0 sm:$0xff] }
 0x6a5   : > { %v1207_v7 = vmul.f32 %v3162_v26, %v3162_v26  ;;  %vm1238_vm13 = vmor %vm1236_vm12, %vm1237_vm8 }
 0x6a6   : > { %v1232_v54 = vmul.f32 %v2833_v46, %v1231_v49  ;;  %v2754_v49 = vld [vmem:[%s2996_s21 + $0x28] sm:$0xff] }
 0x6a7   : > { %v1213_v29 = vsel %vm723_vm1, %v1207_v7, 0.0 }
 0x6a8   : > { %1214 = vadd.xlane.f32.xlu0 %v1213_v29  ;;  %v1233_v59 = vmul.f32 0.5, %v1232_v54 }
 0x6aa   : > { %v1234_v0 = vsub.f32 1.5, %v1233_v59 }
 0x6ac   : > { %v1235_v9 = vmul.f32 %v2833_v46, %v1234_v0 }
 0x6ae   : > { %v1239_v15 = vsel %vm1238_vm13, %v2833_v46, %v1235_v9  ;;  %v2739_v46 = vld [vmem:[%s3483_s27 + $0x40] sm:$0xff]  ;;  %v2744_v9 = vld [vmem:[%s3483_s27 + $0x68] sm:$0xff] }
 0x6af   : > { %v1270_v23 = vmul.f32 %v1239_v15, %v3145_v8  ;;  %v2748_v15 = vld [vmem:[%s3483_s27 + $0x88] sm:$0xff] }
 0x6b0   : > { %1217 = vadd.xlane.f32.xlu0 %v1216_v34  ;;  %v3208_v34 = vpop.permute.xlu2 %1295 }
 0x6b8   : > { %1220 = vadd.xlane.f32.xlu0 %v1219_v35 }
 0x6cc   : > { %1305 = vperm.xlu0 %2786, %v700_v36   ;;  %v3216_v36 = vpop.permute.xlu1 %1290 }
 0x71b   : > { %v1215_v40 = vpop.xlane.xlu0 %1214 }
 0x71c   : > { %v1223_v41 = vmul.f32 %v1215_v40, %v3139_v62  ;;  %v2731_v40 = vld [vmem:[%s3483_s27] sm:$0xff] }
 0x71e   : > { %v1227_v42 = vadd.f32 1e-05, %v1223_v41  ;;  %v2733_v41 = vld [vmem:[%s3483_s27 + $0x10] sm:$0xff] }
 0x720   : > { %2834 = vrsqrt.f32 %v1227_v42  ;;  %vm1246_vm10 = vweird.f32 %v1227_v42 }
 0x723   : > { %v1218_v43 = vpop.xlane.xlu0 %1217 }
 0x724   : > { %v1224_v45 = vmul.f32 %v1218_v43, %v3139_v62  ;;  %v2735_v43 = vld [vmem:[%s3483_s27 + $0x20] sm:$0xff] }
 0x726   : > { %v2835_v47 = vpop.eup %2834  ;;  %v1228_v6 = vadd.f32 1e-05, %v1224_v45  ;;  %v2736_v45 = vld [vmem:[%s3483_s27 + $0x28] sm:$0xff] }
 0x727   : > { %v1241_v48 = vmul.f32 %v2835_v47, %v1227_v42  ;;  %vm1247_vm6 = vweird.f32 %v2835_v47  ;;  %v2732_v42 = vld [vmem:[%s3483_s27 + $0x8] sm:$0xff] }
 0x728   : > { %2836 = vrsqrt.f32 %v1228_v6  ;;  %vm1256_vm7 = vweird.f32 %v1228_v6  ;;  %vm1248_vm11 = vmor %vm1246_vm10, %vm1247_vm6 }
 0x729   : > { %v1242_v51 = vmul.f32 %v2835_v47, %v1241_v48 }
 0x72b   : > { %v1221_v52 = vpop.xlane.xlu0 %1220  ;;  %v1243_v57 = vmul.f32 0.5, %v1242_v51  ;;  %v2753_v51 = vld [vmem:[%s2996_s21 + $0x20] sm:$0xff] }
 0x72c   : > { %v1225_v53 = vmul.f32 %v1221_v52, %v3139_v62 }
 0x72d   : > { %v1244_v61 = vsub.f32 1.5, %v1243_v57  ;;  %v2740_v57 = vld [vmem:[%s3483_s27 + $0x48] sm:$0xff] }
 0x72e   : > { %v2837_v55 = vpop.eup %2836  ;;  %v1229_v56 = vadd.f32 1e-05, %v1225_v53 }
 0x72f   : > { %v1251_v58 = vmul.f32 %v2837_v55, %v1228_v6  ;;  %vm1257_vm5 = vweird.f32 %v2837_v55  ;;  %v1245_v3 = vmul.f32 %v2835_v47, %v1244_v61  ;;  %v2749_v6 = vld [vmem:[%s2996_s21] sm:$0xff] }
 0x730   : > { %2838 = vrsqrt.f32 %v1229_v56  ;;  %vm1258_vm9 = vmor %vm1256_vm7, %vm1257_vm5  ;;  %vm1266_vm15 = vweird.f32 %v1229_v56 }
 0x731   : > { %v1252_v60 = vmul.f32 %v2837_v55, %v1251_v58  ;;  %v1249_v13 = vsel %vm1248_vm11, %v2835_v47, %v1245_v3  ;;  %v2750_v47 = vld [vmem:[%s2996_s21 + $0x8] sm:$0xff] }
 0x732   : > { %v1271_v19 = vmul.f32 %v1249_v13, %v3162_v26  ;;  %1538 = vmatpush.bf16.msra.mxu0 %v2750_v47  ;;  %v2747_v13 = vld [vmem:[%s3483_s27 + $0x80] sm:$0xff] }
 0x733   : > { %v1253_v63 = vmul.f32 0.5, %v1252_v60 }
 0x734   : > { %v1278_v16 = vmul.f32 %v2792_v18, %v1271_v19  ;;  %v2746_v19 = vld [vmem:[%s3483_s27 + $0x78] sm:$0xff] }
 0x735   : > { %v1254_v1 = vsub.f32 1.5, %v1253_v63 }
 0x736   : > { %v2839_v2 = vpop.eup %2838  ;;  %v1285_v26 = vadd.f32 %v2793_v25, %v1278_v16  ;;  %1539 = vmatpush.bf16.msra.mxu0 %v2749_v6  ;;  %v2756_v16 = vld [vmem:[%s2996_s21 + $0x38] sm:$0xff] }
 0x737   : > { %v1255_v4 = vmul.f32 %v2837_v55, %v1254_v1  ;;  %v1261_v5 = vmul.f32 %v2839_v2, %v1229_v56  ;;  %vm1267_vm14 = vweird.f32 %v2839_v2  ;;  %v2743_v1 = vld [vmem:[%s3483_s27 + $0x60] sm:$0xff] }
 0x738   : > { %vm1268_vm0 = vmor %vm1266_vm15, %vm1267_vm14 }
 0x739   : > { %v1262_v10 = vmul.f32 %v2839_v2, %v1261_v5  ;;  %v1259_v11 = vsel %vm1258_vm9, %v2837_v55, %v1255_v4  ;;  %v2737_v4 = vld [vmem:[%s3483_s27 + $0x30] sm:$0xff] }
 0x73a   : > { %v1272_v14 = vmul.f32 %v1259_v11, %v3166_v28  ;;  %v1277_v28 = vmul.f32 %v2792_v18, %v1270_v23  ;;  %v2758_v23 = vld [vmem:[%s2996_s21 + $0x48] sm:$0xff]  ;;  %1690 = vmatpush.bf16.msrb.mxu0 %v2756_v16 }
 0x73b   : > { %v1263_v12 = vmul.f32 0.5, %v1262_v10 }
 0x73c   : > { %v1279_v22 = vmul.f32 %v2792_v18, %v1272_v14  ;;  %v1284_v8 = vadd.f32 %v2793_v25, %v1277_v28  ;;  %v2741_v14 = vld [vmem:[%s3483_s27 + $0x50] sm:$0xff] }
 0x73d   : > { %v1264_v17 = vsub.f32 1.5, %v1263_v12  ;;  %v2738_v12 = vld [vmem:[%s3483_s27 + $0x38] sm:$0xff] }
 0x73e   : > { %v1286_v29 = vadd.f32 %v2793_v25, %v1279_v22  ;;  %v3206_v44 = vpop.permute.xlu0 %1305  ;;  %v3226_v38 = vmul.f32 %v3216_v36, %v1284_v8  ;;  %v2757_v22 = vld [vmem:[%s2996_s21 + $0x40] sm:$0xff] }
 0x73f   : > { %v1265_v20 = vmul.f32 %v2839_v2, %v1264_v17  ;;  %v2742_v17 = vld [vmem:[%s3483_s27 + $0x58] sm:$0xff] }
 0x740   : > { %v3211_v27 = vmul.f32 %v3191_v21, %v1286_v29 }
 0x741   : > { %v1269_v24 = vsel %vm1268_vm0, %v2839_v2, %v1265_v20 }
 0x742   : > { %v1273_v7 = vmul.f32 %v1269_v24, %v3175_v33  ;;  %v3219_v33 = vmul.f32 %v3208_v34, %v1285_v26 }
 0x744   : > { %v1280_v31 = vmul.f32 %v2792_v18, %v1273_v7  ;;  %v3233_v39 = vpack.c.bf16 %v3219_v33, %v3226_v38  ;;  %v2745_v18 = vld [vmem:[%s3483_s27 + $0x70] sm:$0xff] }
 0x746   : > { %v1287_v32 = vadd.f32 %v2793_v25, %v1280_v31 }
 0x748   : > { %v3214_v35 = vmul.f32 %v3206_v44, %v1287_v32 }
 0x74a   : > { %v3223_v37 = vpack.c.bf16 %v3214_v35, %v3211_v27 }
 0x74c   : > { %1425 = vmatpush.bf16.msrb.mxu1 %v3223_v37  ;;  %1462 = vmatpush.bf16.msrb.mxu3 %v3223_v37 }
 0x74d   : > { %1651 = vmatpush.bf16.msra.mxu2 %v3223_v37 }
 0x750   : > { %1426 = vmatpush.bf16.msrb.mxu1 %v3233_v39  ;;  %1463 = vmatpush.bf16.msrb.mxu3 %v3233_v39 }
 0x751   : > { %1652 = vmatpush.bf16.msra.mxu2 %v3233_v39 }
 0x753   : > { %2538 = vmatmul.msk.bf16.vlgmr.msrb.gmra.mxu1 %vm723_vm1, %v2731_v40  ;;  %2548 = vmatmul.msk.bf16.vlgmr.msrb.gmra.mxu3 %vm723_vm1, %v2733_v41 }
 0x754   : > { %1573 = vmatpush.bf16.msra.mxu1 %v3223_v37  ;;  %1612 = vmatpush.bf16.msra.mxu3 %v2754_v49  ;;  %v2760_v49 = vld [vmem:[%s2996_s21 + $0x58] sm:$0xff] }
 0x758   : > { %1574 = vmatpush.bf16.msra.mxu1 %v3233_v39  ;;  %1613 = vmatpush.bf16.msra.mxu3 %v2753_v51 }
 0x75c   : > { %1729 = vmatpush.bf16.msrb.mxu1 %v3223_v37  ;;  %1768 = vmatpush.bf16.msrb.mxu3 %v2758_v23 }
 0x760   : > { %1730 = vmatpush.bf16.msrb.mxu1 %v3233_v39  ;;  %1769 = vmatpush.bf16.msrb.mxu3 %v2757_v22 }
 0x763   : > { %2539 = vmatmul.msk.bf16.gmra.mxu1 %vm723_vm1, %v2732_v42  ;;  %2549 = vmatmul.msk.bf16.gmra.mxu3 %vm723_vm1, %v2734_v30  ;;  %v2762_v30 = vld [vmem:[%s2996_s21 + $0x68] sm:$0xff] }
 0x773   : > { %2578 = vmatmul.msk.bf16.vlgmr.msra.gmra.mxu1 %vm723_vm1, %v2735_v43 }
 0x774   : > { %1885 = vmatpush.bf16.msra.mxu1 %v3223_v37 }
 0x778   : > { %1886 = vmatpush.bf16.msra.mxu1 %v3233_v39 }
 0x783   : > { %2579 = vmatmul.msk.bf16.gmra.mxu1 %vm723_vm1, %v2736_v45 }
 0x793   : > { %2618 = vmatmul.msk.bf16.vlgmr.msrb.gmra.mxu1 %vm723_vm1, %v2739_v46  ;;  %v2761_v46 = vld [vmem:[%s2996_s21 + $0x60] sm:$0xff] }
 0x794   : > { %2041 = vmatpush.bf16.msrb.mxu1 %v3223_v37 }
 0x798   : > { %2042 = vmatpush.bf16.msrb.mxu1 %v3233_v39 }
 0x7a3   : > { %2619 = vmatmul.msk.bf16.gmra.mxu1 %vm723_vm1, %v2740_v57 }
 0x7b3   : > { %2658 = vmatmul.msk.bf16.vlgmr.msra.gmra.mxu1 %vm723_vm1, %v2743_v1  ;;  %v2766_v1 = vld [vmem:[%s2996_s21 + $0x88] sm:$0xff] }
 0x7c3   : > { %2659 = vmatmul.msk.bf16.gmra.mxu1 %vm723_vm1, %v2744_v9 }
 0x7d0   : > { %v1428_v48 = vpop.f32.mrf.mxu1 }
 0x7d3   : > { %2698 = vmatmul.msk.bf16.vlgmr.msrb.gmra.mxu1 %vm723_vm1, %v2747_v13 }
 0x7d6   : > { %v1465_v50 = vpop.f32.mrf.mxu3 }
 0x7d8   : > { %v1430_v52 = vpop.f32.mrf.mxu1 }
 0x7d9   : > { %v1438_v53 = vpack.c.bf16 %v1430_v52, %v1428_v48 }
 0x7db   : > { %2568 = vmatmul.msk.bf16.vlgmr.msra.gmra.mxu0 %vm723_vm1, %v1438_v53 }
 0x7de   : > { %v1467_v54 = vpop.f32.mrf.mxu3 }
 0x7df   : > { %v1475_v55 = vpack.c.bf16 %v1467_v54, %v1465_v50 }
 0x7e0   : > { %v1433_v56 = vpop.f32.mrf.mxu1 }
 0x7e1   : > { %2558 = vmatmul.msk.bf16.vlgmr.msrb.gmra.mxu2 %vm723_vm1, %v1475_v55 }
 0x7e2   : > { %1807 = vmatpush.bf16.msrb.mxu2 %v3223_v37 }
 0x7e3   : > { %2699 = vmatmul.msk.bf16.gmra.mxu1 %vm723_vm1, %v2748_v15 }
 0x7e6   : > { %1808 = vmatpush.bf16.msrb.mxu2 %v3233_v39  ;;  %v1470_v58 = vpop.f32.mrf.mxu3 }
 0x7e8   : > { %v1435_v59 = vpop.f32.mrf.mxu1 }
 0x7e9   : > { %v1439_v60 = vpack.c.bf16 %v1435_v59, %v1433_v56 }
 0x7eb   : > { %2569 = vmatmul.msk.bf16.gmra.mxu0 %vm723_vm1, %v1439_v60 }
 0x7ee   : > { %v1472_v61 = vpop.f32.mrf.mxu3 }
 0x7ef   : > { %v1476_v63 = vpack.c.bf16 %v1472_v61, %v1470_v58  ;;  %v2759_v58 = vld [vmem:[%s2996_s21 + $0x50] sm:$0xff] }
 0x7f0   : > { %v1576_v0 = vpop.f32.mrf.mxu1 }
 0x7f1   : > { %2559 = vmatmul.msk.bf16.gmra.mxu2 %vm723_vm1, %v1476_v63 }
 0x7f8   : > { %v1578_v2 = vpop.f32.mrf.mxu1 }
 0x7f9   : > { %v1586_v3 = vpack.c.bf16 %v1578_v2, %v1576_v0 }
 0x7fb   : > { %2588 = vmatmul.msk.bf16.vlgmr.msra.gmra.mxu3 %vm723_vm1, %v1586_v3  ;;  %v2765_v3 = vld [vmem:[%s2996_s21 + $0x80] sm:$0xff] }
 0x7fc   : > { %1924 = vmatpush.bf16.msra.mxu3 %v2762_v30 }
 0x800   : > { %v1581_v5 = vpop.f32.mrf.mxu1  ;;  %1925 = vmatpush.bf16.msra.mxu3 %v2761_v46 }
 0x801   : > { %2598 = vmatmul.msk.bf16.vlgmr.msra.gmra.mxu2 %vm723_vm1, %v2737_v4 }
 0x802   : > { %1963 = vmatpush.bf16.msra.mxu2 %v3223_v37  ;;  %v2755_v37 = vld [vmem:[%s2996_s21 + $0x30] sm:$0xff] }
 0x803   : > { %1691 = vmatpush.bf16.msrb.mxu0 %v2755_v37 }
 0x806   : > { %1964 = vmatpush.bf16.msra.mxu2 %v3233_v39 }
 0x807   : > { %1846 = vmatpush.bf16.msra.mxu0 %v2760_v49 }
 0x808   : > { %v1583_v10 = vpop.f32.mrf.mxu1 }
 0x809   : > { %v1587_v11 = vpack.c.bf16 %v1583_v10, %v1581_v5 }
 0x80b   : > { %2589 = vmatmul.msk.bf16.gmra.mxu3 %vm723_vm1, %v1587_v11  ;;  %1847 = vmatpush.bf16.msra.mxu0 %v2759_v58  ;;  %v2764_v11 = vld [vmem:[%s2996_s21 + $0x78] sm:$0xff] }
 0x810   : > { %v1732_v20 = vpop.f32.mrf.mxu1 }
 0x811   : > { %2599 = vmatmul.msk.bf16.gmra.mxu2 %vm723_vm1, %v2738_v12 }
 0x818   : > { %v1734_v24 = vpop.f32.mrf.mxu1 }
 0x819   : > { %v1742_v25 = vpack.c.bf16 %v1734_v24, %v1732_v20 }
 0x81b   : > { %2628 = vmatmul.msk.bf16.vlgmr.msrb.gmra.mxu3 %vm723_vm1, %v1742_v25 }
 0x81c   : > { %2080 = vmatpush.bf16.msrb.mxu3 %v2766_v1 }
 0x820   : > { %v1737_v28 = vpop.f32.mrf.mxu1  ;;  %2081 = vmatpush.bf16.msrb.mxu3 %v2765_v3 }
 0x821   : > { %2638 = vmatmul.msk.bf16.vlgmr.msrb.gmra.mxu2 %vm723_vm1, %v2741_v14 }
 0x828   : > { %v1739_v32 = vpop.f32.mrf.mxu1 }
 0x829   : > { %v1743_v8 = vpack.c.bf16 %v1739_v32, %v1737_v28 }
 0x82b   : > { %2629 = vmatmul.msk.bf16.gmra.mxu3 %vm723_vm1, %v1743_v8 }
 0x830   : > { %v1888_v41 = vpop.f32.mrf.mxu1 }
 0x831   : > { %2639 = vmatmul.msk.bf16.gmra.mxu2 %vm723_vm1, %v2742_v17  ;;  %v2763_v17 = vld [vmem:[%s2996_s21 + $0x70] sm:$0xff] }
 0x838   : > { %v1890_v47 = vpop.f32.mrf.mxu1 }
 0x839   : > { %v1898_v6 = vpack.c.bf16 %v1890_v47, %v1888_v41 }
 0x83b   : > { %2668 = vmatmul.msk.bf16.vlgmr.msra.gmra.mxu3 %vm723_vm1, %v1898_v6 }
 0x840   : > { %v1893_v52 = vpop.f32.mrf.mxu1 }
 0x841   : > { %2678 = vmatmul.msk.bf16.vlgmr.msra.gmra.mxu2 %vm723_vm1, %v2745_v18 }
 0x848   : > { %v1895_v56 = vpop.f32.mrf.mxu1 }
 0x849   : > { %v1899_v57 = vpack.c.bf16 %v1895_v56, %v1893_v52  ;;  %v2768_v52 = vld [vmem:[%s2991_s6 + $0x8] sm:$0xff]  ;;  %v2767_v56 = vld [vmem:[%s2991_s6] sm:$0xff] }
 0x84a   : > { %2142 = vmatpush.bf16.msrb.mxu2 %v2768_v52 }
 0x84b   : > { %2669 = vmatmul.msk.bf16.gmra.mxu3 %vm723_vm1, %v1899_v57 }
 0x84e   : > { %2143 = vmatpush.bf16.msrb.mxu2 %v2767_v56 }
 0x850   : > { %v2044_v0 = vpop.f32.mrf.mxu1 }
 0x851   : > { %2679 = vmatmul.msk.bf16.gmra.mxu2 %vm723_vm1, %v2746_v19 }
 0x858   : > { %v1541_v7 = vpop.f32.mrf.mxu0  ;;  %v2046_v4 = vpop.f32.mrf.mxu1 }
 0x859   : > { %v2054_v5 = vpack.c.bf16 %v2046_v4, %v2044_v0 }
 0x85b   : > { %2708 = vmatmul.msk.bf16.vlgmr.msrb.gmra.mxu3 %vm723_vm1, %v2054_v5 }
 0x860   : > { %v1543_v26 = vpop.f32.mrf.mxu0  ;;  %v2049_v12 = vpop.f32.mrf.mxu1 }
 0x864   : > { %v1504_v29 = vpop.f32.mrf.mxu2 }
 0x865   : > { %v1542_v31 = vadd.f32 %v1541_v7, %v1504_v29 }
 0x868   : > { %v1546_v42 = vpop.f32.mrf.mxu0  ;;  %v2051_v14 = vpop.f32.mrf.mxu1 }
 0x869   : > { %v2055_v15 = vpack.c.bf16 %v2051_v14, %v2049_v12 }
 0x86b   : > { %2709 = vmatmul.msk.bf16.gmra.mxu3 %vm723_vm1, %v2055_v15 }
 0x86c   : > { %v1506_v39 = vpop.f32.mrf.mxu2 }
 0x86d   : > { %v1544_v40 = vadd.f32 %v1543_v26, %v1506_v39 }
 0x870   : > { %v1548_v8 = vpop.f32.mrf.mxu0 }
 0x874   : > { %v1509_v43 = vpop.f32.mrf.mxu2 }
 0x875   : > { %v1547_v45 = vadd.f32 %v1546_v42, %v1509_v43 }
 0x87c   : > { %v3340_v48 = vpop.f32.mrf.mxu2 }
 0x87d   : > { %v1549_v12 = vadd.f32 %v1548_v8, %v3340_v48 }
 0x87e   : > { %v1615_v50 = vpop.f32.mrf.mxu3 }
 0x87f   : > { %v1625_v51 = vadd.f32 %v1615_v50, %v1542_v31 }
 0x884   : > { %v1654_v53 = vpop.f32.mrf.mxu2 }
 0x886   : > { %v1617_v54 = vpop.f32.mrf.mxu3 }
 0x887   : > { %v3344_v55 = vadd.f32 %v1617_v54, %v1544_v40 }
 0x88c   : > { %v1656_v59 = vpop.f32.mrf.mxu2 }
 0x88d   : > { %v1664_v60 = vpack.c.bf16 %v1656_v59, %v1654_v53 }
 0x88e   : > { %v1620_v61 = vpop.f32.mrf.mxu3 }
 0x88f   : > { %v1627_v63 = vadd.f32 %v1620_v61, %v1547_v45  ;;  %2608 = vmatmul.msk.bf16.vlgmr.msrb.gmra.mxu0 %vm723_vm1, %v1664_v60 }
 0x890   : > { %2002 = vmatpush.bf16.msrb.mxu0 %v2764_v11 }
 0x894   : > { %v1659_v2 = vpop.f32.mrf.mxu2  ;;  %2003 = vmatpush.bf16.msrb.mxu0 %v2763_v17 }
 0x896   : > { %v1622_v31 = vpop.f32.mrf.mxu3 }
 0x897   : > { %v1628_v14 = vadd.f32 %v1622_v31, %v1549_v12 }
 0x89c   : > { %v1661_v9 = vpop.f32.mrf.mxu2 }
 0x89d   : > { %v1665_v10 = vpack.c.bf16 %v1661_v9, %v1659_v2  ;;  %v2794_v9 = vld [vmem:[%s3484_s26] ss:$0 sm:$0xff] }
 0x89e   : > { %v1771_v26 = vpop.f32.mrf.mxu3 }
 0x89f   : > { %2609 = vmatmul.msk.bf16.gmra.mxu0 %vm723_vm1, %v1665_v10 }
 0x8a4   : > { %v1810_v13 = vpop.f32.mrf.mxu2 }
 0x8a6   : > { %v1773_v32 = vpop.f32.mrf.mxu3 }
 0x8ac   : > { %v1812_v18 = vpop.f32.mrf.mxu2 }
 0x8ad   : > { %v1820_v19 = vpack.c.bf16 %v1812_v18, %v1810_v13 }
 0x8ae   : > { %v1776_v39 = vpop.f32.mrf.mxu3 }
 0x8af   : > { %2648 = vmatmul.msk.bf16.vlgmr.msra.gmra.mxu0 %vm723_vm1, %v1820_v19 }
 0x8b4   : > { %v1815_v20 = vpop.f32.mrf.mxu2 }
 0x8b6   : > { %v1778_v30 = vpop.f32.mrf.mxu3 }
 0x8bc   : > { %v1817_v23 = vpop.f32.mrf.mxu2 }
 0x8bd   : > { %v1821_v22 = vpack.c.bf16 %v1817_v23, %v1815_v20 }
 0x8be   : > { %v1927_v47 = vpop.f32.mrf.mxu3 }
 0x8bf   : > { %2649 = vmatmul.msk.bf16.gmra.mxu0 %vm723_vm1, %v1821_v22 }
 0x8c4   : > { %v1966_v24 = vpop.f32.mrf.mxu2 }
 0x8c6   : > { %v1929_v49 = vpop.f32.mrf.mxu3 }
 0x8cc   : > { %v1968_v25 = vpop.f32.mrf.mxu2 }
 0x8cd   : > { %v1976_v16 = vpack.c.bf16 %v1968_v25, %v1966_v24 }
 0x8ce   : > { %v1932_v54 = vpop.f32.mrf.mxu3 }
 0x8cf   : > { %2688 = vmatmul.msk.bf16.vlgmr.msrb.gmra.mxu0 %vm723_vm1, %v1976_v16 }
 0x8d4   : > { %v1971_v7 = vpop.f32.mrf.mxu2 }
 0x8d6   : > { %v1934_v58 = vpop.f32.mrf.mxu3 }
 0x8dc   : > { %v1973_v28 = vpop.f32.mrf.mxu2 }
 0x8dd   : > { %v1977_v29 = vpack.c.bf16 %v1973_v28, %v1971_v7 }
 0x8de   : > { %v2083_v59 = vpop.f32.mrf.mxu3 }
 0x8df   : > { %2689 = vmatmul.msk.bf16.gmra.mxu0 %vm723_vm1, %v1977_v29 }
 0x8e6   : > { %v2085_v4 = vpop.f32.mrf.mxu3 }
 0x8ee   : > { %v2088_v22 = vpop.f32.mrf.mxu3 }
 0x8f6   : > { %v2090_v8 = vpop.f32.mrf.mxu3 }
 0x90c   : > { %v1693_v37 = vpop.f32.mrf.mxu0 }
 0x90d   : > { %v1703_v40 = vadd.f32 %v1693_v37, %v1625_v51 }
 0x90f   : > { %v1781_v41 = vadd.f32 %v1771_v26, %v1703_v40 }
 0x914   : > { %v1695_v42 = vpop.f32.mrf.mxu0 }
 0x915   : > { %v1704_v60 = vadd.f32 %v1695_v42, %v3344_v55 }
 0x917   : > { %v1782_v0 = vadd.f32 %v1773_v32, %v1704_v60 }
 0x91c   : > { %v1698_v43 = vpop.f32.mrf.mxu0 }
 0x91d   : > { %v1705_v45 = vadd.f32 %v1698_v43, %v1627_v63 }
 0x91f   : > { %v1783_v46 = vadd.f32 %v1776_v39, %v1705_v45 }
 0x924   : > { %v1700_v6 = vpop.f32.mrf.mxu0 }
 0x925   : > { %v1706_v17 = vadd.f32 %v1700_v6, %v1628_v14 }
 0x927   : > { %v1784_v25 = vadd.f32 %v1778_v30, %v1706_v17  ;;  %v2795_v30 = vld [vmem:[%s672_s2] ss:$0 sm:$0xff] }
 0x92c   : > { %v1849_v50 = vpop.f32.mrf.mxu0 }
 0x92d   : > { %v1859_v61 = vadd.f32 %v1849_v50, %v1781_v41 }
 0x92f   : > { %v1937_v1 = vadd.f32 %v1927_v47, %v1859_v61 }
 0x934   : > { %v1851_v53 = vpop.f32.mrf.mxu0 }
 0x935   : > { %v1860_v2 = vadd.f32 %v1851_v53, %v1782_v0 }
 0x937   : > { %v1938_v10 = vadd.f32 %v1929_v49, %v1860_v2 }
 0x93c   : > { %v1854_v57 = vpop.f32.mrf.mxu0 }
 0x93d   : > { %v1861_v18 = vadd.f32 %v1854_v57, %v1783_v46 }
 0x93f   : > { %v1939_v7 = vadd.f32 %v1932_v54, %v1861_v18 }
 0x944   : > { %v1856_v51 = vpop.f32.mrf.mxu0 }
 0x945   : > { %v1862_v28 = vadd.f32 %v1856_v51, %v1784_v25 }
 0x947   : > { %v1940_v26 = vadd.f32 %v1934_v58, %v1862_v28 }
 0x94c   : > { %v2005_v63 = vpop.f32.mrf.mxu0 }
 0x94d   : > { %v2015_v3 = vadd.f32 %v2005_v63, %v1937_v1 }
 0x94f   : > { %v2093_v5 = vadd.f32 %v2083_v59, %v2015_v3 }
 0x951   : > { %v2100_v55 = vadd.f32 %v2794_v9, %v2093_v5 }
 0x953   : > { %v2104_v20 = vmax.f32 %v2100_v55, 0.0 }
 0x954   : > { %v2007_v11 = vpop.f32.mrf.mxu0 }
 0x955   : > { %v2016_v13 = vadd.f32 %v2007_v11, %v1938_v10 }
 0x957   : > { %v2094_v15 = vadd.f32 %v2085_v4, %v2016_v13 }
 0x959   : > { %v2101_v19 = vadd.f32 %v2794_v9, %v2094_v15 }
 0x95b   : > { %v2105_v23 = vmax.f32 %v2101_v19, 0.0 }
 0x95c   : > { %v2010_v24 = vpop.f32.mrf.mxu0 }
 0x95d   : > { %v2113_v16 = vpack.c.bf16 %v2105_v23, %v2104_v20  ;;  %v2017_v29 = vadd.f32 %v2010_v24, %v1939_v7 }
 0x95f   : > { %2718 = vmatmul.msk.bf16.vlgmr.msrb.gmra.mxu2 %vm723_vm1, %v2113_v16  ;;  %v2095_v48 = vadd.f32 %v2088_v22, %v2017_v29 }
 0x961   : > { %v2102_v37 = vadd.f32 %v2794_v9, %v2095_v48 }
 0x963   : > { %v2106_v41 = vmax.f32 %v2102_v37, 0.0 }
 0x964   : > { %v2012_v31 = vpop.f32.mrf.mxu0 }
 0x965   : > { %v2018_v32 = vadd.f32 %v2012_v31, %v1940_v26 }
 0x967   : > { %v2096_v39 = vadd.f32 %v2090_v8, %v2018_v32 }
 0x969   : > { %v2103_v40 = vadd.f32 %v2794_v9, %v2096_v39  ;;  %v2796_v39 = vld [vmem:[%s675_s1] ss:$0 sm:$0xff] }
 0x96b   : > { %v2107_v42 = vmax.f32 %v2103_v40, 0.0 }
 0x96d   : > { %v2114_v43 = vpack.c.bf16 %v2107_v42, %v2106_v41  ;;  %v2797_v42 = vld [vmem:[%s678_s4] ss:$0 sm:$0xff] }
 0x96f   : > { %2719 = vmatmul.msk.bf16.gmra.mxu2 %vm723_vm1, %v2114_v43 }
 0x9e2   : > { %v2145_v45 = vpop.f32.mrf.mxu2 }
 0x9e3   : > { %v2146_v46 = vadd.f32 %v2795_v30, %v2145_v45 }
 0x9e5   : > { %v2155_v47 = vadd.f32 %v2146_v46, %v3226_v38 }
 0x9e7   : > { %v2161_v6 = vsel %vm723_vm1, %v2155_v47, 0.0 }
 0x9e8   : > { %2162 = vadd.xlane.f32.xlu2 %v2161_v6 }
 0x9ea   : > { %v2147_v49 = vpop.f32.mrf.mxu2 }
 0x9eb   : > { %v2148_v50 = vadd.f32 %v2795_v30, %v2147_v49 }
 0x9ed   : > { %v2156_v52 = vadd.f32 %v2148_v50, %v3219_v33 }
 0x9ef   : > { %v2164_v53 = vsel %vm723_vm1, %v2156_v52, 0.0 }
 0x9f0   : > { %2165 = vadd.xlane.f32.xlu1 %v2164_v53 }
 0x9f2   : > { %v2150_v54 = vpop.f32.mrf.mxu2 }
 0x9f3   : > { %v2151_v56 = vadd.f32 %v2795_v30, %v2150_v54 }
 0x9f5   : > { %v2157_v57 = vadd.f32 %v2151_v56, %v3211_v27 }
 0x9f7   : > { %v2167_v58 = vsel %vm723_vm1, %v2157_v57, 0.0 }
 0x9f8   : > { %2168 = vadd.xlane.f32.xlu0 %v2167_v58 }
 0x9fa   : > { %v2152_v51 = vpop.f32.mrf.mxu2 }
 0x9fb   : > { %v2153_v59 = vadd.f32 %v2795_v30, %v2152_v51 }
 0x9fd   : > { %v2158_v38 = vadd.f32 %v2153_v59, %v3214_v35 }
 0x9ff   : > { %v2170_v60 = vsel %vm723_vm1, %v2158_v38, 0.0 }
 0xa00   : > { %2171 = vadd.xlane.f32.xlu2 %v2170_v60 }
 0xa5b   : > { %v2163_v61 = vpop.xlane.xlu2 %2162 }
 0xa5c   : > { %v2173_v33 = vmul.f32 %v2163_v61, %v3139_v62 }
 0xa5e   : > { %v2177_v63 = vsub.f32 %v2155_v47, %v2173_v33 }
 0xa60   : > { %v2181_v0 = vmul.f32 %v2177_v63, %v2177_v63 }
 0xa62   : > { %v2185_v1 = vsel %vm723_vm1, %v2181_v0, 0.0 }
 0xa63   : > { %v2166_v2 = vpop.xlane.xlu1 %2165  ;;  %2186 = vadd.xlane.f32.xlu1 %v2185_v1 }
 0xa64   : > { %v2174_v27 = vmul.f32 %v2166_v2, %v3139_v62 }
 0xa66   : > { %v2178_v3 = vsub.f32 %v2156_v52, %v2174_v27 }
 0xa68   : > { %v2182_v4 = vmul.f32 %v2178_v3, %v2178_v3 }
 0xa6a   : > { %v2188_v5 = vsel %vm723_vm1, %v2182_v4, 0.0 }
 0xa6b   : > { %2189 = vadd.xlane.f32.xlu2 %v2188_v5  ;;  %v2169_v35 = vpop.xlane.xlu0 %2168 }
 0xa6c   : > { %v2175_v9 = vmul.f32 %v2169_v35, %v3139_v62 }
 0xa6e   : > { %v3389_v10 = vsub.f32 %v2157_v57, %v2175_v9 }
 0xa70   : > { %v2183_v11 = vmul.f32 %v3389_v10, %v3389_v10 }
 0xa72   : > { %v2191_v12 = vsel %vm723_vm1, %v2183_v11, 0.0 }
 0xa73   : > { %v2172_v13 = vpop.xlane.xlu2 %2171  ;;  %2192 = vadd.xlane.f32.xlu1 %v2191_v12 }
 0xa74   : > { %v2176_v14 = vmul.f32 %v2172_v13, %v3139_v62 }
 0xa76   : > { %v3395_v55 = vsub.f32 %v2158_v38, %v2176_v14 }
 0xa78   : > { %v2184_v15 = vmul.f32 %v3395_v55, %v3395_v55 }
 0xa7a   : > { %v2194_v17 = vsel %vm723_vm1, %v2184_v15, 0.0 }
 0xa7b   : > { %2195 = vadd.xlane.f32.xlu0 %v2194_v17 }
 0xad6   : > { %v2187_v18 = vpop.xlane.xlu1 %2186 }
 0xad7   : > { %v2197_v19 = vmul.f32 %v2187_v18, %v3139_v62 }
 0xad9   : > { %v2201_v20 = vadd.f32 1e-05, %v2197_v19 }
 0xadb   : > { %2840 = vrsqrt.f32 %v2201_v20  ;;  %vm2211_vm3 = vweird.f32 %v2201_v20 }
 0xade   : > { %v2190_v23 = vpop.xlane.xlu2 %2189 }
 0xadf   : > { %v2198_v22 = vmul.f32 %v2190_v23, %v3139_v62 }
 0xae1   : > { %v2841_v24 = vpop.eup %2840  ;;  %v2202_v25 = vadd.f32 1e-05, %v2198_v22 }
 0xae2   : > { %v2206_v16 = vmul.f32 %v2841_v24, %v2201_v20  ;;  %vm2212_vm2 = vweird.f32 %v2841_v24 }
 0xae3   : > { %2842 = vrsqrt.f32 %v2202_v25  ;;  %vm2213_vm4 = vmor %vm2211_vm3, %vm2212_vm2  ;;  %vm2221_vm6 = vweird.f32 %v2202_v25 }
 0xae4   : > { %v2207_v7 = vmul.f32 %v2841_v24, %v2206_v16 }
 0xae6   : > { %v2208_v28 = vmul.f32 0.5, %v2207_v7  ;;  %v2193_v29 = vpop.xlane.xlu1 %2192 }
 0xae7   : > { %v2199_v48 = vmul.f32 %v2193_v29, %v3139_v62 }
 0xae8   : > { %v2209_v26 = vsub.f32 1.5, %v2208_v28 }
 0xae9   : > { %v2843_v31 = vpop.eup %2842  ;;  %v2203_v32 = vadd.f32 1e-05, %v2199_v48 }
 0xaea   : > { %v2210_v8 = vmul.f32 %v2841_v24, %v2209_v26  ;;  %v2216_v37 = vmul.f32 %v2843_v31, %v2202_v25  ;;  %vm2222_vm5 = vweird.f32 %v2843_v31 }
 0xaeb   : > { %2844 = vrsqrt.f32 %v2203_v32  ;;  %vm2223_vm7 = vmor %vm2221_vm6, %vm2222_vm5  ;;  %vm2231_vm9 = vweird.f32 %v2203_v32 }
 0xaec   : > { %v2214_v40 = vsel %vm2213_vm4, %v2841_v24, %v2210_v8  ;;  %v2217_v41 = vmul.f32 %v2843_v31, %v2216_v37 }
 0xaed   : > { %v2245_v43 = vmul.f32 %v2214_v40, %v2177_v63 }
 0xaee   : > { %v2218_v30 = vmul.f32 0.5, %v2217_v41  ;;  %v2196_v45 = vpop.xlane.xlu0 %2195 }
 0xaef   : > { %v2252_v46 = vmul.f32 %v2796_v39, %v2245_v43  ;;  %v2200_v47 = vmul.f32 %v2196_v45, %v3139_v62 }
 0xaf0   : > { %v2219_v6 = vsub.f32 1.5, %v2218_v30 }
 0xaf1   : > { %v2845_v49 = vpop.eup %2844  ;;  %v2259_v50 = vadd.f32 %v2797_v42, %v2252_v46  ;;  %v2204_v52 = vadd.f32 1e-05, %v2200_v47 }
 0xaf2   : > { %v2220_v53 = vmul.f32 %v2843_v31, %v2219_v6  ;;  %v2226_v54 = vmul.f32 %v2845_v49, %v2203_v32  ;;  %vm2232_vm8 = vweird.f32 %v2845_v49 }
 0xaf3   : > { %v2263_v56 = vmul.f32 %v2259_v50, %v3216_v36  ;;  %2846 = vrsqrt.f32 %v2204_v52  ;;  %vm2233_vm10 = vmor %vm2231_vm9, %vm2232_vm8  ;;  %vm2241_vm12 = vweird.f32 %v2204_v52 }
 0xaf4   : > { %v2224_v57 = vsel %vm2223_vm7, %v2843_v31, %v2220_v53  ;;  %v2227_v58 = vmul.f32 %v2845_v49, %v2226_v54 }
 0xaf5   : > { %2267 = vst.msk [vmem:[#allocation2] sm:$0xff] %vm723_vm1, %v2263_v56  ;;  %v2246_v51 = vmul.f32 %v2224_v57, %v2178_v3 }
 0xaf6   : > { %2271 = vst.msk [vmem:[%s3485_s23] sm:$0xff] %vm723_vm1, %v2263_v56  ;;  %v2228_v62 = vmul.f32 0.5, %v2227_v58 }
 0xaf7   : > { %v2253_v59 = vmul.f32 %v2796_v39, %v2246_v51 }
 0xaf8   : > { %v2229_v38 = vsub.f32 1.5, %v2228_v62 }
 0xaf9   : > { %v2847_v60 = vpop.eup %2846  ;;  %v2260_v61 = vadd.f32 %v2797_v42, %v2253_v59 }
 0xafa   : > { %v2230_v33 = vmul.f32 %v2845_v49, %v2229_v38  ;;  %v2236_v36 = vmul.f32 %v2847_v60, %v2204_v52  ;;  %vm2242_vm11 = vweird.f32 %v2847_v60 }
 0xafb   : > { %v2264_v63 = vmul.f32 %v2260_v61, %v3208_v34  ;;  %vm2243_vm13 = vmor %vm2241_vm12, %vm2242_vm11 }
 0xafc   : > { %v2234_v0 = vsel %vm2233_vm10, %v2845_v49, %v2230_v33  ;;  %v2237_v1 = vmul.f32 %v2847_v60, %v2236_v36 }
 0xafd   : > { %2268 = vst.msk [vmem:[#allocation2 + $0x8] sm:$0xff] %vm723_vm1, %v2264_v63  ;;  %v2247_v2 = vmul.f32 %v2234_v0, %v3389_v10 }
 0xafe   : > { %2272 = vst.msk [vmem:[%s3485_s23 + $0x8] sm:$0xff] %vm723_vm1, %v2264_v63  ;;  %v2238_v27 = vmul.f32 0.5, %v2237_v1 }
 0xaff   : > { %v2254_v3 = vmul.f32 %v2796_v39, %v2247_v2 }
 0xb00   : > { %v2239_v4 = vsub.f32 1.5, %v2238_v27 }
 0xb01   : > { %v2261_v5 = vadd.f32 %v2797_v42, %v2254_v3 }
 0xb02   : > { %v2240_v35 = vmul.f32 %v2847_v60, %v2239_v4 }
 0xb03   : > { %v2265_v34 = vmul.f32 %v2261_v5, %v3191_v21 }
 0xb04   : > { %v2244_v9 = vsel %vm2243_vm13, %v2847_v60, %v2240_v35 }
 0xb05   : > { %2269 = vst.msk [vmem:[#allocation2 + $0x10] sm:$0xff] %vm723_vm1, %v2265_v34  ;;  %v2248_v10 = vmul.f32 %v2244_v9, %v3395_v55 }
 0xb06   : > { %2273 = vst.msk [vmem:[%s3485_s23 + $0x10] sm:$0xff] %vm723_vm1, %v2265_v34 }
 0xb07   : > { %v2255_v11 = vmul.f32 %v2796_v39, %v2248_v10 }
 0xb09   : > { %v2262_v12 = vadd.f32 %v2797_v42, %v2255_v11 }
 0xb0b   : > { %v2266_v13 = vmul.f32 %v2262_v12, %v3206_v44 }
 0xb0d   : > { %2270 = vst.msk [vmem:[#allocation2 + $0x18] sm:$0xff] %vm723_vm1, %v2266_v13 }
 0xb0e   : > { %2274 = vst.msk [vmem:[%s3485_s23 + $0x18] sm:$0xff] %vm723_vm1, %v2266_v13 }
 0xb0f PF: > { %s3486_s3 = sld [smem:[#allocation5_spill]] }
 0xb15   : > { %s26_s21 = sadd.s32 1, %s3486_s3  }
 0xb16   : > { %p23_p5 = scmp.ge.s32.totalorder %s26_s21, 4  }
 0xb18   :  { %25 = sbr.rel (!%p23_p5) target bundleno = 8 (0x8), region = 165 }

// kernel: fastspeech2_forward.5
= control target key start
LH: loop header
LB: loop body
LE: loop exit
PB: predicated region body
PF: predicated region fallthrough
CT: control target
= control target key end

     0   :  { %s2923_s6 = smov 1   ;;  %s2924_s10 = smov 2   ;;  %s3496_s0 = inlined_call_operand.smem [shape: u32[34], index: -1, kind: input, shape index: {}] }
   0x1   :  { %s2983_s5 = sld [smem:[%s3496_s0]]   ;;  %s2925_s14 = smov 3  }
   0x2   :  { %s2988_s9 = sld [smem:[%s3496_s0 + %s2923_s6]]   ;;  %s2926_s18 = smov 4  }
   0x3   :  { %s2993_s13 = sld [smem:[%s3496_s0 + %s2924_s10]]   ;;  %s2927_s22 = smov 5  }
   0x4   :  { %s2998_s17 = sld [smem:[%s3496_s0 + %s2925_s14]]   ;;  %s2928_s26 = smov 6  }
   0x5   :  { %s3003_s21 = sld [smem:[%s3496_s0 + %s2926_s18]]   ;;  %s2929_s30 = smov 7  }
   0x6   :  { %s3008_s25 = sld [smem:[%s3496_s0 + %s2927_s22]]   ;;  %s2930_s4 = smov 8  }
   0x7   :  { %s3013_s29 = sld [smem:[%s3496_s0 + %s2928_s26]]   ;;  %s2931_s10 = smov 9  }
   0x8   :  { %3513 = sst [smem:[#allocation28_spill]] %s2988_s9  ;;  %s2932_s15 = smov 10  }
   0x9   :  { %3514 = sst [smem:[#allocation29_spill]] %s2993_s13  ;;  %s2933_s20 = smov 11  }
   0xa   :  { %3515 = sst [smem:[#allocation30_spill]] %s2998_s17  ;;  %s2934_s26 = smov 12  }
   0xb   :  { %s3018_s3 = sld [smem:[%s3496_s0 + %s2929_s30]]   ;;  %s2935_s1 = smov 13  }
   0xc   :  { %3516 = sst [smem:[#allocation31_spill]] %s3008_s25  ;;  %s2936_s7 = smov 14  }
   0xd   :  { %3517 = sst [smem:[#allocation32_spill]] %s3013_s29  ;;  %s2938_s22 = smov 16  }
   0xe   :  { %s3023_s8 = sld [smem:[%s3496_s0 + %s2930_s4]]   ;;  %s2939_s28 = smov 17  }
   0xf   :  { %s3028_s14 = sld [smem:[%s3496_s0 + %s2931_s10]]  }
  0x10   :  { %s3033_s19 = sld [smem:[%s3496_s0 + %s2932_s15]]   ;;  %s2937_s15 = smov 15  }
  0x11   :  { %s3038_s24 = sld [smem:[%s3496_s0 + %s2933_s20]]  }
  0x12   :  { %s3043_s30 = sld [smem:[%s3496_s0 + %s2934_s26]]  }
  0x13   :  { %s3048_s6 = sld [smem:[%s3496_s0 + %s2935_s1]]  }
  0x14   :  { %s3053_s12 = sld [smem:[%s3496_s0 + %s2936_s7]]   ;;  %s2940_s7 = smov 18  }
  0x15   :  { %s3058_s20 = sld [smem:[%s3496_s0 + %s2937_s15]]   ;;  %s2941_s15 = smov 19  }
  0x16   :  { %s3063_s27 = sld [smem:[%s3496_s0 + %s2938_s22]]   ;;  %s2942_s22 = smov 20  }
  0x17   :  { %s3068_s4 = sld [smem:[%s3496_s0 + %s2939_s28]]   ;;  %s2943_s28 = smov 21  }
  0x18   :  { %s3073_s29 = sld [smem:[%s3496_s0 + %s2940_s7]]   ;;  %s2944_s7 = smov 22  }
  0x19   :  { %s3078_s9 = sld [smem:[%s3496_s0 + %s2941_s15]]   ;;  %s2945_s15 = smov 23  }
  0x1a   :  { %s3083_s25 = sld [smem:[%s3496_s0 + %s2942_s22]]   ;;  %s2946_s22 = smov 24  }
  0x1b   :  { %s3088_s13 = sld [smem:[%s3496_s0 + %s2943_s28]]   ;;  %s2947_s28 = smov 25  }
  0x1c   :  { %s3093_s17 = sld [smem:[%s3496_s0 + %s2944_s7]]   ;;  %s2948_s7 = smov 26  }
  0x1d   :  { %3518 = sst [smem:[#allocation33_spill]] %s3068_s4 }
  0x1f   :  { %3519 = sst [smem:[#allocation34_spill]] %s3078_s9 }
  0x20   :  { %3520 = sst [smem:[#allocation35_spill]] %s3083_s25 }
  0x21   :  { %3521 = sst [smem:[#allocation36_spill]] %s3088_s13 }
  0x22   :  { %3522 = sst [smem:[#allocation37_spill]] %s3093_s17 }
  0x23   :  { %s3098_s9 = sld [smem:[%s3496_s0 + %s2945_s15]]   ;;  %s2949_s15 = smov 27  }
  0x24   :  { %s3103_s25 = sld [smem:[%s3496_s0 + %s2946_s22]]   ;;  %s2950_s22 = smov 28  }
  0x25   :  { %s3108_s13 = sld [smem:[%s3496_s0 + %s2947_s28]]   ;;  %s2951_s28 = smov 29  }
  0x26   :  { %s3113_s17 = sld [smem:[%s3496_s0 + %s2948_s7]]   ;;  %s2952_s7 = smov 30  }
  0x27   :  { %s3118_s4 = sld [smem:[%s3496_s0 + %s2949_s15]]   ;;  %s2953_s15 = smov 31  }
  0x2a   :  { %3523 = sst [smem:[#allocation38_spill]] %s3103_s25 }
  0x2b   :  { %3524 = sst [smem:[#allocation39_spill]] %s3108_s13 }
  0x2c   :  { %3525 = sst [smem:[#allocation40_spill]] %s3113_s17 }
  0x2d   :  { %3526 = sst [smem:[#allocation41_spill]] %s3118_s4 }
  0x2e   :  { %s3123_s25 = sld [smem:[%s3496_s0 + %s2950_s22]]   ;;  %s2954_s22 = smov 32  }
  0x2f   :  { %s3128_s13 = sld [smem:[%s3496_s0 + %s2951_s28]]   ;;  %s2955_s28 = smov 33  }
  0x30   :  { %s3133_s17 = sld [smem:[%s3496_s0 + %s2952_s7]]  }
  0x31   :  { %s3138_s4 = sld [smem:[%s3496_s0 + %s2953_s15]]  }
  0x34   :  { %3527 = sst [smem:[#allocation42_spill]] %s3123_s25 }
  0x35   :  { %3528 = sst [smem:[#allocation43_spill]] %s3128_s13 }
  0x36   :  { %s3143_s25 = sld [smem:[%s3496_s0 + %s2954_s22]]  }
  0x37   :  { %s3148_s13 = sld [smem:[%s3496_s0 + %s2955_s28]]  }
  0x38   :  { %73 = vsyncpa [#allocation3], 0 }
  0x39   :  { %74 = vsyncpa [#allocation6], 0 }
  0x3a   :  { %75 = vsyncpa [#allocation9], 0 }
  0x3b   :  { %76 = vsyncpa [#allocation12], 0 }
  0x3c   :  { %77 = vsyncpa [#allocation15], 0 }
  0x3d   :  { %78 = vsyncpa [#allocation18], 0  ;;  %s110_s7 = sshll.u32 %s3023_s8, 4  ;;  %s111_s7 = int_to_ptr.hbm [resolvable:$true] %s110_s7 }
  0x3e   :  { %79 = vsyncpa [#allocation4], 0  ;;  %s2956_s10 = smov [#allocation5]   ;;  %s2621_s15 = sshra.s32 %s111_s7, 4  ;;  %s2622_s15 = int_to_ptr.hbm [resolvable:$true] %s2621_s15 }
  0x3f   :  { %s112_s11 = sshll.u32 %s2956_s10, 4  ;;  %s2623_s16 = scalar_lea.hbm %s2622_s15, 1  ;;  %s113_s11 = int_to_ptr.vmem [resolvable:$true] %s112_s11 }
  0x40   :  { %p2624_p0 = scmp.ne.s32.totalorder %s2622_s15, %s2623_s16  ;;  %s2625_s0 = scalar_lea.hbm %s3023_s8, 1 }
  0x41   :  { %p2626_p1 = scmp.lt.s32.totalorder %s2622_s15, %s3023_s8  ;;  %p2627_p2 = scmp.lt.s32.totalorder %s2625_s0, %s2623_s16 }
  0x43   :  { %p2628_p3 = por %p2627_p2, %p2626_p1 }
  0x45   :  { %p2629_p4 = pnand %p2628_p3, %p2624_p0 }
  0x47   :  { %2632 = shalt.err (!%p2629_p4)
}
  0x48   :  { %115 = dma.hbm_to_vmem [thread:$0]  %s111_s7, 16, %s113_s11, [#allocation6]  }
  0x49   :  { %s133_s18 = sshll.u32 %s3033_s19, 4  ;;  %s2957_s22 = smov [#allocation8]   ;;  %s134_s18 = int_to_ptr.hbm [resolvable:$true] %s133_s18 }
  0x4a   :  { %s135_s23 = sshll.u32 %s2957_s22, 4  ;;  %s159_s26 = sshll.u32 %s3048_s6, 4  ;;  %s136_s23 = int_to_ptr.vmem [resolvable:$true] %s135_s23  ;;  %s3155_s26 = int_to_ptr.hbm [resolvable:$true] %s159_s26 }
  0x4b   :  { %s2645_s28 = sshra.s32 %s134_s18, 4  ;;  %s2649_s1 = scalar_lea.hbm %s3033_s19, 16  ;;  %s2646_s28 = int_to_ptr.hbm [resolvable:$true] %s2645_s28 }
  0x4c   :  { %s2647_s8 = scalar_lea.hbm %s2646_s28, 16  ;;  %p2650_p6 = scmp.lt.s32.totalorder %s2646_s28, %s3033_s19 }
  0x4d   :  { %p2648_p5 = scmp.ne.s32.totalorder %s2646_s28, %s2647_s8  ;;  %p2651_p7 = scmp.lt.s32.totalorder %s2649_s1, %s2647_s8 }
  0x4f   :  { %p2652_p8 = por %p2651_p7, %p2650_p6 }
  0x51   :  { %p2653_p9 = pnand %p2652_p8, %p2648_p5 }
  0x53   :  { %2656 = shalt.err (!%p2653_p9)
}
  0x54   :  { %s2958_s2 = smov 128   ;;  %s2959_s7 = smov 8  }
  0x55   :  { %141 = dma.hbm_to_vmem [thread:$0]  %s134_s18, 256, %s136_s23, [#allocation9], %s2958_s2, %s2958_s2, %s2959_s7  }
  0x56   :  { %s2960_s10 = smov [#allocation11]   ;;  %s183_s15 = sshll.u32 %s3058_s20, 4  ;;  %s184_s15 = int_to_ptr.hbm [resolvable:$true] %s183_s15 }
  0x57   :  { %s161_s11 = sshll.u32 %s2960_s10, 4  ;;  %s2669_s16 = sshra.s32 %s3155_s26, 4  ;;  %s162_s11 = int_to_ptr.vmem [resolvable:$true] %s161_s11  ;;  %s2670_s16 = int_to_ptr.hbm [resolvable:$true] %s2669_s16 }
  0x58   :  { %s2671_s19 = scalar_lea.hbm %s2670_s16, 16  ;;  %s2673_s0 = scalar_lea.hbm %s3048_s6, 16 }
  0x59   :  { %p2672_p10 = scmp.ne.s32.totalorder %s2670_s16, %s2671_s19  ;;  %p2674_p11 = scmp.lt.s32.totalorder %s2670_s16, %s3048_s6 }
  0x5a   :  { %p2675_p12 = scmp.lt.s32.totalorder %s2673_s0, %s2671_s19 }
  0x5c   :  { %p2676_p13 = por %p2675_p12, %p2674_p11 }
  0x5e   :  { %p2677_p0 = pnand %p2676_p13, %p2672_p10 }
  0x60   :  { %2680 = shalt.err (!%p2677_p0)
}
  0x61   :  { %s2961_s22 = smov 64   ;;  %s2962_s18 = smov 4  }
  0x62   :  { %167 = dma.hbm_to_vmem [thread:$0]  %s3155_s26, 256, %s162_s11, [#allocation12], %s2961_s22, %s2961_s22, %s2962_s18  }
  0x63   :  { %s2963_s23 = smov [#allocation14]   ;;  %s210_s8 = sshll.u32 %s3073_s29, 4  ;;  %s211_s8 = int_to_ptr.hbm [resolvable:$true] %s210_s8 }
  0x64   :  { %s185_s28 = sshll.u32 %s2963_s23, 4  ;;  %s2693_s6 = sshra.s32 %s184_s15, 4  ;;  %s186_s28 = int_to_ptr.vmem [resolvable:$true] %s185_s28  ;;  %s2694_s6 = int_to_ptr.hbm [resolvable:$true] %s2693_s6 }
  0x65   :  { %s2695_s1 = scalar_lea.hbm %s2694_s6, 16  ;;  %s2697_s10 = scalar_lea.hbm %s3058_s20, 16 }
  0x66   :  { %p2696_p1 = scmp.ne.s32.totalorder %s2694_s6, %s2695_s1  ;;  %p2698_p2 = scmp.lt.s32.totalorder %s2694_s6, %s3058_s20 }
  0x67   :  { %p2699_p3 = scmp.lt.s32.totalorder %s2697_s10, %s2695_s1 }
  0x69   :  { %p2700_p4 = por %p2699_p3, %p2698_p2 }
  0x6b   :  { %p2701_p5 = pnand %p2700_p4, %p2696_p1 }
  0x6d   :  { %2704 = shalt.err (!%p2701_p5)
}
  0x6e   :  { %191 = dma.hbm_to_vmem [thread:$0]  %s184_s15, 256, %s186_s28, [#allocation15], %s2961_s22, %s2961_s22, %s2962_s18  }
  0x6f   :  { %s99_s26 = sshll.u32 %s3018_s3, 4  ;;  %s2964_s11 = smov [#allocation17]   ;;  %s100_s26 = int_to_ptr.hbm [resolvable:$true] %s99_s26 }
  0x70   :  { %s212_s16 = sshll.u32 %s2964_s11, 4  ;;  %s2717_s19 = sshra.s32 %s211_s8, 4  ;;  %s213_s16 = int_to_ptr.vmem [resolvable:$true] %s212_s16  ;;  %s2718_s19 = int_to_ptr.hbm [resolvable:$true] %s2717_s19 }
  0x71   :  { %s2719_s0 = scalar_lea.hbm %s2718_s19, 1  ;;  %s2721_s20 = scalar_lea.hbm %s3073_s29, 1 }
  0x72   :  { %p2720_p6 = scmp.ne.s32.totalorder %s2718_s19, %s2719_s0  ;;  %p2722_p7 = scmp.lt.s32.totalorder %s2718_s19, %s3073_s29 }
  0x73   :  { %p2723_p8 = scmp.lt.s32.totalorder %s2721_s20, %s2719_s0 }
  0x75   :  { %p2724_p9 = por %p2723_p8, %p2722_p7 }
  0x77   :  { %p2725_p10 = pnand %p2724_p9, %p2720_p6 }
  0x79   :  { %2728 = shalt.err (!%p2725_p10)
}
  0x7a   :  { %215 = dma.hbm_to_vmem [thread:$0]  %s211_s8, 16, %s213_s16, [#allocation18]  }
  0x7b   :  { %s2965_s15 = smov [#allocation2]   ;;  %s120_s28 = sshll.u32 %s3028_s14, 4  ;;  %s3180_s28 = int_to_ptr.hbm [resolvable:$true] %s120_s28 }
  0x7c   :  { %s101_s23 = sshll.u32 %s2965_s15, 4  ;;  %s2741_s6 = sshra.s32 %s100_s26, 4  ;;  %s102_s23 = int_to_ptr.vmem [resolvable:$true] %s101_s23  ;;  %s2742_s6 = int_to_ptr.hbm [resolvable:$true] %s2741_s6 }
  0x7d   :  { %s2743_s1 = scalar_lea.hbm %s2742_s6, 1  ;;  %s2745_s10 = scalar_lea.hbm %s3018_s3, 1 }
  0x7e   :  { %p2744_p11 = scmp.ne.s32.totalorder %s2742_s6, %s2743_s1  ;;  %p2746_p12 = scmp.lt.s32.totalorder %s2742_s6, %s3018_s3 }
  0x7f   :  { %p2747_p13 = scmp.lt.s32.totalorder %s2745_s10, %s2743_s1 }
  0x81   :  { %p2748_p0 = por %p2747_p13, %p2746_p12 }
  0x83   :  { %p2749_p1 = pnand %p2748_p0, %p2744_p11 }
  0x85   :  { %2752 = shalt.err (!%p2749_p1)
}
  0x86   :  { %104 = dma.hbm_to_vmem [thread:$0]  %s100_s26, 16, %s102_s23, [#allocation3]  }
  0x87   :  { %s149_s29 = sshll.u32 %s3043_s30, 4  ;;  %s2966_s8 = smov [#allocation7]   ;;  %s150_s29 = int_to_ptr.hbm [resolvable:$true] %s149_s29 }
  0x88   :  { %s122_s11 = sshll.u32 %s2966_s8, 4  ;;  %s2765_s16 = sshra.s32 %s3180_s28, 4  ;;  %s123_s11 = int_to_ptr.vmem [resolvable:$true] %s122_s11  ;;  %s2766_s16 = int_to_ptr.hbm [resolvable:$true] %s2765_s16 }
  0x89   :  { %s2767_s19 = scalar_lea.hbm %s2766_s16, 16  ;;  %s2769_s0 = scalar_lea.hbm %s3028_s14, 16 }
  0x8a   :  { %p2768_p2 = scmp.ne.s32.totalorder %s2766_s16, %s2767_s19  ;;  %p2770_p3 = scmp.lt.s32.totalorder %s2766_s16, %s3028_s14 }
  0x8b   :  { %p2771_p4 = scmp.lt.s32.totalorder %s2769_s0, %s2767_s19 }
  0x8d   :  { %p2772_p5 = por %p2771_p4, %p2770_p3 }
  0x8f   :  { %p2773_p6 = pnand %p2772_p5, %p2768_p2 }
  0x91   :  { %2776 = shalt.err (!%p2773_p6)
}
  0x92   :  { %128 = dma.hbm_to_vmem [thread:$0]  %s3180_s28, 256, %s123_s11, [#allocation6], %s2958_s2, %s2958_s2, %s2959_s7  }
  0x93   :  { %s2967_s3 = smov [#allocation10]   ;;  %s173_s20 = sshll.u32 %s3053_s12, 4  ;;  %s174_s20 = int_to_ptr.hbm [resolvable:$true] %s173_s20 }
  0x94   :  { %s151_s26 = sshll.u32 %s2967_s3, 4  ;;  %s2789_s15 = sshra.s32 %s150_s29, 4  ;;  %s152_s26 = int_to_ptr.vmem [resolvable:$true] %s151_s26  ;;  %s2790_s15 = int_to_ptr.hbm [resolvable:$true] %s2789_s15 }
  0x95   :  { %s2791_s14 = scalar_lea.hbm %s2790_s15, 1  ;;  %s2793_s23 = scalar_lea.hbm %s3043_s30, 1 }
  0x96   :  { %p2792_p7 = scmp.ne.s32.totalorder %s2790_s15, %s2791_s14  ;;  %p2794_p8 = scmp.lt.s32.totalorder %s2790_s15, %s3043_s30 }
  0x97   :  { %p2795_p9 = scmp.lt.s32.totalorder %s2793_s23, %s2791_s14 }
  0x99   :  { %p2796_p10 = por %p2795_p9, %p2794_p8 }
  0x9b   :  { %p2797_p11 = pnand %p2796_p10, %p2792_p7 }
  0x9d   :  { %2800 = shalt.err (!%p2797_p11)
}
  0x9e   :  { %154 = dma.hbm_to_vmem [thread:$0]  %s150_s29, 16, %s152_s26, [#allocation9]  }
  0x9f   :  { %s197_s28 = sshll.u32 %s3063_s27, 4  ;;  %s2968_s6 = smov [#allocation13]   ;;  %s198_s28 = int_to_ptr.hbm [resolvable:$true] %s197_s28 }
  0xa0   :  { %s175_s1 = sshll.u32 %s2968_s6, 4  ;;  %s2813_s10 = sshra.s32 %s174_s20, 4  ;;  %s176_s1 = int_to_ptr.vmem [resolvable:$true] %s175_s1  ;;  %s2814_s10 = int_to_ptr.hbm [resolvable:$true] %s2813_s10 }
  0xa1   :  { %s2815_s8 = scalar_lea.hbm %s2814_s10, 1  ;;  %s2817_s11 = scalar_lea.hbm %s3053_s12, 1 }
  0xa2   :  { %p2816_p12 = scmp.ne.s32.totalorder %s2814_s10, %s2815_s8  ;;  %p2818_p13 = scmp.lt.s32.totalorder %s2814_s10, %s3053_s12 }
  0xa3   :  { %p2819_p0 = scmp.lt.s32.totalorder %s2817_s11, %s2815_s8 }
  0xa5   :  { %p2820_p1 = por %p2819_p0, %p2818_p13 }
  0xa7   :  { %p2821_p2 = pnand %p2820_p1, %p2816_p12 }
  0xa9   :  { %2824 = shalt.err (!%p2821_p2)
}
  0xaa   :  { %178 = dma.hbm_to_vmem [thread:$0]  %s174_s20, 16, %s176_s1, [#allocation12]  }
  0xab   :  { %s2969_s30 = smov [#allocation16]   ;;  %s228_s16 = sshll.u32 %s3098_s9, 4  ;;  %s229_s16 = int_to_ptr.hbm [resolvable:$true] %s228_s16 }
  0xac   :  { %s199_s29 = sshll.u32 %s2969_s30, 4  ;;  %s2837_s19 = sshra.s32 %s198_s28, 4  ;;  %s200_s29 = int_to_ptr.vmem [resolvable:$true] %s199_s29  ;;  %s2838_s19 = int_to_ptr.hbm [resolvable:$true] %s2837_s19 }
  0xad   :  { %s2839_s0 = scalar_lea.hbm %s2838_s19, 1  ;;  %s2841_s3 = scalar_lea.hbm %s3063_s27, 1 }
  0xae   :  { %p2840_p3 = scmp.ne.s32.totalorder %s2838_s19, %s2839_s0  ;;  %p2842_p4 = scmp.lt.s32.totalorder %s2838_s19, %s3063_s27 }
  0xaf   :  { %p2843_p5 = scmp.lt.s32.totalorder %s2841_s3, %s2839_s0 }
  0xb1   :  { %p2844_p6 = por %p2843_p5, %p2842_p4 }
  0xb3   :  { %p2845_p7 = pnand %p2844_p6, %p2840_p3 }
  0xb5   :  { %2848 = shalt.err (!%p2845_p7)
}
  0xb6   :  { %202 = dma.hbm_to_vmem [thread:$0]  %s198_s28, 16, %s200_s29, [#allocation15]  }
  0xb7   :  { %s2970_s12 = smov [#allocation19]   ;;  %s2861_s20 = sshra.s32 %s229_s16, 4  ;;  %s2862_s20 = int_to_ptr.hbm [resolvable:$true] %s2861_s20 }
  0xb8   :  { %s230_s26 = sshll.u32 %s2970_s12, 4  ;;  %s2863_s15 = scalar_lea.hbm %s2862_s20, 144  ;;  %s231_s26 = int_to_ptr.vmem [resolvable:$true] %s230_s26 }
  0xb9   :  { %p2864_p8 = scmp.ne.s32.totalorder %s2862_s20, %s2863_s15  ;;  %s2865_s14 = scalar_lea.hbm %s3098_s9, 144 }
  0xba   :  { %p2866_p9 = scmp.lt.s32.totalorder %s2862_s20, %s3098_s9  ;;  %p2867_p10 = scmp.lt.s32.totalorder %s2865_s14, %s2863_s15 }
  0xbc   :  { %p2868_p11 = por %p2867_p10, %p2866_p9 }
  0xbe   :  { %p2869_p12 = pnand %p2868_p11, %p2864_p8 }
  0xc0   :  { %2872 = shalt.err (!%p2869_p12)
}
  0xc1   :  { %236 = dma.hbm_to_vmem [thread:$0]  %s229_s16, 2304, %s231_s26, [#allocation18], %s2961_s22, %s2961_s22, %s2962_s18  }
  0xc2   :  { %2909 = dma.done.wait [#allocation3], 16  }
  0xc3   :  { %2910 = vsyncadd [#allocation3], 4294967280 }
  0xc4   :  { %2911 = dma.done.wait [#allocation6], 272  }
  0xc5   :  { %2912 = vsyncadd [#allocation6], 4294967024 }
  0xc6   :  { %2913 = dma.done.wait [#allocation9], 272  }
  0xc7   :  { %2914 = vsyncadd [#allocation9], 4294967024 }
  0xc8   :  { %2915 = dma.done.wait [#allocation12], 272  }
  0xc9   :  { %2916 = vsyncadd [#allocation12], 4294967024 }
  0xca   :  { %2917 = dma.done.wait [#allocation15], 272  }
  0xcb   :  { %2918 = vsyncadd [#allocation15], 4294967024 }
  0xcc   :  { %2919 = dma.done.wait [#allocation18], 2320  }
  0xcd   :  { %2920 = vsyncadd [#allocation18], 4294964976  ;;  %v2465_v0 = vld [vmem:[%s3038_s24] sm:$0xff]  ;;  %vm383_vm0 = vcmask 130048   ;;  %v2467_v3 = vld [vmem:[#allocation11 + $0x8] sm:$0xff]  ;;  %s3529_s9 = sld [smem:[#allocation33_spill]] }
  0xce   :  { %v386_v1 = vld [vmem:[%s3003_s21] sm:$0x3]  ;;  %410 = vmatpush.bf16.msra.mxu2 %v2465_v0  ;;  %447 = vmatpush.bf16.msra.mxu3 %v2467_v3  ;;  %v2466_v4 = vld [vmem:[#allocation11] sm:$0xff]  ;;  %v2461_v6 = vld [vmem:[#allocation14] sm:$0xff]  ;;  %vm325_vm1 = vcmask 261120   ;;  %s3530_s21 = sld [smem:[#allocation30_spill]] }
  0xcf   :  { %v387_v2 = vpack.c.bf16 %v386_v1, %v386_v1  ;;  %v2462_v5 = vld [vmem:[#allocation14 + $0x8] sm:$0xff]  ;;  %v293_v8 = vld [vmem:[%s2983_s5 + $0x8] sm:$0xff]  ;;  %v2566_v26 = vld [vmem:[#allocation13] ss:$0 sm:$0xff]  ;;  %vm463_vm2 = vcmask 1041408   ;;  %vm456_vm3 = vcmask 15360  }
  0xd0   :  { %335 = vmatpush.bf16.msra.mxu0 %v2462_v5  ;;  %v292_v7 = vld [vmem:[%s2983_s5] sm:$0xff]  ;;  %v2567_v18 = vld [vmem:[#allocation16] ss:$0 sm:$0xff]  ;;  %s3531_s5 = sld [smem:[#allocation29_spill]]  ;;  %v2568_v33 = vld [vmem:[#allocation17] ss:$0 sm:$0xff] }
  0xd1   :  { %2167 = vmatmul.msk.bf16.vlgmr.msra.gmra.mxu2 %vm383_vm0, %v387_v2  ;;  %v304_v9 = vpack.c.bf16 %v293_v8, %v292_v7  ;;  %v2565_v10 = vld [vmem:[#allocation10] ss:$0 sm:$0xff]  ;;  %s3532_s24 = sld [smem:[#allocation34_spill]]  ;;  %vm1435_vm15 = vcmask 121856   ;;  %s2974_s30 = smov [#allocation20]  }
  0xd2   :  { %448 = vmatpush.bf16.msra.mxu3 %v2466_v4  ;;  %s3533_s27 = sld [smem:[#allocation35_spill]]  ;;  %s2072_s29 = sshll.u32 %s2974_s30, 4  ;;  %s2073_s29 = int_to_ptr.vmem [resolvable:$true] %s2072_s29 }
  0xd3   :  { %v2464_v17 = vld [vmem:[%s3529_s9 + $0x8] sm:$0xff]  ;;  %v2463_v19 = vld [vmem:[%s3529_s9] sm:$0xff]  ;;  %s3534_s22 = sld [smem:[#allocation36_spill]] }
  0xd4   :  { %336 = vmatpush.bf16.msra.mxu0 %v2461_v6  ;;  %375 = vmatpush.bf16.msra.mxu1 %v2464_v17  ;;  %v454_v29 = vld [vmem:[%s3530_s21] sm:$0xff]  ;;  %v455_v31 = vld [vmem:[%s3530_s21 + $0x8] sm:$0xff]  ;;  %s3535_s18 = sld [smem:[#allocation37_spill]] }
  0xd5   :  { %s3536_s23 = sld [smem:[#allocation38_spill]] }
  0xd6   :  { %v3227_v42 = vld [vmem:[%s3531_s5] sm:$0xff]  ;;  %v3230_v43 = vld [vmem:[%s3531_s5 + $0x8] sm:$0xff]  ;;  %v3237_v44 = vld [vmem:[%s3531_s5 + $0x10] sm:$0xff]  ;;  %s3537_s28 = sld [smem:[#allocation31_spill]] }
  0xd7   :  { %2153 = vmatmul.msk.bf16.vlgmr.msra.gmra.mxu0 %vm325_vm1, %v304_v9  ;;  %v2471_v45 = vld [vmem:[%s3532_s24 + $0x18] sm:$0xff]  ;;  %v2469_v46 = vld [vmem:[%s3532_s24 + $0x8] sm:$0xff]  ;;  %v2470_v47 = vld [vmem:[%s3532_s24 + $0x10] sm:$0xff]  ;;  %s3538_s6 = sld [smem:[#allocation41_spill]] }
  0xd8   :  { %376 = vmatpush.bf16.msra.mxu1 %v2463_v19  ;;  %575 = vmatpush.bf16.msrb.mxu3 %v2471_v45  ;;  %v2468_v48 = vld [vmem:[%s3532_s24] sm:$0xff]  ;;  %v2473_v49 = vld [vmem:[%s3532_s24 + $0x28] sm:$0xff]  ;;  %s3539_s1 = sld [smem:[#allocation39_spill]] }
  0xd9   :  { %v2472_v50 = vld [vmem:[%s3532_s24 + $0x20] sm:$0xff]  ;;  %s3540_s10 = sld [smem:[#allocation40_spill]] }
  0xda   :  { %v2569_v63 = vld [vmem:[%s3533_s27] ss:$0 sm:$0xff]  ;;  %s3541_s8 = sld [smem:[#allocation42_spill]] }
  0xdb   :  { %s3542_s11 = sld [smem:[#allocation28_spill]] }
  0xdc   :  { %576 = vmatpush.bf16.msrb.mxu3 %v2470_v47 }
 0x154   :  { %v412_v11 = vpop.f32.mrf.mxu2  ;;  %v338_v16 = vpop.f32.mrf.mxu0 }
 0x155   :  { %v413_v12 = vadd.f32 %v2565_v10, %v412_v11  ;;  %v339_v20 = vadd.f32 %v2567_v18, %v338_v16 }
 0x157   :  { %v416_v13 = vmax.f32 %v413_v12, 0.0  ;;  %v343_v22 = vmax.f32 %v339_v20, 0.0 }
 0x159   :  { %v417_v14 = vpack.c.bf16 %v416_v13, %v416_v13  ;;  %v2971_v13 = vmov 32.0  }
 0x15a   :  { %2592 = vrcp.f32 %v2971_v13 }
 0x15b   :  { %2176 = vmatmul.msk.bf16.vlgmr.msra.gmra.mxu3 %vm325_vm1, %v417_v14 }
 0x15c   :  { %v414_v15 = vpop.f32.mrf.mxu2  ;;  %v340_v21 = vpop.f32.mrf.mxu0 }
 0x15d   :  { %v341_v23 = vadd.f32 %v2567_v18, %v340_v21 }
 0x15f   :  { %v344_v24 = vmax.f32 %v341_v23, 0.0 }
 0x160   :  { %v2593_v14 = vpop.eup %2592 }
 0x161   :  { %v345_v25 = vpack.c.bf16 %v344_v24, %v343_v22  ;;  %v682_v15 = vmul.f32 32.0, %v2593_v14  ;;  %vm686_vm4 = vweird.f32 %v2593_v14 }
 0x163   :  { %2162 = vmatmul.msk.bf16.vlgmr.msra.gmra.mxu1 %vm325_vm1, %v345_v25  ;;  %v683_v16 = vsub.f32 1.0, %v682_v15  ;;  %v2486_v15 = vld [vmem:[%s3532_s24 + $0x50] sm:$0xff] }
 0x165   :  { %v684_v17 = vmul.f32 %v2593_v14, %v683_v16 }
 0x167   :  { %v685_v18 = vadd.f32 %v2593_v14, %v684_v17 }
 0x169   :  { %v3262_v19 = vsel %vm686_vm4, %v2593_v14, %v685_v18  ;;  %v2487_v14 = vld [vmem:[%s3532_s24 + $0x58] sm:$0xff] }
 0x1de   :  { %v450_v27 = vpop.f32.mrf.mxu3 }
 0x1df   :  { %v451_v28 = vadd.f32 %v2566_v26, %v450_v27 }
 0x1e0   :  { %v378_v34 = vpop.f32.mrf.mxu1 }
 0x1e1   :  { %2177 = vmatpush.msk.msrb.mxu2 %vm463_vm2, %v451_v28  ;;  %v379_v35 = vadd.f32 %v2568_v33, %v378_v34 }
 0x1e2   :  { %2178 = vmatmul.msk.f32.vlgmr.msrb.gmra.mxu2 %vm456_vm3, %v454_v29 }
 0x1e3   :  { %384 = vst.msk [vmem:[#allocation20] sm:$0xff] %vm383_vm0, %v379_v35  ;;  %604 = vmatpush.bf16.msra.mxu2 %v2469_v46 }
 0x1e6   :  { %v452_v30 = vpop.f32.mrf.mxu3 }
 0x1e7   :  { %605 = vmatpush.bf16.msra.mxu2 %v2468_v48 }
 0x1e8   :  { %v380_v37 = vpop.f32.mrf.mxu1 }
 0x1e9   :  { %v381_v40 = vadd.f32 %v2568_v33, %v380_v37 }
 0x1ea   :  { %2179 = vmatmul.msk.f32.gmra.mxu2 %vm456_vm3, %v455_v31 }
 0x1eb   :  { %385 = vst.msk [vmem:[#allocation20 + $0x8] sm:$0xff] %vm383_vm0, %v381_v40 }
 0x265   :  { %v484_v32 = vpop.f32.mrf.mxu2 }
 0x266   :  { %v3219_v38 = vadd.f32 %v484_v32, %v292_v7 }
 0x26d   :  { %v487_v36 = vpop.f32.mrf.mxu2 }
 0x26e   :  { %v3221_v39 = vadd.f32 %v487_v36, %v293_v8 }
 0x270   :  { %v507_v41 = vpack.c.bf16 %v3221_v39, %v3219_v38 }
 0x272   :  { %523 = vmatpush.bf16.msrb.mxu0 %v507_v41  ;;  %546 = vmatpush.bf16.msrb.mxu1 %v507_v41 }
 0x275   :  { %2192 = vmatmul.msk.bf16.vlgmr.msrb.gmra.mxu0 %vm383_vm0, %v3227_v42  ;;  %2197 = vmatmul.msk.bf16.vlgmr.msrb.gmra.mxu1 %vm383_vm0, %v3230_v43 }
 0x276   :  { %627 = vmatpush.bf16.msra.mxu0 %v507_v41  ;;  %656 = vmatpush.bf16.msra.mxu1 %v2473_v49 }
 0x27a   :  { %657 = vmatpush.bf16.msra.mxu1 %v2472_v50 }
 0x285   :  { %2220 = vmatmul.msk.bf16.vlgmr.msra.gmra.mxu0 %vm383_vm0, %v3237_v44 }
 0x2f2   :  { %v525_v51 = vpop.f32.mrf.mxu0  ;;  %v548_v52 = vpop.f32.mrf.mxu1 }
 0x2fa   :  { %v527_v53 = vpop.f32.mrf.mxu0  ;;  %v550_v54 = vpop.f32.mrf.mxu1 }
 0x2fb   :  { %v3247_v55 = vpack.c.bf16 %v527_v53, %v525_v51  ;;  %v3249_v56 = vpack.c.bf16 %v550_v54, %v548_v52  ;;  %v2570_v54 = vld [vmem:[%s3534_s22] ss:$0 sm:$0xff] }
 0x2fd   :  { %2206 = vmatmul.msk.bf16.vlgmr.msrb.gmra.mxu3 %vm325_vm1, %v3249_v56  ;;  %2215 = vmatmul.msk.bf16.vlgmr.msra.gmra.mxu2 %vm325_vm1, %v3247_v55 }
 0x302   :  { %v629_v57 = vpop.f32.mrf.mxu0 }
 0x30a   :  { %v631_v58 = vpop.f32.mrf.mxu0 }
 0x30b   :  { %v3255_v59 = vpack.c.bf16 %v631_v58, %v629_v57 }
 0x30d   :  { %2229 = vmatmul.msk.bf16.vlgmr.msra.gmra.mxu1 %vm325_vm1, %v3255_v59 }
 0x380   :  { %v578_v60 = vpop.f32.mrf.mxu3  ;;  %v607_v61 = vpop.f32.mrf.mxu2 }
 0x381   :  { %v608_v62 = vadd.f32 %v607_v61, %v578_v60 }
 0x388   :  { %v580_v3 = vpop.f32.mrf.mxu3  ;;  %v609_v4 = vpop.f32.mrf.mxu2 }
 0x389   :  { %v610_v6 = vadd.f32 %v609_v4, %v580_v3  ;;  %v2483_v3 = vld [vmem:[%s3532_s24 + $0x38] sm:$0xff]  ;;  %v2482_v4 = vld [vmem:[%s3532_s24 + $0x30] sm:$0xff] }
 0x38a   :  { %v659_v0 = vpop.f32.mrf.mxu1 }
 0x38b   :  { %v664_v1 = vadd.f32 %v659_v0, %v608_v62  ;;  %v2571_v62 = vld [vmem:[%s3535_s18] ss:$0 sm:$0xff] }
 0x38d   :  { %v669_v2 = vadd.f32 %v2569_v63, %v664_v1 }
 0x38f   :  { %v671_v5 = vmax.f32 %v669_v2, 0.0 }
 0x391   :  { %v675_v7 = vsel %vm325_vm1, %v671_v5, 0.0 }
 0x392   :  { %v661_v8 = vpop.f32.mrf.mxu1  ;;  %676 = vadd.xlane.f32.xlu0 %v675_v7  ;;  %v2476_v7 = vld [vmem:[#allocation19 + $0x10] sm:$0xff] }
 0x393   :  { %v665_v9 = vadd.f32 %v661_v8, %v610_v6  ;;  %v2475_v6 = vld [vmem:[#allocation19 + $0x8] sm:$0xff]  ;;  %v2474_v8 = vld [vmem:[#allocation19] sm:$0xff] }
 0x394   :  { %832 = vmatpush.bf16.msrb.mxu1 %v2475_v6 }
 0x395   :  { %v670_v10 = vadd.f32 %v2569_v63, %v665_v9  ;;  %v2479_v9 = vld [vmem:[#allocation19 + $0x28] sm:$0xff] }
 0x397   :  { %v672_v11 = vmax.f32 %v670_v10, 0.0  ;;  %v2485_v10 = vld [vmem:[%s3532_s24 + $0x48] sm:$0xff] }
 0x398   :  { %833 = vmatpush.bf16.msrb.mxu1 %v2474_v8 }
 0x399   :  { %v678_v12 = vsel %vm325_vm1, %v672_v11, 0.0 }
 0x39a   :  { %679 = vadd.xlane.f32.xlu0 %v678_v12  ;;  %v2484_v12 = vld [vmem:[%s3532_s24 + $0x40] sm:$0xff] }
 0x39c   :  { %1027 = vmatpush.bf16.msra.mxu1 %v2485_v10 }
 0x3a0   :  { %1028 = vmatpush.bf16.msra.mxu1 %v2484_v12 }
 0x405   :  { %v677_v20 = vpop.xlane.xlu0 %676 }
 0x406   :  { %v688_v21 = vmul.f32 %v3262_v19, %v677_v20 }
 0x408   :  { %v690_v22 = vsub.f32 %v671_v5, %v688_v21  ;;  %v2477_v5 = vld [vmem:[#allocation19 + $0x18] sm:$0xff] }
 0x409   :  { %803 = vmatpush.bf16.msrb.mxu0 %v2477_v5 }
 0x40a   :  { %v692_v23 = vmul.f32 %v690_v22, %v690_v22 }
 0x40c   :  { %v694_v24 = vsel %vm325_vm1, %v692_v23, 0.0 }
 0x40d   :  { %695 = vadd.xlane.f32.xlu1 %v694_v24  ;;  %v680_v25 = vpop.xlane.xlu0 %679  ;;  %804 = vmatpush.bf16.msrb.mxu0 %v2476_v7 }
 0x40e   :  { %v689_v26 = vmul.f32 %v3262_v19, %v680_v25 }
 0x410   :  { %v691_v27 = vsub.f32 %v672_v11, %v689_v26  ;;  %v2478_v11 = vld [vmem:[#allocation19 + $0x20] sm:$0xff] }
 0x412   :  { %v693_v28 = vmul.f32 %v691_v27, %v691_v27 }
 0x414   :  { %v697_v29 = vsel %vm325_vm1, %v693_v28, 0.0 }
 0x415   :  { %698 = vadd.xlane.f32.xlu1 %v697_v29 }
 0x480   :  { %v696_v30 = vpop.xlane.xlu1 %695 }
 0x481   :  { %v700_v31 = vmul.f32 %v696_v30, %v3262_v19 }
 0x483   :  { %v702_v32 = vadd.f32 1e-05, %v700_v31 }
 0x485   :  { %2594 = vrsqrt.f32 %v702_v32  ;;  %vm710_vm6 = vweird.f32 %v702_v32 }
 0x488   :  { %v699_v33 = vpop.xlane.xlu1 %698 }
 0x489   :  { %v701_v34 = vmul.f32 %v699_v33, %v3262_v19 }
 0x48b   :  { %v2595_v35 = vpop.eup %2594  ;;  %v703_v36 = vadd.f32 1e-05, %v701_v34 }
 0x48c   :  { %v705_v37 = vmul.f32 %v2595_v35, %v702_v32  ;;  %vm711_vm5 = vweird.f32 %v2595_v35 }
 0x48d   :  { %2596 = vrsqrt.f32 %v703_v36  ;;  %vm712_vm7 = vmor %vm710_vm6, %vm711_vm5  ;;  %vm720_vm9 = vweird.f32 %v703_v36 }
 0x48e   :  { %v706_v40 = vmul.f32 %v2595_v35, %v705_v37 }
 0x490   :  { %v707_v41 = vmul.f32 0.5, %v706_v40 }
 0x492   :  { %v708_v45 = vsub.f32 1.5, %v707_v41 }
 0x493   :  { %v2597_v46 = vpop.eup %2596 }
 0x494   :  { %v709_v47 = vmul.f32 %v2595_v35, %v708_v45  ;;  %v715_v48 = vmul.f32 %v2597_v46, %v703_v36  ;;  %vm721_vm8 = vweird.f32 %v2597_v46 }
 0x495   :  { %vm722_vm10 = vmor %vm720_vm9, %vm721_vm8 }
 0x496   :  { %v716_v49 = vmul.f32 %v2597_v46, %v715_v48  ;;  %v713_v50 = vsel %vm712_vm7, %v2595_v35, %v709_v47 }
 0x497   :  { %v724_v53 = vmul.f32 %v713_v50, %v690_v22 }
 0x498   :  { %v717_v51 = vmul.f32 0.5, %v716_v49 }
 0x499   :  { %v729_v61 = vmul.f32 %v2570_v54, %v724_v53 }
 0x49a   :  { %v718_v52 = vsub.f32 1.5, %v717_v51 }
 0x49b   :  { %v734_v0 = vadd.f32 %v2571_v62, %v729_v61 }
 0x49c   :  { %v719_v57 = vmul.f32 %v2597_v46, %v718_v52 }
 0x49e   :  { %v723_v58 = vsel %vm722_vm10, %v2597_v46, %v719_v57  ;;  %v2573_v46 = vld [vmem:[%s3533_s27 + $0x1] ss:$0 sm:$0xff] }
 0x49f   :  { %v725_v60 = vmul.f32 %v723_v58, %v691_v27  ;;  %v2572_v27 = vld [vmem:[%s3536_s23] ss:$0 sm:$0xff] }
 0x4a1   :  { %v730_v63 = vmul.f32 %v2570_v54, %v725_v60 }
 0x4a3   :  { %v735_v1 = vadd.f32 %v2571_v62, %v730_v63 }
 0x4a5   :  { %v751_v2 = vpack.c.bf16 %v735_v1, %v734_v0 }
 0x4a7   :  { %759 = vmatpush.bf16.msra.mxu3 %v751_v2  ;;  %774 = vmatpush.bf16.msrb.mxu2 %v751_v2 }
 0x4aa   :  { %2230 = vmatmul.msk.bf16.vlgmr.msra.gmra.mxu3 %vm383_vm0, %v3227_v42  ;;  %2231 = vmatmul.msk.bf16.vlgmr.msrb.gmra.mxu2 %vm383_vm0, %v3230_v43 }
 0x4ab   :  { %847 = vmatpush.bf16.msrb.mxu3 %v751_v2  ;;  %876 = vmatpush.bf16.msra.mxu2 %v2479_v9  ;;  %v2972_v2 = vmov 0  }
 0x4ac   :  { %2562 = vset.pattern.permute.xlu0 %v2972_v2  ;;  %2563 = vset.pattern.permute.xlu1 %v2972_v2 }
 0x4ad   :  { %2564 = vset.pattern.permute.xlu2 %v2972_v2 }
 0x4af   :  { %1053 = vmatpush.bf16.msra.mxu3 %v2483_v3  ;;  %877 = vmatpush.bf16.msra.mxu2 %v2478_v11 }
 0x4b3   :  { %1054 = vmatpush.bf16.msra.mxu3 %v2482_v4  ;;  %1079 = vmatpush.bf16.msrb.mxu2 %v2487_v14 }
 0x4b7   :  { %1080 = vmatpush.bf16.msrb.mxu2 %v2486_v15 }
 0x4ba   :  { %2250 = vmatmul.msk.bf16.vlgmr.msrb.gmra.mxu3 %vm383_vm0, %v3237_v44 }
 0x4ca   :  { %2299 = vmatmul.msk.bf16.vlgmr.msra.gmra.mxu3 %vm325_vm1, %v3247_v55 }
 0x52d   :  { %v761_v13 = vpop.f32.mrf.mxu3  ;;  %v776_v55 = vpop.f32.mrf.mxu2 }
 0x535   :  { %v763_v16 = vpop.f32.mrf.mxu3  ;;  %v778_v17 = vpop.f32.mrf.mxu2 }
 0x536   :  { %v766_v18 = vpack.c.bf16 %v763_v16, %v761_v13  ;;  %v781_v20 = vpack.c.bf16 %v778_v17, %v776_v55 }
 0x538   :  { %2240 = vmatmul.msk.bf16.vlgmr.msrb.gmra.mxu0 %vm325_vm1, %v781_v20  ;;  %2249 = vmatmul.msk.bf16.vlgmr.msrb.gmra.mxu1 %vm325_vm1, %v766_v18 }
 0x53d   :  { %v849_v21 = vpop.f32.mrf.mxu3 }
 0x545   :  { %v851_v22 = vpop.f32.mrf.mxu3 }
 0x546   :  { %v854_v23 = vpack.c.bf16 %v851_v22, %v849_v21  ;;  %v1415_v21 = vld [vmem:[%s3537_s28] sm:$0xff]  ;;  %v1416_v22 = vld [vmem:[%s3537_s28 + $0x8] sm:$0xff] }
 0x548   :  { %2259 = vmatmul.msk.bf16.vlgmr.msra.gmra.mxu2 %vm325_vm1, %v854_v23  ;;  %2290 = vmatmul.msk.bf16.vlgmr.msra.gmra.mxu1 %vm325_vm1, %v3249_v56  ;;  %v2481_v23 = vld [vmem:[%s3538_s6 + $0x8] sm:$0xff] }
 0x549   :  { %979 = vmatpush.bf16.msra.mxu0 %v2481_v23 }
 0x558   :  { %2308 = vmatmul.msk.bf16.vlgmr.msrb.gmra.mxu2 %vm325_vm1, %v3255_v59  ;;  %v1056_v59 = vpop.f32.mrf.mxu3 }
 0x560   :  { %v1058_v53 = vpop.f32.mrf.mxu3 }
 0x5b5   :  { %v835_v24 = vpop.f32.mrf.mxu1  ;;  %v806_v25 = vpop.f32.mrf.mxu0 }
 0x5b6   :  { %v836_v26 = vadd.f32 %v835_v24, %v806_v25 }
 0x5bd   :  { %v837_v28 = vpop.f32.mrf.mxu1  ;;  %v808_v32 = vpop.f32.mrf.mxu0 }
 0x5be   :  { %v838_v34 = vadd.f32 %v837_v28, %v808_v32 }
 0x5c5   :  { %v1030_v37 = vpop.f32.mrf.mxu1 }
 0x5c6   :  { %v1057_v45 = vadd.f32 %v1056_v59, %v1030_v37 }
 0x5cb   :  { %v879_v29 = vpop.f32.mrf.mxu2 }
 0x5cc   :  { %v884_v30 = vadd.f32 %v879_v29, %v836_v26  ;;  %v2480_v26 = vld [vmem:[%s3538_s6] sm:$0xff] }
 0x5cd   :  { %v1032_v51 = vpop.f32.mrf.mxu1  ;;  %980 = vmatpush.bf16.msra.mxu0 %v2480_v26  ;;  %v2576_v26 = vld [vmem:[%s3534_s22 + $0x1] ss:$0 sm:$0xff] }
 0x5ce   :  { %v889_v31 = vadd.f32 %v2572_v27, %v884_v30  ;;  %v1059_v54 = vadd.f32 %v1058_v53, %v1032_v51  ;;  %v2578_v51 = vld [vmem:[#allocation2] ss:$0 sm:$0xff] }
 0x5cf   :  { %v2574_v53 = vld [vmem:[%s3539_s1] ss:$0 sm:$0xff] }
 0x5d0   :  { %v891_v33 = vmax.f32 %v889_v31, 0.0 }
 0x5d2   :  { %v895_v35 = vsel %vm325_vm1, %v891_v33, 0.0 }
 0x5d3   :  { %v881_v36 = vpop.f32.mrf.mxu2  ;;  %896 = vadd.xlane.f32.xlu2 %v895_v35 }
 0x5d4   :  { %v885_v56 = vadd.f32 %v881_v36, %v838_v34 }
 0x5d6   :  { %v890_v40 = vadd.f32 %v2572_v27, %v885_v56 }
 0x5d8   :  { %v892_v41 = vmax.f32 %v890_v40, 0.0 }
 0x5da   :  { %v898_v47 = vsel %vm325_vm1, %v892_v41, 0.0 }
 0x5db   :  { %v1082_v48 = vpop.f32.mrf.mxu2  ;;  %899 = vadd.xlane.f32.xlu2 %v898_v47 }
 0x5dc   :  { %v1087_v49 = vadd.f32 %v1082_v48, %v1057_v45 }
 0x5de   :  { %v1092_v50 = vadd.f32 %v2573_v46, %v1087_v49 }
 0x5e0   :  { %v1094_v52 = vmax.f32 %v1092_v50, 0.0 }
 0x5e2   :  { %v1100_v57 = vsel %vm325_vm1, %v1094_v52, 0.0 }
 0x5e3   :  { %v1084_v58 = vpop.f32.mrf.mxu2  ;;  %1101 = vadd.xlane.f32.xlu0 %v1100_v57 }
 0x5e4   :  { %v1088_v60 = vadd.f32 %v1084_v58, %v1059_v54 }
 0x5e6   :  { %v1093_v61 = vadd.f32 %v2573_v46, %v1088_v60 }
 0x5e8   :  { %v1095_v62 = vmax.f32 %v1093_v61, 0.0 }
 0x5ea   :  { %v1103_v63 = vsel %vm325_vm1, %v1095_v62, 0.0 }
 0x5eb   :  { %1104 = vadd.xlane.f32.xlu1 %v1103_v63 }
 0x646   :  { %v897_v0 = vpop.xlane.xlu2 %896 }
 0x647   :  { %v901_v1 = vmul.f32 %v897_v0, %v3262_v19 }
 0x649   :  { %v3303_v3 = vsub.f32 %v891_v33, %v901_v1 }
 0x64b   :  { %v905_v4 = vmul.f32 %v3303_v3, %v3303_v3 }
 0x64d   :  { %v907_v5 = vsel %vm325_vm1, %v905_v4, 0.0  ;;  %v2575_v4 = vld [vmem:[%s3540_s10] ss:$0 sm:$0xff] }
 0x64e   :  { %908 = vadd.xlane.f32.xlu2 %v907_v5  ;;  %v900_v6 = vpop.xlane.xlu2 %899 }
 0x64f   :  { %v902_v7 = vmul.f32 %v900_v6, %v3262_v19 }
 0x651   :  { %v3309_v8 = vsub.f32 %v892_v41, %v902_v7 }
 0x653   :  { %v906_v9 = vmul.f32 %v3309_v8, %v3309_v8 }
 0x655   :  { %v910_v10 = vsel %vm325_vm1, %v906_v9, 0.0 }
 0x656   :  { %v1102_v11 = vpop.xlane.xlu0 %1101  ;;  %911 = vadd.xlane.f32.xlu0 %v910_v10 }
 0x657   :  { %v1106_v12 = vmul.f32 %v1102_v11, %v3262_v19 }
 0x659   :  { %v3315_v13 = vsub.f32 %v1094_v52, %v1106_v12 }
 0x65b   :  { %v1110_v55 = vmul.f32 %v3315_v13, %v3315_v13 }
 0x65d   :  { %v1112_v14 = vsel %vm325_vm1, %v1110_v55, 0.0 }
 0x65e   :  { %1113 = vadd.xlane.f32.xlu1 %v1112_v14  ;;  %v1105_v15 = vpop.xlane.xlu1 %1104 }
 0x65f   :  { %v1107_v16 = vmul.f32 %v1105_v15, %v3262_v19 }
 0x661   :  { %v3321_v17 = vsub.f32 %v1095_v62, %v1107_v16 }
 0x663   :  { %v1111_v18 = vmul.f32 %v3321_v17, %v3321_v17 }
 0x665   :  { %v1115_v20 = vsel %vm325_vm1, %v1111_v18, 0.0 }
 0x666   :  { %1116 = vadd.xlane.f32.xlu2 %v1115_v20 }
 0x66a   :  { %1420 = vperm.xlu0 %2562, %v1415_v21  }
 0x677   :  { %1425 = vperm.xlu1 %2563, %v1416_v22  }
 0x6c1   :  { %v909_v24 = vpop.xlane.xlu2 %908 }
 0x6c2   :  { %v913_v25 = vmul.f32 %v909_v24, %v3262_v19 }
 0x6c4   :  { %v915_v27 = vadd.f32 1e-05, %v913_v25 }
 0x6c6   :  { %2598 = vrsqrt.f32 %v915_v27  ;;  %vm923_vm12 = vweird.f32 %v915_v27 }
 0x6c9   :  { %v912_v28 = vpop.xlane.xlu0 %911 }
 0x6ca   :  { %v914_v29 = vmul.f32 %v912_v28, %v3262_v19 }
 0x6cc   :  { %v2599_v30 = vpop.eup %2598  ;;  %v916_v31 = vadd.f32 1e-05, %v914_v29 }
 0x6cd   :  { %v918_v32 = vmul.f32 %v2599_v30, %v915_v27  ;;  %vm924_vm11 = vweird.f32 %v2599_v30 }
 0x6ce   :  { %2600 = vrsqrt.f32 %v916_v31  ;;  %vm925_vm13 = vmor %vm923_vm12, %vm924_vm11  ;;  %vm933_vm2 = vweird.f32 %v916_v31  ;;  %vm989_vm12 = vcmask 7168  }
 0x6cf   :  { %v919_v33 = vmul.f32 %v2599_v30, %v918_v32 }
 0x6d1   :  { %v920_v34 = vmul.f32 0.5, %v919_v33  ;;  %v1114_v35 = vpop.xlane.xlu1 %1113 }
 0x6d2   :  { %v1118_v36 = vmul.f32 %v1114_v35, %v3262_v19  ;;  %v2577_v35 = vld [vmem:[%s3535_s18 + $0x1] ss:$0 sm:$0xff] }
 0x6d3   :  { %v921_v56 = vsub.f32 1.5, %v920_v34 }
 0x6d4   :  { %v2601_v37 = vpop.eup %2600  ;;  %v1120_v40 = vadd.f32 1e-05, %v1118_v36 }
 0x6d5   :  { %v922_v59 = vmul.f32 %v2599_v30, %v921_v56  ;;  %v928_v41 = vmul.f32 %v2601_v37, %v916_v31  ;;  %vm934_vm14 = vweird.f32 %v2601_v37 }
 0x6d6   :  { %2602 = vrsqrt.f32 %v1120_v40  ;;  %vm935_vm4 = vmor %vm933_vm2, %vm934_vm14  ;;  %vm1128_vm6 = vweird.f32 %v1120_v40 }
 0x6d7   :  { %v929_v45 = vmul.f32 %v2601_v37, %v928_v41  ;;  %v926_v46 = vsel %vm925_vm13, %v2599_v30, %v922_v59  ;;  %v2491_v41 = vld [vmem:[#allocation19 + $0x48] sm:$0xff] }
 0x6d8   :  { %v937_v54 = vmul.f32 %v926_v46, %v3303_v3  ;;  %1223 = vmatpush.bf16.msrb.mxu3 %v2491_v41  ;;  %v2490_v46 = vld [vmem:[#allocation19 + $0x40] sm:$0xff] }
 0x6d9   :  { %v930_v47 = vmul.f32 0.5, %v929_v45  ;;  %v1117_v48 = vpop.xlane.xlu2 %1116  ;;  %v2489_v45 = vld [vmem:[#allocation19 + $0x38] sm:$0xff] }
 0x6da   :  { %v1119_v49 = vmul.f32 %v1117_v48, %v3262_v19  ;;  %v942_v5 = vmul.f32 %v2574_v53, %v937_v54  ;;  %1252 = vmatpush.bf16.msra.mxu2 %v2489_v45  ;;  %v2579_v48 = vld [vmem:[%s3541_s8] ss:$0 sm:$0xff] }
 0x6db   :  { %v931_v50 = vsub.f32 1.5, %v930_v47  ;;  %v2488_v47 = vld [vmem:[#allocation19 + $0x30] sm:$0xff] }
 0x6dc   :  { %v2603_v52 = vpop.eup %2602  ;;  %v1121_v57 = vadd.f32 1e-05, %v1119_v49  ;;  %v1421_v58 = vpop.permute.xlu0 %1420  ;;  %v947_v55 = vadd.f32 %v2575_v4, %v942_v5  ;;  %1224 = vmatpush.bf16.msrb.mxu3 %v2490_v46  ;;  %v3355_v49 = vld [vmem:[%s3542_s11] sm:$0xff] }
 0x6dd   :  { %v932_v60 = vmul.f32 %v2601_v37, %v931_v50  ;;  %v1123_v61 = vmul.f32 %v2603_v52, %v1120_v40  ;;  %vm1431_vm3 = vcmp.ge.f32.partialorder %v1421_v58, %v2578_v51  ;;  %vm1129_vm5 = vweird.f32 %v2603_v52 }
 0x6de   :  { %2604 = vrsqrt.f32 %v1121_v57  ;;  %v1433_v62 = vsel %vm1431_vm3, 1, %v2972_v2  ;;  %vm1130_vm7 = vmor %vm1128_vm6, %vm1129_vm5  ;;  %vm1138_vm10 = vweird.f32 %v1121_v57  ;;  %1253 = vmatpush.bf16.msra.mxu2 %v2488_v47 }
 0x6df   :  { %v936_v63 = vsel %vm935_vm4, %v2601_v37, %v932_v60  ;;  %v1124_v0 = vmul.f32 %v2603_v52, %v1123_v61  ;;  %v1436_v1 = vsel %vm1435_vm15, %v1433_v62, 0  ;;  %v2492_v61 = vld [vmem:[#allocation19 + $0x50] sm:$0xff]  ;;  %v1471_v62 = vld [vmem:[#allocation7 + $0x8] sm:$0xff] }
 0x6e0   :  { %v938_v6 = vmul.f32 %v936_v63, %v3309_v8  ;;  %v1438_v3 = vshrl.u32 %v1436_v1, 16  ;;  %v1437_v24 = vand.u32 65535, %v1436_v1 }
 0x6e1   :  { %v1125_v7 = vmul.f32 0.5, %v1124_v0  ;;  %v1470_v0 = vld [vmem:[#allocation7] sm:$0xff] }
 0x6e2   :  { %v943_v9 = vmul.f32 %v2574_v53, %v938_v6  ;;  %v1440_v10 = vcvt.s32.f32 %v1438_v3  ;;  %v1439_v29 = vcvt.s32.f32 %v1437_v24  ;;  %v2493_v53 = vld [vmem:[#allocation19 + $0x58] sm:$0xff]  ;;  %1492 = vmatpush.msrb.mxu2 %v1471_v62 }
 0x6e3   :  { %v1126_v11 = vsub.f32 1.5, %v1125_v7 }
 0x6e4   :  { %v2605_v12 = vpop.eup %2604  ;;  %v948_v14 = vadd.f32 %v2575_v4, %v943_v9  ;;  %1443 = vadd.xlane.f32.xlu2 %v1440_v10  ;;  %1493 = vmatpush.msrb.mxu2 %v1470_v0  ;;  %v2497_v0 = vld [vmem:[%s3532_s24 + $0x68] sm:$0xff] }
 0x6e5   :  { %v1127_v15 = vmul.f32 %v2603_v52, %v1126_v11  ;;  %v1133_v16 = vmul.f32 %v2605_v12, %v1121_v57  ;;  %vm1139_vm8 = vweird.f32 %v2605_v12  ;;  %v3361_v57 = vld [vmem:[%s3542_s11 + $0x8] sm:$0xff] }
 0x6e6   :  { %v949_v18 = vpack.c.bf16 %v948_v14, %v947_v55  ;;  %vm1140_vm11 = vmor %vm1138_vm10, %vm1139_vm8  ;;  %v1462_v55 = vlaneseq }
 0x6e7   :  { %v1134_v20 = vmul.f32 %v2605_v12, %v1133_v16  ;;  %v1131_v8 = vsel %vm1130_vm7, %v2603_v52, %v1127_v15 }
 0x6e8   :  { %2268 = vmatmul.msk.bf16.vlgmr.msra.gmra.mxu0 %vm325_vm1, %v949_v18  ;;  %v1142_v25 = vmul.f32 %v1131_v8, %v3315_v13  ;;  %v3368_v16 = vand.u32 127, %v1462_v55  ;;  %v2499_v55 = vld [vmem:[%s3532_s24 + $0x78] sm:$0xff] }
 0x6e9   :  { %v1135_v21 = vmul.f32 0.5, %v1134_v20  ;;  %v1426_v23 = vpop.permute.xlu1 %1425 }
 0x6ea   :  { %vm1432_vm9 = vcmp.ge.f32.partialorder %v1426_v23, %v2578_v51  ;;  %v1147_v34 = vmul.f32 %v2576_v26, %v1142_v25  ;;  %v2973_v23 = vmov 0.0  }
 0x6eb   :  { %v1136_v22 = vsub.f32 1.5, %v1135_v21  ;;  %v1434_v28 = vsel %vm1432_vm9, 1, %v2972_v2 }
 0x6ec   :  { %v1449_v30 = vsel %vm1435_vm15, %v1434_v28, 0  ;;  %1441 = vadd.xlane.f32.xlu2 %v1439_v29  ;;  %v1152_v13 = vadd.f32 %v2577_v35, %v1147_v34 }
 0x6ed   :  { %v1137_v27 = vmul.f32 %v2605_v12, %v1136_v22  ;;  %v1451_v32 = vshrl.u32 %v1449_v30, 16  ;;  %v1450_v59 = vand.u32 65535, %v1449_v30 }
 0x6ef   :  { %v1141_v31 = vsel %vm1140_vm11, %v2605_v12, %v1137_v27  ;;  %v1453_v56 = vcvt.s32.f32 %v1451_v32 }
 0x6f0   :  { %v1143_v33 = vmul.f32 %v1141_v31, %v3321_v17  ;;  %v1452_v17 = vcvt.s32.f32 %v1450_v59 }
 0x6f2   :  { %v1148_v36 = vmul.f32 %v2576_v26, %v1143_v33  ;;  %v2580_v33 = vld [vmem:[%s3536_s23 + $0x1] ss:$0 sm:$0xff] }
 0x6f4   :  { %v1153_v37 = vadd.f32 %v2577_v35, %v1148_v36  ;;  %1456 = vadd.xlane.f32.xlu2 %v1453_v56 }
 0x6f6   :  { %v1171_v40 = vpack.c.bf16 %v1153_v37, %v1152_v13 }
 0x6f8   :  { %1179 = vmatpush.bf16.msrb.mxu0 %v1171_v40  ;;  %1194 = vmatpush.bf16.msrb.mxu1 %v1171_v40 }
 0x6fb   :  { %2312 = vmatmul.msk.bf16.vlgmr.msrb.gmra.mxu0 %vm383_vm0, %v3227_v42  ;;  %2313 = vmatmul.msk.bf16.vlgmr.msrb.gmra.mxu1 %vm383_vm0, %v3230_v43 }
 0x6fc   :  { %1267 = vmatpush.bf16.msra.mxu0 %v1171_v40  ;;  %1454 = vadd.xlane.f32.xlu2 %v1452_v17 }
 0x6fd   :  { %1296 = vmatpush.bf16.msra.mxu1 %v2493_v53 }
 0x701   :  { %1297 = vmatpush.bf16.msra.mxu1 %v2492_v61 }
 0x70b   :  { %2332 = vmatmul.msk.bf16.vlgmr.msra.gmra.mxu0 %vm383_vm0, %v3237_v44 }
 0x757   :  { %v1444_v54 = vpop.xlane.xlu2 %1443 }
 0x758   :  { %v1446_v9 = vcvt.f32.s32 %v1444_v54 }
 0x75a   :  { %v1447_v12 = vshll.u32 %v1446_v9, 16  ;;  %v2494_v9 = vld [vmem:[%s3538_s6 + $0x10] sm:$0xff] }
 0x75f   :  { %v1442_v1 = vpop.xlane.xlu2 %1441 }
 0x760   :  { %v1445_v14 = vcvt.f32.s32 %v1442_v1  ;;  %v2496_v1 = vld [vmem:[%s3532_s24 + $0x60] sm:$0xff] }
 0x762   :  { %v1448_v18 = vadd.s32 %v1447_v12, %v1445_v14  ;;  %v2501_v12 = vld [vmem:[%s3532_s24 + $0x88] sm:$0xff] }
 0x764   :  { %vm1464_vm13 = vcmp.eq.s32.totalorder %v1448_v18, %v3368_v16 }
 0x765   :  { %v982_v50 = vpop.f32.mrf.mxu0  ;;  %v2358_v24 = vsel %vm1464_vm13, 1.0, %v2973_v23 }
 0x766   :  { %v983_v51 = vadd.f32 %v2579_v48, %v982_v50 }
 0x767   :  { %v1457_v6 = vpop.xlane.xlu2 %1456 }
 0x768   :  { %v987_v52 = vmul.f32 %v983_v51, %v3355_v49  ;;  %v1459_v20 = vcvt.f32.s32 %v1457_v6  ;;  %v2495_v6 = vld [vmem:[%s3538_s6 + $0x18] sm:$0xff] }
 0x769   :  { %1403 = vmatpush.bf16.msra.mxu3 %v2495_v6 }
 0x76a   :  { %990 = vst.msk [vmem:[%s3133_s17] sm:$0xff] %vm989_vm12, %v987_v52  ;;  %v1460_v21 = vshll.u32 %v1459_v20, 16  ;;  %v2498_v20 = vld [vmem:[%s3532_s24 + $0x70] sm:$0xff] }
 0x76d   :  { %v984_v58 = vpop.f32.mrf.mxu0  ;;  %1404 = vmatpush.bf16.msra.mxu3 %v2494_v9 }
 0x76e   :  { %v985_v60 = vadd.f32 %v2579_v48, %v984_v58 }
 0x76f   :  { %v1455_v8 = vpop.xlane.xlu2 %1454 }
 0x770   :  { %v988_v63 = vmul.f32 %v985_v60, %v3361_v57  ;;  %v1458_v22 = vcvt.f32.s32 %v1455_v8 }
 0x772   :  { %991 = vst.msk [vmem:[%s3133_s17 + $0x8] sm:$0xff] %vm989_vm12, %v988_v63  ;;  %v1461_v27 = vadd.s32 %v1460_v21, %v1458_v22  ;;  %s3543_s17 = sld [smem:[#allocation32_spill]] }
 0x774   :  { %vm1465_vm14 = vcmp.eq.s32.totalorder %v1461_v27, %v3368_v16 }
 0x775   :  { %v2359_v28 = vsel %vm1465_vm14, 1.0, %v2973_v23 }
 0x778   :  { %v1181_v4 = vpop.f32.mrf.mxu0  ;;  %v1196_v5 = vpop.f32.mrf.mxu1 }
 0x780   :  { %v1183_v3 = vpop.f32.mrf.mxu0  ;;  %v1198_v7 = vpop.f32.mrf.mxu1 }
 0x781   :  { %v1186_v10 = vpack.c.bf16 %v1183_v3, %v1181_v4  ;;  %v1201_v11 = vpack.c.bf16 %v1198_v7, %v1196_v5 }
 0x783   :  { %2322 = vmatmul.msk.bf16.vlgmr.msrb.gmra.mxu3 %vm325_vm1, %v1201_v11  ;;  %2331 = vmatmul.msk.bf16.vlgmr.msra.gmra.mxu2 %vm325_vm1, %v1186_v10 }
 0x784   :  { %1601 = vmatpush.bf16.msra.mxu2 %v2497_v0  ;;  %1572 = vmatpush.bf16.msrb.mxu3 %v2499_v55  ;;  %v2585_v0 = vld [vmem:[%s3533_s27 + $0x2] ss:$0 sm:$0xff] }
 0x788   :  { %v1269_v15 = vpop.f32.mrf.mxu0  ;;  %1602 = vmatpush.bf16.msra.mxu2 %v2496_v1  ;;  %1573 = vmatpush.bf16.msrb.mxu3 %v2498_v20 }
 0x790   :  { %v1271_v25 = vpop.f32.mrf.mxu0 }
 0x791   :  { %v1274_v26 = vpack.c.bf16 %v1271_v25, %v1269_v15  ;;  %v2500_v15 = vld [vmem:[%s3532_s24 + $0x80] sm:$0xff] }
 0x793   :  { %2341 = vmatmul.msk.bf16.vlgmr.msra.gmra.mxu1 %vm325_vm1, %v1274_v26  ;;  %2360 = vmatmul.msk.f32.vlgmr.msrb.gmra.mxu2 %vm383_vm0, %v2358_v24 }
 0x79b   :  { %2361 = vmatmul.msk.f32.gmra.mxu2 %vm383_vm0, %v2359_v28 }
 0x806   :  { %v1255_v29 = vpop.f32.mrf.mxu2  ;;  %v1226_v30 = vpop.f32.mrf.mxu3 }
 0x807   :  { %v1256_v32 = vadd.f32 %v1255_v29, %v1226_v30 }
 0x80e   :  { %v1257_v31 = vpop.f32.mrf.mxu2  ;;  %v1228_v56 = vpop.f32.mrf.mxu3 }
 0x80f   :  { %v1258_v40 = vadd.f32 %v1257_v31, %v1228_v56 }
 0x810   :  { %v1299_v34 = vpop.f32.mrf.mxu1 }
 0x811   :  { %v1304_v35 = vadd.f32 %v1299_v34, %v1256_v32 }
 0x813   :  { %v1309_v36 = vadd.f32 %v2580_v33, %v1304_v35 }
 0x815   :  { %v1311_v13 = vmax.f32 %v1309_v36, 0.0  ;;  %v2581_v36 = vld [vmem:[%s3539_s1 + $0x1] ss:$0 sm:$0xff] }
 0x816   :  { %v1495_v37 = vpop.f32.mrf.mxu2 }
 0x817   :  { %v1317_v59 = vsel %vm325_vm1, %v1311_v13, 0.0  ;;  %v3380_v48 = vadd.f32 %v1495_v37, %v3219_v38 }
 0x818   :  { %v1301_v17 = vpop.f32.mrf.mxu1  ;;  %1318 = vadd.xlane.f32.xlu1 %v1317_v59 }
 0x819   :  { %v1305_v41 = vadd.f32 %v1301_v17, %v1258_v40  ;;  %v2582_v40 = vld [vmem:[%s3540_s10 + $0x1] ss:$0 sm:$0xff] }
 0x81b   :  { %v1310_v45 = vadd.f32 %v2580_v33, %v1305_v41 }
 0x81d   :  { %v1312_v46 = vmax.f32 %v1310_v45, 0.0 }
 0x81e   :  { %v1498_v47 = vpop.f32.mrf.mxu2 }
 0x81f   :  { %v3383_v50 = vadd.f32 %v1498_v47, %v3221_v39  ;;  %v1320_v51 = vsel %vm325_vm1, %v1312_v46, 0.0 }
 0x820   :  { %1321 = vadd.xlane.f32.xlu2 %v1320_v51 }
 0x821   :  { %v1520_v52 = vpack.c.bf16 %v3383_v50, %v3380_v48 }
 0x823   :  { %1528 = vmatpush.bf16.msrb.mxu0 %v1520_v52  ;;  %1543 = vmatpush.bf16.msrb.mxu1 %v1520_v52 }
 0x826   :  { %2375 = vmatmul.msk.bf16.vlgmr.msrb.gmra.mxu0 %vm383_vm0, %v3227_v42  ;;  %2376 = vmatmul.msk.bf16.vlgmr.msrb.gmra.mxu1 %vm383_vm0, %v3230_v43 }
 0x827   :  { %1616 = vmatpush.bf16.msra.mxu0 %v1520_v52  ;;  %1645 = vmatpush.bf16.msra.mxu1 %v2501_v12 }
 0x82b   :  { %1646 = vmatpush.bf16.msra.mxu1 %v2500_v15 }
 0x836   :  { %2395 = vmatmul.msk.bf16.vlgmr.msra.gmra.mxu0 %vm383_vm0, %v3237_v44  ;;  %v1982_v44 = vld [vmem:[%s3543_s17 + $0x8] sm:$0xff] }
 0x88b   :  { %v1319_v38 = vpop.xlane.xlu1 %1318 }
 0x88c   :  { %v1323_v39 = vmul.f32 %v1319_v38, %v3262_v19 }
 0x88e   :  { %v1325_v53 = vsub.f32 %v1311_v13, %v1323_v39  ;;  %v2584_v39 = vld [vmem:[%s3541_s8 + $0x1] ss:$0 sm:$0xff] }
 0x890   :  { %v1327_v54 = vmul.f32 %v1325_v53, %v1325_v53 }
 0x892   :  { %v1329_v58 = vsel %vm325_vm1, %v1327_v54, 0.0 }
 0x893   :  { %1330 = vadd.xlane.f32.xlu0 %v1329_v58  ;;  %v1322_v60 = vpop.xlane.xlu2 %1321 }
 0x894   :  { %v1324_v42 = vmul.f32 %v1322_v60, %v3262_v19 }
 0x896   :  { %v1326_v61 = vsub.f32 %v1312_v46, %v1324_v42 }
 0x898   :  { %v1328_v62 = vmul.f32 %v1326_v61, %v1326_v61 }
 0x89a   :  { %v1332_v43 = vsel %vm325_vm1, %v1328_v62, 0.0 }
 0x89b   :  { %1333 = vadd.xlane.f32.xlu2 %v1332_v43 }
 0x8a3   :  { %v1530_v63 = vpop.f32.mrf.mxu0  ;;  %v1545_v51 = vpop.f32.mrf.mxu1 }
 0x8a7   :  { %1991 = vperm.xlu0 %2562, %v1982_v44  }
 0x8ab   :  { %v1532_v4 = vpop.f32.mrf.mxu0  ;;  %v1547_v52 = vpop.f32.mrf.mxu1 }
 0x8ac   :  { %v1535_v5 = vpack.c.bf16 %v1532_v4, %v1530_v63  ;;  %v1550_v38 = vpack.c.bf16 %v1547_v52, %v1545_v51  ;;  %v2586_v51 = vld [vmem:[%s3534_s22 + $0x2] ss:$0 sm:$0xff] }
 0x8ae   :  { %2394 = vmatmul.msk.bf16.vlgmr.msra.gmra.mxu2 %vm325_vm1, %v1535_v5 }
 0x8b3   :  { %v1618_v11 = vpop.f32.mrf.mxu0 }
 0x8bb   :  { %v1620_v24 = vpop.f32.mrf.mxu0 }
 0x8bc   :  { %v1623_v25 = vpack.c.bf16 %v1620_v24, %v1618_v11 }
 0x8be   :  { %2404 = vmatmul.msk.bf16.vlgmr.msra.gmra.mxu1 %vm325_vm1, %v1623_v25 }
 0x906   :  { %v1331_v3 = vpop.xlane.xlu0 %1330 }
 0x907   :  { %v1335_v7 = vmul.f32 %v1331_v3, %v3262_v19 }
 0x909   :  { %v1337_v10 = vadd.f32 1e-05, %v1335_v7 }
 0x90b   :  { %2606 = vrsqrt.f32 %v1337_v10  ;;  %vm1345_vm3 = vweird.f32 %v1337_v10 }
 0x90e   :  { %v1334_v14 = vpop.xlane.xlu2 %1333 }
 0x90f   :  { %v1336_v18 = vmul.f32 %v1334_v14, %v3262_v19 }
 0x911   :  { %v2607_v8 = vpop.eup %2606  ;;  %v1338_v21 = vadd.f32 1e-05, %v1336_v18 }
 0x912   :  { %v1340_v22 = vmul.f32 %v2607_v8, %v1337_v10  ;;  %vm1346_vm2 = vweird.f32 %v2607_v8 }
 0x913   :  { %2608 = vrsqrt.f32 %v1338_v21  ;;  %vm1347_vm4 = vmor %vm1345_vm3, %vm1346_vm2  ;;  %vm1355_vm6 = vweird.f32 %v1338_v21 }
 0x914   :  { %v1341_v26 = vmul.f32 %v2607_v8, %v1340_v22 }
 0x916   :  { %v1342_v27 = vmul.f32 0.5, %v1341_v26 }
 0x918   :  { %v1343_v28 = vsub.f32 1.5, %v1342_v27 }
 0x919   :  { %v2609_v29 = vpop.eup %2608 }
 0x91a   :  { %v1344_v30 = vmul.f32 %v2607_v8, %v1343_v28  ;;  %v1350_v31 = vmul.f32 %v2609_v29, %v1338_v21  ;;  %vm1356_vm5 = vweird.f32 %v2609_v29 }
 0x91b   :  { %vm1357_vm7 = vmor %vm1355_vm6, %vm1356_vm5 }
 0x91c   :  { %v1351_v32 = vmul.f32 %v2609_v29, %v1350_v31  ;;  %v1348_v33 = vsel %vm1347_vm4, %v2607_v8, %v1344_v30 }
 0x91d   :  { %v1359_v56 = vmul.f32 %v1348_v33, %v1325_v53 }
 0x91e   :  { %v1352_v34 = vmul.f32 0.5, %v1351_v32 }
 0x91f   :  { %v1364_v59 = vmul.f32 %v2581_v36, %v1359_v56 }
 0x920   :  { %v1353_v35 = vsub.f32 1.5, %v1352_v34 }
 0x921   :  { %v1369_v45 = vadd.f32 %v2582_v40, %v1364_v59 }
 0x922   :  { %v1354_v13 = vmul.f32 %v2609_v29, %v1353_v35 }
 0x924   :  { %v1358_v37 = vsel %vm1357_vm7, %v2609_v29, %v1354_v13 }
 0x925   :  { %v1360_v17 = vmul.f32 %v1358_v37, %v1326_v61 }
 0x927   :  { %v1365_v41 = vmul.f32 %v2581_v36, %v1360_v17 }
 0x929   :  { %v1370_v46 = vadd.f32 %v2582_v40, %v1365_v41 }
 0x92b   :  { %v1371_v47 = vpack.c.bf16 %v1370_v46, %v1369_v45 }
 0x92d   :  { %2357 = vmatmul.msk.bf16.vlgmr.msra.gmra.mxu3 %vm325_vm1, %v1371_v47 }
 0x931   :  { %v1604_v62 = vpop.f32.mrf.mxu2 }
 0x939   :  { %v1606_v6 = vpop.f32.mrf.mxu2 }
 0x93b   :  { %v1648_v43 = vpop.f32.mrf.mxu1 }
 0x93d   :  { %2385 = vmatmul.msk.bf16.vlgmr.msrb.gmra.mxu3 %vm325_vm1, %v1550_v38 }
 0x943   :  { %v1650_v10 = vpop.f32.mrf.mxu1 }
 0x9b0   :  { %v1406_v53 = vpop.f32.mrf.mxu3 }
 0x9b1   :  { %v1407_v54 = vadd.f32 %v2584_v39, %v1406_v53 }
 0x9b3   :  { %v1411_v58 = vmul.f32 %v1407_v54, %v3355_v49  ;;  %v2587_v54 = vld [vmem:[%s3535_s18 + $0x2] ss:$0 sm:$0xff] }
 0x9b5   :  { %1413 = vst.msk [vmem:[%s3138_s4] sm:$0xff] %vm989_vm12, %v1411_v58 }
 0x9b8   :  { %v1408_v60 = vpop.f32.mrf.mxu3 }
 0x9b9   :  { %v1409_v42 = vadd.f32 %v2584_v39, %v1408_v60 }
 0x9bb   :  { %v1412_v61 = vmul.f32 %v1409_v42, %v3361_v57 }
 0x9bd   :  { %1414 = vst.msk [vmem:[%s3138_s4 + $0x8] sm:$0xff] %vm989_vm12, %v1412_v61  ;;  %s3544_s4 = sld [smem:[#allocation43_spill]] }
 0x9c0   :  { %v1575_v44 = vpop.f32.mrf.mxu3 }
 0x9c1   :  { %v1605_v63 = vadd.f32 %v1604_v62, %v1575_v44  ;;  %v2618_v62 = vld [vmem:[%s3531_s5] sm:$0xff]  ;;  %v2620_v44 = vld [vmem:[%s3531_s5 + $0x10] sm:$0xff] }
 0x9c3   :  { %v1653_v1 = vadd.f32 %v1648_v43, %v1605_v63  ;;  %v2619_v43 = vld [vmem:[%s3531_s5 + $0x8] sm:$0xff]  ;;  %s2074_s16 = sshll.u32 %s3544_s4, 4  ;;  %s2901_s3 = scalar_lea.hbm %s3544_s4, 16  ;;  %s2075_s16 = int_to_ptr.hbm [resolvable:$true] %s2074_s16 }
 0x9c4   :  { %v2505_v63 = vld [vmem:[#allocation19 + $0x78] sm:$0xff]  ;;  %s2897_s19 = sshra.s32 %s2075_s16, 4  ;;  %s2898_s19 = int_to_ptr.hbm [resolvable:$true] %s2897_s19 }
 0x9c5   :  { %v1658_v4 = vadd.f32 %v2585_v0, %v1653_v1  ;;  %1789 = vmatpush.bf16.msrb.mxu0 %v2505_v63  ;;  %v2504_v1 = vld [vmem:[#allocation19 + $0x70] sm:$0xff]  ;;  %s2899_s0 = scalar_lea.hbm %s2898_s19, 16  ;;  %p2902_p0 = scmp.lt.s32.totalorder %s2898_s19, %s3544_s4 }
 0x9c6   :  { %p2900_p13 = scmp.ne.s32.totalorder %s2898_s19, %s2899_s0  ;;  %p2903_p1 = scmp.lt.s32.totalorder %s2901_s3, %s2899_s0 }
 0x9c7   :  { %v1660_v5 = vmax.f32 %v1658_v4, 0.0  ;;  %v2502_v4 = vld [vmem:[#allocation19 + $0x60] sm:$0xff] }
 0x9c8   :  { %v1577_v3 = vpop.f32.mrf.mxu3  ;;  %p2904_p2 = por %p2903_p1, %p2902_p0 }
 0x9c9   :  { %v1607_v7 = vadd.f32 %v1606_v6, %v1577_v3  ;;  %v1666_v9 = vsel %vm325_vm1, %v1660_v5, 0.0  ;;  %1790 = vmatpush.bf16.msrb.mxu0 %v2504_v1  ;;  %v2506_v6 = vld [vmem:[#allocation19 + $0x80] sm:$0xff]  ;;  %v2033_v1 = vld [vmem:[#allocation8] sm:$0xff] }
 0x9ca   :  { %1667 = vadd.xlane.f32.xlu2 %v1666_v9  ;;  %p2905_p3 = pnand %p2904_p2, %p2900_p13 }
 0x9cb   :  { %v1654_v11 = vadd.f32 %v1650_v10, %v1607_v7 }
 0x9cd   :  { %v1659_v12 = vadd.f32 %v2585_v0, %v1654_v11  ;;  %v2503_v0 = vld [vmem:[#allocation19 + $0x68] sm:$0xff] }
 0x9ce   :  { %1818 = vmatpush.bf16.msrb.mxu1 %v2503_v0  ;;  %v2034_v0 = vld [vmem:[#allocation8 + $0x8] sm:$0xff] }
 0x9cf   :  { %v1661_v55 = vmax.f32 %v1659_v12, 0.0 }
 0x9d1   :  { %v1669_v14 = vsel %vm325_vm1, %v1661_v55, 0.0 }
 0x9d2   :  { %1670 = vadd.xlane.f32.xlu2 %v1669_v14  ;;  %1819 = vmatpush.bf16.msrb.mxu1 %v2502_v4  ;;  %v2509_v4 = vld [vmem:[%s3538_s6 + $0x28] sm:$0xff] }
 0x9d3   :  { %1969 = vmatpush.bf16.msra.mxu0 %v2509_v4 }
 0x9d6   :  { %2055 = vmatpush.msra.mxu1 %v2034_v0 }
 0x9d8   :  { %2056 = vmatpush.msra.mxu1 %v2033_v1 }
 0xa3d   :  { %v1668_v15 = vpop.xlane.xlu2 %1667 }
 0xa3e   :  { %v1672_v18 = vmul.f32 %v1668_v15, %v3262_v19 }
 0xa40   :  { %v1674_v20 = vsub.f32 %v1660_v5, %v1672_v18  ;;  %v2507_v5 = vld [vmem:[#allocation19 + $0x88] sm:$0xff] }
 0xa42   :  { %v1676_v8 = vmul.f32 %v1674_v20, %v1674_v20 }
 0xa44   :  { %v1678_v21 = vsel %vm325_vm1, %v1676_v8, 0.0 }
 0xa45   :  { %1679 = vadd.xlane.f32.xlu2 %v1678_v21  ;;  %v1671_v22 = vpop.xlane.xlu2 %1670  ;;  %v2588_v21 = vld [vmem:[%s3536_s23 + $0x2] ss:$0 sm:$0xff] }
 0xa46   :  { %v1673_v24 = vmul.f32 %v1671_v22, %v3262_v19 }
 0xa48   :  { %v1675_v25 = vsub.f32 %v1661_v55, %v1673_v24 }
 0xa4a   :  { %v1677_v26 = vmul.f32 %v1675_v25, %v1675_v25 }
 0xa4c   :  { %v1681_v27 = vsel %vm325_vm1, %v1677_v26, 0.0 }
 0xa4d   :  { %1682 = vadd.xlane.f32.xlu1 %v1681_v27 }
 0xab8   :  { %v1680_v28 = vpop.xlane.xlu2 %1679 }
 0xab9   :  { %v1684_v29 = vmul.f32 %v1680_v28, %v3262_v19 }
 0xabb   :  { %v1686_v30 = vadd.f32 1e-05, %v1684_v29 }
 0xabd   :  { %2610 = vrsqrt.f32 %v1686_v30  ;;  %vm1694_vm9 = vweird.f32 %v1686_v30 }
 0xac0   :  { %v1683_v31 = vpop.xlane.xlu1 %1682 }
 0xac1   :  { %v1685_v32 = vmul.f32 %v1683_v31, %v3262_v19 }
 0xac3   :  { %v2611_v33 = vpop.eup %2610  ;;  %v1687_v34 = vadd.f32 1e-05, %v1685_v32 }
 0xac4   :  { %v1689_v35 = vmul.f32 %v2611_v33, %v1686_v30  ;;  %vm1695_vm8 = vweird.f32 %v2611_v33 }
 0xac5   :  { %2612 = vrsqrt.f32 %v1687_v34  ;;  %vm1696_vm10 = vmor %vm1694_vm9, %vm1695_vm8  ;;  %vm1704_vm13 = vweird.f32 %v1687_v34 }
 0xac6   :  { %v1690_v36 = vmul.f32 %v2611_v33, %v1689_v35 }
 0xac8   :  { %v1691_v56 = vmul.f32 0.5, %v1690_v36  ;;  %v1981_v36 = vld [vmem:[%s3543_s17] sm:$0xff] }
 0xaca   :  { %v1692_v13 = vsub.f32 1.5, %v1691_v56  ;;  %v2583_v56 = vld [vmem:[#allocation5] ss:$0 sm:$0xff] }
 0xacb   :  { %v2613_v37 = vpop.eup %2612 }
 0xacc   :  { %v1693_v40 = vmul.f32 %v2611_v33, %v1692_v13  ;;  %v1699_v59 = vmul.f32 %v2613_v37, %v1687_v34  ;;  %vm1705_vm11 = vweird.f32 %v2613_v37  ;;  %v1992_v13 = vpop.permute.xlu0 %1991 }
 0xacd   :  { %vm1706_vm14 = vmor %vm1704_vm13, %vm1705_vm11  ;;  %vm1998_vm2 = vcmp.ge.f32.partialorder %v1992_v13, %v2583_v56  ;;  %v2589_v13 = vld [vmem:[%s3539_s1 + $0x2] ss:$0 sm:$0xff] }
 0xace   :  { %v1700_v17 = vmul.f32 %v2613_v37, %v1699_v59  ;;  %v1697_v41 = vsel %vm1696_vm10, %v2611_v33, %v1693_v40 }
 0xacf   :  { %v1708_v47 = vmul.f32 %v1697_v41, %v1674_v20 }
 0xad0   :  { %v1701_v45 = vmul.f32 0.5, %v1700_v17 }
 0xad1   :  { %v1713_v53 = vmul.f32 %v2586_v51, %v1708_v47 }
 0xad2   :  { %v1702_v46 = vsub.f32 1.5, %v1701_v45 }
 0xad3   :  { %v1718_v60 = vadd.f32 %v2587_v54, %v1713_v53 }
 0xad4   :  { %v1703_v52 = vmul.f32 %v2613_v37, %v1702_v46 }
 0xad6   :  { %v1707_v38 = vsel %vm1706_vm14, %v2613_v37, %v1703_v52  ;;  %v2000_v37 = vsel %vm1998_vm2, 1, %v2972_v2 }
 0xad7   :  { %v1709_v39 = vmul.f32 %v1707_v38, %v1675_v25  ;;  %v2014_v40 = vsel %vm1435_vm15, %v2000_v37, 0 }
 0xad8   :  { %v2016_v59 = vshrl.u32 %v2014_v40, 16  ;;  %v2015_v63 = vand.u32 65535, %v2014_v40 }
 0xad9   :  { %v1714_v58 = vmul.f32 %v2586_v51, %v1709_v39 }
 0xada   :  { %v2018_v17 = vcvt.s32.f32 %v2016_v59 }
 0xadb   :  { %v1719_v42 = vadd.f32 %v2587_v54, %v1714_v58 }
 0xadd   :  { %v1737_v61 = vpack.c.bf16 %v1719_v42, %v1718_v60 }
 0xadf   :  { %1745 = vmatpush.bf16.msra.mxu3 %v1737_v61  ;;  %1760 = vmatpush.bf16.msrb.mxu2 %v1737_v61 }
 0xae2   :  { %2408 = vmatmul.msk.bf16.vlgmr.msra.gmra.mxu3 %vm383_vm0, %v2618_v62  ;;  %2409 = vmatmul.msk.bf16.vlgmr.msrb.gmra.mxu2 %vm383_vm0, %v2619_v43 }
 0xae3   :  { %1833 = vmatpush.bf16.msrb.mxu3 %v1737_v61  ;;  %1862 = vmatpush.bf16.msra.mxu2 %v2507_v5 }
 0xae7   :  { %1863 = vmatpush.bf16.msra.mxu2 %v2506_v6 }
 0xaf2   :  { %2428 = vmatmul.msk.bf16.vlgmr.msrb.gmra.mxu3 %vm383_vm0, %v2620_v44 }
 0xb65   :  { %v1747_v3 = vpop.f32.mrf.mxu3  ;;  %v1762_v7 = vpop.f32.mrf.mxu2 }
 0xb6d   :  { %v1749_v9 = vpop.f32.mrf.mxu3  ;;  %v1764_v10 = vpop.f32.mrf.mxu2 }
 0xb6e   :  { %v1752_v11 = vpack.c.bf16 %v1749_v9, %v1747_v3  ;;  %v1767_v12 = vpack.c.bf16 %v1764_v10, %v1762_v7  ;;  %v2508_v3 = vld [vmem:[%s3538_s6 + $0x20] sm:$0xff] }
 0xb6f   :  { %1970 = vmatpush.bf16.msra.mxu0 %v2508_v3 }
 0xb70   :  { %2418 = vmatmul.msk.bf16.vlgmr.msrb.gmra.mxu0 %vm325_vm1, %v1767_v12  ;;  %2427 = vmatmul.msk.bf16.vlgmr.msrb.gmra.mxu1 %vm325_vm1, %v1752_v11 }
 0xb75   :  { %v1835_v55 = vpop.f32.mrf.mxu3 }
 0xb7d   :  { %v1837_v14 = vpop.f32.mrf.mxu3 }
 0xb7e   :  { %v1840_v15 = vpack.c.bf16 %v1837_v14, %v1835_v55 }
 0xb80   :  { %2437 = vmatmul.msk.bf16.vlgmr.msra.gmra.mxu2 %vm325_vm1, %v1840_v15 }
 0xbed   :  { %v1792_v18 = vpop.f32.mrf.mxu0  ;;  %v1821_v20 = vpop.f32.mrf.mxu1 }
 0xbee   :  { %v1822_v8 = vadd.f32 %v1821_v20, %v1792_v18 }
 0xbf5   :  { %v1794_v26 = vpop.f32.mrf.mxu0  ;;  %v1823_v27 = vpop.f32.mrf.mxu1 }
 0xbf6   :  { %v1824_v29 = vadd.f32 %v1823_v27, %v1794_v26 }
 0xc03   :  { %v1865_v22 = vpop.f32.mrf.mxu2 }
 0xc04   :  { %v1870_v24 = vadd.f32 %v1865_v22, %v1822_v8 }
 0xc06   :  { %v1875_v25 = vadd.f32 %v2588_v21, %v1870_v24 }
 0xc08   :  { %v1877_v28 = vmax.f32 %v1875_v25, 0.0 }
 0xc0a   :  { %v1883_v30 = vsel %vm325_vm1, %v1877_v28, 0.0 }
 0xc0b   :  { %v1867_v31 = vpop.f32.mrf.mxu2  ;;  %1884 = vadd.xlane.f32.xlu2 %v1883_v30 }
 0xc0c   :  { %v1871_v32 = vadd.f32 %v1867_v31, %v1824_v29 }
 0xc0e   :  { %v1876_v33 = vadd.f32 %v2588_v21, %v1871_v32 }
 0xc10   :  { %v1878_v34 = vmax.f32 %v1876_v33, 0.0 }
 0xc12   :  { %v1886_v35 = vsel %vm325_vm1, %v1878_v34, 0.0 }
 0xc13   :  { %1887 = vadd.xlane.f32.xlu1 %v1886_v35 }
 0xc23   :  { %1986 = vperm.xlu2 %2564, %v1981_v36  }
 0xc4c   :  { %2021 = vadd.xlane.f32.xlu2 %v2018_v17 }
 0xc7e   :  { %v1885_v41 = vpop.xlane.xlu2 %1884 }
 0xc7f   :  { %v1889_v45 = vmul.f32 %v1885_v41, %v3262_v19  ;;  %v2590_v41 = vld [vmem:[%s3540_s10 + $0x2] ss:$0 sm:$0xff] }
 0xc81   :  { %v3449_v46 = vsub.f32 %v1877_v28, %v1889_v45 }
 0xc83   :  { %v1893_v47 = vmul.f32 %v3449_v46, %v3449_v46 }
 0xc85   :  { %v1895_v51 = vsel %vm325_vm1, %v1893_v47, 0.0 }
 0xc86   :  { %v1888_v52 = vpop.xlane.xlu1 %1887  ;;  %1896 = vadd.xlane.f32.xlu1 %v1895_v51  ;;  %v1987_v38 = vpop.permute.xlu2 %1986 }
 0xc87   :  { %v1890_v39 = vmul.f32 %v1888_v52, %v3262_v19  ;;  %vm1997_vm3 = vcmp.ge.f32.partialorder %v1987_v38, %v2583_v56 }
 0xc88   :  { %v1999_v53 = vsel %vm1997_vm3, 1, %v2972_v2  ;;  %v2017_v2 = vcvt.s32.f32 %v2015_v63 }
 0xc89   :  { %v3456_v54 = vsub.f32 %v1878_v34, %v1890_v39  ;;  %v2001_v58 = vsel %vm1435_vm15, %v1999_v53, 0 }
 0xc8a   :  { %v2002_v60 = vand.u32 65535, %v2001_v58  ;;  %v2003_v43 = vshrl.u32 %v2001_v58, 16 }
 0xc8b   :  { %v1894_v42 = vmul.f32 %v3456_v54, %v3456_v54 }
 0xc8c   :  { %v2004_v61 = vcvt.s32.f32 %v2002_v60  ;;  %v2005_v44 = vcvt.s32.f32 %v2003_v43 }
 0xc8d   :  { %v1898_v62 = vsel %vm325_vm1, %v1894_v42, 0.0 }
 0xc8e   :  { %1899 = vadd.xlane.f32.xlu1 %v1898_v62  ;;  %2006 = vadd.xlane.f32.xlu0 %v2004_v61 }
 0xc96   :  { %2008 = vadd.xlane.f32.xlu1 %v2005_v44 }
 0xc9e   :  { %2019 = vadd.xlane.f32.xlu1 %v2017_v2 }
 0xcbf   :  { %v2022_v22 = vpop.xlane.xlu2 %2021 }
 0xcc0   :  { %v2024_v29 = vcvt.f32.s32 %v2022_v22 }
 0xcc2   :  { %v2025_v35 = vshll.u32 %v2024_v29, 16 }
 0xcf9   :  { %v1897_v5 = vpop.xlane.xlu1 %1896 }
 0xcfa   :  { %v1901_v6 = vmul.f32 %v1897_v5, %v3262_v19 }
 0xcfc   :  { %v1903_v7 = vadd.f32 1e-05, %v1901_v6 }
 0xcfe   :  { %2614 = vrsqrt.f32 %v1903_v7  ;;  %vm1911_vm4 = vweird.f32 %v1903_v7 }
 0xd01   :  { %v1900_v9 = vpop.xlane.xlu1 %1899  ;;  %v2007_v15 = vpop.xlane.xlu0 %2006 }
 0xd02   :  { %v1902_v10 = vmul.f32 %v1900_v9, %v3262_v19  ;;  %v2010_v21 = vcvt.f32.s32 %v2007_v15 }
 0xd04   :  { %v2615_v11 = vpop.eup %2614  ;;  %v1904_v12 = vadd.f32 1e-05, %v1902_v10 }
 0xd05   :  { %v1906_v55 = vmul.f32 %v2615_v11, %v1903_v7  ;;  %vm1912_vm15 = vweird.f32 %v2615_v11 }
 0xd06   :  { %2616 = vrsqrt.f32 %v1904_v12  ;;  %vm1913_vm5 = vmor %vm1911_vm4, %vm1912_vm15  ;;  %vm1921_vm8 = vweird.f32 %v1904_v12 }
 0xd07   :  { %v1907_v14 = vmul.f32 %v2615_v11, %v1906_v55 }
 0xd09   :  { %v1908_v18 = vmul.f32 0.5, %v1907_v14  ;;  %v2009_v20 = vpop.xlane.xlu1 %2008 }
 0xd0a   :  { %v2011_v8 = vcvt.f32.s32 %v2009_v20 }
 0xd0b   :  { %v1909_v24 = vsub.f32 1.5, %v1908_v18 }
 0xd0c   :  { %v2617_v25 = vpop.eup %2616  ;;  %v2012_v26 = vshll.u32 %v2011_v8, 16 }
 0xd0d   :  { %v1910_v27 = vmul.f32 %v2615_v11, %v1909_v24  ;;  %v1916_v28 = vmul.f32 %v2617_v25, %v1904_v12  ;;  %vm1922_vm7 = vweird.f32 %v2617_v25 }
 0xd0e   :  { %v2013_v19 = vadd.s32 %v2012_v26, %v2010_v21  ;;  %vm1923_vm9 = vmor %vm1921_vm8, %vm1922_vm7 }
 0xd0f   :  { %v1917_v30 = vmul.f32 %v2617_v25, %v1916_v28  ;;  %v1914_v31 = vsel %vm1913_vm5, %v2615_v11, %v1910_v27 }
 0xd10   :  { %vm2027_vm6 = vcmp.eq.s32.totalorder %v2013_v19, %v3368_v16  ;;  %v1925_v37 = vmul.f32 %v1914_v31, %v3449_v46 }
 0xd11   :  { %v1918_v32 = vmul.f32 0.5, %v1917_v30  ;;  %v2454_v33 = vsel %vm2027_vm6, 1.0, %v2973_v23  ;;  %v2020_v34 = vpop.xlane.xlu1 %2019 }
 0xd12   :  { %v2023_v36 = vcvt.f32.s32 %v2020_v34  ;;  %2456 = vmatmul.msk.f32.vlgmr.msra.gmra.mxu1 %vm383_vm0, %v2454_v33  ;;  %v1930_v45 = vmul.f32 %v2589_v13, %v1925_v37 }
 0xd13   :  { %v1919_v56 = vsub.f32 1.5, %v1918_v32 }
 0xd14   :  { %v2026_v40 = vadd.s32 %v2025_v35, %v2023_v36  ;;  %v1935_v46 = vadd.f32 %v2590_v41, %v1930_v45 }
 0xd15   :  { %v1920_v59 = vmul.f32 %v2617_v25, %v1919_v56 }
 0xd16   :  { %vm2028_vm10 = vcmp.eq.s32.totalorder %v2026_v40, %v3368_v16 }
 0xd17   :  { %v1924_v17 = vsel %vm1923_vm9, %v2617_v25, %v1920_v59  ;;  %v2455_v51 = vsel %vm2028_vm10, 1.0, %v2973_v23 }
 0xd18   :  { %v1926_v47 = vmul.f32 %v1924_v17, %v3456_v54 }
 0xd1a   :  { %v1931_v52 = vmul.f32 %v2589_v13, %v1926_v47  ;;  %2457 = vmatmul.msk.f32.gmra.mxu1 %vm383_vm0, %v2455_v51 }
 0xd1c   :  { %v1936_v38 = vadd.f32 %v2590_v41, %v1931_v52 }
 0xd1e   :  { %v1937_v39 = vpack.c.bf16 %v1936_v38, %v1935_v46 }
 0xd20   :  { %2453 = vmatmul.msk.bf16.vlgmr.msra.gmra.mxu0 %vm325_vm1, %v1937_v39 }
 0xd21   :  { %2908 = shalt.err (!%p2905_p3)
}
 0xd22   :  { %2080 = dma.vmem_to_hbm [thread:$0]  %s2073_s29, 256, %s2075_s16, [#allocation4], %s2958_s2, %s2958_s2, %s2959_s7  }
 0xd23   :  { %v2591_v58 = vld [vmem:[%s3541_s8 + $0x2] ss:$0 sm:$0xff] }
 0xd8f   :  { %v2058_v16 = vpop.f32.mrf.mxu1 }
 0xd90   :  { %v2064_v23 = vadd.f32 %v2058_v16, %v3380_v48 }
 0xd92   :  { %2066 = vst.msk [vmem:[%s3148_s13] sm:$0xff] %vm325_vm1, %v2064_v23 }
 0xd97   :  { %v2061_v53 = vpop.f32.mrf.mxu1 }
 0xd98   :  { %v2065_v54 = vadd.f32 %v2061_v53, %v3383_v50 }
 0xd9a   :  { %2067 = vst.msk [vmem:[%s3148_s13 + $0x8] sm:$0xff] %vm325_vm1, %v2065_v54 }
 0xd9d   :  { %v1972_v60 = vpop.f32.mrf.mxu0 }
 0xd9e   :  { %v1973_v42 = vadd.f32 %v2591_v58, %v1972_v60 }
 0xda0   :  { %v1977_v61 = vmul.f32 %v1973_v42, %v3355_v49 }
 0xda2   :  { %1979 = vst.msk [vmem:[%s3143_s25] sm:$0xff] %vm989_vm12, %v1977_v61 }
 0xda5   :  { %v1974_v62 = vpop.f32.mrf.mxu0 }
 0xda6   :  { %v1975_v43 = vadd.f32 %v2591_v58, %v1974_v62 }
 0xda8   :  { %v1978_v44 = vmul.f32 %v1975_v43, %v3361_v57 }
 0xdaa   :  { %1980 = vst.msk [vmem:[%s3143_s25 + $0x8] sm:$0xff] %vm989_vm12, %v1978_v44 }
 0xdab   :  { %2921 = dma.done.wait [#allocation4], 256  }
 0xdac   :  { %2922 = vsyncadd [#allocation4], 4294967040 }
 0xdad   :  { %2101 = vsyncpa [#allocation3], 1 }
 0xdae   :  { %2102 = vsyncpa [#allocation6], 1 }
 0xdaf   :  { %2103 = vsyncpa [#allocation9], 1 }
 0xdb0   :  { %2104 = vsyncpa [#allocation12], 1 }
 0xdb1   :  { %2105 = vsyncpa [#allocation15], 1 }
 0xdb2   :  { %2106 = vsyncpa [#allocation18], 1 }
 0xdb3   :  { %2107 = vsyncpa [#allocation4], 1 }

// kernel: fastspeech2_forward.7
= control target key start
LH: loop header
LB: loop body
LE: loop exit
PB: predicated region body
PF: predicated region fallthrough
CT: control target
= control target key end

     0   :  { %21 = vsyncpa [#allocation3], 0  ;;  %s3011_s0 = inlined_call_operand.vmem [shape: f32[32,32], index: 0, kind: input, shape index: {}]   ;;  %s3012_s1 = inlined_call_operand.vmem [shape: bf16[5,32,32], index: 1, kind: input, shape index: {}]   ;;  %s3013_s2 = inlined_call_operand.vmem [shape: bf16[32,16], index: 2, kind: input, shape index: {}]   ;;  %s3014_s3 = inlined_call_operand.vmem [shape: f32[1,16], index: 3, kind: input, shape index: {}]   ;;  %s3015_s4 = inlined_call_operand.vmem [shape: bf16[5,16,32], index: 4, kind: input, shape index: {}]   ;;  %s3016_s5 = inlined_call_operand.vmem [shape: f32[1,32], index: 5, kind: input, shape index: {}]   ;;  %s3017_s6 = inlined_call_operand.vmem [shape: bf16[5,32,32], index: 6, kind: input, shape index: {}]   ;;  %s3018_s7 = inlined_call_operand.vmem [shape: f32[1,32], index: 7, kind: input, shape index: {}]   ;;  %s3019_s8 = inlined_call_operand.vmem [shape: bf16[5,32,32], index: 8, kind: input, shape index: {}]   ;;  %s3020_s9 = inlined_call_operand.vmem [shape: f32[1,32], index: 9, kind: input, shape index: {}]   ;;  %s3021_s10 = inlined_call_operand.vmem [shape: bf16[5,32,32], index: 10, kind: input, shape index: {}]   ;;  %s3022_s11 = inlined_call_operand.vmem [shape: f32[1,32], index: 11, kind: input, shape index: {}]   ;;  %s3023_s12 = inlined_call_operand.vmem [shape: bf16[5,32,16], index: 12, kind: input, shape index: {}]   ;;  %s3024_s13 = inlined_call_operand.vmem [shape: f32[1,16], index: 13, kind: input, shape index: {}]   ;;  %s3025_s14 = inlined_call_operand.hbm [shape: f32[32,16], index: 14, kind: output, shape index: {0}]   ;;  %s3026_s15 = inlined_call_operand.hbm [shape: f32[32,16], index: 15, kind: output, shape index: {1}]  }
   0x1   :  { %v2342_v0 = vld [vmem:[%s3013_s2 + $0x8] sm:$0xff]  ;;  %v2341_v1 = vld [vmem:[%s3013_s2] sm:$0xff]  ;;  %v78_v2 = vld [vmem:[%s3011_s0 + $0x10] sm:$0xff] }
   0x2   :  { %v79_v3 = vld [vmem:[%s3011_s0 + $0x18] sm:$0xff]  ;;  %v76_v4 = vld [vmem:[%s3011_s0] sm:$0xff]  ;;  %2388 = vmatpush.bf16.msra.mxu2 %v2342_v0  ;;  %115 = vmatpush.bf16.msra.mxu0 %v2342_v0  ;;  %v77_v5 = vld [vmem:[%s3011_s0 + $0x8] sm:$0xff] }
   0x3   :  { %22 = vsyncpa [#allocation5], 0  ;;  %v81_v6 = vpack.c.bf16 %v79_v3, %v78_v2  ;;  %v80_v7 = vpack.c.bf16 %v77_v5, %v76_v4  ;;  %vm102_vm0 = vcmask 261120   ;;  %v2394_v8 = vld [vmem:[%s3014_s3] ss:$0 sm:$0xff]  ;;  %vm128_vm1 = vcmask 130048  }
   0x4   :  { %v2624_v19 = vld [vmem:[%s3012_s1 + $0x10] sm:$0xff]  ;;  %v2629_v20 = vld [vmem:[%s3012_s1] sm:$0xff]  ;;  %v2645_v22 = vld [vmem:[%s3012_s1 + $0x18] sm:$0xff]  ;;  %s1883_s18 = sshll.u32 %s3025_s14, 4  ;;  %s2495_s19 = smov 128   ;;  %s1884_s18 = int_to_ptr.hbm [resolvable:$true] %s1883_s18 }
   0x5   :  { %v2634_v21 = vld [vmem:[%s3012_s1 + $0x20] sm:$0xff]  ;;  %v2650_v23 = vld [vmem:[%s3012_s1 + $0x8] sm:$0xff]  ;;  %v2666_v25 = vld [vmem:[%s3012_s1 + $0x30] sm:$0xff]  ;;  %s2496_s20 = smov 8   ;;  %s1896_s25 = sshll.u32 %s3026_s15, 4  ;;  %s1897_s25 = int_to_ptr.hbm [resolvable:$true] %s1896_s25 }
   0x6   :  { %2389 = vmatpush.bf16.msra.mxu2 %v2341_v1  ;;  %116 = vmatpush.bf16.msra.mxu0 %v2341_v1  ;;  %v2655_v24 = vld [vmem:[%s3012_s1 + $0x28] sm:$0xff]  ;;  %v2671_v26 = vld [vmem:[%s3012_s1 + $0x40] sm:$0xff]  ;;  %v2680_v27 = vld [vmem:[%s3012_s1 + $0x38] sm:$0xff] }
   0x7   :  { %v2685_v28 = vld [vmem:[%s3012_s1 + $0x48] sm:$0xff]  ;;  %v2345_v31 = vld [vmem:[%s3015_s4 + $0x10] sm:$0xff]  ;;  %v2343_v32 = vld [vmem:[%s3015_s4] sm:$0xff] }
   0x8   :  { %v2344_v29 = vld [vmem:[%s3015_s4 + $0x8] sm:$0xff]  ;;  %v2347_v46 = vld [vmem:[%s3015_s4 + $0x20] sm:$0xff]  ;;  %v2346_v47 = vld [vmem:[%s3015_s4 + $0x18] sm:$0xff] }
   0x9   :  { %1938 = vmatmul.msk.bf16.vlgmr.msra.gmra.mxu2 %vm102_vm0, %v81_v6  ;;  %1937 = vmatmul.msk.bf16.vlgmr.msra.gmra.mxu0 %vm102_vm0, %v80_v7 }
   0xa   :  { %243 = vmatpush.bf16.msra.mxu3 %v2344_v29  ;;  %v2350_v29 = vld [vmem:[%s3017_s6 + $0x10] sm:$0xff] }
   0xe   :  { %274 = vmatpush.bf16.msrb.mxu3 %v2343_v32 }
  0x86   :  { %v118_v9 = vpop.f32.mrf.mxu0 }
  0x87   :  { %v2601_v10 = vadd.f32 %v2394_v8, %v118_v9 }
  0x89   :  { %129 = vst.msk [vmem:[#allocation2] sm:$0xff] %vm128_vm1, %v2601_v10 }
  0x8c   :  { %v123_v11 = vpop.f32.mrf.mxu2 }
  0x8d   :  { %v2605_v12 = vadd.f32 %v2394_v8, %v123_v11 }
  0x8e   :  { %v120_v13 = vpop.f32.mrf.mxu0 }
  0x8f   :  { %131 = vst.msk [vmem:[#allocation2 + $0x10] sm:$0xff] %vm128_vm1, %v2605_v12  ;;  %v2609_v14 = vadd.f32 %v2394_v8, %v120_v13 }
  0x91   :  { %130 = vst.msk [vmem:[#allocation2 + $0x8] sm:$0xff] %vm128_vm1, %v2609_v14  ;;  %v148_v18 = vpack.c.bf16 %v2609_v14, %v2601_v10 }
  0x94   :  { %v125_v15 = vpop.f32.mrf.mxu2 }
  0x95   :  { %v2613_v16 = vadd.f32 %v2394_v8, %v125_v15 }
  0x97   :  { %132 = vst.msk [vmem:[#allocation2 + $0x18] sm:$0xff] %vm128_vm1, %v2613_v16  ;;  %v149_v17 = vpack.c.bf16 %v2613_v16, %v2605_v12 }
  0x99   :  { %172 = vmatpush.bf16.msra.mxu1 %v149_v17  ;;  %209 = vmatpush.bf16.msrb.mxu2 %v149_v17 }
  0x9a   :  { %308 = vmatpush.bf16.msrb.mxu0 %v149_v17 }
  0x9d   :  { %173 = vmatpush.bf16.msra.mxu1 %v148_v18  ;;  %210 = vmatpush.bf16.msrb.mxu2 %v148_v18 }
  0x9e   :  { %309 = vmatpush.bf16.msrb.mxu0 %v148_v18 }
  0xa0   :  { %1965 = vmatmul.msk.bf16.vlgmr.msrb.gmra.mxu2 %vm102_vm0, %v2624_v19  ;;  %1955 = vmatmul.msk.bf16.vlgmr.msra.gmra.mxu1 %vm102_vm0, %v2629_v20 }
  0xa1   :  { %380 = vmatpush.bf16.msra.mxu2 %v149_v17  ;;  %1987 = vmatmul.msk.bf16.vlgmr.msrb.gmra.mxu0 %vm102_vm0, %v2634_v21 }
  0xa2   :  { %452 = vmatpush.bf16.msra.mxu0 %v149_v17  ;;  %342 = vmatpush.bf16.msrb.mxu1 %v2345_v31  ;;  %v2351_v17 = vld [vmem:[%s3017_s6 + $0x18] sm:$0xff] }
  0xa5   :  { %381 = vmatpush.bf16.msra.mxu2 %v148_v18 }
  0xa6   :  { %453 = vmatpush.bf16.msra.mxu0 %v148_v18  ;;  %486 = vmatpush.bf16.msra.mxu1 %v2347_v46  ;;  %v2395_v46 = vld [vmem:[%s3016_s5] ss:$0 sm:$0xff] }
  0xaa   :  { %606 = vmatpush.bf16.msrb.mxu0 %v2351_v17 }
  0xae   :  { %607 = vmatpush.bf16.msrb.mxu0 %v2350_v29 }
  0xb0   :  { %1966 = vmatmul.msk.bf16.gmra.mxu2 %vm102_vm0, %v2645_v22  ;;  %1956 = vmatmul.msk.bf16.gmra.mxu1 %vm102_vm0, %v2650_v23 }
  0xb1   :  { %1988 = vmatmul.msk.bf16.gmra.mxu0 %vm102_vm0, %v2655_v24 }
  0xc0   :  { %2003 = vmatmul.msk.bf16.vlgmr.msra.gmra.mxu2 %vm102_vm0, %v2666_v25 }
  0xc1   :  { %2019 = vmatmul.msk.bf16.vlgmr.msra.gmra.mxu0 %vm102_vm0, %v2671_v26 }
  0xd0   :  { %2004 = vmatmul.msk.bf16.gmra.mxu2 %vm102_vm0, %v2680_v27 }
  0xd1   :  { %2020 = vmatmul.msk.bf16.gmra.mxu0 %vm102_vm0, %v2685_v28 }
 0x11d   :  { %v175_v42 = vpop.f32.mrf.mxu1 }
 0x11e   :  { %v311_v30 = vpop.f32.mrf.mxu0 }
 0x123   :  { %v212_v33 = vpop.f32.mrf.mxu2 }
 0x125   :  { %v177_v48 = vpop.f32.mrf.mxu1 }
 0x126   :  { %v313_v34 = vpop.f32.mrf.mxu0  ;;  %v185_v51 = vpack.c.bf16 %v177_v48, %v175_v42 }
 0x127   :  { %v321_v35 = vpack.c.bf16 %v313_v34, %v311_v30 }
 0x129   :  { %1993 = vmatmul.msk.bf16.vlgmr.msrb.gmra.mxu1 %vm128_vm1, %v321_v35 }
 0x12b   :  { %v214_v36 = vpop.f32.mrf.mxu2 }
 0x12c   :  { %v222_v37 = vpack.c.bf16 %v214_v36, %v212_v33 }
 0x12d   :  { %v180_v53 = vpop.f32.mrf.mxu1 }
 0x12e   :  { %1971 = vmatmul.msk.bf16.vlgmr.msra.gmra.mxu3 %vm128_vm1, %v222_v37  ;;  %v316_v38 = vpop.f32.mrf.mxu0 }
 0x12f   :  { %414 = vmatpush.bf16.msra.mxu3 %v2346_v47 }
 0x133   :  { %v217_v39 = vpop.f32.mrf.mxu2 }
 0x135   :  { %v182_v56 = vpop.f32.mrf.mxu1 }
 0x136   :  { %v318_v40 = vpop.f32.mrf.mxu0  ;;  %v186_v58 = vpack.c.bf16 %v182_v56, %v180_v53 }
 0x137   :  { %v322_v41 = vpack.c.bf16 %v318_v40, %v316_v38 }
 0x139   :  { %1994 = vmatmul.msk.bf16.gmra.mxu1 %vm128_vm1, %v322_v41 }
 0x13b   :  { %v219_v43 = vpop.f32.mrf.mxu2 }
 0x13c   :  { %v223_v44 = vpack.c.bf16 %v219_v43, %v217_v39 }
 0x13e   :  { %1972 = vmatmul.msk.bf16.gmra.mxu3 %vm128_vm1, %v223_v44  ;;  %v455_v45 = vpop.f32.mrf.mxu0 }
 0x143   :  { %v383_v57 = vpop.f32.mrf.mxu2 }
 0x146   :  { %v457_v49 = vpop.f32.mrf.mxu0 }
 0x147   :  { %v465_v50 = vpack.c.bf16 %v457_v49, %v455_v45 }
 0x149   :  { %2025 = vmatmul.msk.bf16.vlgmr.msra.gmra.mxu1 %vm128_vm1, %v465_v50 }
 0x14b   :  { %v385_v59 = vpop.f32.mrf.mxu2 }
 0x14c   :  { %v393_v60 = vpack.c.bf16 %v385_v59, %v383_v57 }
 0x14e   :  { %1977 = vmatmul.msk.bf16.vlgmr.msrb.gmra.mxu3 %vm128_vm1, %v185_v51  ;;  %v460_v52 = vpop.f32.mrf.mxu0 }
 0x153   :  { %v388_v61 = vpop.f32.mrf.mxu2 }
 0x156   :  { %v462_v54 = vpop.f32.mrf.mxu0 }
 0x157   :  { %v466_v55 = vpack.c.bf16 %v462_v54, %v460_v52 }
 0x159   :  { %2026 = vmatmul.msk.bf16.gmra.mxu1 %vm128_vm1, %v466_v55 }
 0x15b   :  { %v390_v62 = vpop.f32.mrf.mxu2 }
 0x15c   :  { %v394_v63 = vpack.c.bf16 %v390_v62, %v388_v61 }
 0x15e   :  { %1978 = vmatmul.msk.bf16.gmra.mxu3 %vm128_vm1, %v186_v58 }
 0x16e   :  { %2009 = vmatmul.msk.bf16.vlgmr.msra.gmra.mxu3 %vm128_vm1, %v393_v60 }
 0x17e   :  { %2010 = vmatmul.msk.bf16.gmra.mxu3 %vm128_vm1, %v394_v63  ;;  %v2349_v63 = vld [vmem:[%s3017_s6 + $0x8] sm:$0xff] }
 0x17f   :  { %643 = vmatpush.bf16.msrb.mxu1 %v2349_v63 }
 0x1a6   :  { %v344_v3 = vpop.f32.mrf.mxu1 }
 0x1ae   :  { %v346_v5 = vpop.f32.mrf.mxu1 }
 0x1b1   :  { %v245_v0 = vpop.f32.mrf.mxu3 }
 0x1b6   :  { %v349_v7 = vpop.f32.mrf.mxu1 }
 0x1b9   :  { %v247_v1 = vpop.f32.mrf.mxu3 }
 0x1be   :  { %v351_v11 = vpop.f32.mrf.mxu1 }
 0x1c1   :  { %v250_v2 = vpop.f32.mrf.mxu3 }
 0x1c6   :  { %v488_v15 = vpop.f32.mrf.mxu1 }
 0x1c9   :  { %v252_v4 = vpop.f32.mrf.mxu3 }
 0x1ce   :  { %v490_v30 = vpop.f32.mrf.mxu1 }
 0x1d1   :  { %v276_v6 = vpop.f32.mrf.mxu3 }
 0x1d2   :  { %v277_v37 = vadd.f32 %v276_v6, %v245_v0  ;;  %v2348_v0 = vld [vmem:[%s3017_s6] sm:$0xff] }
 0x1d3   :  { %644 = vmatpush.bf16.msrb.mxu1 %v2348_v0  ;;  %v2361_v0 = vld [vmem:[%s3019_s8 + $0x18] sm:$0xff] }
 0x1d4   :  { %v354_v41 = vadd.f32 %v344_v3, %v277_v37  ;;  %v2353_v3 = vld [vmem:[%s3017_s6 + $0x28] sm:$0xff] }
 0x1d6   :  { %v493_v34 = vpop.f32.mrf.mxu1 }
 0x1d9   :  { %v278_v8 = vpop.f32.mrf.mxu3 }
 0x1da   :  { %v279_v33 = vadd.f32 %v278_v8, %v247_v1 }
 0x1dc   :  { %v355_v40 = vadd.f32 %v346_v5, %v279_v33 }
 0x1de   :  { %v495_v50 = vpop.f32.mrf.mxu1 }
 0x1e1   :  { %v281_v9 = vpop.f32.mrf.mxu3 }
 0x1e2   :  { %v282_v32 = vadd.f32 %v281_v9, %v250_v2 }
 0x1e4   :  { %v356_v35 = vadd.f32 %v349_v7, %v282_v32 }
 0x1e9   :  { %v283_v13 = vpop.f32.mrf.mxu3 }
 0x1ea   :  { %v284_v39 = vadd.f32 %v283_v13, %v252_v4  ;;  %v2352_v4 = vld [vmem:[%s3017_s6 + $0x20] sm:$0xff] }
 0x1ec   :  { %v357_v45 = vadd.f32 %v351_v11, %v284_v39 }
 0x1f1   :  { %v416_v18 = vpop.f32.mrf.mxu3 }
 0x1f2   :  { %v426_v44 = vadd.f32 %v416_v18, %v354_v41 }
 0x1f4   :  { %v498_v52 = vadd.f32 %v488_v15, %v426_v44 }
 0x1f6   :  { %v505_v56 = vadd.f32 %v2395_v46, %v498_v52 }
 0x1f9   :  { %v418_v31 = vpop.f32.mrf.mxu3 }
 0x1fa   :  { %v427_v42 = vadd.f32 %v418_v31, %v355_v40 }
 0x1fc   :  { %v499_v48 = vadd.f32 %v490_v30, %v427_v42  ;;  %v2355_v42 = vld [vmem:[%s3017_s6 + $0x38] sm:$0xff] }
 0x1fd   :  { %763 = vmatpush.bf16.msra.mxu1 %v2355_v42 }
 0x1fe   :  { %v506_v54 = vadd.f32 %v2395_v46, %v499_v48 }
 0x201   :  { %v421_v36 = vpop.f32.mrf.mxu3 }
 0x202   :  { %v428_v38 = vadd.f32 %v421_v36, %v356_v35  ;;  %v2357_v36 = vld [vmem:[%s3017_s6 + $0x48] sm:$0xff] }
 0x204   :  { %v500_v43 = vadd.f32 %v493_v34, %v428_v38  ;;  %v2356_v38 = vld [vmem:[%s3017_s6 + $0x40] sm:$0xff] }
 0x206   :  { %v507_v51 = vadd.f32 %v2395_v46, %v500_v43 }
 0x208   :  { %2400 = vtanh.f32 %v507_v51 }
 0x209   :  { %v423_v47 = vpop.f32.mrf.mxu3 }
 0x20a   :  { %v429_v49 = vadd.f32 %v423_v47, %v357_v45  ;;  %v2354_v45 = vld [vmem:[%s3017_s6 + $0x30] sm:$0xff] }
 0x20b   :  { %764 = vmatpush.bf16.msra.mxu1 %v2354_v45 }
 0x20c   :  { %v501_v53 = vadd.f32 %v495_v50, %v429_v49 }
 0x20e   :  { %v508_v55 = vadd.f32 %v2395_v46, %v501_v53  ;;  %v2401_v57 = vpop.eup %2400 }
 0x210   :  { %2402 = vtanh.f32 %v508_v55 }
 0x211   :  { %2404 = vtanh.f32 %v506_v54 }
 0x212   :  { %2406 = vtanh.f32 %v505_v56 }
 0x216   :  { %v2403_v58 = vpop.eup %2402 }
 0x217   :  { %v539_v59 = vpack.c.bf16 %v2403_v58, %v2401_v57  ;;  %v2405_v60 = vpop.eup %2404 }
 0x218   :  { %v2407_v61 = vpop.eup %2406 }
 0x219   :  { %546 = vmatpush.bf16.msrb.mxu2 %v539_v59  ;;  %567 = vmatpush.bf16.msrb.mxu3 %v539_v59  ;;  %v538_v62 = vpack.c.bf16 %v2405_v60, %v2407_v61 }
 0x21a   :  { %724 = vmatpush.bf16.msra.mxu0 %v539_v59 }
 0x21d   :  { %547 = vmatpush.bf16.msrb.mxu2 %v538_v62  ;;  %568 = vmatpush.bf16.msrb.mxu3 %v538_v62 }
 0x21e   :  { %725 = vmatpush.bf16.msra.mxu0 %v538_v62 }
 0x220   :  { %2043 = vmatmul.msk.bf16.vlgmr.msrb.gmra.mxu2 %vm102_vm0, %v2629_v20  ;;  %2045 = vmatmul.msk.bf16.vlgmr.msrb.gmra.mxu3 %vm102_vm0, %v2624_v19 }
 0x221   :  { %662 = vmatpush.bf16.msra.mxu2 %v539_v59  ;;  %701 = vmatpush.bf16.msra.mxu3 %v2353_v3 }
 0x225   :  { %663 = vmatpush.bf16.msra.mxu2 %v538_v62  ;;  %702 = vmatpush.bf16.msra.mxu3 %v2352_v4 }
 0x229   :  { %786 = vmatpush.bf16.msrb.mxu2 %v539_v59  ;;  %825 = vmatpush.bf16.msrb.mxu3 %v2357_v36 }
 0x22d   :  { %787 = vmatpush.bf16.msrb.mxu2 %v538_v62  ;;  %826 = vmatpush.bf16.msrb.mxu3 %v2356_v38 }
 0x230   :  { %2044 = vmatmul.msk.bf16.gmra.mxu2 %vm102_vm0, %v2650_v23  ;;  %2046 = vmatmul.msk.bf16.gmra.mxu3 %vm102_vm0, %v2645_v22 }
 0x240   :  { %2067 = vmatmul.msk.bf16.vlgmr.msra.gmra.mxu2 %vm102_vm0, %v2634_v21 }
 0x241   :  { %946 = vmatpush.bf16.msra.mxu2 %v2361_v0 }
 0x250   :  { %2068 = vmatmul.msk.bf16.gmra.mxu2 %vm102_vm0, %v2655_v24 }
 0x260   :  { %2091 = vmatmul.msk.bf16.vlgmr.msrb.gmra.mxu2 %vm102_vm0, %v2671_v26 }
 0x270   :  { %2092 = vmatmul.msk.bf16.gmra.mxu2 %vm102_vm0, %v2685_v28 }
 0x2a3   :  { %v549_v1 = vpop.f32.mrf.mxu2  ;;  %v570_v2 = vpop.f32.mrf.mxu3 }
 0x2ab   :  { %v551_v5 = vpop.f32.mrf.mxu2  ;;  %v572_v6 = vpop.f32.mrf.mxu3 }
 0x2ac   :  { %v559_v7 = vpack.c.bf16 %v551_v5, %v549_v1  ;;  %v580_v8 = vpack.c.bf16 %v572_v6, %v570_v2  ;;  %v2360_v2 = vld [vmem:[%s3019_s8 + $0x10] sm:$0xff] }
 0x2ad   :  { %947 = vmatpush.bf16.msra.mxu2 %v2360_v2 }
 0x2ae   :  { %2055 = vmatmul.msk.bf16.vlgmr.msrb.gmra.mxu0 %vm102_vm0, %v580_v8  ;;  %2065 = vmatmul.msk.bf16.vlgmr.msrb.gmra.mxu1 %vm102_vm0, %v559_v7 }
 0x2b3   :  { %v554_v9 = vpop.f32.mrf.mxu2  ;;  %v575_v11 = vpop.f32.mrf.mxu3 }
 0x2bb   :  { %v556_v13 = vpop.f32.mrf.mxu2  ;;  %v577_v15 = vpop.f32.mrf.mxu3 }
 0x2bc   :  { %v560_v17 = vpack.c.bf16 %v556_v13, %v554_v9  ;;  %v581_v18 = vpack.c.bf16 %v577_v15, %v575_v11 }
 0x2be   :  { %2056 = vmatmul.msk.bf16.gmra.mxu0 %vm102_vm0, %v581_v18  ;;  %2066 = vmatmul.msk.bf16.gmra.mxu1 %vm102_vm0, %v560_v17 }
 0x2c3   :  { %v665_v29 = vpop.f32.mrf.mxu2 }
 0x2cb   :  { %v667_v30 = vpop.f32.mrf.mxu2 }
 0x2cc   :  { %v675_v31 = vpack.c.bf16 %v667_v30, %v665_v29 }
 0x2ce   :  { %2077 = vmatmul.msk.bf16.vlgmr.msra.gmra.mxu3 %vm102_vm0, %v675_v31  ;;  %2079 = vmatmul.msk.bf16.vlgmr.msra.gmra.mxu0 %vm102_vm0, %v2666_v25 }
 0x2d3   :  { %v670_v32 = vpop.f32.mrf.mxu2 }
 0x2db   :  { %v672_v33 = vpop.f32.mrf.mxu2 }
 0x2dc   :  { %v676_v34 = vpack.c.bf16 %v672_v33, %v670_v32  ;;  %v2396_v33 = vld [vmem:[%s3018_s7] ss:$0 sm:$0xff] }
 0x2de   :  { %2078 = vmatmul.msk.bf16.gmra.mxu3 %vm102_vm0, %v676_v34  ;;  %2080 = vmatmul.msk.bf16.gmra.mxu0 %vm102_vm0, %v2680_v27 }
 0x2e3   :  { %v789_v35 = vpop.f32.mrf.mxu2 }
 0x2eb   :  { %v791_v37 = vpop.f32.mrf.mxu2 }
 0x2ec   :  { %v799_v39 = vpack.c.bf16 %v791_v37, %v789_v35 }
 0x2ee   :  { %2101 = vmatmul.msk.bf16.vlgmr.msrb.gmra.mxu3 %vm102_vm0, %v799_v39 }
 0x2f3   :  { %v794_v40 = vpop.f32.mrf.mxu2 }
 0x2fb   :  { %v796_v43 = vpop.f32.mrf.mxu2 }
 0x2fc   :  { %v800_v44 = vpack.c.bf16 %v796_v43, %v794_v40 }
 0x2fe   :  { %2102 = vmatmul.msk.bf16.gmra.mxu3 %vm102_vm0, %v800_v44 }
 0x32b   :  { %v609_v41 = vpop.f32.mrf.mxu0  ;;  %v646_v56 = vpop.f32.mrf.mxu1 }
 0x32c   :  { %v647_v13 = vadd.f32 %v646_v56, %v609_v41 }
 0x333   :  { %v611_v46 = vpop.f32.mrf.mxu0  ;;  %v648_v58 = vpop.f32.mrf.mxu1 }
 0x334   :  { %v649_v9 = vadd.f32 %v648_v58, %v611_v46 }
 0x33b   :  { %v614_v47 = vpop.f32.mrf.mxu0  ;;  %v651_v60 = vpop.f32.mrf.mxu1 }
 0x33c   :  { %v652_v5 = vadd.f32 %v651_v60, %v614_v47 }
 0x343   :  { %v616_v48 = vpop.f32.mrf.mxu0  ;;  %v653_v62 = vpop.f32.mrf.mxu1 }
 0x344   :  { %v654_v17 = vadd.f32 %v653_v62, %v616_v48 }
 0x34b   :  { %v727_v49 = vpop.f32.mrf.mxu0 }
 0x351   :  { %v704_v55 = vpop.f32.mrf.mxu3 }
 0x352   :  { %v714_v18 = vadd.f32 %v704_v55, %v647_v13  ;;  %v2362_v55 = vld [vmem:[%s3019_s8 + $0x20] sm:$0xff] }
 0x353   :  { %v729_v50 = vpop.f32.mrf.mxu0 }
 0x354   :  { %v737_v51 = vpack.c.bf16 %v729_v50, %v727_v49  ;;  %v2359_v50 = vld [vmem:[%s3019_s8 + $0x8] sm:$0xff] }
 0x355   :  { %983 = vmatpush.bf16.msra.mxu3 %v2359_v50 }
 0x356   :  { %2089 = vmatmul.msk.bf16.vlgmr.msra.gmra.mxu1 %vm102_vm0, %v737_v51  ;;  %v2358_v51 = vld [vmem:[%s3019_s8] sm:$0xff] }
 0x359   :  { %v706_v57 = vpop.f32.mrf.mxu3  ;;  %984 = vmatpush.bf16.msra.mxu3 %v2358_v51  ;;  %v2371_v51 = vld [vmem:[%s3021_s10 + $0x18] sm:$0xff] }
 0x35a   :  { %v715_v15 = vadd.f32 %v706_v57, %v649_v9  ;;  %v2367_v9 = vld [vmem:[%s3019_s8 + $0x48] sm:$0xff] }
 0x35b   :  { %v732_v52 = vpop.f32.mrf.mxu0 }
 0x361   :  { %v709_v59 = vpop.f32.mrf.mxu3 }
 0x362   :  { %v716_v6 = vadd.f32 %v709_v59, %v652_v5 }
 0x363   :  { %v734_v53 = vpop.f32.mrf.mxu0 }
 0x364   :  { %v738_v54 = vpack.c.bf16 %v734_v53, %v732_v52 }
 0x366   :  { %2090 = vmatmul.msk.bf16.gmra.mxu1 %vm102_vm0, %v738_v54  ;;  %v2363_v54 = vld [vmem:[%s3019_s8 + $0x28] sm:$0xff] }
 0x369   :  { %v711_v61 = vpop.f32.mrf.mxu3 }
 0x36a   :  { %v717_v31 = vadd.f32 %v711_v61, %v654_v17 }
 0x371   :  { %v828_v63 = vpop.f32.mrf.mxu3 }
 0x379   :  { %v830_v3 = vpop.f32.mrf.mxu3 }
 0x381   :  { %v833_v7 = vpop.f32.mrf.mxu3 }
 0x389   :  { %v835_v37 = vpop.f32.mrf.mxu3 }
 0x3d3   :  { %v766_v1 = vpop.f32.mrf.mxu1 }
 0x3d4   :  { %v776_v32 = vadd.f32 %v766_v1, %v714_v18  ;;  %v2365_v18 = vld [vmem:[%s3019_s8 + $0x38] sm:$0xff] }
 0x3d5   :  { %1103 = vmatpush.bf16.msrb.mxu3 %v2365_v18 }
 0x3d6   :  { %v838_v39 = vadd.f32 %v828_v63, %v776_v32 }
 0x3d8   :  { %v845_v43 = vadd.f32 %v2396_v33, %v838_v39 }
 0x3db   :  { %v768_v4 = vpop.f32.mrf.mxu1 }
 0x3dc   :  { %v777_v29 = vadd.f32 %v768_v4, %v715_v15 }
 0x3de   :  { %v839_v35 = vadd.f32 %v830_v3, %v777_v29  ;;  %v2364_v29 = vld [vmem:[%s3019_s8 + $0x30] sm:$0xff] }
 0x3df   :  { %1104 = vmatpush.bf16.msrb.mxu3 %v2364_v29 }
 0x3e0   :  { %v846_v42 = vadd.f32 %v2396_v33, %v839_v35 }
 0x3e3   :  { %v771_v8 = vpop.f32.mrf.mxu1 }
 0x3e4   :  { %v778_v11 = vadd.f32 %v771_v8, %v716_v6 }
 0x3e6   :  { %v840_v30 = vadd.f32 %v833_v7, %v778_v11  ;;  %v2366_v11 = vld [vmem:[%s3019_s8 + $0x40] sm:$0xff] }
 0x3e8   :  { %v847_v38 = vadd.f32 %v2396_v33, %v840_v30 }
 0x3ea   :  { %2408 = vtanh.f32 %v847_v38 }
 0x3eb   :  { %v773_v34 = vpop.f32.mrf.mxu1 }
 0x3ec   :  { %v779_v36 = vadd.f32 %v773_v34, %v717_v31 }
 0x3ee   :  { %v841_v40 = vadd.f32 %v835_v37, %v779_v36 }
 0x3f0   :  { %v848_v41 = vadd.f32 %v2396_v33, %v841_v40  ;;  %v2409_v44 = vpop.eup %2408 }
 0x3f2   :  { %2410 = vtanh.f32 %v848_v41 }
 0x3f3   :  { %2412 = vtanh.f32 %v846_v42 }
 0x3f4   :  { %2414 = vtanh.f32 %v845_v43 }
 0x3f8   :  { %v2411_v45 = vpop.eup %2410 }
 0x3f9   :  { %v879_v46 = vpack.c.bf16 %v2411_v45, %v2409_v44  ;;  %v2413_v47 = vpop.eup %2412 }
 0x3fa   :  { %v2415_v48 = vpop.eup %2414 }
 0x3fb   :  { %886 = vmatpush.bf16.msrb.mxu0 %v879_v46  ;;  %907 = vmatpush.bf16.msrb.mxu1 %v879_v46  ;;  %v878_v49 = vpack.c.bf16 %v2413_v47, %v2415_v48 }
 0x3fc   :  { %1064 = vmatpush.bf16.msrb.mxu2 %v879_v46 }
 0x3ff   :  { %887 = vmatpush.bf16.msrb.mxu0 %v878_v49  ;;  %908 = vmatpush.bf16.msrb.mxu1 %v878_v49 }
 0x400   :  { %1065 = vmatpush.bf16.msrb.mxu2 %v878_v49 }
 0x402   :  { %2119 = vmatmul.msk.bf16.vlgmr.msrb.gmra.mxu0 %vm102_vm0, %v2629_v20  ;;  %2121 = vmatmul.msk.bf16.vlgmr.msrb.gmra.mxu1 %vm102_vm0, %v2624_v19 }
 0x403   :  { %1002 = vmatpush.bf16.msra.mxu0 %v879_v46  ;;  %1041 = vmatpush.bf16.msra.mxu1 %v2363_v54 }
 0x407   :  { %1003 = vmatpush.bf16.msra.mxu0 %v878_v49  ;;  %1042 = vmatpush.bf16.msra.mxu1 %v2362_v55 }
 0x40b   :  { %1126 = vmatpush.bf16.msrb.mxu0 %v879_v46  ;;  %1165 = vmatpush.bf16.msrb.mxu1 %v2367_v9 }
 0x40f   :  { %1127 = vmatpush.bf16.msrb.mxu0 %v878_v49  ;;  %1166 = vmatpush.bf16.msrb.mxu1 %v2366_v11 }
 0x412   :  { %2120 = vmatmul.msk.bf16.gmra.mxu0 %vm102_vm0, %v2650_v23  ;;  %2122 = vmatmul.msk.bf16.gmra.mxu1 %vm102_vm0, %v2645_v22 }
 0x422   :  { %2143 = vmatmul.msk.bf16.vlgmr.msra.gmra.mxu0 %vm102_vm0, %v2634_v21 }
 0x423   :  { %1286 = vmatpush.bf16.msra.mxu0 %v2371_v51 }
 0x432   :  { %2144 = vmatmul.msk.bf16.gmra.mxu0 %vm102_vm0, %v2655_v24 }
 0x442   :  { %2167 = vmatmul.msk.bf16.vlgmr.msrb.gmra.mxu0 %vm102_vm0, %v2671_v26 }
 0x452   :  { %2168 = vmatmul.msk.bf16.gmra.mxu0 %vm102_vm0, %v2685_v28 }
 0x47f   :  { %v889_v52 = vpop.f32.mrf.mxu0  ;;  %v910_v53 = vpop.f32.mrf.mxu1 }
 0x487   :  { %v891_v56 = vpop.f32.mrf.mxu0  ;;  %v912_v57 = vpop.f32.mrf.mxu1 }
 0x488   :  { %v899_v58 = vpack.c.bf16 %v891_v56, %v889_v52  ;;  %v920_v59 = vpack.c.bf16 %v912_v57, %v910_v53  ;;  %v2370_v53 = vld [vmem:[%s3021_s10 + $0x10] sm:$0xff] }
 0x489   :  { %1287 = vmatpush.bf16.msra.mxu0 %v2370_v53 }
 0x48a   :  { %2131 = vmatmul.msk.bf16.vlgmr.msra.gmra.mxu2 %vm102_vm0, %v920_v59  ;;  %2141 = vmatmul.msk.bf16.vlgmr.msra.gmra.mxu3 %vm102_vm0, %v899_v58 }
 0x48f   :  { %v894_v60 = vpop.f32.mrf.mxu0  ;;  %v915_v61 = vpop.f32.mrf.mxu1 }
 0x497   :  { %v896_v62 = vpop.f32.mrf.mxu0  ;;  %v917_v63 = vpop.f32.mrf.mxu1 }
 0x498   :  { %v900_v0 = vpack.c.bf16 %v896_v62, %v894_v60  ;;  %v921_v1 = vpack.c.bf16 %v917_v63, %v915_v61 }
 0x49a   :  { %2132 = vmatmul.msk.bf16.gmra.mxu2 %vm102_vm0, %v921_v1  ;;  %2142 = vmatmul.msk.bf16.gmra.mxu3 %vm102_vm0, %v900_v0 }
 0x49f   :  { %v1005_v2 = vpop.f32.mrf.mxu0 }
 0x4a7   :  { %v1007_v3 = vpop.f32.mrf.mxu0 }
 0x4a8   :  { %v1015_v4 = vpack.c.bf16 %v1007_v3, %v1005_v2 }
 0x4aa   :  { %2153 = vmatmul.msk.bf16.vlgmr.msra.gmra.mxu1 %vm102_vm0, %v1015_v4  ;;  %2155 = vmatmul.msk.bf16.vlgmr.msrb.gmra.mxu2 %vm102_vm0, %v2666_v25 }
 0x4af   :  { %v1010_v5 = vpop.f32.mrf.mxu0 }
 0x4b7   :  { %v1012_v6 = vpop.f32.mrf.mxu0 }
 0x4b8   :  { %v1016_v7 = vpack.c.bf16 %v1012_v6, %v1010_v5  ;;  %v2397_v6 = vld [vmem:[%s3020_s9] ss:$0 sm:$0xff] }
 0x4ba   :  { %2154 = vmatmul.msk.bf16.gmra.mxu1 %vm102_vm0, %v1016_v7  ;;  %2156 = vmatmul.msk.bf16.gmra.mxu2 %vm102_vm0, %v2680_v27 }
 0x4bf   :  { %v1129_v8 = vpop.f32.mrf.mxu0 }
 0x4c7   :  { %v1131_v15 = vpop.f32.mrf.mxu0 }
 0x4c8   :  { %v1139_v17 = vpack.c.bf16 %v1131_v15, %v1129_v8 }
 0x4ca   :  { %2177 = vmatmul.msk.bf16.vlgmr.msrb.gmra.mxu1 %vm102_vm0, %v1139_v17 }
 0x4cf   :  { %v1134_v31 = vpop.f32.mrf.mxu0 }
 0x4d7   :  { %v1136_v33 = vpop.f32.mrf.mxu0 }
 0x4d8   :  { %v1140_v34 = vpack.c.bf16 %v1136_v33, %v1134_v31 }
 0x4da   :  { %2178 = vmatmul.msk.bf16.gmra.mxu1 %vm102_vm0, %v1140_v34 }
 0x50d   :  { %v949_v13 = vpop.f32.mrf.mxu2  ;;  %v986_v43 = vpop.f32.mrf.mxu3 }
 0x50e   :  { %v987_v62 = vadd.f32 %v986_v43, %v949_v13 }
 0x515   :  { %v951_v30 = vpop.f32.mrf.mxu2  ;;  %v988_v45 = vpop.f32.mrf.mxu3 }
 0x516   :  { %v989_v60 = vadd.f32 %v988_v45, %v951_v30 }
 0x51d   :  { %v954_v32 = vpop.f32.mrf.mxu2  ;;  %v991_v47 = vpop.f32.mrf.mxu3 }
 0x51e   :  { %v992_v56 = vadd.f32 %v991_v47, %v954_v32 }
 0x525   :  { %v956_v35 = vpop.f32.mrf.mxu2  ;;  %v993_v49 = vpop.f32.mrf.mxu3 }
 0x526   :  { %v994_v0 = vadd.f32 %v993_v49, %v956_v35 }
 0x527   :  { %v1044_v41 = vpop.f32.mrf.mxu1 }
 0x528   :  { %v1054_v1 = vadd.f32 %v1044_v41, %v987_v62 }
 0x52d   :  { %v1067_v36 = vpop.f32.mrf.mxu2 }
 0x52f   :  { %v1046_v44 = vpop.f32.mrf.mxu1 }
 0x530   :  { %v1055_v63 = vadd.f32 %v1046_v44, %v989_v60 }
 0x535   :  { %v1069_v37 = vpop.f32.mrf.mxu2 }
 0x536   :  { %v1077_v38 = vpack.c.bf16 %v1069_v37, %v1067_v36 }
 0x537   :  { %v1049_v46 = vpop.f32.mrf.mxu1 }
 0x538   :  { %2165 = vmatmul.msk.bf16.vlgmr.msrb.gmra.mxu3 %vm102_vm0, %v1077_v38  ;;  %v1056_v57 = vadd.f32 %v1049_v46, %v992_v56 }
 0x53d   :  { %v1072_v39 = vpop.f32.mrf.mxu2 }
 0x53f   :  { %v1051_v48 = vpop.f32.mrf.mxu1 }
 0x540   :  { %v1057_v4 = vadd.f32 %v1051_v48, %v994_v0 }
 0x545   :  { %v1074_v40 = vpop.f32.mrf.mxu2 }
 0x546   :  { %v1078_v42 = vpack.c.bf16 %v1074_v40, %v1072_v39 }
 0x547   :  { %v1168_v50 = vpop.f32.mrf.mxu1 }
 0x548   :  { %2166 = vmatmul.msk.bf16.gmra.mxu3 %vm102_vm0, %v1078_v42 }
 0x54f   :  { %v1170_v54 = vpop.f32.mrf.mxu1 }
 0x557   :  { %v1173_v58 = vpop.f32.mrf.mxu1 }
 0x55f   :  { %v1175_v11 = vpop.f32.mrf.mxu1 }
 0x5bb   :  { %v1106_v52 = vpop.f32.mrf.mxu3 }
 0x5bc   :  { %v1116_v5 = vadd.f32 %v1106_v52, %v1054_v1  ;;  %v2377_v52 = vld [vmem:[%s3021_s10 + $0x48] sm:$0xff] }
 0x5be   :  { %v1178_v17 = vadd.f32 %v1168_v50, %v1116_v5 }
 0x5c0   :  { %v1185_v30 = vadd.f32 %v2397_v6, %v1178_v17 }
 0x5c3   :  { %v1108_v55 = vpop.f32.mrf.mxu3 }
 0x5c4   :  { %v1117_v2 = vadd.f32 %v1108_v55, %v1055_v63 }
 0x5c6   :  { %v1179_v8 = vadd.f32 %v1170_v54, %v1117_v2  ;;  %v2376_v54 = vld [vmem:[%s3021_s10 + $0x40] sm:$0xff] }
 0x5c8   :  { %v1186_v29 = vadd.f32 %v2397_v6, %v1179_v8 }
 0x5cb   :  { %v1111_v59 = vpop.f32.mrf.mxu3 }
 0x5cc   :  { %v1118_v61 = vadd.f32 %v1111_v59, %v1056_v57  ;;  %v2374_v59 = vld [vmem:[%s3021_s10 + $0x30] sm:$0xff] }
 0x5ce   :  { %v1180_v3 = vadd.f32 %v1173_v58, %v1118_v61 }
 0x5d0   :  { %v1187_v15 = vadd.f32 %v2397_v6, %v1180_v3 }
 0x5d2   :  { %2416 = vtanh.f32 %v1187_v15 }
 0x5d3   :  { %v1113_v7 = vpop.f32.mrf.mxu3 }
 0x5d4   :  { %v1119_v9 = vadd.f32 %v1113_v7, %v1057_v4 }
 0x5d6   :  { %v1181_v18 = vadd.f32 %v1175_v11, %v1119_v9 }
 0x5d8   :  { %v1188_v13 = vadd.f32 %v2397_v6, %v1181_v18  ;;  %v2417_v31 = vpop.eup %2416 }
 0x5da   :  { %2418 = vtanh.f32 %v1188_v13  ;;  %v2381_v13 = vld [vmem:[%s3023_s12 + $0x18] sm:$0xff] }
 0x5db   :  { %2420 = vtanh.f32 %v1186_v29 }
 0x5dc   :  { %2422 = vtanh.f32 %v1185_v30 }
 0x5e0   :  { %v2419_v32 = vpop.eup %2418 }
 0x5e1   :  { %v1219_v33 = vpack.c.bf16 %v2419_v32, %v2417_v31  ;;  %v2421_v34 = vpop.eup %2420  ;;  %v2380_v32 = vld [vmem:[%s3023_s12 + $0x10] sm:$0xff] }
 0x5e2   :  { %v2423_v35 = vpop.eup %2422 }
 0x5e3   :  { %1226 = vmatpush.bf16.msra.mxu2 %v1219_v33  ;;  %1247 = vmatpush.bf16.msra.mxu3 %v1219_v33  ;;  %v1218_v36 = vpack.c.bf16 %v2421_v34, %v2423_v35 }
 0x5e4   :  { %1404 = vmatpush.bf16.msrb.mxu0 %v1219_v33 }
 0x5e7   :  { %1227 = vmatpush.bf16.msra.mxu2 %v1218_v36  ;;  %1248 = vmatpush.bf16.msra.mxu3 %v1218_v36 }
 0x5e8   :  { %1405 = vmatpush.bf16.msrb.mxu0 %v1218_v36 }
 0x5ea   :  { %2195 = vmatmul.msk.bf16.vlgmr.msra.gmra.mxu2 %vm102_vm0, %v2629_v20  ;;  %2197 = vmatmul.msk.bf16.vlgmr.msra.gmra.mxu3 %vm102_vm0, %v2624_v19  ;;  %v2369_v19 = vld [vmem:[%s3021_s10 + $0x8] sm:$0xff]  ;;  %v2368_v20 = vld [vmem:[%s3021_s10] sm:$0xff] }
 0x5eb   :  { %1342 = vmatpush.bf16.msrb.mxu2 %v1219_v33  ;;  %1323 = vmatpush.bf16.msra.mxu1 %v2369_v19  ;;  %v2398_v19 = vld [vmem:[%s3022_s11] ss:$0 sm:$0xff] }
 0x5ef   :  { %1343 = vmatpush.bf16.msrb.mxu2 %v1218_v36  ;;  %1324 = vmatpush.bf16.msra.mxu1 %v2368_v20 }
 0x5f3   :  { %1466 = vmatpush.bf16.msra.mxu2 %v1219_v33 }
 0x5f7   :  { %1467 = vmatpush.bf16.msra.mxu2 %v1218_v36 }
 0x5fa   :  { %2196 = vmatmul.msk.bf16.gmra.mxu2 %vm102_vm0, %v2650_v23  ;;  %2198 = vmatmul.msk.bf16.gmra.mxu3 %vm102_vm0, %v2645_v22  ;;  %v2373_v23 = vld [vmem:[%s3021_s10 + $0x28] sm:$0xff] }
 0x5fb   :  { %1381 = vmatpush.bf16.msrb.mxu3 %v2373_v23 }
 0x60a   :  { %2219 = vmatmul.msk.bf16.vlgmr.msrb.gmra.mxu2 %vm102_vm0, %v2634_v21 }
 0x60b   :  { %1626 = vmatpush.bf16.msrb.mxu2 %v2381_v13 }
 0x60f   :  { %1627 = vmatpush.bf16.msrb.mxu2 %v2380_v32 }
 0x61a   :  { %2220 = vmatmul.msk.bf16.gmra.mxu2 %vm102_vm0, %v2655_v24  ;;  %v2372_v24 = vld [vmem:[%s3021_s10 + $0x20] sm:$0xff] }
 0x61b   :  { %1382 = vmatpush.bf16.msrb.mxu3 %v2372_v24 }
 0x61f   :  { %1505 = vmatpush.bf16.msra.mxu3 %v2377_v52 }
 0x623   :  { %1506 = vmatpush.bf16.msra.mxu3 %v2376_v54 }
 0x62a   :  { %2243 = vmatmul.msk.bf16.vlgmr.msra.gmra.mxu2 %vm102_vm0, %v2671_v26 }
 0x63a   :  { %2244 = vmatmul.msk.bf16.gmra.mxu2 %vm102_vm0, %v2685_v28 }
 0x66d   :  { %v1229_v21 = vpop.f32.mrf.mxu2  ;;  %v1250_v22 = vpop.f32.mrf.mxu3 }
 0x675   :  { %v1231_v26 = vpop.f32.mrf.mxu2  ;;  %v1252_v28 = vpop.f32.mrf.mxu3 }
 0x676   :  { %v1239_v37 = vpack.c.bf16 %v1231_v26, %v1229_v21  ;;  %v1260_v38 = vpack.c.bf16 %v1252_v28, %v1250_v22 }
 0x678   :  { %2207 = vmatmul.msk.bf16.vlgmr.msra.gmra.mxu0 %vm102_vm0, %v1260_v38  ;;  %2217 = vmatmul.msk.bf16.vlgmr.msra.gmra.mxu1 %vm102_vm0, %v1239_v37 }
 0x67d   :  { %v1234_v39 = vpop.f32.mrf.mxu2  ;;  %v1255_v40 = vpop.f32.mrf.mxu3 }
 0x685   :  { %v1236_v42 = vpop.f32.mrf.mxu2  ;;  %v1257_v41 = vpop.f32.mrf.mxu3 }
 0x686   :  { %v1240_v43 = vpack.c.bf16 %v1236_v42, %v1234_v39  ;;  %v1261_v44 = vpack.c.bf16 %v1257_v41, %v1255_v40 }
 0x688   :  { %2208 = vmatmul.msk.bf16.gmra.mxu0 %vm102_vm0, %v1261_v44  ;;  %2218 = vmatmul.msk.bf16.gmra.mxu1 %vm102_vm0, %v1240_v43 }
 0x68d   :  { %v1345_v45 = vpop.f32.mrf.mxu2 }
 0x695   :  { %v1347_v46 = vpop.f32.mrf.mxu2 }
 0x696   :  { %v1355_v47 = vpack.c.bf16 %v1347_v46, %v1345_v45 }
 0x698   :  { %2229 = vmatmul.msk.bf16.vlgmr.msrb.gmra.mxu3 %vm102_vm0, %v1355_v47  ;;  %2231 = vmatmul.msk.bf16.vlgmr.msrb.gmra.mxu0 %vm102_vm0, %v2666_v25 }
 0x69d   :  { %v1350_v48 = vpop.f32.mrf.mxu2 }
 0x6a5   :  { %v1352_v49 = vpop.f32.mrf.mxu2 }
 0x6a6   :  { %v1356_v50 = vpack.c.bf16 %v1352_v49, %v1350_v48 }
 0x6a8   :  { %2230 = vmatmul.msk.bf16.gmra.mxu3 %vm102_vm0, %v1356_v50  ;;  %2232 = vmatmul.msk.bf16.gmra.mxu0 %vm102_vm0, %v2680_v27  ;;  %v2375_v27 = vld [vmem:[%s3021_s10 + $0x38] sm:$0xff] }
 0x6a9   :  { %1443 = vmatpush.bf16.msrb.mxu1 %v2375_v27  ;;  %v2434_v27 = vld [vmem:[%s3012_s1 + $0x8] sm:$0xff] }
 0x6ad   :  { %v1469_v51 = vpop.f32.mrf.mxu2  ;;  %1444 = vmatpush.bf16.msrb.mxu1 %v2374_v59  ;;  %v2437_v59 = vld [vmem:[%s3012_s1 + $0x28] sm:$0xff] }
 0x6b5   :  { %v1471_v53 = vpop.f32.mrf.mxu2 }
 0x6b6   :  { %v1479_v25 = vpack.c.bf16 %v1471_v53, %v1469_v51 }
 0x6b8   :  { %2253 = vmatmul.msk.bf16.vlgmr.msra.gmra.mxu3 %vm102_vm0, %v1479_v25 }
 0x6bd   :  { %v1474_v55 = vpop.f32.mrf.mxu2 }
 0x6c5   :  { %v1476_v57 = vpop.f32.mrf.mxu2 }
 0x6c6   :  { %v1480_v58 = vpack.c.bf16 %v1476_v57, %v1474_v55  ;;  %v2432_v55 = vld [vmem:[%s3012_s1] sm:$0xff]  ;;  %v2435_v57 = vld [vmem:[%s3012_s1 + $0x18] sm:$0xff] }
 0x6c8   :  { %2254 = vmatmul.msk.bf16.gmra.mxu3 %vm102_vm0, %v1480_v58  ;;  %v2436_v58 = vld [vmem:[%s3012_s1 + $0x20] sm:$0xff] }
 0x6f5   :  { %v1289_v56 = vpop.f32.mrf.mxu0  ;;  %v1326_v6 = vpop.f32.mrf.mxu1 }
 0x6f6   :  { %v1327_v29 = vadd.f32 %v1326_v6, %v1289_v56  ;;  %v2433_v56 = vld [vmem:[%s3012_s1 + $0x10] sm:$0xff] }
 0x6fd   :  { %v1291_v60 = vpop.f32.mrf.mxu0  ;;  %v1328_v8 = vpop.f32.mrf.mxu1 }
 0x6fe   :  { %v1329_v34 = vadd.f32 %v1328_v8, %v1291_v60  ;;  %v2438_v60 = vld [vmem:[%s3012_s1 + $0x40] sm:$0xff] }
 0x705   :  { %v1294_v61 = vpop.f32.mrf.mxu0  ;;  %v1331_v11 = vpop.f32.mrf.mxu1 }
 0x706   :  { %v1332_v28 = vadd.f32 %v1331_v11, %v1294_v61  ;;  %v2439_v61 = vld [vmem:[%s3012_s1 + $0x48] sm:$0xff] }
 0x70d   :  { %v1296_v62 = vpop.f32.mrf.mxu0  ;;  %v1333_v17 = vpop.f32.mrf.mxu1 }
 0x70e   :  { %v1334_v43 = vadd.f32 %v1333_v17, %v1296_v62  ;;  %v2379_v62 = vld [vmem:[%s3023_s12 + $0x8] sm:$0xff] }
 0x70f   :  { %1663 = vmatpush.bf16.msrb.mxu3 %v2379_v62 }
 0x715   :  { %v1407_v63 = vpop.f32.mrf.mxu0 }
 0x71b   :  { %v1384_v5 = vpop.f32.mrf.mxu3 }
 0x71c   :  { %v1394_v30 = vadd.f32 %v1384_v5, %v1327_v29 }
 0x71d   :  { %v1409_v0 = vpop.f32.mrf.mxu0 }
 0x71e   :  { %v1417_v1 = vpack.c.bf16 %v1409_v0, %v1407_v63  ;;  %v2378_v63 = vld [vmem:[%s3023_s12] sm:$0xff] }
 0x71f   :  { %1664 = vmatpush.bf16.msrb.mxu3 %v2378_v63 }
 0x720   :  { %2241 = vmatmul.msk.bf16.vlgmr.msrb.gmra.mxu1 %vm102_vm0, %v1417_v1 }
 0x723   :  { %v1386_v7 = vpop.f32.mrf.mxu3 }
 0x724   :  { %v1395_v20 = vadd.f32 %v1386_v7, %v1329_v34 }
 0x725   :  { %v1412_v2 = vpop.f32.mrf.mxu0 }
 0x72b   :  { %v1389_v9 = vpop.f32.mrf.mxu3 }
 0x72c   :  { %v1396_v37 = vadd.f32 %v1389_v9, %v1332_v28 }
 0x72d   :  { %v1414_v3 = vpop.f32.mrf.mxu0 }
 0x72e   :  { %v1418_v4 = vpack.c.bf16 %v1414_v3, %v1412_v2  ;;  %v2383_v2 = vld [vmem:[%s3023_s12 + $0x28] sm:$0xff]  ;;  %v2382_v3 = vld [vmem:[%s3023_s12 + $0x20] sm:$0xff] }
 0x730   :  { %2242 = vmatmul.msk.bf16.gmra.mxu1 %vm102_vm0, %v1418_v4 }
 0x733   :  { %v1391_v15 = vpop.f32.mrf.mxu3 }
 0x734   :  { %v1397_v46 = vadd.f32 %v1391_v15, %v1334_v43 }
 0x73b   :  { %v1508_v18 = vpop.f32.mrf.mxu3 }
 0x743   :  { %v1510_v35 = vpop.f32.mrf.mxu3 }
 0x74b   :  { %v1513_v38 = vpop.f32.mrf.mxu3 }
 0x753   :  { %v1515_v49 = vpop.f32.mrf.mxu3 }
 0x79d   :  { %v1446_v31 = vpop.f32.mrf.mxu1 }
 0x79e   :  { %v1456_v33 = vadd.f32 %v1446_v31, %v1394_v30  ;;  %v2440_v31 = vld [vmem:[%s3012_s1 + $0x30] sm:$0xff] }
 0x7a0   :  { %v1518_v36 = vadd.f32 %v1508_v18, %v1456_v33 }
 0x7a2   :  { %v1525_v23 = vadd.f32 %v2398_v19, %v1518_v36 }
 0x7a4   :  { %2424 = vtanh.f32 %v1525_v23 }
 0x7a5   :  { %v1448_v21 = vpop.f32.mrf.mxu1 }
 0x7a6   :  { %v1457_v22 = vadd.f32 %v1448_v21, %v1395_v20  ;;  %v2386_v20 = vld [vmem:[%s3023_s12 + $0x40] sm:$0xff] }
 0x7a8   :  { %v1519_v24 = vadd.f32 %v1510_v35, %v1457_v22  ;;  %v2441_v35 = vld [vmem:[%s3012_s1 + $0x38] sm:$0xff] }
 0x7aa   :  { %v1526_v26 = vadd.f32 %v2398_v19, %v1519_v24  ;;  %v2425_v42 = vpop.eup %2424  ;;  %v2385_v24 = vld [vmem:[%s3023_s12 + $0x38] sm:$0xff] }
 0x7ab   :  { %1783 = vmatpush.bf16.msra.mxu3 %v2385_v24 }
 0x7ac   :  { %2426 = vtanh.f32 %v1526_v26  ;;  %v2384_v26 = vld [vmem:[%s3023_s12 + $0x30] sm:$0xff] }
 0x7ad   :  { %v1451_v39 = vpop.f32.mrf.mxu1 }
 0x7ae   :  { %v1458_v40 = vadd.f32 %v1451_v39, %v1396_v37 }
 0x7af   :  { %1784 = vmatpush.bf16.msra.mxu3 %v2384_v26 }
 0x7b0   :  { %v1520_v44 = vadd.f32 %v1513_v38, %v1458_v40 }
 0x7b2   :  { %v2427_v41 = vpop.eup %2426  ;;  %v1527_v50 = vadd.f32 %v2398_v19, %v1520_v44 }
 0x7b3   :  { %v1558_v45 = vpack.c.bf16 %v2427_v41, %v2425_v42 }
 0x7b4   :  { %2428 = vtanh.f32 %v1527_v50 }
 0x7b5   :  { %v1453_v47 = vpop.f32.mrf.mxu1 }
 0x7b6   :  { %v1459_v48 = vadd.f32 %v1453_v47, %v1397_v46 }
 0x7b8   :  { %v1521_v51 = vadd.f32 %v1515_v49, %v1459_v48 }
 0x7ba   :  { %v1528_v52 = vadd.f32 %v2398_v19, %v1521_v51  ;;  %v2429_v53 = vpop.eup %2428  ;;  %v2387_v19 = vld [vmem:[%s3023_s12 + $0x48] sm:$0xff]  ;;  %s2494_s12 = smov [#allocation2]  }
 0x7bb   :  { %s1881_s3 = sshll.u32 %s2494_s12, 4  ;;  %s1882_s3 = int_to_ptr.vmem [resolvable:$true] %s1881_s3 }
 0x7bc   :  { %2430 = vtanh.f32 %v1528_v52  ;;  %1889 = dma.vmem_to_hbm [thread:$0]  %s1882_s3, 512, %s1884_s18, [#allocation3], %s2495_s19, %s2495_s19, %s2496_s20  }
 0x7c2   :  { %v2431_v54 = vpop.eup %2430 }
 0x7c3   :  { %v1559_v25 = vpack.c.bf16 %v2431_v54, %v2429_v53 }
 0x7c5   :  { %1566 = vmatpush.bf16.msra.mxu0 %v1559_v25  ;;  %1587 = vmatpush.bf16.msra.mxu1 %v1559_v25 }
 0x7c6   :  { %1744 = vmatpush.bf16.msra.mxu2 %v1559_v25 }
 0x7c9   :  { %1567 = vmatpush.bf16.msra.mxu0 %v1558_v45  ;;  %1588 = vmatpush.bf16.msra.mxu1 %v1558_v45 }
 0x7ca   :  { %1745 = vmatpush.bf16.msra.mxu2 %v1558_v45 }
 0x7cc   :  { %2271 = vmatmul.msk.bf16.vlgmr.msra.gmra.mxu0 %vm102_vm0, %v2432_v55  ;;  %2273 = vmatmul.msk.bf16.vlgmr.msra.gmra.mxu1 %vm102_vm0, %v2433_v56 }
 0x7cd   :  { %1682 = vmatpush.bf16.msrb.mxu0 %v1559_v25  ;;  %1721 = vmatpush.bf16.msrb.mxu1 %v2383_v2 }
 0x7d1   :  { %1683 = vmatpush.bf16.msrb.mxu0 %v1558_v45  ;;  %1722 = vmatpush.bf16.msrb.mxu1 %v2382_v3 }
 0x7d5   :  { %1806 = vmatpush.bf16.msra.mxu0 %v1559_v25  ;;  %1845 = vmatpush.bf16.msra.mxu1 %v2387_v19 }
 0x7d9   :  { %1807 = vmatpush.bf16.msra.mxu0 %v1558_v45  ;;  %1846 = vmatpush.bf16.msra.mxu1 %v2386_v20 }
 0x7dc   :  { %2272 = vmatmul.msk.bf16.gmra.mxu0 %vm102_vm0, %v2434_v27  ;;  %2274 = vmatmul.msk.bf16.gmra.mxu1 %vm102_vm0, %v2435_v57 }
 0x7ec   :  { %2295 = vmatmul.msk.bf16.vlgmr.msrb.gmra.mxu0 %vm102_vm0, %v2436_v58 }
 0x7fc   :  { %2296 = vmatmul.msk.bf16.gmra.mxu0 %vm102_vm0, %v2437_v59  ;;  %v2399_v59 = vld [vmem:[%s3024_s13] ss:$0 sm:$0xff]  ;;  %s2497_s13 = smov [#allocation4]  }
 0x7fd   :  { %s1894_s22 = sshll.u32 %s2497_s13, 4  ;;  %s1895_s22 = int_to_ptr.vmem [resolvable:$true] %s1894_s22 }
 0x80c   :  { %2319 = vmatmul.msk.bf16.vlgmr.msra.gmra.mxu0 %vm102_vm0, %v2438_v60 }
 0x81c   :  { %2320 = vmatmul.msk.bf16.gmra.mxu0 %vm102_vm0, %v2439_v61 }
 0x849   :  { %v1569_v0 = vpop.f32.mrf.mxu0  ;;  %v1590_v1 = vpop.f32.mrf.mxu1 }
 0x851   :  { %v1571_v4 = vpop.f32.mrf.mxu0  ;;  %v1592_v5 = vpop.f32.mrf.mxu1 }
 0x852   :  { %v1579_v6 = vpack.c.bf16 %v1571_v4, %v1569_v0  ;;  %v1600_v7 = vpack.c.bf16 %v1592_v5, %v1590_v1 }
 0x854   :  { %2283 = vmatmul.msk.bf16.vlgmr.msrb.gmra.mxu2 %vm102_vm0, %v1600_v7  ;;  %2293 = vmatmul.msk.bf16.vlgmr.msrb.gmra.mxu3 %vm102_vm0, %v1579_v6 }
 0x859   :  { %v1574_v8 = vpop.f32.mrf.mxu0  ;;  %v1595_v9 = vpop.f32.mrf.mxu1 }
 0x861   :  { %v1576_v11 = vpop.f32.mrf.mxu0  ;;  %v1597_v15 = vpop.f32.mrf.mxu1 }
 0x862   :  { %v1580_v17 = vpack.c.bf16 %v1576_v11, %v1574_v8  ;;  %v1601_v18 = vpack.c.bf16 %v1597_v15, %v1595_v9 }
 0x864   :  { %2284 = vmatmul.msk.bf16.gmra.mxu2 %vm102_vm0, %v1601_v18  ;;  %2294 = vmatmul.msk.bf16.gmra.mxu3 %vm102_vm0, %v1580_v17 }
 0x869   :  { %v1685_v29 = vpop.f32.mrf.mxu0 }
 0x871   :  { %v1687_v13 = vpop.f32.mrf.mxu0 }
 0x872   :  { %v1695_v30 = vpack.c.bf16 %v1687_v13, %v1685_v29 }
 0x874   :  { %2305 = vmatmul.msk.bf16.vlgmr.msrb.gmra.mxu1 %vm102_vm0, %v1695_v30  ;;  %2307 = vmatmul.msk.bf16.vlgmr.msra.gmra.mxu2 %vm102_vm0, %v2440_v31 }
 0x879   :  { %v1690_v32 = vpop.f32.mrf.mxu0 }
 0x881   :  { %v1692_v33 = vpop.f32.mrf.mxu0 }
 0x882   :  { %v1696_v34 = vpack.c.bf16 %v1692_v33, %v1690_v32 }
 0x884   :  { %2306 = vmatmul.msk.bf16.gmra.mxu1 %vm102_vm0, %v1696_v34  ;;  %2308 = vmatmul.msk.bf16.gmra.mxu2 %vm102_vm0, %v2441_v35 }
 0x889   :  { %v1809_v36 = vpop.f32.mrf.mxu0 }
 0x891   :  { %v1811_v22 = vpop.f32.mrf.mxu0 }
 0x892   :  { %v1819_v23 = vpack.c.bf16 %v1811_v22, %v1809_v36 }
 0x894   :  { %2329 = vmatmul.msk.bf16.vlgmr.msra.gmra.mxu1 %vm102_vm0, %v1819_v23 }
 0x899   :  { %v1814_v37 = vpop.f32.mrf.mxu0 }
 0x8a1   :  { %v1816_v39 = vpop.f32.mrf.mxu0 }
 0x8a2   :  { %v1820_v40 = vpack.c.bf16 %v1816_v39, %v1814_v37 }
 0x8a4   :  { %2330 = vmatmul.msk.bf16.gmra.mxu1 %vm102_vm0, %v1820_v40 }
 0x8d7   :  { %v1629_v21 = vpop.f32.mrf.mxu2  ;;  %v1666_v49 = vpop.f32.mrf.mxu3 }
 0x8d8   :  { %v1667_v56 = vadd.f32 %v1666_v49, %v1629_v21 }
 0x8df   :  { %v1631_v28 = vpop.f32.mrf.mxu2  ;;  %v1668_v51 = vpop.f32.mrf.mxu3 }
 0x8e0   :  { %v1669_v61 = vadd.f32 %v1668_v51, %v1631_v28 }
 0x8e7   :  { %v1634_v38 = vpop.f32.mrf.mxu2  ;;  %v1671_v53 = vpop.f32.mrf.mxu3 }
 0x8e8   :  { %v1672_v5 = vadd.f32 %v1671_v53, %v1634_v38 }
 0x8ef   :  { %v1636_v42 = vpop.f32.mrf.mxu2  ;;  %v1673_v25 = vpop.f32.mrf.mxu3 }
 0x8f0   :  { %v1674_v18 = vadd.f32 %v1673_v25, %v1636_v42 }
 0x8f1   :  { %v1724_v48 = vpop.f32.mrf.mxu1 }
 0x8f2   :  { %v1734_v27 = vadd.f32 %v1724_v48, %v1667_v56 }
 0x8f7   :  { %v1747_v41 = vpop.f32.mrf.mxu2 }
 0x8f9   :  { %v1726_v50 = vpop.f32.mrf.mxu1 }
 0x8fa   :  { %v1735_v0 = vadd.f32 %v1726_v50, %v1669_v61 }
 0x8ff   :  { %v1749_v43 = vpop.f32.mrf.mxu2 }
 0x900   :  { %v1757_v44 = vpack.c.bf16 %v1749_v43, %v1747_v41 }
 0x901   :  { %v1729_v52 = vpop.f32.mrf.mxu1 }
 0x902   :  { %2317 = vmatmul.msk.bf16.vlgmr.msra.gmra.mxu3 %vm102_vm0, %v1757_v44  ;;  %v1736_v7 = vadd.f32 %v1729_v52, %v1672_v5 }
 0x907   :  { %v1752_v45 = vpop.f32.mrf.mxu2 }
 0x909   :  { %v1731_v54 = vpop.f32.mrf.mxu1 }
 0x90a   :  { %v1737_v13 = vadd.f32 %v1731_v54, %v1674_v18 }
 0x90f   :  { %v1754_v46 = vpop.f32.mrf.mxu2 }
 0x910   :  { %v1758_v47 = vpack.c.bf16 %v1754_v46, %v1752_v45 }
 0x911   :  { %v1848_v55 = vpop.f32.mrf.mxu1 }
 0x912   :  { %2318 = vmatmul.msk.bf16.gmra.mxu3 %vm102_vm0, %v1758_v47 }
 0x919   :  { %v1850_v63 = vpop.f32.mrf.mxu1 }
 0x921   :  { %v1853_v11 = vpop.f32.mrf.mxu1 }
 0x929   :  { %v1855_v32 = vpop.f32.mrf.mxu1 }
 0x985   :  { %v1786_v57 = vpop.f32.mrf.mxu3 }
 0x986   :  { %v1796_v58 = vadd.f32 %v1786_v57, %v1734_v27 }
 0x988   :  { %v1858_v60 = vadd.f32 %v1848_v55, %v1796_v58 }
 0x98a   :  { %v1865_v62 = vadd.f32 %v2399_v59, %v1858_v60 }
 0x98c   :  { %v1869_v1 = vadd.f32 %v1865_v62, %v2601_v10 }
 0x98d   :  { %v1788_v2 = vpop.f32.mrf.mxu3 }
 0x98e   :  { %1873 = vst.msk [vmem:[#allocation4] sm:$0xff] %vm128_vm1, %v1869_v1  ;;  %v1797_v3 = vadd.f32 %v1788_v2, %v1735_v0 }
 0x990   :  { %v1859_v4 = vadd.f32 %v1850_v63, %v1797_v3 }
 0x992   :  { %v1866_v6 = vadd.f32 %v2399_v59, %v1859_v4 }
 0x994   :  { %v1870_v8 = vadd.f32 %v1866_v6, %v2609_v14 }
 0x995   :  { %v1791_v9 = vpop.f32.mrf.mxu3 }
 0x996   :  { %1874 = vst.msk [vmem:[#allocation4 + $0x8] sm:$0xff] %vm128_vm1, %v1870_v8  ;;  %v1798_v15 = vadd.f32 %v1791_v9, %v1736_v7 }
 0x998   :  { %v1860_v17 = vadd.f32 %v1853_v11, %v1798_v15 }
 0x99a   :  { %v1867_v29 = vadd.f32 %v2399_v59, %v1860_v17 }
 0x99c   :  { %v1871_v10 = vadd.f32 %v1867_v29, %v2605_v12 }
 0x99d   :  { %v1793_v30 = vpop.f32.mrf.mxu3 }
 0x99e   :  { %1875 = vst.msk [vmem:[#allocation4 + $0x10] sm:$0xff] %vm128_vm1, %v1871_v10  ;;  %v1799_v31 = vadd.f32 %v1793_v30, %v1737_v13 }
 0x9a0   :  { %v1861_v33 = vadd.f32 %v1855_v32, %v1799_v31 }
 0x9a2   :  { %v1868_v14 = vadd.f32 %v2399_v59, %v1861_v33 }
 0x9a4   :  { %v1872_v34 = vadd.f32 %v1868_v14, %v2613_v16 }
 0x9a6   :  { %1876 = vst.msk [vmem:[#allocation4 + $0x18] sm:$0xff] %vm128_vm1, %v1872_v34 }
 0x9a7   :  { %1902 = dma.vmem_to_hbm [thread:$0]  %s1895_s22, 512, %s1897_s25, [#allocation5], %s2495_s19, %s2495_s19, %s2496_s20  }
 0x9a8   :  { %2490 = dma.done.wait [#allocation3], 512  }
 0x9a9   :  { %2491 = vsyncadd [#allocation3], 4294966784 }
 0x9aa   :  { %2492 = dma.done.wait [#allocation5], 512  }
 0x9ab   :  { %2493 = vsyncadd [#allocation5], 4294966784 }
 0x9ac   :  { %1911 = vsyncpa [#allocation3], 1 }
 0x9ad   :  { %1912 = vsyncpa [#allocation5], 1 }

</bundles_post_ra>
